<compile_context>
chip_gen: v7x
topology: tpu7x:2x2x1
jax: 0.10.0
libtpu: 0.0.40
codegen_flags: <defaults>
</compile_context>

<pallas_src>
import functools

import jax
import jax.numpy as jnp
from jax.experimental import pallas as pl
from jax.experimental.pallas import tpu as pltpu

LRELU_SLOPE = 0.2
BN_EPS = 1e-5
VMEM_LIMIT = 32 * 1024 * 1024   # explicit scoped-VMEM limit (safe on v5e/v6e/v7x)


# ---------------------------------------------------------------------------
# Tiling helpers
# ---------------------------------------------------------------------------
def _round_up(x, m):
    return ((x + m - 1) // m) * m


def _pick_m_tile(m, cap):
    """Return (tm, m_pad): tm is a multiple of 8, <= cap, and divides m_pad."""
    m8 = _round_up(m, 8)
    if m8 <= cap:
        return m8, m8
    t = (cap // 8) * 8
    while t >= 128:
        if m8 % t == 0:
            return t, m8
        t -= 8
    t = (cap // 8) * 8           # no good divisor: pad M up to a tile multiple
    return t, _round_up(m, t)


def _pick_divisor_tile(m, cap=1024):
    """m is already a multiple of 8; largest multiple-of-8 divisor <= cap."""
    if m <= cap:
        return m
    t = (cap // 8) * 8
    while t >= 8:
        if m % t == 0:
            return t
        t -= 8
    return 8


def _pick_k_tile(k, cap=4096):
    """Return (tk, k_pad). Prefer a single full-K tile so weights stay resident."""
    if k <= cap:
        return k, k
    for t in (4096, 2048, 1024, 512, 256, 128):
        if t <= cap and k % t == 0:
            return t, k
    t = min(cap, 2048)
    return t, _round_up(k, t)


# ---------------------------------------------------------------------------
# Pallas kernels
# ---------------------------------------------------------------------------
def _leaky(y):
    return jnp.where(y >= 0, y, LRELU_SLOPE * y)


def _conv_kernel_nk1(a_ref, w_ref, b_ref, o_ref, *, apply_lrelu):
    """Single-K-tile conv: direct write, no accumulator scratch."""
    y = jnp.dot(a_ref[...], w_ref[...], preferred_element_type=jnp.float32)
    y = y + b_ref[...]
    if apply_lrelu:
        y = _leaky(y)
    o_ref[...] = y.astype(o_ref.dtype)


def _conv_kernel_acc(a_ref, w_ref, b_ref, o_ref, acc_ref, *, apply_lrelu):
    """Multi-K-tile conv with an f32 VMEM accumulator."""
    k = pl.program_id(2)

    @pl.when(k == 0)
    def _():
        acc_ref[...] = jnp.zeros_like(acc_ref)

    acc_ref[...] += jnp.dot(a_ref[...], w_ref[...],
                            preferred_element_type=jnp.float32)

    @pl.when(k == pl.num_programs(2) - 1)
    def _():
        y = acc_ref[...] + b_ref[...]
        if apply_lrelu:
            y = _leaky(y)
        o_ref[...] = y.astype(o_ref.dtype)


def _conv_stats_kernel_nk1(a_ref, w_ref, b_ref, o_ref, sum_ref, ssq_ref, *,
                           tm, m_valid, mask_rows):
    """Single-K-tile conv fused with per-channel sum / sum-of-squares.

    The stats blocks are indexed only by the Cout axis (outermost grid axis)
    so they stay resident in VMEM while the M axis sweeps.
    """
    i = pl.program_id(1)

    @pl.when(i == 0)
    def _():
        sum_ref[...] = jnp.zeros_like(sum_ref)
        ssq_ref[...] = jnp.zeros_like(ssq_ref)

    y = jnp.dot(a_ref[...], w_ref[...], preferred_element_type=jnp.float32)
    y = y + b_ref[...]
    o_ref[...] = y.astype(o_ref.dtype)

    ys = y
    if mask_rows:  # static: only when M was padded up to the tile multiple
        rows = i * tm + jax.lax.broadcasted_iota(jnp.int32, (tm, 1), 0)
        ys = jnp.where(rows < m_valid, y, 0.0)
    sum_ref[...] += jnp.sum(ys, axis=0, keepdims=True)
    ssq_ref[...] += jnp.sum(ys * ys, axis=0, keepdims=True)


def _conv_stats_kernel_acc(a_ref, w_ref, b_ref, o_ref, sum_ref, ssq_ref,
                           acc_ref, *, tm, m_valid, mask_rows):
    """Multi-K-tile conv + stats (accumulator variant, large-K fallback)."""
    i = pl.program_id(1)
    k = pl.program_id(2)

    @pl.when(k == 0)
    def _():
        acc_ref[...] = jnp.zeros_like(acc_ref)

    @pl.when(jnp.logical_and(i == 0, k == 0))
    def _():
        sum_ref[...] = jnp.zeros_like(sum_ref)
        ssq_ref[...] = jnp.zeros_like(ssq_ref)

    acc_ref[...] += jnp.dot(a_ref[...], w_ref[...],
                            preferred_element_type=jnp.float32)

    @pl.when(k == pl.num_programs(2) - 1)
    def _():
        y = acc_ref[...] + b_ref[...]
        o_ref[...] = y.astype(o_ref.dtype)
        ys = y
        if mask_rows:
            rows = i * tm + jax.lax.broadcasted_iota(jnp.int32, (tm, 1), 0)
            ys = jnp.where(rows < m_valid, y, 0.0)
        sum_ref[...] += jnp.sum(ys, axis=0, keepdims=True)
        ssq_ref[...] += jnp.sum(ys * ys, axis=0, keepdims=True)


def _bn_lrelu_kernel(x_ref, sum_ref, ssq_ref, g_ref, b_ref, o_ref, *, inv_m):
    """Fold batch stats + gamma/beta into scale/shift, apply, then leaky-relu."""
    mean = sum_ref[...] * inv_m
    var = jnp.maximum(ssq_ref[...] * inv_m - mean * mean, 0.0)  # biased var
    scale = g_ref[...] * jax.lax.rsqrt(var + BN_EPS)
    shift = b_ref[...] - mean * scale
    y = x_ref[...].astype(jnp.float32) * scale + shift
    o_ref[...] = _leaky(y).astype(o_ref.dtype)


# ---------------------------------------------------------------------------
# pallas_call wrappers
# ---------------------------------------------------------------------------
def conv_matmul(patches, w2, bias, *, apply_lrelu, compute_stats, out_dtype):
    """patches: (M, K) bf16, w2: (K, Cp) bf16, bias: (Cp,) f32. Cp % 128 == 0."""
    M, K = patches.shape
    Cp = w2.shape[1]

    tk, K_pad = _pick_k_tile(K)
    m_cap = 1024 if tk <= 2048 else 512           # keep double-buffered VMEM small
    tm, M_pad = _pick_m_tile(M, m_cap)
    tn = 256 if (Cp % 256 == 0 and Cp >= 512) else 128   # nj >= 2 when Cp == 256

    if K_pad != K:                                 # exact: zero columns/rows
        patches = jnp.pad(patches, ((0, 0), (0, K_pad - K)))
        w2 = jnp.pad(w2, ((0, K_pad - K), (0, 0)))
    if M_pad != M:
        patches = jnp.pad(patches, ((0, M_pad - M), (0, 0)))

    nj, ni, nk = Cp // tn, M_pad // tm, K_pad // tk
    mask_rows = (M_pad != M)
    bias2 = bias.reshape(1, Cp)

    if nk == 1:
        grid = (nj, ni)
        a_spec = pl.BlockSpec((tm, K_pad), lambda j, i: (i, 0))
        w_spec = pl.BlockSpec((K_pad, tn), lambda j, i: (0, j))   # weight resident
        b_spec = pl.BlockSpec((1, tn), lambda j, i: (0, j))
        o_spec = pl.BlockSpec((tm, tn), lambda j, i: (i, j))
        s_spec = pl.BlockSpec((1, tn), lambda j, i: (0, j))
        scratch = []
        if compute_stats:
            kernel = functools.partial(_conv_stats_kernel_nk1, tm=tm,
                                       m_valid=M, mask_rows=mask_rows)
            dims = ("parallel", "arbitrary")      # stats resident across i
        else:
            kernel = functools.partial(_conv_kernel_nk1, apply_lrelu=apply_lrelu)
            dims = ("parallel", "parallel")       # both v7x TCs even when nj==1
    else:
        grid = (nj, ni, nk)
        a_spec = pl.BlockSpec((tm, tk), lambda j, i, k: (i, k))
        w_spec = pl.BlockSpec((tk, tn), lambda j, i, k: (k, j))
        b_spec = pl.BlockSpec((1, tn), lambda j, i, k: (0, j))
        o_spec = pl.BlockSpec((tm, tn), lambda j, i, k: (i, j))
        s_spec = pl.BlockSpec((1, tn), lambda j, i, k: (0, j))
        scratch = [pltpu.VMEM((tm, tn), jnp.float32)]
        if compute_stats:
            kernel = functools.partial(_conv_stats_kernel_acc, tm=tm,
                                       m_valid=M, mask_rows=mask_rows)
            dims = ("parallel", "arbitrary", "arbitrary")
        else:
            kernel = functools.partial(_conv_kernel_acc, apply_lrelu=apply_lrelu)
            dims = ("parallel", "parallel", "arbitrary")

    if compute_stats:
        out_shape = (jax.ShapeDtypeStruct((M_pad, Cp), out_dtype),
                     jax.ShapeDtypeStruct((1, Cp), jnp.float32),
                     jax.ShapeDtypeStruct((1, Cp), jnp.float32))
        out_specs = (o_spec, s_spec, s_spec)
    else:
        out_shape = jax.ShapeDtypeStruct((M_pad, Cp), out_dtype)
        out_specs = o_spec

    return pl.pallas_call(
        kernel,
        out_shape=out_shape,
        grid_spec=pltpu.PrefetchScalarGridSpec(
            num_scalar_prefetch=0,
            grid=grid,
            in_specs=[a_spec, w_spec, b_spec],
            out_specs=out_specs,
            scratch_shapes=scratch),
        compiler_params=pltpu.CompilerParams(
            dimension_semantics=dims,
            vmem_limit_bytes=VMEM_LIMIT),
    )(patches, w2, bias2)


def bn_lrelu(x, s, ssq, gamma, beta, *, m_valid):
    """x: (M_pad, Cp) bf16; s/ssq/gamma/beta: (1, Cp) f32. Returns bf16."""
    Mp, Cp = x.shape
    tm = _pick_divisor_tile(Mp, 1024)
    ni = Mp // tm
    kernel = functools.partial(_bn_lrelu_kernel, inv_m=1.0 / m_valid)
    row = pl.BlockSpec((1, Cp), lambda i: (0, 0))
    return pl.pallas_call(
        kernel,
        out_shape=jax.ShapeDtypeStruct((Mp, Cp), jnp.bfloat16),
        grid_spec=pltpu.PrefetchScalarGridSpec(
            num_scalar_prefetch=0,
            grid=(ni,),
            in_specs=[pl.BlockSpec((tm, Cp), lambda i: (i, 0)),
                      row, row, row, row],
            out_specs=pl.BlockSpec((tm, Cp), lambda i: (i, 0))),
        compiler_params=pltpu.CompilerParams(
            dimension_semantics=("parallel",),
            vmem_limit_bytes=VMEM_LIMIT),
    )(x, s, ssq, gamma, beta)


# ---------------------------------------------------------------------------
# Glue: im2col patch extraction (XLA slices) + one-time weight preparation
# ---------------------------------------------------------------------------
def im2col(x_nhwc, ksize, stride, pad):
    N, H, W, C = x_nhwc.shape
    Ho = (H + 2 * pad - ksize) // stride + 1
    Wo = (W + 2 * pad - ksize) // stride + 1
    xp = jnp.pad(x_nhwc, ((0, 0), (pad, pad), (pad, pad), (0, 0)))
    cols = []
    for kh in range(ksize):
        for kw in range(ksize):
            cols.append(xp[:, kh:kh + stride * (Ho - 1) + 1:stride,
                           kw:kw + stride * (Wo - 1) + 1:stride, :])
    patches = jnp.stack(cols, axis=3)               # (N, Ho, Wo, k*k, C)
    return patches.reshape(N * Ho * Wo, ksize * ksize * C), Ho, Wo


def prepare_params(params):
    """One-time weight re-layout: transpose / zero-pad Cin+Cout / bf16 cast."""
    prep = {}
    prev_cout_p = None
    for name, idx, has_bn in (('conv1', 1, False), ('conv2', 2, True),
                              ('conv3', 3, True), ('conv4', 4, True),
                              ('conv5', 5, False)):
        w = params[f'w{idx}']                        # (Cout, Cin, kh, kw)
        b = params[f'b{idx}']
        cout, cin, kh, kw = w.shape
        cin_p = cin if prev_cout_p is None else prev_cout_p   # padded slab flows
        cout_p = _round_up(cout, 128)
        wt = jnp.transpose(w, (2, 3, 1, 0))          # (kh, kw, Cin, Cout)
        wt = jnp.pad(wt, ((0, 0), (0, 0), (0, cin_p - cin), (0, cout_p - cout)))
        entry = {
            'w2': wt.reshape(kh * kw * cin_p, cout_p).astype(jnp.bfloat16),
            'bias': jnp.pad(b, (0, cout_p - cout)).astype(jnp.float32),
            'cout': cout, 'cout_p': cout_p, 'ksize': kh,
        }
        if has_bn:
            entry['gamma'] = jnp.pad(params[f'gamma{idx}'],
                                     (0, cout_p - cout)).reshape(1, cout_p)
            entry['beta'] = jnp.pad(params[f'beta{idx}'],
                                    (0, cout_p - cout)).reshape(1, cout_p)
        prep[name] = entry
        prev_cout_p = cout_p
    return prep


def discriminator_forward(x_nchw, prep):
    x = jnp.transpose(x_nchw, (0, 2, 3, 1)).astype(jnp.bfloat16)   # NCHW -> NHWC
    N = x.shape[0]
    feats = []

    # conv1 + leaky_relu fused into the matmul kernel
    p = prep['conv1']
    patches, Ho, Wo = im2col(x, p['ksize'], 2, 1)
    y = conv_matmul(patches, p['w2'], p['bias'], apply_lrelu=True,
                    compute_stats=False, out_dtype=jnp.bfloat16)
    M = N * Ho * Wo
    cur = y[:M].reshape(N, Ho, Wo, p['cout_p'])
    feats.append(cur[..., :p['cout']])

    # conv2..4: conv fused with BN batch-stats, then BN-affine + lrelu
    for name in ('conv2', 'conv3', 'conv4'):
        p = prep[name]
        patches, Ho, Wo = im2col(cur, p['ksize'], 2, 1)
        y, s, ssq = conv_matmul(patches, p['w2'], p['bias'], apply_lrelu=False,
                                compute_stats=True, out_dtype=jnp.bfloat16)
        M = N * Ho * Wo
        y = bn_lrelu(y, s, ssq, p['gamma'], p['beta'], m_valid=M)
        cur = y[:M].reshape(N, Ho, Wo, p['cout_p'])
        feats.append(cur[..., :p['cout']])

    # conv5: kernel 4, stride 1, pad 0, no activation
    p = prep['conv5']
    patches, Ho, Wo = im2col(cur, p['ksize'], 1, 0)
    y = conv_matmul(patches, p['w2'], p['bias'], apply_lrelu=False,
                    compute_stats=False, out_dtype=jnp.float32)
    M = N * Ho * Wo
    pred = y[:M].reshape(N, Ho, Wo, p['cout_p'])[..., :p['cout']]

    return {
        'feature_maps': [jnp.transpose(f.astype(jnp.float32), (0, 3, 1, 2))
                         for f in feats],
        'prediction': jnp.transpose(pred, (0, 3, 1, 2)),
    }


# ---------------------------------------------------------------------------
# Pure-JAX f32 reference (correctness cross-check) + parameter init
# ---------------------------------------------------------------------------
def reference_prediction(x_nchw, params):
    def conv(x, w, b, stride, pad):
        y = jax.lax.conv_general_dilated(
            x, w, (stride, stride), [(pad, pad), (pad, pad)],
            dimension_numbers=('NCHW', 'OIHW', 'NCHW'))
        return y + b.reshape(1, -1, 1, 1)

    def lrelu(x):
        return jnp.where(x >= 0, x, LRELU_SLOPE * x)

    def bn(x, g, bt):
        mean = jnp.mean(x, axis=(0, 2, 3), keepdims=True)
        var = jnp.var(x, axis=(0, 2, 3), keepdims=True)
        return ((x - mean) * jax.lax.rsqrt(var + BN_EPS)
                * g.reshape(1, -1, 1, 1) + bt.reshape(1, -1, 1, 1))

    x1 = lrelu(conv(x_nchw, params['w1'], params['b1'], 2, 1))
    x2 = lrelu(bn(conv(x1, params['w2'], params['b2'], 2, 1),
                  params['gamma2'], params['beta2']))
    x3 = lrelu(bn(conv(x2, params['w3'], params['b3'], 2, 1),
                  params['gamma3'], params['beta3']))
    x4 = lrelu(bn(conv(x3, params['w4'], params['b4'], 2, 1),
                  params['gamma4'], params['beta4']))
    return conv(x4, params['w5'], params['b5'], 1, 0)


def init_params(key, d):
    shapes = {
        'w1': (d, 3, 4, 4),
        'w2': (2 * d, d, 4, 4),
        'w3': (4 * d, 2 * d, 4, 4),
        'w4': (8 * d, 4 * d, 4, 4),
        'w5': (1, 8 * d, 4, 4),
    }
    params = {}
    keys = jax.random.split(key, len(shapes))
    for (name, shp), k in zip(shapes.items(), keys):
        params[name] = 0.02 * jax.random.normal(k, shp, dtype=jnp.float32)
        params['b' + name[1:]] = jnp.zeros((shp[0],), dtype=jnp.float32)
    for idx, c in zip((2, 3, 4), (2 * d, 4 * d, 8 * d)):
        params[f'gamma{idx}'] = jnp.ones((c,), dtype=jnp.float32)
        params[f'beta{idx}'] = jnp.zeros((c,), dtype=jnp.float32)
    return params


if __name__ == "__main__":
    d = 16            # reduced width (module default is 128); same architecture
    N, H, W = 2, 64, 64
    key = jax.random.PRNGKey(0)
    kx, kp = jax.random.split(key)
    x = jax.random.normal(kx, (N, 3, H, W), dtype=jnp.float32)
    params = init_params(kp, d)

    prep = prepare_params(params)                 # one-time weight re-layout
    fwd = jax.jit(functools.partial(discriminator_forward, prep=prep))
    out = fwd(x)
    jax.block_until_ready(out)

    # Shape checks (64x64 input -> 32,16,8,4 feature maps, 1x1 prediction)
    assert out['prediction'].shape == (N, 1, 1, 1)
    expected = [(N, d, 32, 32), (N, 2 * d, 16, 16),
                (N, 4 * d, 8, 8), (N, 8 * d, 4, 4)]
    for fm, shp in zip(out['feature_maps'], expected):
        assert fm.shape == shp, (fm.shape, shp)

    # Numerical cross-check against an f32 reference.  bf16 MXU inputs and
    # bf16 intermediates (f32 accumulation / f32 BN stats) give ~1e-2-level
    # relative deviation, hence the relaxed tolerance.
    ref = reference_prediction(x, params)
    err = float(jnp.max(jnp.abs(out['prediction'] - ref)))
    assert jnp.allclose(out['prediction'], ref, rtol=5e-2, atol=5e-2), err

    print("KERNEL_OK")
</pallas_src>

<mosaic_0001>
module attributes {stable_mosaic.version = 11 : i64} {
  func.func @_conv_kernel_nk1(%arg0: i32, %arg1: i32, %arg2: memref<1024x48xbf16, #tpu.memory_space<vmem>>, %arg3: memref<48x128xbf16, #tpu.memory_space<vmem>>, %arg4: memref<1x128xf32, #tpu.memory_space<vmem>>, %arg5: memref<1024x128xbf16, #tpu.memory_space<vmem>>) attributes {dimension_semantics = [#tpu.dimension_semantics<parallel>, #tpu.dimension_semantics<parallel>], iteration_bounds = array<i64: 1, 2>, scalar_prefetch = 0 : i64, scratch_operands = 0 : i64, tpu.core_type = #tpu.core_type<tc>, window_params = [{transform_indices = @transform_0, window_bounds = array<i64: 1024, 48>}, {transform_indices = @transform_1, window_bounds = array<i64: 48, 128>}, {transform_indices = @transform_2, window_bounds = array<i64: 1, 128>}, {transform_indices = @transform_3, window_bounds = array<i64: 1024, 128>}]} {
    %c0 = arith.constant 0 : index
    %c0_0 = arith.constant 0 : index
    %0 = vector.load %arg2[%c0, %c0_0] : memref<1024x48xbf16, #tpu.memory_space<vmem>>, vector<1024x48xbf16>
    %c0_1 = arith.constant 0 : index
    %c0_2 = arith.constant 0 : index
    %1 = vector.load %arg3[%c0_1, %c0_2] : memref<48x128xbf16, #tpu.memory_space<vmem>>, vector<48x128xbf16>
    %cst = arith.constant dense<0.000000e+00> : vector<1024x128xf32>
    %2 = tpu.matmul %0, %1, %cst {dimension_numbers = #tpu.dot_dimension_numbers<[1], [0], [0], [1], [0, 0, 1, 1], [], []>} : vector<1024x48xbf16>, vector<48x128xbf16>, vector<1024x128xf32> -> vector<1024x128xf32>
    %c0_3 = arith.constant 0 : index
    %c0_4 = arith.constant 0 : index
    %3 = vector.load %arg4[%c0_3, %c0_4] : memref<1x128xf32, #tpu.memory_space<vmem>>, vector<1x128xf32>
    %4 = vector.broadcast %3 : vector<1x128xf32> to vector<1024x128xf32>
    %5 = arith.addf %2, %4 : vector<1024x128xf32>
    %cst_5 = arith.constant 0.000000e+00 : f32
    %6 = vector.broadcast %cst_5 : f32 to vector<1024x128xf32>
    %7 = arith.cmpf oge, %5, %6 : vector<1024x128xf32>
    %cst_6 = arith.constant 2.000000e-01 : f32
    %8 = vector.broadcast %cst_6 : f32 to vector<1024x128xf32>
    %9 = arith.mulf %8, %5 : vector<1024x128xf32>
    %10 = arith.select %7, %5, %9 : vector<1024x128xi1>, vector<1024x128xf32>
    %11 = arith.truncf %10 : vector<1024x128xf32> to vector<1024x128xbf16>
    %c0_7 = arith.constant 0 : index
    %c0_8 = arith.constant 0 : index
    %12 = vector.load %arg5[%c0_7, %c0_8] : memref<1024x128xbf16, #tpu.memory_space<vmem>>, vector<1024x128xbf16>
    tpu.vector_store %arg5[%c0_7, %c0_8], %11 {strides = array<i32>} : memref<1024x128xbf16, #tpu.memory_space<vmem>>, vector<1024x128xbf16>,
    return
  }
  func.func @transform_0(%arg0: i32, %arg1: i32) -> (i32, i32) {
    %c0_i32 = arith.constant 0 : i32
    %c0_i32_0 = arith.constant 0 : i32
    return %arg1, %c0_i32 : i32, i32
  }
  func.func @transform_1(%arg0: i32, %arg1: i32) -> (i32, i32) {
    %c0_i32 = arith.constant 0 : i32
    %c0_i32_0 = arith.constant 0 : i32
    return %c0_i32, %arg0 : i32, i32
  }
  func.func @transform_2(%arg0: i32, %arg1: i32) -> (i32, i32) {
    %c0_i32 = arith.constant 0 : i32
    %c0_i32_0 = arith.constant 0 : i32
    return %c0_i32, %arg0 : i32, i32
  }
  func.func @transform_3(%arg0: i32, %arg1: i32) -> (i32, i32) {
    %c0_i32 = arith.constant 0 : i32
    return %arg1, %arg0 : i32, i32
  }
}

module attributes {stable_mosaic.version = 11 : i64} {
  func.func @_conv_stats_kernel_nk1(%arg0: i32, %arg1: i32, %arg2: memref<512x2048xbf16, #tpu.memory_space<vmem>>, %arg3: memref<2048x128xbf16, #tpu.memory_space<vmem>>, %arg4: memref<1x128xf32, #tpu.memory_space<vmem>>, %arg5: memref<512x128xbf16, #tpu.memory_space<vmem>>, %arg6: memref<1x128xf32, #tpu.memory_space<vmem>>, %arg7: memref<1x128xf32, #tpu.memory_space<vmem>>) attributes {dimension_semantics = [#tpu.dimension_semantics<parallel>, #tpu.dimension_semantics<arbitrary>], iteration_bounds = array<i64: 1, 1>, scalar_prefetch = 0 : i64, scratch_operands = 0 : i64, tpu.core_type = #tpu.core_type<tc>, window_params = [{transform_indices = @transform_0, window_bounds = array<i64: 512, 2048>}, {transform_indices = @transform_1, window_bounds = array<i64: 2048, 128>}, {transform_indices = @transform_2, window_bounds = array<i64: 1, 128>}, {transform_indices = @transform_3, window_bounds = array<i64: 512, 128>}, {transform_indices = @transform_4, window_bounds = array<i64: 1, 128>}, {transform_indices = @transform_5, window_bounds = array<i64: 1, 128>}]} {
    %c0_i32 = arith.constant 0 : i32
    %0 = arith.cmpi eq, %arg1, %c0_i32 : i32
    %1 = arith.extui %0 : i1 to i32
    %c0_i32_0 = arith.constant 0 : i32
    %2 = arith.cmpi ne, %1, %c0_i32_0 : i32
    scf.if %2 {
      %cst_18 = arith.constant 0.000000e+00 : f32
      %22 = vector.broadcast %cst_18 : f32 to vector<1x128xf32>
      %c0_19 = arith.constant 0 : index
      %c0_20 = arith.constant 0 : index
      %23 = vector.load %arg6[%c0_19, %c0_20] : memref<1x128xf32, #tpu.memory_space<vmem>>, vector<1x128xf32>
      tpu.vector_store %arg6[%c0_19, %c0_20], %22 {strides = array<i32>} : memref<1x128xf32, #tpu.memory_space<vmem>>, vector<1x128xf32>,
      %cst_21 = arith.constant 0.000000e+00 : f32
      %24 = vector.broadcast %cst_21 : f32 to vector<1x128xf32>
      %c0_22 = arith.constant 0 : index
      %c0_23 = arith.constant 0 : index
      %25 = vector.load %arg7[%c0_22, %c0_23] : memref<1x128xf32, #tpu.memory_space<vmem>>, vector<1x128xf32>
      tpu.vector_store %arg7[%c0_22, %c0_23], %24 {strides = array<i32>} : memref<1x128xf32, #tpu.memory_space<vmem>>, vector<1x128xf32>,
    } else {
    }
    %c0 = arith.constant 0 : index
    %c0_1 = arith.constant 0 : index
    %3 = vector.load %arg2[%c0, %c0_1] : memref<512x2048xbf16, #tpu.memory_space<vmem>>, vector<512x2048xbf16>
    %c0_2 = arith.constant 0 : index
    %c0_3 = arith.constant 0 : index
    %4 = vector.load %arg3[%c0_2, %c0_3] : memref<2048x128xbf16, #tpu.memory_space<vmem>>, vector<2048x128xbf16>
    %cst = arith.constant dense<0.000000e+00> : vector<512x128xf32>
    %5 = tpu.matmul %3, %4, %cst {dimension_numbers = #tpu.dot_dimension_numbers<[1], [0], [0], [1], [0, 0, 1, 1], [], []>} : vector<512x2048xbf16>, vector<2048x128xbf16>, vector<512x128xf32> -> vector<512x128xf32>
    %c0_4 = arith.constant 0 : index
    %c0_5 = arith.constant 0 : index
    %6 = vector.load %arg4[%c0_4, %c0_5] : memref<1x128xf32, #tpu.memory_space<vmem>>, vector<1x128xf32>
    %7 = vector.broadcast %6 : vector<1x128xf32> to vector<512x128xf32>
    %8 = arith.addf %5, %7 : vector<512x128xf32>
    %9 = arith.truncf %8 : vector<512x128xf32> to vector<512x128xbf16>
    %c0_6 = arith.constant 0 : index
    %c0_7 = arith.constant 0 : index
    %10 = vector.load %arg5[%c0_6, %c0_7] : memref<512x128xbf16, #tpu.memory_space<vmem>>, vector<512x128xbf16>
    tpu.vector_store %arg5[%c0_6, %c0_7], %9 {strides = array<i32>} : memref<512x128xbf16, #tpu.memory_space<vmem>>, vector<512x128xbf16>,
    %c0_8 = arith.constant 0 : index
    %c0_9 = arith.constant 0 : index
    %11 = vector.load %arg6[%c0_8, %c0_9] : memref<1x128xf32, #tpu.memory_space<vmem>>, vector<1x128xf32>
    %cst_10 = arith.constant dense<0.000000e+00> : vector<128xf32>
    %12 = vector.multi_reduction <add>, %8, %cst_10 [0] : vector<512x128xf32> to vector<128xf32>
    %13 = vector.shape_cast %12 : vector<128xf32> to vector<1x128xf32>
    %14 = arith.addf %11, %13 : vector<1x128xf32>
    %c0_11 = arith.constant 0 : index
    %c0_12 = arith.constant 0 : index
    %15 = vector.load %arg6[%c0_11, %c0_12] : memref<1x128xf32, #tpu.memory_space<vmem>>, vector<1x128xf32>
    tpu.vector_store %arg6[%c0_11, %c0_12], %14 {strides = array<i32>} : memref<1x128xf32, #tpu.memory_space<vmem>>, vector<1x128xf32>,
    %c0_13 = arith.constant 0 : index
    %c0_14 = arith.constant 0 : index
    %16 = vector.load %arg7[%c0_13, %c0_14] : memref<1x128xf32, #tpu.memory_space<vmem>>, vector<1x128xf32>
    %17 = arith.mulf %8, %8 : vector<512x128xf32>
    %cst_15 = arith.constant dense<0.000000e+00> : vector<128xf32>
    %18 = vector.multi_reduction <add>, %17, %cst_15 [0] : vector<512x128xf32> to vector<128xf32>
    %19 = vector.shape_cast %18 : vector<128xf32> to vector<1x128xf32>
    %20 = arith.addf %16, %19 : vector<1x128xf32>
    %c0_16 = arith.constant 0 : index
    %c0_17 = arith.constant 0 : index
    %21 = vector.load %arg7[%c0_16, %c0_17] : memref<1x128xf32, #tpu.memory_space<vmem>>, vector<1x128xf32>
    tpu.vector_store %arg7[%c0_16, %c0_17], %20 {strides = array<i32>} : memref<1x128xf32, #tpu.memory_space<vmem>>, vector<1x128xf32>,
    return
  }
  func.func @transform_0(%arg0: i32, %arg1: i32) -> (i32, i32) {
    %c0_i32 = arith.constant 0 : i32
    %c0_i32_0 = arith.constant 0 : i32
    return %arg1, %c0_i32 : i32, i32
  }
  func.func @transform_1(%arg0: i32, %arg1: i32) -> (i32, i32) {
    %c0_i32 = arith.constant 0 : i32
    %c0_i32_0 = arith.constant 0 : i32
    return %c0_i32, %arg0 : i32, i32
  }
  func.func @transform_2(%arg0: i32, %arg1: i32) -> (i32, i32) {
    %c0_i32 = arith.constant 0 : i32
    %c0_i32_0 = arith.constant 0 : i32
    return %c0_i32, %arg0 : i32, i32
  }
  func.func @transform_3(%arg0: i32, %arg1: i32) -> (i32, i32) {
    %c0_i32 = arith.constant 0 : i32
    return %arg1, %arg0 : i32, i32
  }
  func.func @transform_4(%arg0: i32, %arg1: i32) -> (i32, i32) {
    %c0_i32 = arith.constant 0 : i32
    %c0_i32_0 = arith.constant 0 : i32
    return %c0_i32, %arg0 : i32, i32
  }
  func.func @transform_5(%arg0: i32, %arg1: i32) -> (i32, i32) {
    %c0_i32 = arith.constant 0 : i32
    %c0_i32_0 = arith.constant 0 : i32
    return %c0_i32, %arg0 : i32, i32
  }
}

module attributes {stable_mosaic.version = 11 : i64} {
  func.func @_bn_lrelu_kernel(%arg0: i32, %arg1: memref<512x128xbf16, #tpu.memory_space<vmem>>, %arg2: memref<1x128xf32, #tpu.memory_space<vmem>>, %arg3: memref<1x128xf32, #tpu.memory_space<vmem>>, %arg4: memref<1x128xf32, #tpu.memory_space<vmem>>, %arg5: memref<1x128xf32, #tpu.memory_space<vmem>>, %arg6: memref<512x128xbf16, #tpu.memory_space<vmem>>) attributes {dimension_semantics = [#tpu.dimension_semantics<parallel>], iteration_bounds = array<i64: 1>, scalar_prefetch = 0 : i64, scratch_operands = 0 : i64, tpu.core_type = #tpu.core_type<tc>, window_params = [{transform_indices = @transform_0, window_bounds = array<i64: 512, 128>}, {pipeline_mode = #tpu.pipeline_mode<synchronous>, transform_indices = @transform_1, window_bounds = array<i64: 1, 128>}, {pipeline_mode = #tpu.pipeline_mode<synchronous>, transform_indices = @transform_2, window_bounds = array<i64: 1, 128>}, {pipeline_mode = #tpu.pipeline_mode<synchronous>, transform_indices = @transform_3, window_bounds = array<i64: 1, 128>}, {pipeline_mode = #tpu.pipeline_mode<synchronous>, transform_indices = @transform_4, window_bounds = array<i64: 1, 128>}, {transform_indices = @transform_5, window_bounds = array<i64: 512, 128>}]} {
    %c0 = arith.constant 0 : index
    %c0_0 = arith.constant 0 : index
    %0 = vector.load %arg2[%c0, %c0_0] : memref<1x128xf32, #tpu.memory_space<vmem>>, vector<1x128xf32>
    %cst = arith.constant 0.001953125 : f32
    %1 = vector.broadcast %cst : f32 to vector<1x128xf32>
    %2 = arith.mulf %0, %1 : vector<1x128xf32>
    %c0_1 = arith.constant 0 : index
    %c0_2 = arith.constant 0 : index
    %3 = vector.load %arg3[%c0_1, %c0_2] : memref<1x128xf32, #tpu.memory_space<vmem>>, vector<1x128xf32>
    %cst_3 = arith.constant 0.001953125 : f32
    %4 = vector.broadcast %cst_3 : f32 to vector<1x128xf32>
    %5 = arith.mulf %3, %4 : vector<1x128xf32>
    %6 = arith.mulf %2, %2 : vector<1x128xf32>
    %7 = arith.subf %5, %6 : vector<1x128xf32>
    %cst_4 = arith.constant 0.000000e+00 : f32
    %8 = vector.broadcast %cst_4 : f32 to vector<1x128xf32>
    %9 = arith.maximumf %7, %8 : vector<1x128xf32>
    %c0_5 = arith.constant 0 : index
    %c0_6 = arith.constant 0 : index
    %10 = vector.load %arg4[%c0_5, %c0_6] : memref<1x128xf32, #tpu.memory_space<vmem>>, vector<1x128xf32>
    %cst_7 = arith.constant 9.99999974E-6 : f32
    %11 = vector.broadcast %cst_7 : f32 to vector<1x128xf32>
    %12 = arith.addf %9, %11 : vector<1x128xf32>
    %13 = math.rsqrt %12 : vector<1x128xf32>
    %14 = arith.mulf %10, %13 : vector<1x128xf32>
    %c0_8 = arith.constant 0 : index
    %c0_9 = arith.constant 0 : index
    %15 = vector.load %arg5[%c0_8, %c0_9] : memref<1x128xf32, #tpu.memory_space<vmem>>, vector<1x128xf32>
    %16 = arith.mulf %2, %14 : vector<1x128xf32>
    %17 = arith.subf %15, %16 : vector<1x128xf32>
    %c0_10 = arith.constant 0 : index
    %c0_11 = arith.constant 0 : index
    %18 = vector.load %arg1[%c0_10, %c0_11] : memref<512x128xbf16, #tpu.memory_space<vmem>>, vector<512x128xbf16>
    %19 = arith.extf %18 : vector<512x128xbf16> to vector<512x128xf32>
    %20 = vector.broadcast %14 : vector<1x128xf32> to vector<512x128xf32>
    %21 = arith.mulf %19, %20 : vector<512x128xf32>
    %22 = vector.broadcast %17 : vector<1x128xf32> to vector<512x128xf32>
    %23 = arith.addf %21, %22 : vector<512x128xf32>
    %cst_12 = arith.constant 0.000000e+00 : f32
    %24 = vector.broadcast %cst_12 : f32 to vector<512x128xf32>
    %25 = arith.cmpf oge, %23, %24 : vector<512x128xf32>
    %cst_13 = arith.constant 2.000000e-01 : f32
    %26 = vector.broadcast %cst_13 : f32 to vector<512x128xf32>
    %27 = arith.mulf %26, %23 : vector<512x128xf32>
    %28 = arith.select %25, %23, %27 : vector<512x128xi1>, vector<512x128xf32>
    %29 = arith.truncf %28 : vector<512x128xf32> to vector<512x128xbf16>
    %c0_14 = arith.constant 0 : index
    %c0_15 = arith.constant 0 : index
    %30 = vector.load %arg6[%c0_14, %c0_15] : memref<512x128xbf16, #tpu.memory_space<vmem>>, vector<512x128xbf16>
    tpu.vector_store %arg6[%c0_14, %c0_15], %29 {strides = array<i32>} : memref<512x128xbf16, #tpu.memory_space<vmem>>, vector<512x128xbf16>,
    return
  }
  func.func @transform_0(%arg0: i32) -> (i32, i32) {
    %c0_i32 = arith.constant 0 : i32
    %c0_i32_0 = arith.constant 0 : i32
    return %arg0, %c0_i32 : i32, i32
  }
  func.func @transform_1(%arg0: i32) -> (i32, i32) {
    %c0_i32 = arith.constant 0 : i32
    %c0_i32_0 = arith.constant 0 : i32
    %c0_i32_1 = arith.constant 0 : i32
    return %c0_i32, %c0_i32_0 : i32, i32
  }
  func.func @transform_2(%arg0: i32) -> (i32, i32) {
    %c0_i32 = arith.constant 0 : i32
    %c0_i32_0 = arith.constant 0 : i32
    %c0_i32_1 = arith.constant 0 : i32
    return %c0_i32, %c0_i32_0 : i32, i32
  }
  func.func @transform_3(%arg0: i32) -> (i32, i32) {
    %c0_i32 = arith.constant 0 : i32
    %c0_i32_0 = arith.constant 0 : i32
    %c0_i32_1 = arith.constant 0 : i32
    return %c0_i32, %c0_i32_0 : i32, i32
  }
  func.func @transform_4(%arg0: i32) -> (i32, i32) {
    %c0_i32 = arith.constant 0 : i32
    %c0_i32_0 = arith.constant 0 : i32
    %c0_i32_1 = arith.constant 0 : i32
    return %c0_i32, %c0_i32_0 : i32, i32
  }
  func.func @transform_5(%arg0: i32) -> (i32, i32) {
    %c0_i32 = arith.constant 0 : i32
    %c0_i32_0 = arith.constant 0 : i32
    return %arg0, %c0_i32 : i32, i32
  }
}

module attributes {stable_mosaic.version = 11 : i64} {
  func.func @_conv_stats_kernel_nk1(%arg0: i32, %arg1: i32, %arg2: memref<128x2048xbf16, #tpu.memory_space<vmem>>, %arg3: memref<2048x128xbf16, #tpu.memory_space<vmem>>, %arg4: memref<1x128xf32, #tpu.memory_space<vmem>>, %arg5: memref<128x128xbf16, #tpu.memory_space<vmem>>, %arg6: memref<1x128xf32, #tpu.memory_space<vmem>>, %arg7: memref<1x128xf32, #tpu.memory_space<vmem>>) attributes {dimension_semantics = [#tpu.dimension_semantics<parallel>, #tpu.dimension_semantics<arbitrary>], iteration_bounds = array<i64: 1, 1>, scalar_prefetch = 0 : i64, scratch_operands = 0 : i64, tpu.core_type = #tpu.core_type<tc>, window_params = [{transform_indices = @transform_0, window_bounds = array<i64: 128, 2048>}, {transform_indices = @transform_1, window_bounds = array<i64: 2048, 128>}, {transform_indices = @transform_2, window_bounds = array<i64: 1, 128>}, {transform_indices = @transform_3, window_bounds = array<i64: 128, 128>}, {transform_indices = @transform_4, window_bounds = array<i64: 1, 128>}, {transform_indices = @transform_5, window_bounds = array<i64: 1, 128>}]} {
    %c0_i32 = arith.constant 0 : i32
    %0 = arith.cmpi eq, %arg1, %c0_i32 : i32
    %1 = arith.extui %0 : i1 to i32
    %c0_i32_0 = arith.constant 0 : i32
    %2 = arith.cmpi ne, %1, %c0_i32_0 : i32
    scf.if %2 {
      %cst_18 = arith.constant 0.000000e+00 : f32
      %22 = vector.broadcast %cst_18 : f32 to vector<1x128xf32>
      %c0_19 = arith.constant 0 : index
      %c0_20 = arith.constant 0 : index
      %23 = vector.load %arg6[%c0_19, %c0_20] : memref<1x128xf32, #tpu.memory_space<vmem>>, vector<1x128xf32>
      tpu.vector_store %arg6[%c0_19, %c0_20], %22 {strides = array<i32>} : memref<1x128xf32, #tpu.memory_space<vmem>>, vector<1x128xf32>,
      %cst_21 = arith.constant 0.000000e+00 : f32
      %24 = vector.broadcast %cst_21 : f32 to vector<1x128xf32>
      %c0_22 = arith.constant 0 : index
      %c0_23 = arith.constant 0 : index
      %25 = vector.load %arg7[%c0_22, %c0_23] : memref<1x128xf32, #tpu.memory_space<vmem>>, vector<1x128xf32>
      tpu.vector_store %arg7[%c0_22, %c0_23], %24 {strides = array<i32>} : memref<1x128xf32, #tpu.memory_space<vmem>>, vector<1x128xf32>,
    } else {
    }
    %c0 = arith.constant 0 : index
    %c0_1 = arith.constant 0 : index
    %3 = vector.load %arg2[%c0, %c0_1] : memref<128x2048xbf16, #tpu.memory_space<vmem>>, vector<128x2048xbf16>
    %c0_2 = arith.constant 0 : index
    %c0_3 = arith.constant 0 : index
    %4 = vector.load %arg3[%c0_2, %c0_3] : memref<2048x128xbf16, #tpu.memory_space<vmem>>, vector<2048x128xbf16>
    %cst = arith.constant dense<0.000000e+00> : vector<128x128xf32>
    %5 = tpu.matmul %3, %4, %cst {dimension_numbers = #tpu.dot_dimension_numbers<[1], [0], [0], [1], [0, 0, 1, 1], [], []>} : vector<128x2048xbf16>, vector<2048x128xbf16>, vector<128x128xf32> -> vector<128x128xf32>
    %c0_4 = arith.constant 0 : index
    %c0_5 = arith.constant 0 : index
    %6 = vector.load %arg4[%c0_4, %c0_5] : memref<1x128xf32, #tpu.memory_space<vmem>>, vector<1x128xf32>
    %7 = vector.broadcast %6 : vector<1x128xf32> to vector<128x128xf32>
    %8 = arith.addf %5, %7 : vector<128x128xf32>
    %9 = arith.truncf %8 : vector<128x128xf32> to vector<128x128xbf16>
    %c0_6 = arith.constant 0 : index
    %c0_7 = arith.constant 0 : index
    %10 = vector.load %arg5[%c0_6, %c0_7] : memref<128x128xbf16, #tpu.memory_space<vmem>>, vector<128x128xbf16>
    tpu.vector_store %arg5[%c0_6, %c0_7], %9 {strides = array<i32>} : memref<128x128xbf16, #tpu.memory_space<vmem>>, vector<128x128xbf16>,
    %c0_8 = arith.constant 0 : index
    %c0_9 = arith.constant 0 : index
    %11 = vector.load %arg6[%c0_8, %c0_9] : memref<1x128xf32, #tpu.memory_space<vmem>>, vector<1x128xf32>
    %cst_10 = arith.constant dense<0.000000e+00> : vector<128xf32>
    %12 = vector.multi_reduction <add>, %8, %cst_10 [0] : vector<128x128xf32> to vector<128xf32>
    %13 = vector.shape_cast %12 : vector<128xf32> to vector<1x128xf32>
    %14 = arith.addf %11, %13 : vector<1x128xf32>
    %c0_11 = arith.constant 0 : index
    %c0_12 = arith.constant 0 : index
    %15 = vector.load %arg6[%c0_11, %c0_12] : memref<1x128xf32, #tpu.memory_space<vmem>>, vector<1x128xf32>
    tpu.vector_store %arg6[%c0_11, %c0_12], %14 {strides = array<i32>} : memref<1x128xf32, #tpu.memory_space<vmem>>, vector<1x128xf32>,
    %c0_13 = arith.constant 0 : index
    %c0_14 = arith.constant 0 : index
    %16 = vector.load %arg7[%c0_13, %c0_14] : memref<1x128xf32, #tpu.memory_space<vmem>>, vector<1x128xf32>
    %17 = arith.mulf %8, %8 : vector<128x128xf32>
    %cst_15 = arith.constant dense<0.000000e+00> : vector<128xf32>
    %18 = vector.multi_reduction <add>, %17, %cst_15 [0] : vector<128x128xf32> to vector<128xf32>
    %19 = vector.shape_cast %18 : vector<128xf32> to vector<1x128xf32>
    %20 = arith.addf %16, %19 : vector<1x128xf32>
    %c0_16 = arith.constant 0 : index
    %c0_17 = arith.constant 0 : index
    %21 = vector.load %arg7[%c0_16, %c0_17] : memref<1x128xf32, #tpu.memory_space<vmem>>, vector<1x128xf32>
    tpu.vector_store %arg7[%c0_16, %c0_17], %20 {strides = array<i32>} : memref<1x128xf32, #tpu.memory_space<vmem>>, vector<1x128xf32>,
    return
  }
  func.func @transform_0(%arg0: i32, %arg1: i32) -> (i32, i32) {
    %c0_i32 = arith.constant 0 : i32
    %c0_i32_0 = arith.constant 0 : i32
    return %arg1, %c0_i32 : i32, i32
  }
  func.func @transform_1(%arg0: i32, %arg1: i32) -> (i32, i32) {
    %c0_i32 = arith.constant 0 : i32
    %c0_i32_0 = arith.constant 0 : i32
    return %c0_i32, %arg0 : i32, i32
  }
  func.func @transform_2(%arg0: i32, %arg1: i32) -> (i32, i32) {
    %c0_i32 = arith.constant 0 : i32
    %c0_i32_0 = arith.constant 0 : i32
    return %c0_i32, %arg0 : i32, i32
  }
  func.func @transform_3(%arg0: i32, %arg1: i32) -> (i32, i32) {
    %c0_i32 = arith.constant 0 : i32
    return %arg1, %arg0 : i32, i32
  }
  func.func @transform_4(%arg0: i32, %arg1: i32) -> (i32, i32) {
    %c0_i32 = arith.constant 0 : i32
    %c0_i32_0 = arith.constant 0 : i32
    return %c0_i32, %arg0 : i32, i32
  }
  func.func @transform_5(%arg0: i32, %arg1: i32) -> (i32, i32) {
    %c0_i32 = arith.constant 0 : i32
    %c0_i32_0 = arith.constant 0 : i32
    return %c0_i32, %arg0 : i32, i32
  }
}

module attributes {stable_mosaic.version = 11 : i64} {
  func.func @_bn_lrelu_kernel(%arg0: i32, %arg1: memref<128x128xbf16, #tpu.memory_space<vmem>>, %arg2: memref<1x128xf32, #tpu.memory_space<vmem>>, %arg3: memref<1x128xf32, #tpu.memory_space<vmem>>, %arg4: memref<1x128xf32, #tpu.memory_space<vmem>>, %arg5: memref<1x128xf32, #tpu.memory_space<vmem>>, %arg6: memref<128x128xbf16, #tpu.memory_space<vmem>>) attributes {dimension_semantics = [#tpu.dimension_semantics<parallel>], iteration_bounds = array<i64: 1>, scalar_prefetch = 0 : i64, scratch_operands = 0 : i64, tpu.core_type = #tpu.core_type<tc>, window_params = [{transform_indices = @transform_0, window_bounds = array<i64: 128, 128>}, {pipeline_mode = #tpu.pipeline_mode<synchronous>, transform_indices = @transform_1, window_bounds = array<i64: 1, 128>}, {pipeline_mode = #tpu.pipeline_mode<synchronous>, transform_indices = @transform_2, window_bounds = array<i64: 1, 128>}, {pipeline_mode = #tpu.pipeline_mode<synchronous>, transform_indices = @transform_3, window_bounds = array<i64: 1, 128>}, {pipeline_mode = #tpu.pipeline_mode<synchronous>, transform_indices = @transform_4, window_bounds = array<i64: 1, 128>}, {transform_indices = @transform_5, window_bounds = array<i64: 128, 128>}]} {
    %c0 = arith.constant 0 : index
    %c0_0 = arith.constant 0 : index
    %0 = vector.load %arg2[%c0, %c0_0] : memref<1x128xf32, #tpu.memory_space<vmem>>, vector<1x128xf32>
    %cst = arith.constant 7.812500e-03 : f32
    %1 = vector.broadcast %cst : f32 to vector<1x128xf32>
    %2 = arith.mulf %0, %1 : vector<1x128xf32>
    %c0_1 = arith.constant 0 : index
    %c0_2 = arith.constant 0 : index
    %3 = vector.load %arg3[%c0_1, %c0_2] : memref<1x128xf32, #tpu.memory_space<vmem>>, vector<1x128xf32>
    %cst_3 = arith.constant 7.812500e-03 : f32
    %4 = vector.broadcast %cst_3 : f32 to vector<1x128xf32>
    %5 = arith.mulf %3, %4 : vector<1x128xf32>
    %6 = arith.mulf %2, %2 : vector<1x128xf32>
    %7 = arith.subf %5, %6 : vector<1x128xf32>
    %cst_4 = arith.constant 0.000000e+00 : f32
    %8 = vector.broadcast %cst_4 : f32 to vector<1x128xf32>
    %9 = arith.maximumf %7, %8 : vector<1x128xf32>
    %c0_5 = arith.constant 0 : index
    %c0_6 = arith.constant 0 : index
    %10 = vector.load %arg4[%c0_5, %c0_6] : memref<1x128xf32, #tpu.memory_space<vmem>>, vector<1x128xf32>
    %cst_7 = arith.constant 9.99999974E-6 : f32
    %11 = vector.broadcast %cst_7 : f32 to vector<1x128xf32>
    %12 = arith.addf %9, %11 : vector<1x128xf32>
    %13 = math.rsqrt %12 : vector<1x128xf32>
    %14 = arith.mulf %10, %13 : vector<1x128xf32>
    %c0_8 = arith.constant 0 : index
    %c0_9 = arith.constant 0 : index
    %15 = vector.load %arg5[%c0_8, %c0_9] : memref<1x128xf32, #tpu.memory_space<vmem>>, vector<1x128xf32>
    %16 = arith.mulf %2, %14 : vector<1x128xf32>
    %17 = arith.subf %15, %16 : vector<1x128xf32>
    %c0_10 = arith.constant 0 : index
    %c0_11 = arith.constant 0 : index
    %18 = vector.load %arg1[%c0_10, %c0_11] : memref<128x128xbf16, #tpu.memory_space<vmem>>, vector<128x128xbf16>
    %19 = arith.extf %18 : vector<128x128xbf16> to vector<128x128xf32>
    %20 = vector.broadcast %14 : vector<1x128xf32> to vector<128x128xf32>
    %21 = arith.mulf %19, %20 : vector<128x128xf32>
    %22 = vector.broadcast %17 : vector<1x128xf32> to vector<128x128xf32>
    %23 = arith.addf %21, %22 : vector<128x128xf32>
    %cst_12 = arith.constant 0.000000e+00 : f32
    %24 = vector.broadcast %cst_12 : f32 to vector<128x128xf32>
    %25 = arith.cmpf oge, %23, %24 : vector<128x128xf32>
    %cst_13 = arith.constant 2.000000e-01 : f32
    %26 = vector.broadcast %cst_13 : f32 to vector<128x128xf32>
    %27 = arith.mulf %26, %23 : vector<128x128xf32>
    %28 = arith.select %25, %23, %27 : vector<128x128xi1>, vector<128x128xf32>
    %29 = arith.truncf %28 : vector<128x128xf32> to vector<128x128xbf16>
    %c0_14 = arith.constant 0 : index
    %c0_15 = arith.constant 0 : index
    %30 = vector.load %arg6[%c0_14, %c0_15] : memref<128x128xbf16, #tpu.memory_space<vmem>>, vector<128x128xbf16>
    tpu.vector_store %arg6[%c0_14, %c0_15], %29 {strides = array<i32>} : memref<128x128xbf16, #tpu.memory_space<vmem>>, vector<128x128xbf16>,
    return
  }
  func.func @transform_0(%arg0: i32) -> (i32, i32) {
    %c0_i32 = arith.constant 0 : i32
    %c0_i32_0 = arith.constant 0 : i32
    return %arg0, %c0_i32 : i32, i32
  }
  func.func @transform_1(%arg0: i32) -> (i32, i32) {
    %c0_i32 = arith.constant 0 : i32
    %c0_i32_0 = arith.constant 0 : i32
    %c0_i32_1 = arith.constant 0 : i32
    return %c0_i32, %c0_i32_0 : i32, i32
  }
  func.func @transform_2(%arg0: i32) -> (i32, i32) {
    %c0_i32 = arith.constant 0 : i32
    %c0_i32_0 = arith.constant 0 : i32
    %c0_i32_1 = arith.constant 0 : i32
    return %c0_i32, %c0_i32_0 : i32, i32
  }
  func.func @transform_3(%arg0: i32) -> (i32, i32) {
    %c0_i32 = arith.constant 0 : i32
    %c0_i32_0 = arith.constant 0 : i32
    %c0_i32_1 = arith.constant 0 : i32
    return %c0_i32, %c0_i32_0 : i32, i32
  }
  func.func @transform_4(%arg0: i32) -> (i32, i32) {
    %c0_i32 = arith.constant 0 : i32
    %c0_i32_0 = arith.constant 0 : i32
    %c0_i32_1 = arith.constant 0 : i32
    return %c0_i32, %c0_i32_0 : i32, i32
  }
  func.func @transform_5(%arg0: i32) -> (i32, i32) {
    %c0_i32 = arith.constant 0 : i32
    %c0_i32_0 = arith.constant 0 : i32
    return %arg0, %c0_i32 : i32, i32
  }
}

module attributes {stable_mosaic.version = 11 : i64} {
  func.func @_bn_lrelu_kernel(%arg0: i32, %arg1: memref<32x128xbf16, #tpu.memory_space<vmem>>, %arg2: memref<1x128xf32, #tpu.memory_space<vmem>>, %arg3: memref<1x128xf32, #tpu.memory_space<vmem>>, %arg4: memref<1x128xf32, #tpu.memory_space<vmem>>, %arg5: memref<1x128xf32, #tpu.memory_space<vmem>>, %arg6: memref<32x128xbf16, #tpu.memory_space<vmem>>) attributes {dimension_semantics = [#tpu.dimension_semantics<parallel>], iteration_bounds = array<i64: 1>, scalar_prefetch = 0 : i64, scratch_operands = 0 : i64, tpu.core_type = #tpu.core_type<tc>, window_params = [{transform_indices = @transform_0, window_bounds = array<i64: 32, 128>}, {pipeline_mode = #tpu.pipeline_mode<synchronous>, transform_indices = @transform_1, window_bounds = array<i64: 1, 128>}, {pipeline_mode = #tpu.pipeline_mode<synchronous>, transform_indices = @transform_2, window_bounds = array<i64: 1, 128>}, {pipeline_mode = #tpu.pipeline_mode<synchronous>, transform_indices = @transform_3, window_bounds = array<i64: 1, 128>}, {pipeline_mode = #tpu.pipeline_mode<synchronous>, transform_indices = @transform_4, window_bounds = array<i64: 1, 128>}, {transform_indices = @transform_5, window_bounds = array<i64: 32, 128>}]} {
    %c0 = arith.constant 0 : index
    %c0_0 = arith.constant 0 : index
    %0 = vector.load %arg2[%c0, %c0_0] : memref<1x128xf32, #tpu.memory_space<vmem>>, vector<1x128xf32>
    %cst = arith.constant 3.125000e-02 : f32
    %1 = vector.broadcast %cst : f32 to vector<1x128xf32>
    %2 = arith.mulf %0, %1 : vector<1x128xf32>
    %c0_1 = arith.constant 0 : index
    %c0_2 = arith.constant 0 : index
    %3 = vector.load %arg3[%c0_1, %c0_2] : memref<1x128xf32, #tpu.memory_space<vmem>>, vector<1x128xf32>
    %cst_3 = arith.constant 3.125000e-02 : f32
    %4 = vector.broadcast %cst_3 : f32 to vector<1x128xf32>
    %5 = arith.mulf %3, %4 : vector<1x128xf32>
    %6 = arith.mulf %2, %2 : vector<1x128xf32>
    %7 = arith.subf %5, %6 : vector<1x128xf32>
    %cst_4 = arith.constant 0.000000e+00 : f32
    %8 = vector.broadcast %cst_4 : f32 to vector<1x128xf32>
    %9 = arith.maximumf %7, %8 : vector<1x128xf32>
    %c0_5 = arith.constant 0 : index
    %c0_6 = arith.constant 0 : index
    %10 = vector.load %arg4[%c0_5, %c0_6] : memref<1x128xf32, #tpu.memory_space<vmem>>, vector<1x128xf32>
    %cst_7 = arith.constant 9.99999974E-6 : f32
    %11 = vector.broadcast %cst_7 : f32 to vector<1x128xf32>
    %12 = arith.addf %9, %11 : vector<1x128xf32>
    %13 = math.rsqrt %12 : vector<1x128xf32>
    %14 = arith.mulf %10, %13 : vector<1x128xf32>
    %c0_8 = arith.constant 0 : index
    %c0_9 = arith.constant 0 : index
    %15 = vector.load %arg5[%c0_8, %c0_9] : memref<1x128xf32, #tpu.memory_space<vmem>>, vector<1x128xf32>
    %16 = arith.mulf %2, %14 : vector<1x128xf32>
    %17 = arith.subf %15, %16 : vector<1x128xf32>
    %c0_10 = arith.constant 0 : index
    %c0_11 = arith.constant 0 : index
    %18 = vector.load %arg1[%c0_10, %c0_11] : memref<32x128xbf16, #tpu.memory_space<vmem>>, vector<32x128xbf16>
    %19 = arith.extf %18 : vector<32x128xbf16> to vector<32x128xf32>
    %20 = vector.broadcast %14 : vector<1x128xf32> to vector<32x128xf32>
    %21 = arith.mulf %19, %20 : vector<32x128xf32>
    %22 = vector.broadcast %17 : vector<1x128xf32> to vector<32x128xf32>
    %23 = arith.addf %21, %22 : vector<32x128xf32>
    %cst_12 = arith.constant 0.000000e+00 : f32
    %24 = vector.broadcast %cst_12 : f32 to vector<32x128xf32>
    %25 = arith.cmpf oge, %23, %24 : vector<32x128xf32>
    %cst_13 = arith.constant 2.000000e-01 : f32
    %26 = vector.broadcast %cst_13 : f32 to vector<32x128xf32>
    %27 = arith.mulf %26, %23 : vector<32x128xf32>
    %28 = arith.select %25, %23, %27 : vector<32x128xi1>, vector<32x128xf32>
    %29 = arith.truncf %28 : vector<32x128xf32> to vector<32x128xbf16>
    %c0_14 = arith.constant 0 : index
    %c0_15 = arith.constant 0 : index
    %30 = vector.load %arg6[%c0_14, %c0_15] : memref<32x128xbf16, #tpu.memory_space<vmem>>, vector<32x128xbf16>
    tpu.vector_store %arg6[%c0_14, %c0_15], %29 {strides = array<i32>} : memref<32x128xbf16, #tpu.memory_space<vmem>>, vector<32x128xbf16>,
    return
  }
  func.func @transform_0(%arg0: i32) -> (i32, i32) {
    %c0_i32 = arith.constant 0 : i32
    %c0_i32_0 = arith.constant 0 : i32
    return %arg0, %c0_i32 : i32, i32
  }
  func.func @transform_1(%arg0: i32) -> (i32, i32) {
    %c0_i32 = arith.constant 0 : i32
    %c0_i32_0 = arith.constant 0 : i32
    %c0_i32_1 = arith.constant 0 : i32
    return %c0_i32, %c0_i32_0 : i32, i32
  }
  func.func @transform_2(%arg0: i32) -> (i32, i32) {
    %c0_i32 = arith.constant 0 : i32
    %c0_i32_0 = arith.constant 0 : i32
    %c0_i32_1 = arith.constant 0 : i32
    return %c0_i32, %c0_i32_0 : i32, i32
  }
  func.func @transform_3(%arg0: i32) -> (i32, i32) {
    %c0_i32 = arith.constant 0 : i32
    %c0_i32_0 = arith.constant 0 : i32
    %c0_i32_1 = arith.constant 0 : i32
    return %c0_i32, %c0_i32_0 : i32, i32
  }
  func.func @transform_4(%arg0: i32) -> (i32, i32) {
    %c0_i32 = arith.constant 0 : i32
    %c0_i32_0 = arith.constant 0 : i32
    %c0_i32_1 = arith.constant 0 : i32
    return %c0_i32, %c0_i32_0 : i32, i32
  }
  func.func @transform_5(%arg0: i32) -> (i32, i32) {
    %c0_i32 = arith.constant 0 : i32
    %c0_i32_0 = arith.constant 0 : i32
    return %arg0, %c0_i32 : i32, i32
  }
}

module attributes {stable_mosaic.version = 11 : i64} {
  func.func @_conv_stats_kernel_nk1(%arg0: i32, %arg1: i32, %arg2: memref<32x2048xbf16, #tpu.memory_space<vmem>>, %arg3: memref<2048x128xbf16, #tpu.memory_space<vmem>>, %arg4: memref<1x128xf32, #tpu.memory_space<vmem>>, %arg5: memref<32x128xbf16, #tpu.memory_space<vmem>>, %arg6: memref<1x128xf32, #tpu.memory_space<vmem>>, %arg7: memref<1x128xf32, #tpu.memory_space<vmem>>) attributes {dimension_semantics = [#tpu.dimension_semantics<parallel>, #tpu.dimension_semantics<arbitrary>], iteration_bounds = array<i64: 1, 1>, scalar_prefetch = 0 : i64, scratch_operands = 0 : i64, tpu.core_type = #tpu.core_type<tc>, window_params = [{transform_indices = @transform_0, window_bounds = array<i64: 32, 2048>}, {transform_indices = @transform_1, window_bounds = array<i64: 2048, 128>}, {transform_indices = @transform_2, window_bounds = array<i64: 1, 128>}, {transform_indices = @transform_3, window_bounds = array<i64: 32, 128>}, {transform_indices = @transform_4, window_bounds = array<i64: 1, 128>}, {transform_indices = @transform_5, window_bounds = array<i64: 1, 128>}]} {
    %c0_i32 = arith.constant 0 : i32
    %0 = arith.cmpi eq, %arg1, %c0_i32 : i32
    %1 = arith.extui %0 : i1 to i32
    %c0_i32_0 = arith.constant 0 : i32
    %2 = arith.cmpi ne, %1, %c0_i32_0 : i32
    scf.if %2 {
      %cst_18 = arith.constant 0.000000e+00 : f32
      %22 = vector.broadcast %cst_18 : f32 to vector<1x128xf32>
      %c0_19 = arith.constant 0 : index
      %c0_20 = arith.constant 0 : index
      %23 = vector.load %arg6[%c0_19, %c0_20] : memref<1x128xf32, #tpu.memory_space<vmem>>, vector<1x128xf32>
      tpu.vector_store %arg6[%c0_19, %c0_20], %22 {strides = array<i32>} : memref<1x128xf32, #tpu.memory_space<vmem>>, vector<1x128xf32>,
      %cst_21 = arith.constant 0.000000e+00 : f32
      %24 = vector.broadcast %cst_21 : f32 to vector<1x128xf32>
      %c0_22 = arith.constant 0 : index
      %c0_23 = arith.constant 0 : index
      %25 = vector.load %arg7[%c0_22, %c0_23] : memref<1x128xf32, #tpu.memory_space<vmem>>, vector<1x128xf32>
      tpu.vector_store %arg7[%c0_22, %c0_23], %24 {strides = array<i32>} : memref<1x128xf32, #tpu.memory_space<vmem>>, vector<1x128xf32>,
    } else {
    }
    %c0 = arith.constant 0 : index
    %c0_1 = arith.constant 0 : index
    %3 = vector.load %arg2[%c0, %c0_1] : memref<32x2048xbf16, #tpu.memory_space<vmem>>, vector<32x2048xbf16>
    %c0_2 = arith.constant 0 : index
    %c0_3 = arith.constant 0 : index
    %4 = vector.load %arg3[%c0_2, %c0_3] : memref<2048x128xbf16, #tpu.memory_space<vmem>>, vector<2048x128xbf16>
    %cst = arith.constant dense<0.000000e+00> : vector<32x128xf32>
    %5 = tpu.matmul %3, %4, %cst {dimension_numbers = #tpu.dot_dimension_numbers<[1], [0], [0], [1], [0, 0, 1, 1], [], []>} : vector<32x2048xbf16>, vector<2048x128xbf16>, vector<32x128xf32> -> vector<32x128xf32>
    %c0_4 = arith.constant 0 : index
    %c0_5 = arith.constant 0 : index
    %6 = vector.load %arg4[%c0_4, %c0_5] : memref<1x128xf32, #tpu.memory_space<vmem>>, vector<1x128xf32>
    %7 = vector.broadcast %6 : vector<1x128xf32> to vector<32x128xf32>
    %8 = arith.addf %5, %7 : vector<32x128xf32>
    %9 = arith.truncf %8 : vector<32x128xf32> to vector<32x128xbf16>
    %c0_6 = arith.constant 0 : index
    %c0_7 = arith.constant 0 : index
    %10 = vector.load %arg5[%c0_6, %c0_7] : memref<32x128xbf16, #tpu.memory_space<vmem>>, vector<32x128xbf16>
    tpu.vector_store %arg5[%c0_6, %c0_7], %9 {strides = array<i32>} : memref<32x128xbf16, #tpu.memory_space<vmem>>, vector<32x128xbf16>,
    %c0_8 = arith.constant 0 : index
    %c0_9 = arith.constant 0 : index
    %11 = vector.load %arg6[%c0_8, %c0_9] : memref<1x128xf32, #tpu.memory_space<vmem>>, vector<1x128xf32>
    %cst_10 = arith.constant dense<0.000000e+00> : vector<128xf32>
    %12 = vector.multi_reduction <add>, %8, %cst_10 [0] : vector<32x128xf32> to vector<128xf32>
    %13 = vector.shape_cast %12 : vector<128xf32> to vector<1x128xf32>
    %14 = arith.addf %11, %13 : vector<1x128xf32>
    %c0_11 = arith.constant 0 : index
    %c0_12 = arith.constant 0 : index
    %15 = vector.load %arg6[%c0_11, %c0_12] : memref<1x128xf32, #tpu.memory_space<vmem>>, vector<1x128xf32>
    tpu.vector_store %arg6[%c0_11, %c0_12], %14 {strides = array<i32>} : memref<1x128xf32, #tpu.memory_space<vmem>>, vector<1x128xf32>,
    %c0_13 = arith.constant 0 : index
    %c0_14 = arith.constant 0 : index
    %16 = vector.load %arg7[%c0_13, %c0_14] : memref<1x128xf32, #tpu.memory_space<vmem>>, vector<1x128xf32>
    %17 = arith.mulf %8, %8 : vector<32x128xf32>
    %cst_15 = arith.constant dense<0.000000e+00> : vector<128xf32>
    %18 = vector.multi_reduction <add>, %17, %cst_15 [0] : vector<32x128xf32> to vector<128xf32>
    %19 = vector.shape_cast %18 : vector<128xf32> to vector<1x128xf32>
    %20 = arith.addf %16, %19 : vector<1x128xf32>
    %c0_16 = arith.constant 0 : index
    %c0_17 = arith.constant 0 : index
    %21 = vector.load %arg7[%c0_16, %c0_17] : memref<1x128xf32, #tpu.memory_space<vmem>>, vector<1x128xf32>
    tpu.vector_store %arg7[%c0_16, %c0_17], %20 {strides = array<i32>} : memref<1x128xf32, #tpu.memory_space<vmem>>, vector<1x128xf32>,
    return
  }
  func.func @transform_0(%arg0: i32, %arg1: i32) -> (i32, i32) {
    %c0_i32 = arith.constant 0 : i32
    %c0_i32_0 = arith.constant 0 : i32
    return %arg1, %c0_i32 : i32, i32
  }
  func.func @transform_1(%arg0: i32, %arg1: i32) -> (i32, i32) {
    %c0_i32 = arith.constant 0 : i32
    %c0_i32_0 = arith.constant 0 : i32
    return %c0_i32, %arg0 : i32, i32
  }
  func.func @transform_2(%arg0: i32, %arg1: i32) -> (i32, i32) {
    %c0_i32 = arith.constant 0 : i32
    %c0_i32_0 = arith.constant 0 : i32
    return %c0_i32, %arg0 : i32, i32
  }
  func.func @transform_3(%arg0: i32, %arg1: i32) -> (i32, i32) {
    %c0_i32 = arith.constant 0 : i32
    return %arg1, %arg0 : i32, i32
  }
  func.func @transform_4(%arg0: i32, %arg1: i32) -> (i32, i32) {
    %c0_i32 = arith.constant 0 : i32
    %c0_i32_0 = arith.constant 0 : i32
    return %c0_i32, %arg0 : i32, i32
  }
  func.func @transform_5(%arg0: i32, %arg1: i32) -> (i32, i32) {
    %c0_i32 = arith.constant 0 : i32
    %c0_i32_0 = arith.constant 0 : i32
    return %c0_i32, %arg0 : i32, i32
  }
}

module attributes {stable_mosaic.version = 11 : i64} {
  func.func @_conv_kernel_nk1(%arg0: i32, %arg1: i32, %arg2: memref<8x2048xbf16, #tpu.memory_space<vmem>>, %arg3: memref<2048x128xbf16, #tpu.memory_space<vmem>>, %arg4: memref<1x128xf32, #tpu.memory_space<vmem>>, %arg5: memref<8x128xf32, #tpu.memory_space<vmem>>) attributes {dimension_semantics = [#tpu.dimension_semantics<parallel>, #tpu.dimension_semantics<parallel>], iteration_bounds = array<i64: 1, 1>, scalar_prefetch = 0 : i64, scratch_operands = 0 : i64, tpu.core_type = #tpu.core_type<tc>, window_params = [{transform_indices = @transform_0, window_bounds = array<i64: 8, 2048>}, {transform_indices = @transform_1, window_bounds = array<i64: 2048, 128>}, {transform_indices = @transform_2, window_bounds = array<i64: 1, 128>}, {transform_indices = @transform_3, window_bounds = array<i64: 8, 128>}]} {
    %c0 = arith.constant 0 : index
    %c0_0 = arith.constant 0 : index
    %0 = vector.load %arg2[%c0, %c0_0] : memref<8x2048xbf16, #tpu.memory_space<vmem>>, vector<8x2048xbf16>
    %c0_1 = arith.constant 0 : index
    %c0_2 = arith.constant 0 : index
    %1 = vector.load %arg3[%c0_1, %c0_2] : memref<2048x128xbf16, #tpu.memory_space<vmem>>, vector<2048x128xbf16>
    %cst = arith.constant dense<0.000000e+00> : vector<8x128xf32>
    %2 = tpu.matmul %0, %1, %cst {dimension_numbers = #tpu.dot_dimension_numbers<[1], [0], [0], [1], [0, 0, 1, 1], [], []>} : vector<8x2048xbf16>, vector<2048x128xbf16>, vector<8x128xf32> -> vector<8x128xf32>
    %c0_3 = arith.constant 0 : index
    %c0_4 = arith.constant 0 : index
    %3 = vector.load %arg4[%c0_3, %c0_4] : memref<1x128xf32, #tpu.memory_space<vmem>>, vector<1x128xf32>
    %4 = vector.broadcast %3 : vector<1x128xf32> to vector<8x128xf32>
    %5 = arith.addf %2, %4 : vector<8x128xf32>
    %c0_5 = arith.constant 0 : index
    %c0_6 = arith.constant 0 : index
    %6 = vector.load %arg5[%c0_5, %c0_6] : memref<8x128xf32, #tpu.memory_space<vmem>>, vector<8x128xf32>
    tpu.vector_store %arg5[%c0_5, %c0_6], %5 {strides = array<i32>} : memref<8x128xf32, #tpu.memory_space<vmem>>, vector<8x128xf32>,
    return
  }
  func.func @transform_0(%arg0: i32, %arg1: i32) -> (i32, i32) {
    %c0_i32 = arith.constant 0 : i32
    %c0_i32_0 = arith.constant 0 : i32
    return %arg1, %c0_i32 : i32, i32
  }
  func.func @transform_1(%arg0: i32, %arg1: i32) -> (i32, i32) {
    %c0_i32 = arith.constant 0 : i32
    %c0_i32_0 = arith.constant 0 : i32
    return %c0_i32, %arg0 : i32, i32
  }
  func.func @transform_2(%arg0: i32, %arg1: i32) -> (i32, i32) {
    %c0_i32 = arith.constant 0 : i32
    %c0_i32_0 = arith.constant 0 : i32
    return %c0_i32, %arg0 : i32, i32
  }
  func.func @transform_3(%arg0: i32, %arg1: i32) -> (i32, i32) {
    %c0_i32 = arith.constant 0 : i32
    return %arg1, %arg0 : i32, i32
  }
}

</mosaic_0001>

<bundles_post_ra>
// kernel: discriminator_forward.8
= control target key start
LH: loop header
LB: loop body
LE: loop exit
PB: predicated region body
PF: predicated region fallthrough
CT: control target
= control target key end

     0   :  { %s3696_s12 = smov 0   ;;  %s3698_s13 = smov 0   ;;  %s4214_s0 = inlined_call_operand.vmem [shape: bf16[2048,48], index: 0, kind: input, shape index: {}]   ;;  %s4215_s1 = inlined_call_operand.vmem [shape: bf16[48,128], index: 1, kind: input, shape index: {}]   ;;  %s4216_s2 = inlined_call_operand.vmem [shape: f32[1,128], index: 2, kind: input, shape index: {}]   ;;  %s4217_s3 = inlined_call_operand.vmem [shape: bf16[2048,128], index: 3, kind: output, shape index: {}]  }
   0x1   :  { %s3700_s14 = smov 0  }
   0x2 LB: > { %s22_s15 = sadd.s32 1, %s3670_s13  ;;  %p2575_p0 = scmp.ge.s32.totalorder %s3674_s14, 1  ;;  %s3674_s14 = sphi %s3700_s14, %s13_s14   ;;  %s3670_s13 = sphi %s3698_s13, %s4219_s13   ;;  %s3666_s12 = sphi %s3696_s12, %s4218_s12  }
   0x3   : > { %p23_p1 = scmp.ge.s32.totalorder %s22_s15, 2  ;;  %p169_p2 = scmp.lt.s32.totalorder %s3674_s14, 3 }
   0x5   : > { %s4221_s15 = smov (%p23_p1, %s22_s15), 0  ;;  %p170_p3 = pnand %p2575_p0, %p169_p2 }
   0x6   : > { %v3584_v0 = vld [vmem:[%s4215_s1] sm:$0xff] (!%p170_p3)   ;;  %s2576_s18 = sshll.u32 (!%p170_p3), %s3666_s12, 7  ;;  %v3585_v1 = vld [vmem:[%s4215_s1 + $0x8] sm:$0xff] (!%p170_p3)   ;;  %v3586_v2 = vld [vmem:[%s4215_s1 + $0x10] sm:$0xff] (!%p170_p3)   ;;  %vm705_vm0 = vcmask (!%p170_p3), 392192  }
   0x7   : > { %173 = sbr.rel (%p170_p3) target bundleno = 380 (0x17c), region = 32  ;;  %p204_p4 = scmp.lt.s32.totalorder (!%p170_p3), %s2576_s18, 255  ;;  %3420 = vmatprep.subr.bf16.mxu0 (!%p170_p3), %v3584_v0  ;;  %3554 = vmatprep.subr.bf16.mxu1 (!%p170_p3), %v3584_v0 }
   0x8   : > { %3421 = vmatpush3.bf16.msra.mxu0 (!%p170_p3), %v3584_v0  ;;  %3557 = vmatpush3.bf16.msra.mxu1 (!%p170_p3), %v3584_v0 }
   0x9   : > { %3422 = vmatprep.subr.bf16.mxu0 (!%p170_p3), %v3585_v1  ;;  %3555 = vmatprep.subr.bf16.mxu1 (!%p170_p3), %v3585_v1 }
   0xc   : > { %3423 = vmatpush3.bf16.msra.mxu0 (!%p170_p3), %v3585_v1  ;;  %3558 = vmatpush3.bf16.msra.mxu1 (!%p170_p3), %v3585_v1 }
   0xd   : > { %3424 = vmatprep.subr.bf16.mxu0 (!%p170_p3), %v3586_v2  ;;  %3556 = vmatprep.subr.bf16.mxu1 (!%p170_p3), %v3586_v2 }
   0xe   : > { %s4223_s18 = smov (!%p204_p4, %s2576_s18), 255 }
   0xf   : > { %s2577_s23 = sshll.u32 %s4223_s18, 2 }
  0x10   : > { %s3731_s26 = scalar_lea.vmem %s4214_s0, %s2577_s23  ;;  %3425 = vmatpush3.bf16.msra.mxu0 %v3586_v2  ;;  %3559 = vmatpush3.bf16.msra.mxu1 %v3586_v2  ;;  %s3881_s4 = scalar_lea.vmem %s4217_s3, %s2577_s23 }
  0x11   : > { %v3587_v3 = vld [vmem:[%s3731_s26] sm:$0xff]   ;;  %v3589_v5 = vld [vmem:[%s3731_s26 + $0x8] sm:$0xff]   ;;  %v3591_v7 = vld [vmem:[%s3731_s26 + $0x10] sm:$0xff]  }
  0x12   : > { %v3588_v4 = vld [vmem:[%s3731_s26 + $0x100] sm:$0xff]   ;;  %3426 = vmatprep.mubr.msk.bf16.mxu0 %vm705_vm0, %v3587_v3  ;;  %v3590_v6 = vld [vmem:[%s3731_s26 + $0x108] sm:$0xff]   ;;  %v3592_v8 = vld [vmem:[%s3731_s26 + $0x110] sm:$0xff]  }
  0x13   : > { %3490 = vmatprep.mubr.msk.bf16.mxu1 %vm705_vm0, %v3588_v4  ;;  %3427 = vmatmul.mubr.msk.bf16.vlgmr.msra.gmra.mrb[0].mxu0 %vm705_vm0, %v3589_v5  ;;  %v3593_v9 = vld [vmem:[%s3731_s26 + $0x18] sm:$0xff]   ;;  %v3595_v11 = vld [vmem:[%s3731_s26 + $0x20] sm:$0xff]   ;;  %v3597_v13 = vld [vmem:[%s3731_s26 + $0x28] sm:$0xff]  }
  0x14   : > { %3491 = vmatmul.mubr.msk.bf16.vlgmr.msra.gmra.mrb[0].mxu1 %vm705_vm0, %v3590_v6  ;;  %3430 = vmatprep.mubr.msk.bf16.mxu0 %vm705_vm0, %v3591_v7  ;;  %v3594_v10 = vld [vmem:[%s3731_s26 + $0x118] sm:$0xff]   ;;  %v3596_v12 = vld [vmem:[%s3731_s26 + $0x120] sm:$0xff]   ;;  %v3598_v14 = vld [vmem:[%s3731_s26 + $0x128] sm:$0xff]  }
  0x15   : > { %3494 = vmatprep.mubr.msk.bf16.mxu1 %vm705_vm0, %v3592_v8  ;;  %v3599_v15 = vld [vmem:[%s3731_s26 + $0x30] sm:$0xff]   ;;  %v3601_v17 = vld [vmem:[%s3731_s26 + $0x38] sm:$0xff]   ;;  %v3603_v19 = vld [vmem:[%s3731_s26 + $0x40] sm:$0xff]  }
  0x16   : > { %v3600_v16 = vld [vmem:[%s3731_s26 + $0x130] sm:$0xff]   ;;  %v3602_v18 = vld [vmem:[%s3731_s26 + $0x138] sm:$0xff]   ;;  %v3604_v20 = vld [vmem:[%s3731_s26 + $0x140] sm:$0xff]  }
  0x17   : > { %v3605_v21 = vld [vmem:[%s3731_s26 + $0x48] sm:$0xff]   ;;  %v3607_v23 = vld [vmem:[%s3731_s26 + $0x50] sm:$0xff]   ;;  %v3609_v25 = vld [vmem:[%s3731_s26 + $0x58] sm:$0xff]  }
  0x18   : > { %v3606_v22 = vld [vmem:[%s3731_s26 + $0x148] sm:$0xff]   ;;  %v3608_v24 = vld [vmem:[%s3731_s26 + $0x150] sm:$0xff]   ;;  %v3610_v26 = vld [vmem:[%s3731_s26 + $0x158] sm:$0xff]  }
  0x19   : > { %v3611_v27 = vld [vmem:[%s3731_s26 + $0x60] sm:$0xff]   ;;  %v3613_v29 = vld [vmem:[%s3731_s26 + $0x68] sm:$0xff]   ;;  %v3615_v31 = vld [vmem:[%s3731_s26 + $0x70] sm:$0xff]  }
  0x1a   : > { %v3612_v28 = vld [vmem:[%s3731_s26 + $0x160] sm:$0xff]   ;;  %v3614_v30 = vld [vmem:[%s3731_s26 + $0x168] sm:$0xff]   ;;  %v3616_v32 = vld [vmem:[%s3731_s26 + $0x170] sm:$0xff]  }
  0x1b   : > { %3431 = vmatmul.mubr.msk.bf16.gmra.mrb[4].mxu0 %vm705_vm0, %v3593_v9  ;;  %v3617_v33 = vld [vmem:[%s3731_s26 + $0x78] sm:$0xff]   ;;  %v3619_v35 = vld [vmem:[%s3731_s26 + $0x80] sm:$0xff]   ;;  %v3621_v37 = vld [vmem:[%s3731_s26 + $0x88] sm:$0xff]  }
  0x1c   : > { %3495 = vmatmul.mubr.msk.bf16.gmra.mrb[4].mxu1 %vm705_vm0, %v3594_v10  ;;  %3434 = vmatprep.mubr.msk.bf16.mxu0 %vm705_vm0, %v3595_v11  ;;  %v3618_v34 = vld [vmem:[%s3731_s26 + $0x178] sm:$0xff]   ;;  %v3620_v36 = vld [vmem:[%s3731_s26 + $0x180] sm:$0xff]   ;;  %v3622_v38 = vld [vmem:[%s3731_s26 + $0x188] sm:$0xff]  }
  0x1d   : > { %3498 = vmatprep.mubr.msk.bf16.mxu1 %vm705_vm0, %v3596_v12  ;;  %v3623_v39 = vld [vmem:[%s3731_s26 + $0x90] sm:$0xff]   ;;  %v3625_v41 = vld [vmem:[%s3731_s26 + $0x98] sm:$0xff]   ;;  %v3627_v43 = vld [vmem:[%s3731_s26 + $0xa0] sm:$0xff]  }
  0x1e   : > { %v3624_v40 = vld [vmem:[%s3731_s26 + $0x190] sm:$0xff]   ;;  %v3626_v42 = vld [vmem:[%s3731_s26 + $0x198] sm:$0xff]   ;;  %v3628_v44 = vld [vmem:[%s3731_s26 + $0x1a0] sm:$0xff]  }
  0x1f   : > { %v3629_v45 = vld [vmem:[%s3731_s26 + $0xa8] sm:$0xff]   ;;  %v3631_v47 = vld [vmem:[%s3731_s26 + $0xb0] sm:$0xff]   ;;  %v3633_v49 = vld [vmem:[%s3731_s26 + $0xb8] sm:$0xff]  }
  0x20   : > { %v3630_v46 = vld [vmem:[%s3731_s26 + $0x1a8] sm:$0xff]   ;;  %v3632_v48 = vld [vmem:[%s3731_s26 + $0x1b0] sm:$0xff]   ;;  %v3634_v50 = vld [vmem:[%s3731_s26 + $0x1b8] sm:$0xff]  }
  0x21   : > { %v3635_v51 = vld [vmem:[%s3731_s26 + $0xc0] sm:$0xff]   ;;  %v3637_v53 = vld [vmem:[%s3731_s26 + $0xc8] sm:$0xff]   ;;  %v3639_v55 = vld [vmem:[%s3731_s26 + $0xd0] sm:$0xff]  }
  0x22   : > { %v3636_v52 = vld [vmem:[%s3731_s26 + $0x1c0] sm:$0xff]   ;;  %v3638_v54 = vld [vmem:[%s3731_s26 + $0x1c8] sm:$0xff]   ;;  %v3640_v56 = vld [vmem:[%s3731_s26 + $0x1d0] sm:$0xff]  }
  0x23   : > { %3435 = vmatmul.mubr.msk.bf16.gmra.mrb[8].mxu0 %vm705_vm0, %v3597_v13  ;;  %v3641_v57 = vld [vmem:[%s3731_s26 + $0xd8] sm:$0xff]   ;;  %v3643_v59 = vld [vmem:[%s3731_s26 + $0xe0] sm:$0xff]   ;;  %v3645_v61 = vld [vmem:[%s3731_s26 + $0xe8] sm:$0xff]  }
  0x24   : > { %3499 = vmatmul.mubr.msk.bf16.gmra.mrb[8].mxu1 %vm705_vm0, %v3598_v14  ;;  %3438 = vmatprep.mubr.msk.bf16.mxu0 %vm705_vm0, %v3599_v15  ;;  %v3642_v58 = vld [vmem:[%s3731_s26 + $0x1d8] sm:$0xff]   ;;  %v3644_v60 = vld [vmem:[%s3731_s26 + $0x1e0] sm:$0xff]   ;;  %v3646_v62 = vld [vmem:[%s3731_s26 + $0x1e8] sm:$0xff]  }
  0x25   : > { %3502 = vmatprep.mubr.msk.bf16.mxu1 %vm705_vm0, %v3600_v16  ;;  %v3647_v63 = vld [vmem:[%s3731_s26 + $0xf0] sm:$0xff]   ;;  %v3649_v1 = vld [vmem:[%s3731_s26 + $0xf8] sm:$0xff]   ;;  %v3864_v3 = vld [vmem:[%s4216_s2] ss:$0 sm:$0xff] }
  0x26   : > { %v3648_v0 = vld [vmem:[%s3731_s26 + $0x1f0] sm:$0xff]   ;;  %v3650_v2 = vld [vmem:[%s3731_s26 + $0x1f8] sm:$0xff]  }
  0x2b   : > { %3439 = vmatmul.mubr.msk.bf16.gmra.mrb[12].mxu0 %vm705_vm0, %v3601_v17 }
  0x2c   : > { %3503 = vmatmul.mubr.msk.bf16.gmra.mrb[12].mxu1 %vm705_vm0, %v3602_v18  ;;  %3442 = vmatprep.mubr.msk.bf16.mxu0 %vm705_vm0, %v3603_v19 }
  0x2d   : > { %3506 = vmatprep.mubr.msk.bf16.mxu1 %vm705_vm0, %v3604_v20 }
  0x33   : > { %3443 = vmatmul.mubr.msk.bf16.gmra.mrb[16].mxu0 %vm705_vm0, %v3605_v21 }
  0x34   : > { %3507 = vmatmul.mubr.msk.bf16.gmra.mrb[16].mxu1 %vm705_vm0, %v3606_v22  ;;  %3446 = vmatprep.mubr.msk.bf16.mxu0 %vm705_vm0, %v3607_v23 }
  0x35   : > { %3510 = vmatprep.mubr.msk.bf16.mxu1 %vm705_vm0, %v3608_v24 }
  0x3b   : > { %3447 = vmatmul.mubr.msk.bf16.gmra.mrb[20].mxu0 %vm705_vm0, %v3609_v25 }
  0x3c   : > { %3511 = vmatmul.mubr.msk.bf16.gmra.mrb[20].mxu1 %vm705_vm0, %v3610_v26  ;;  %3450 = vmatprep.mubr.msk.bf16.mxu0 %vm705_vm0, %v3611_v27 }
  0x3d   : > { %3514 = vmatprep.mubr.msk.bf16.mxu1 %vm705_vm0, %v3612_v28 }
  0x43   : > { %3451 = vmatmul.mubr.msk.bf16.gmra.mrb[24].mxu0 %vm705_vm0, %v3613_v29 }
  0x44   : > { %3515 = vmatmul.mubr.msk.bf16.gmra.mrb[24].mxu1 %vm705_vm0, %v3614_v30  ;;  %3454 = vmatprep.mubr.msk.bf16.mxu0 %vm705_vm0, %v3615_v31 }
  0x45   : > { %3518 = vmatprep.mubr.msk.bf16.mxu1 %vm705_vm0, %v3616_v32 }
  0x4b   : > { %3455 = vmatmul.mubr.msk.bf16.gmra.mrb[28].mxu0 %vm705_vm0, %v3617_v33 }
  0x4c   : > { %3519 = vmatmul.mubr.msk.bf16.gmra.mrb[28].mxu1 %vm705_vm0, %v3618_v34  ;;  %3458 = vmatprep.mubr.msk.bf16.mxu0 %vm705_vm0, %v3619_v35 }
  0x4d   : > { %3522 = vmatprep.mubr.msk.bf16.mxu1 %vm705_vm0, %v3620_v36 }
  0x53   : > { %3459 = vmatmul.mubr.msk.bf16.gmra.mrb[32].mxu0 %vm705_vm0, %v3621_v37 }
  0x54   : > { %3523 = vmatmul.mubr.msk.bf16.gmra.mrb[32].mxu1 %vm705_vm0, %v3622_v38  ;;  %3462 = vmatprep.mubr.msk.bf16.mxu0 %vm705_vm0, %v3623_v39 }
  0x55   : > { %3526 = vmatprep.mubr.msk.bf16.mxu1 %vm705_vm0, %v3624_v40 }
  0x5b   : > { %3463 = vmatmul.mubr.msk.bf16.gmra.mrb[36].mxu0 %vm705_vm0, %v3625_v41 }
  0x5c   : > { %3527 = vmatmul.mubr.msk.bf16.gmra.mrb[36].mxu1 %vm705_vm0, %v3626_v42  ;;  %3466 = vmatprep.mubr.msk.bf16.mxu0 %vm705_vm0, %v3627_v43 }
  0x5d   : > { %3530 = vmatprep.mubr.msk.bf16.mxu1 %vm705_vm0, %v3628_v44 }
  0x63   : > { %3467 = vmatmul.mubr.msk.bf16.gmra.mrb[40].mxu0 %vm705_vm0, %v3629_v45 }
  0x64   : > { %3531 = vmatmul.mubr.msk.bf16.gmra.mrb[40].mxu1 %vm705_vm0, %v3630_v46  ;;  %3470 = vmatprep.mubr.msk.bf16.mxu0 %vm705_vm0, %v3631_v47 }
  0x65   : > { %3534 = vmatprep.mubr.msk.bf16.mxu1 %vm705_vm0, %v3632_v48 }
  0x6b   : > { %3471 = vmatmul.mubr.msk.bf16.gmra.mrb[44].mxu0 %vm705_vm0, %v3633_v49 }
  0x6c   : > { %3535 = vmatmul.mubr.msk.bf16.gmra.mrb[44].mxu1 %vm705_vm0, %v3634_v50  ;;  %3474 = vmatprep.mubr.msk.bf16.mxu0 %vm705_vm0, %v3635_v51 }
  0x6d   : > { %3538 = vmatprep.mubr.msk.bf16.mxu1 %vm705_vm0, %v3636_v52 }
  0x73   : > { %3475 = vmatmul.mubr.msk.bf16.gmra.mrb[48].mxu0 %vm705_vm0, %v3637_v53 }
  0x74   : > { %3539 = vmatmul.mubr.msk.bf16.gmra.mrb[48].mxu1 %vm705_vm0, %v3638_v54  ;;  %3478 = vmatprep.mubr.msk.bf16.mxu0 %vm705_vm0, %v3639_v55 }
  0x75   : > { %3542 = vmatprep.mubr.msk.bf16.mxu1 %vm705_vm0, %v3640_v56 }
  0x7b   : > { %3479 = vmatmul.mubr.msk.bf16.gmra.mrb[52].mxu0 %vm705_vm0, %v3641_v57 }
  0x7c   : > { %3543 = vmatmul.mubr.msk.bf16.gmra.mrb[52].mxu1 %vm705_vm0, %v3642_v58  ;;  %3482 = vmatprep.mubr.msk.bf16.mxu0 %vm705_vm0, %v3643_v59 }
  0x7d   : > { %3546 = vmatprep.mubr.msk.bf16.mxu1 %vm705_vm0, %v3644_v60 }
  0x83   : > { %3483 = vmatmul.mubr.msk.bf16.gmra.mrb[56].mxu0 %vm705_vm0, %v3645_v61 }
  0x84   : > { %3547 = vmatmul.mubr.msk.bf16.gmra.mrb[56].mxu1 %vm705_vm0, %v3646_v62  ;;  %3486 = vmatprep.mubr.msk.bf16.mxu0 %vm705_vm0, %v3647_v63 }
  0x85   : > { %3550 = vmatprep.mubr.msk.bf16.mxu1 %vm705_vm0, %v3648_v0 }
  0x8b   : > { %3487 = vmatmul.mubr.msk.bf16.gmra.mrb[60].mxu0 %vm705_vm0, %v3649_v1 }
  0x8c   : > { %3551 = vmatmul.mubr.msk.bf16.gmra.mrb[60].mxu1 %vm705_vm0, %v3650_v2 }
  0xe6   : > { %v3428_v4 = vpop.f32.mrb[0].mxu0 }
  0xe7   : > { %v3492_v5 = vpop.f32.mrb[0].mxu1  ;;  %v941_v6 = vadd.f32 %v3428_v4, %v3864_v3  ;;  %v932_v8 = vpop.f32.mrb[1].mxu0 }
  0xe8   : > { %v1197_v7 = vadd.f32 %v3492_v5, %v3864_v3  ;;  %v1188_v9 = vpop.f32.mrb[1].mxu1  ;;  %v933_v10 = vadd.f32 %v3864_v3, %v932_v8  ;;  %v3429_v12 = vpop.f32.mrb[2].mxu0 }
  0xe9   : > { %v1189_v11 = vadd.f32 %v3864_v3, %v1188_v9  ;;  %v3493_v13 = vpop.f32.mrb[2].mxu1  ;;  %vm1445_vm1 = vcmp.ge.f32.partialorder %v941_v6, 0.0  ;;  %v1573_v14 = vmul.f32 0.2, %v941_v6  ;;  %v944_v18 = vadd.f32 %v3429_v12, %v3864_v3  ;;  %v935_v20 = vpop.f32.mrb[3].mxu0 }
  0xea   : > { %vm1509_vm2 = vcmp.ge.f32.partialorder %v1197_v7, 0.0  ;;  %v1637_v15 = vmul.f32 0.2, %v1197_v7  ;;  %vm1443_vm3 = vcmp.ge.f32.partialorder %v933_v10, 0.0  ;;  %v1571_v16 = vmul.f32 0.2, %v933_v10 }
  0xeb   : > { %vm1507_vm4 = vcmp.ge.f32.partialorder %v1189_v11, 0.0  ;;  %v1635_v17 = vmul.f32 0.2, %v1189_v11  ;;  %v1200_v19 = vadd.f32 %v3493_v13, %v3864_v3  ;;  %v1191_v21 = vpop.f32.mrb[3].mxu1  ;;  %v1701_v22 = vsel %vm1445_vm1, %v941_v6, %v1573_v14 }
  0xec   : > { %v1765_v23 = vsel %vm1509_vm2, %v1197_v7, %v1637_v15  ;;  %v936_v24 = vadd.f32 %v3864_v3, %v935_v20  ;;  %v1192_v25 = vadd.f32 %v3864_v3, %v1191_v21  ;;  %vm1446_vm5 = vcmp.ge.f32.partialorder %v944_v18, 0.0 }
  0xed   : > { %v1574_v26 = vmul.f32 0.2, %v944_v18  ;;  %vm1510_vm6 = vcmp.ge.f32.partialorder %v1200_v19, 0.0  ;;  %v1638_v27 = vmul.f32 0.2, %v1200_v19  ;;  %v1699_v30 = vsel %vm1443_vm3, %v933_v10, %v1571_v16 }
  0xee   : > { %vm1444_vm7 = vcmp.ge.f32.partialorder %v936_v24, 0.0  ;;  %v1572_v28 = vmul.f32 0.2, %v936_v24  ;;  %vm1508_vm8 = vcmp.ge.f32.partialorder %v1192_v25, 0.0  ;;  %v1636_v29 = vmul.f32 0.2, %v1192_v25 }
  0xef   : > { %v1763_v31 = vsel %vm1507_vm4, %v1189_v11, %v1635_v17  ;;  %v1702_v32 = vsel %vm1446_vm5, %v944_v18, %v1574_v26  ;;  %v1766_v33 = vsel %vm1510_vm6, %v1200_v19, %v1638_v27  ;;  %v3432_v34 = vpop.f32.mrb[4].mxu0  ;;  %v3496_v35 = vpop.f32.mrb[4].mxu1 }
  0xf0   : > { %v2978_v36 = vpack.c.bf16 %v1702_v32, %v1701_v22  ;;  %v3138_v37 = vpack.c.bf16 %v1766_v33, %v1765_v23  ;;  %v1700_v38 = vsel %vm1444_vm7, %v936_v24, %v1572_v28  ;;  %v1764_v39 = vsel %vm1508_vm8, %v1192_v25, %v1636_v29  ;;  %v948_v40 = vpop.f32.mrb[5].mxu0  ;;  %v1204_v41 = vpop.f32.mrb[5].mxu1 }
  0xf1   : > { %v2973_v42 = vpack.c.bf16 %v1700_v38, %v1699_v30  ;;  %v3133_v43 = vpack.c.bf16 %v1764_v39, %v1763_v31  ;;  %v957_v44 = vadd.f32 %v3432_v34, %v3864_v3  ;;  %v1213_v45 = vadd.f32 %v3496_v35, %v3864_v3  ;;  %v3433_v46 = vpop.f32.mrb[6].mxu0  ;;  %v3497_v47 = vpop.f32.mrb[6].mxu1 }
  0xf2   : > { %3290 = vst [vmem:[%s3881_s4 + $0x8] sm:$0xff] %v2978_v36   ;;  %3322 = vst [vmem:[%s3881_s4 + $0x108] sm:$0xff] %v3138_v37   ;;  %v949_v48 = vadd.f32 %v3864_v3, %v948_v40  ;;  %v1205_v49 = vadd.f32 %v3864_v3, %v1204_v41  ;;  %v960_v50 = vadd.f32 %v3433_v46, %v3864_v3  ;;  %v951_v52 = vpop.f32.mrb[7].mxu0  ;;  %v1207_v53 = vpop.f32.mrb[7].mxu1 }
  0xf3   : > { %v1216_v51 = vadd.f32 %v3497_v47, %v3864_v3  ;;  %2974 = vst [vmem:[%s3881_s4] sm:$0xff] %v2973_v42   ;;  %3321 = vst [vmem:[%s3881_s4 + $0x100] sm:$0xff] %v3133_v43   ;;  %vm1449_vm9 = vcmp.ge.f32.partialorder %v957_v44, 0.0  ;;  %v1577_v54 = vmul.f32 0.2, %v957_v44  ;;  %vm1513_vm10 = vcmp.ge.f32.partialorder %v1213_v45, 0.0 }
  0xf4   : > { %v1641_v55 = vmul.f32 0.2, %v1213_v45  ;;  %vm1447_vm11 = vcmp.ge.f32.partialorder %v949_v48, 0.0  ;;  %v1575_v56 = vmul.f32 0.2, %v949_v48  ;;  %vm1511_vm12 = vcmp.ge.f32.partialorder %v1205_v49, 0.0 }
  0xf5   : > { %v1639_v57 = vmul.f32 0.2, %v1205_v49  ;;  %v1705_v58 = vsel %vm1449_vm9, %v957_v44, %v1577_v54  ;;  %vm1450_vm13 = vcmp.ge.f32.partialorder %v960_v50, 0.0  ;;  %v1578_v60 = vmul.f32 0.2, %v960_v50 }
  0xf6   : > { %v1769_v59 = vsel %vm1513_vm10, %v1213_v45, %v1641_v55  ;;  %v1703_v61 = vsel %vm1447_vm11, %v949_v48, %v1575_v56  ;;  %vm1514_vm14 = vcmp.ge.f32.partialorder %v1216_v51, 0.0  ;;  %v1642_v63 = vmul.f32 0.2, %v1216_v51  ;;  %v3436_v0 = vpop.f32.mrb[8].mxu0 }
  0xf7   : > { %v1767_v62 = vsel %vm1511_vm12, %v1205_v49, %v1639_v57  ;;  %v3500_v1 = vpop.f32.mrb[8].mxu1  ;;  %v1706_v2 = vsel %vm1450_vm13, %v960_v50, %v1578_v60  ;;  %v952_v4 = vadd.f32 %v3864_v3, %v951_v52  ;;  %v1208_v5 = vadd.f32 %v3864_v3, %v1207_v53  ;;  %v964_v7 = vpop.f32.mrb[9].mxu0 }
  0xf8   : > { %v973_v6 = vadd.f32 %v3436_v0, %v3864_v3  ;;  %v1220_v8 = vpop.f32.mrb[9].mxu1  ;;  %v2988_v9 = vpack.c.bf16 %v1706_v2, %v1705_v58  ;;  %v1770_v10 = vsel %vm1514_vm14, %v1216_v51, %v1642_v63  ;;  %v1229_v11 = vadd.f32 %v3500_v1, %v3864_v3  ;;  %v3437_v13 = vpop.f32.mrb[10].mxu0 }
  0xf9   : > { %v965_v12 = vadd.f32 %v3864_v3, %v964_v7  ;;  %v3501_v14 = vpop.f32.mrb[10].mxu1  ;;  %v3148_v15 = vpack.c.bf16 %v1770_v10, %v1769_v59  ;;  %vm1448_vm15 = vcmp.ge.f32.partialorder %v952_v4, 0.0  ;;  %v1576_v16 = vmul.f32 0.2, %v952_v4  ;;  %v967_v17 = vpop.f32.mrb[11].mxu0 }
  0xfa   : > { %vm1512_vm0 = vcmp.ge.f32.partialorder %v1208_v5, 0.0  ;;  %v1223_v18 = vpop.f32.mrb[11].mxu1  ;;  %3292 = vst [vmem:[%s3881_s4 + $0x18] sm:$0xff] %v2988_v9   ;;  %v1640_v19 = vmul.f32 0.2, %v1208_v5  ;;  %vm1453_vm1 = vcmp.ge.f32.partialorder %v973_v6, 0.0  ;;  %v1221_v27 = vadd.f32 %v3864_v3, %v1220_v8 }
  0xfb   : > { %v1581_v20 = vmul.f32 0.2, %v973_v6  ;;  %vm1517_vm2 = vcmp.ge.f32.partialorder %v1229_v11, 0.0  ;;  %3324 = vst [vmem:[%s3881_s4 + $0x118] sm:$0xff] %v3148_v15   ;;  %v1704_v21 = vsel %vm1448_vm15, %v952_v4, %v1576_v16  ;;  %v1645_v22 = vmul.f32 0.2, %v1229_v11 }
  0xfc   : > { %vm1451_vm3 = vcmp.ge.f32.partialorder %v965_v12, 0.0  ;;  %v1579_v23 = vmul.f32 0.2, %v965_v12  ;;  %v2983_v24 = vpack.c.bf16 %v1704_v21, %v1703_v61  ;;  %v1768_v25 = vsel %vm1512_vm0, %v1208_v5, %v1640_v19 }
  0xfd   : > { %v1709_v26 = vsel %vm1453_vm1, %v973_v6, %v1581_v20  ;;  %v3143_v28 = vpack.c.bf16 %v1768_v25, %v1767_v62  ;;  %v1773_v29 = vsel %vm1517_vm2, %v1229_v11, %v1645_v22  ;;  %v976_v31 = vadd.f32 %v3437_v13, %v3864_v3 }
  0xfe   : > { %v1707_v30 = vsel %vm1451_vm3, %v965_v12, %v1579_v23  ;;  %3291 = vst [vmem:[%s3881_s4 + $0x10] sm:$0xff] %v2983_v24   ;;  %vm1515_vm4 = vcmp.ge.f32.partialorder %v1221_v27, 0.0  ;;  %v1643_v32 = vmul.f32 0.2, %v1221_v27  ;;  %v1232_v33 = vadd.f32 %v3501_v14, %v3864_v3  ;;  %v3440_v35 = vpop.f32.mrb[12].mxu0 }
  0xff   : > { %v968_v34 = vadd.f32 %v3864_v3, %v967_v17  ;;  %v3504_v36 = vpop.f32.mrb[12].mxu1  ;;  %3323 = vst [vmem:[%s3881_s4 + $0x110] sm:$0xff] %v3143_v28   ;;  %vm1454_vm5 = vcmp.ge.f32.partialorder %v976_v31, 0.0  ;;  %v1582_v37 = vmul.f32 0.2, %v976_v31  ;;  %v1224_v38 = vadd.f32 %v3864_v3, %v1223_v18  ;;  %v980_v40 = vpop.f32.mrb[13].mxu0 }
 0x100   : > { %v989_v39 = vadd.f32 %v3440_v35, %v3864_v3  ;;  %v1236_v41 = vpop.f32.mrb[13].mxu1  ;;  %v1771_v42 = vsel %vm1515_vm4, %v1221_v27, %v1643_v32  ;;  %vm1518_vm6 = vcmp.ge.f32.partialorder %v1232_v33, 0.0  ;;  %v1646_v43 = vmul.f32 0.2, %v1232_v33  ;;  %v3441_v44 = vpop.f32.mrb[14].mxu0 }
 0x101   : > { %vm1452_vm7 = vcmp.ge.f32.partialorder %v968_v34, 0.0  ;;  %v3505_v45 = vpop.f32.mrb[14].mxu1  ;;  %v1710_v46 = vsel %vm1454_vm5, %v976_v31, %v1582_v37  ;;  %v1580_v47 = vmul.f32 0.2, %v968_v34  ;;  %vm1516_vm8 = vcmp.ge.f32.partialorder %v1224_v38, 0.0  ;;  %v983_v49 = vpop.f32.mrb[15].mxu0 }
 0x102   : > { %v1644_v48 = vmul.f32 0.2, %v1224_v38  ;;  %v2998_v50 = vpack.c.bf16 %v1710_v46, %v1709_v26  ;;  %v1774_v51 = vsel %vm1518_vm6, %v1232_v33, %v1646_v43  ;;  %vm1457_vm9 = vcmp.ge.f32.partialorder %v989_v39, 0.0  ;;  %v1239_v53 = vpop.f32.mrb[15].mxu1 }
 0x103   : > { %v1585_v52 = vmul.f32 0.2, %v989_v39  ;;  %v3158_v54 = vpack.c.bf16 %v1774_v51, %v1773_v29  ;;  %v1708_v55 = vsel %vm1452_vm7, %v968_v34, %v1580_v47  ;;  %v1245_v57 = vadd.f32 %v3504_v36, %v3864_v3 }
 0x104   : > { %v1772_v56 = vsel %vm1516_vm8, %v1224_v38, %v1644_v48  ;;  %3294 = vst [vmem:[%s3881_s4 + $0x28] sm:$0xff] %v2998_v50   ;;  %v2993_v58 = vpack.c.bf16 %v1708_v55, %v1707_v30  ;;  %v981_v61 = vadd.f32 %v3864_v3, %v980_v40  ;;  %v1237_v63 = vadd.f32 %v3864_v3, %v1236_v41 }
 0x105   : > { %v3153_v59 = vpack.c.bf16 %v1772_v56, %v1771_v42  ;;  %v1713_v60 = vsel %vm1457_vm9, %v989_v39, %v1585_v52  ;;  %3326 = vst [vmem:[%s3881_s4 + $0x128] sm:$0xff] %v3158_v54   ;;  %vm1521_vm10 = vcmp.ge.f32.partialorder %v1245_v57, 0.0  ;;  %v1649_v62 = vmul.f32 0.2, %v1245_v57 }
 0x106   : > { %v992_v0 = vadd.f32 %v3441_v44, %v3864_v3  ;;  %3293 = vst [vmem:[%s3881_s4 + $0x20] sm:$0xff] %v2993_v58   ;;  %vm1455_vm11 = vcmp.ge.f32.partialorder %v981_v61, 0.0  ;;  %v1583_v1 = vmul.f32 0.2, %v981_v61  ;;  %v1248_v2 = vadd.f32 %v3505_v45, %v3864_v3  ;;  %v3444_v5 = vpop.f32.mrb[16].mxu0 }
 0x107   : > { %3325 = vst [vmem:[%s3881_s4 + $0x120] sm:$0xff] %v3153_v59   ;;  %v984_v4 = vadd.f32 %v3864_v3, %v983_v49  ;;  %v3508_v6 = vpop.f32.mrb[16].mxu1  ;;  %v1777_v7 = vsel %vm1521_vm10, %v1245_v57, %v1649_v62  ;;  %vm1519_vm12 = vcmp.ge.f32.partialorder %v1237_v63, 0.0  ;;  %v1647_v8 = vmul.f32 0.2, %v1237_v63  ;;  %v996_v9 = vpop.f32.mrb[17].mxu0 }
 0x108   : > { %vm1458_vm13 = vcmp.ge.f32.partialorder %v992_v0, 0.0  ;;  %v1252_v10 = vpop.f32.mrb[17].mxu1  ;;  %v1711_v11 = vsel %vm1455_vm11, %v981_v61, %v1583_v1  ;;  %v1586_v12 = vmul.f32 0.2, %v992_v0  ;;  %vm1522_vm14 = vcmp.ge.f32.partialorder %v1248_v2, 0.0  ;;  %v3445_v14 = vpop.f32.mrb[18].mxu0 }
 0x109   : > { %v1650_v13 = vmul.f32 0.2, %v1248_v2  ;;  %v1775_v15 = vsel %vm1519_vm12, %v1237_v63, %v1647_v8  ;;  %vm1456_vm15 = vcmp.ge.f32.partialorder %v984_v4, 0.0  ;;  %v1584_v16 = vmul.f32 0.2, %v984_v4  ;;  %v3509_v18 = vpop.f32.mrb[18].mxu1 }
 0x10a   : > { %v1240_v17 = vadd.f32 %v3864_v3, %v1239_v53  ;;  %v999_v19 = vpop.f32.mrb[19].mxu0  ;;  %v1714_v20 = vsel %vm1458_vm13, %v992_v0, %v1586_v12  ;;  %v1005_v22 = vadd.f32 %v3444_v5, %v3864_v3  ;;  %v1261_v23 = vadd.f32 %v3508_v6, %v3864_v3  ;;  %v1255_v24 = vpop.f32.mrb[19].mxu1 }
 0x10b   : > { %v1778_v21 = vsel %vm1522_vm14, %v1248_v2, %v1650_v13  ;;  %v3008_v25 = vpack.c.bf16 %v1714_v20, %v1713_v60  ;;  %v1712_v27 = vsel %vm1456_vm15, %v984_v4, %v1584_v16  ;;  %v997_v32 = vadd.f32 %v3864_v3, %v996_v9 }
 0x10c   : > { %v3168_v26 = vpack.c.bf16 %v1778_v21, %v1777_v7  ;;  %vm1520_vm0 = vcmp.ge.f32.partialorder %v1240_v17, 0.0  ;;  %v3003_v28 = vpack.c.bf16 %v1712_v27, %v1711_v11  ;;  %v1648_v29 = vmul.f32 0.2, %v1240_v17 }
 0x10d   : > { %vm1461_vm1 = vcmp.ge.f32.partialorder %v1005_v22, 0.0  ;;  %v1589_v30 = vmul.f32 0.2, %v1005_v22  ;;  %3296 = vst [vmem:[%s3881_s4 + $0x38] sm:$0xff] %v3008_v25   ;;  %vm1525_vm2 = vcmp.ge.f32.partialorder %v1261_v23, 0.0  ;;  %v1253_v33 = vadd.f32 %v3864_v3, %v1252_v10 }
 0x10e   : > { %3328 = vst [vmem:[%s3881_s4 + $0x138] sm:$0xff] %v3168_v26   ;;  %v1653_v31 = vmul.f32 0.2, %v1261_v23  ;;  %3295 = vst [vmem:[%s3881_s4 + $0x30] sm:$0xff] %v3003_v28   ;;  %v1776_v34 = vsel %vm1520_vm0, %v1240_v17, %v1648_v29  ;;  %v1008_v36 = vadd.f32 %v3445_v14, %v3864_v3  ;;  %v1264_v37 = vadd.f32 %v3509_v18, %v3864_v3  ;;  %v3448_v38 = vpop.f32.mrb[20].mxu0 }
 0x10f   : > { %v1717_v35 = vsel %vm1461_vm1, %v1005_v22, %v1589_v30  ;;  %v3512_v39 = vpop.f32.mrb[20].mxu1  ;;  %v3163_v40 = vpack.c.bf16 %v1776_v34, %v1775_v15  ;;  %vm1459_vm3 = vcmp.ge.f32.partialorder %v997_v32, 0.0  ;;  %v1587_v42 = vmul.f32 0.2, %v997_v32  ;;  %v1012_v43 = vpop.f32.mrb[21].mxu0 }
 0x110   : > { %v1781_v41 = vsel %vm1525_vm2, %v1261_v23, %v1653_v31  ;;  %v1268_v44 = vpop.f32.mrb[21].mxu1  ;;  %vm1523_vm4 = vcmp.ge.f32.partialorder %v1253_v33, 0.0  ;;  %v1651_v45 = vmul.f32 0.2, %v1253_v33  ;;  %vm1462_vm5 = vcmp.ge.f32.partialorder %v1008_v36, 0.0  ;;  %v3449_v50 = vpop.f32.mrb[22].mxu0 }
 0x111   : > { %v1590_v46 = vmul.f32 0.2, %v1008_v36  ;;  %3327 = vst [vmem:[%s3881_s4 + $0x130] sm:$0xff] %v3163_v40   ;;  %v1715_v47 = vsel %vm1459_vm3, %v997_v32, %v1587_v42  ;;  %vm1526_vm6 = vcmp.ge.f32.partialorder %v1264_v37, 0.0  ;;  %v1654_v48 = vmul.f32 0.2, %v1264_v37 }
 0x112   : > { %v1000_v49 = vadd.f32 %v3864_v3, %v999_v19  ;;  %v3513_v51 = vpop.f32.mrb[22].mxu1  ;;  %v1779_v52 = vsel %vm1523_vm4, %v1253_v33, %v1651_v45  ;;  %v1256_v54 = vadd.f32 %v3864_v3, %v1255_v24  ;;  %v1021_v55 = vadd.f32 %v3448_v38, %v3864_v3  ;;  %v1015_v56 = vpop.f32.mrb[23].mxu0 }
 0x113   : > { %v1718_v53 = vsel %vm1462_vm5, %v1008_v36, %v1590_v46  ;;  %v1271_v57 = vpop.f32.mrb[23].mxu1  ;;  %v1782_v59 = vsel %vm1526_vm6, %v1264_v37, %v1654_v48  ;;  %v1277_v1 = vadd.f32 %v3512_v39, %v3864_v3  ;;  %v1013_v2 = vadd.f32 %v3864_v3, %v1012_v43 }
 0x114   : > { %v3018_v58 = vpack.c.bf16 %v1718_v53, %v1717_v35  ;;  %vm1460_vm7 = vcmp.ge.f32.partialorder %v1000_v49, 0.0  ;;  %v1588_v60 = vmul.f32 0.2, %v1000_v49  ;;  %v3178_v61 = vpack.c.bf16 %v1782_v59, %v1781_v41 }
 0x115   : > { %vm1524_vm8 = vcmp.ge.f32.partialorder %v1256_v54, 0.0  ;;  %v1652_v62 = vmul.f32 0.2, %v1256_v54  ;;  %vm1465_vm9 = vcmp.ge.f32.partialorder %v1021_v55, 0.0  ;;  %v1593_v0 = vmul.f32 0.2, %v1021_v55 }
 0x116   : > { %3298 = vst [vmem:[%s3881_s4 + $0x48] sm:$0xff] %v3018_v58   ;;  %v1716_v63 = vsel %vm1460_vm7, %v1000_v49, %v1588_v60  ;;  %3330 = vst [vmem:[%s3881_s4 + $0x148] sm:$0xff] %v3178_v61   ;;  %v1269_v6 = vadd.f32 %v3864_v3, %v1268_v44  ;;  %v1024_v7 = vadd.f32 %v3449_v50, %v3864_v3  ;;  %v3452_v8 = vpop.f32.mrb[24].mxu0  ;;  %vm1529_vm10 = vcmp.ge.f32.partialorder %v1277_v1, 0.0 }
 0x117   : > { %v3013_v4 = vpack.c.bf16 %v1716_v63, %v1715_v47  ;;  %v1780_v5 = vsel %vm1524_vm8, %v1256_v54, %v1652_v62  ;;  %v3516_v9 = vpop.f32.mrb[24].mxu1  ;;  %v1721_v11 = vsel %vm1465_vm9, %v1021_v55, %v1593_v0  ;;  %v1657_v12 = vmul.f32 0.2, %v1277_v1  ;;  %v1028_v13 = vpop.f32.mrb[25].mxu0 }
 0x118   : > { %v3173_v10 = vpack.c.bf16 %v1780_v5, %v1779_v52  ;;  %v1284_v14 = vpop.f32.mrb[25].mxu1  ;;  %vm1463_vm11 = vcmp.ge.f32.partialorder %v1013_v2, 0.0  ;;  %v1591_v15 = vmul.f32 0.2, %v1013_v2  ;;  %vm1527_vm12 = vcmp.ge.f32.partialorder %v1269_v6, 0.0  ;;  %v3453_v20 = vpop.f32.mrb[26].mxu0 }
 0x119   : > { %3297 = vst [vmem:[%s3881_s4 + $0x40] sm:$0xff] %v3013_v4   ;;  %v1655_v16 = vmul.f32 0.2, %v1269_v6  ;;  %v1785_v17 = vsel %vm1529_vm10, %v1277_v1, %v1657_v12  ;;  %vm1466_vm13 = vcmp.ge.f32.partialorder %v1024_v7, 0.0  ;;  %v1594_v18 = vmul.f32 0.2, %v1024_v7 }
 0x11a   : > { %3329 = vst [vmem:[%s3881_s4 + $0x140] sm:$0xff] %v3173_v10   ;;  %v1280_v19 = vadd.f32 %v3513_v51, %v3864_v3  ;;  %v3517_v21 = vpop.f32.mrb[26].mxu1  ;;  %v1719_v22 = vsel %vm1463_vm11, %v1013_v2, %v1591_v15  ;;  %v1016_v24 = vadd.f32 %v3864_v3, %v1015_v56  ;;  %v1272_v25 = vadd.f32 %v3864_v3, %v1271_v57  ;;  %v1031_v26 = vpop.f32.mrb[27].mxu0 }
 0x11b   : > { %v1783_v23 = vsel %vm1527_vm12, %v1269_v6, %v1655_v16  ;;  %v1287_v27 = vpop.f32.mrb[27].mxu1  ;;  %v1722_v28 = vsel %vm1466_vm13, %v1024_v7, %v1594_v18  ;;  %v1037_v30 = vadd.f32 %v3452_v8, %v3864_v3  ;;  %v1293_v38 = vadd.f32 %v3516_v9, %v3864_v3 }
 0x11c   : > { %vm1530_vm14 = vcmp.ge.f32.partialorder %v1280_v19, 0.0  ;;  %v1658_v29 = vmul.f32 0.2, %v1280_v19  ;;  %v3028_v31 = vpack.c.bf16 %v1722_v28, %v1721_v11  ;;  %vm1464_vm15 = vcmp.ge.f32.partialorder %v1016_v24, 0.0 }
 0x11d   : > { %v1592_v32 = vmul.f32 0.2, %v1016_v24  ;;  %vm1528_vm0 = vcmp.ge.f32.partialorder %v1272_v25, 0.0  ;;  %v1656_v34 = vmul.f32 0.2, %v1272_v25  ;;  %vm1469_vm1 = vcmp.ge.f32.partialorder %v1037_v30, 0.0 }
 0x11e   : > { %v1786_v33 = vsel %vm1530_vm14, %v1280_v19, %v1658_v29  ;;  %v1597_v35 = vmul.f32 0.2, %v1037_v30  ;;  %3300 = vst [vmem:[%s3881_s4 + $0x58] sm:$0xff] %v3028_v31   ;;  %v1029_v39 = vadd.f32 %v3864_v3, %v1028_v13  ;;  %v3456_v40 = vpop.f32.mrb[28].mxu0  ;;  %v1285_v45 = vadd.f32 %v3864_v3, %v1284_v14 }
 0x11f   : > { %v3188_v36 = vpack.c.bf16 %v1786_v33, %v1785_v17  ;;  %v1720_v37 = vsel %vm1464_vm15, %v1016_v24, %v1592_v32  ;;  %v3520_v41 = vpop.f32.mrb[28].mxu1  ;;  %v1784_v43 = vsel %vm1528_vm0, %v1272_v25, %v1656_v34  ;;  %v1044_v46 = vpop.f32.mrb[29].mxu0  ;;  %vm1533_vm2 = vcmp.ge.f32.partialorder %v1293_v38, 0.0 }
 0x120   : > { %v3023_v42 = vpack.c.bf16 %v1720_v37, %v1719_v22  ;;  %v1725_v44 = vsel %vm1469_vm1, %v1037_v30, %v1597_v35  ;;  %v1300_v47 = vpop.f32.mrb[29].mxu1  ;;  %v3183_v48 = vpack.c.bf16 %v1784_v43, %v1783_v23  ;;  %v1661_v49 = vmul.f32 0.2, %v1293_v38  ;;  %v3457_v50 = vpop.f32.mrb[30].mxu0 }
 0x121   : > { %3332 = vst [vmem:[%s3881_s4 + $0x158] sm:$0xff] %v3188_v36   ;;  %vm1467_vm3 = vcmp.ge.f32.partialorder %v1029_v39, 0.0  ;;  %v3521_v51 = vpop.f32.mrb[30].mxu1  ;;  %v1595_v52 = vmul.f32 0.2, %v1029_v39  ;;  %vm1531_vm4 = vcmp.ge.f32.partialorder %v1285_v45, 0.0  ;;  %v1040_v54 = vadd.f32 %v3453_v20, %v3864_v3 }
 0x122   : > { %3299 = vst [vmem:[%s3881_s4 + $0x50] sm:$0xff] %v3023_v42   ;;  %v1659_v53 = vmul.f32 0.2, %v1285_v45  ;;  %v1047_v55 = vpop.f32.mrb[31].mxu0  ;;  %3331 = vst [vmem:[%s3881_s4 + $0x150] sm:$0xff] %v3183_v48   ;;  %v1789_v56 = vsel %vm1533_vm2, %v1293_v38, %v1661_v49  ;;  %v1296_v57 = vadd.f32 %v3517_v21, %v3864_v3  ;;  %v1032_v58 = vadd.f32 %v3864_v3, %v1031_v26  ;;  %v1303_v60 = vpop.f32.mrb[31].mxu1 }
 0x123   : > { %v1288_v59 = vadd.f32 %v3864_v3, %v1287_v27  ;;  %v1723_v61 = vsel %vm1467_vm3, %v1029_v39, %v1595_v52  ;;  %vm1470_vm5 = vcmp.ge.f32.partialorder %v1040_v54, 0.0  ;;  %v1598_v63 = vmul.f32 0.2, %v1040_v54 }
 0x124   : > { %v1787_v62 = vsel %vm1531_vm4, %v1285_v45, %v1659_v53  ;;  %vm1534_vm6 = vcmp.ge.f32.partialorder %v1296_v57, 0.0  ;;  %v1662_v0 = vmul.f32 0.2, %v1296_v57  ;;  %vm1468_vm7 = vcmp.ge.f32.partialorder %v1032_v58, 0.0 }
 0x125   : > { %v1596_v1 = vmul.f32 0.2, %v1032_v58  ;;  %v1726_v2 = vsel %vm1470_vm5, %v1040_v54, %v1598_v63  ;;  %vm1532_vm8 = vcmp.ge.f32.partialorder %v1288_v59, 0.0  ;;  %v1660_v4 = vmul.f32 0.2, %v1288_v59 }
 0x126   : > { %v1053_v5 = vadd.f32 %v3456_v40, %v3864_v3  ;;  %v3038_v6 = vpack.c.bf16 %v1726_v2, %v1725_v44  ;;  %v1790_v7 = vsel %vm1534_vm6, %v1296_v57, %v1662_v0  ;;  %v1309_v9 = vadd.f32 %v3520_v41, %v3864_v3  ;;  %v3460_v10 = vpop.f32.mrb[32].mxu0 }
 0x127   : > { %v1724_v8 = vsel %vm1468_vm7, %v1032_v58, %v1596_v1  ;;  %v3524_v11 = vpop.f32.mrb[32].mxu1  ;;  %v3198_v12 = vpack.c.bf16 %v1790_v7, %v1789_v56  ;;  %v1788_v14 = vsel %vm1532_vm8, %v1288_v59, %v1660_v4  ;;  %v1060_v15 = vpop.f32.mrb[33].mxu0  ;;  %v1045_v21 = vadd.f32 %v3864_v3, %v1044_v46 }
 0x128   : > { %v3033_v13 = vpack.c.bf16 %v1724_v8, %v1723_v61  ;;  %vm1473_vm9 = vcmp.ge.f32.partialorder %v1053_v5, 0.0  ;;  %v1316_v16 = vpop.f32.mrb[33].mxu1  ;;  %3302 = vst [vmem:[%s3881_s4 + $0x68] sm:$0xff] %v3038_v6   ;;  %v3193_v17 = vpack.c.bf16 %v1788_v14, %v1787_v62  ;;  %v1601_v18 = vmul.f32 0.2, %v1053_v5  ;;  %v3461_v20 = vpop.f32.mrb[34].mxu0 }
 0x129   : > { %vm1537_vm10 = vcmp.ge.f32.partialorder %v1309_v9, 0.0  ;;  %v1665_v19 = vmul.f32 0.2, %v1309_v9  ;;  %3334 = vst [vmem:[%s3881_s4 + $0x168] sm:$0xff] %v3198_v12   ;;  %v1301_v22 = vadd.f32 %v3864_v3, %v1300_v47  ;;  %v1056_v23 = vadd.f32 %v3457_v50, %v3864_v3  ;;  %v3525_v25 = vpop.f32.mrb[34].mxu1  ;;  %v1063_v26 = vpop.f32.mrb[35].mxu0 }
 0x12a   : > { %3301 = vst [vmem:[%s3881_s4 + $0x60] sm:$0xff] %v3033_v13   ;;  %v1312_v24 = vadd.f32 %v3521_v51, %v3864_v3  ;;  %3333 = vst [vmem:[%s3881_s4 + $0x160] sm:$0xff] %v3193_v17   ;;  %v1729_v27 = vsel %vm1473_vm9, %v1053_v5, %v1601_v18  ;;  %v1048_v29 = vadd.f32 %v3864_v3, %v1047_v55  ;;  %v1319_v31 = vpop.f32.mrb[35].mxu1  ;;  %vm1471_vm11 = vcmp.ge.f32.partialorder %v1045_v21, 0.0 }
 0x12b   : > { %v1793_v28 = vsel %vm1537_vm10, %v1309_v9, %v1665_v19  ;;  %v1304_v30 = vadd.f32 %v3864_v3, %v1303_v60  ;;  %v1599_v32 = vmul.f32 0.2, %v1045_v21  ;;  %vm1535_vm12 = vcmp.ge.f32.partialorder %v1301_v22, 0.0 }
 0x12c   : > { %v1663_v33 = vmul.f32 0.2, %v1301_v22  ;;  %vm1474_vm13 = vcmp.ge.f32.partialorder %v1056_v23, 0.0  ;;  %v1602_v34 = vmul.f32 0.2, %v1056_v23  ;;  %vm1538_vm14 = vcmp.ge.f32.partialorder %v1312_v24, 0.0 }
 0x12d   : > { %v1666_v35 = vmul.f32 0.2, %v1312_v24  ;;  %v1727_v36 = vsel %vm1471_vm11, %v1045_v21, %v1599_v32  ;;  %vm1472_vm15 = vcmp.ge.f32.partialorder %v1048_v29, 0.0  ;;  %v1600_v38 = vmul.f32 0.2, %v1048_v29 }
 0x12e   : > { %v1791_v37 = vsel %vm1535_vm12, %v1301_v22, %v1663_v33  ;;  %v1730_v39 = vsel %vm1474_vm13, %v1056_v23, %v1602_v34  ;;  %vm1536_vm0 = vcmp.ge.f32.partialorder %v1304_v30, 0.0  ;;  %v1664_v41 = vmul.f32 0.2, %v1304_v30  ;;  %v3464_v42 = vpop.f32.mrb[36].mxu0 }
 0x12f   : > { %v1794_v40 = vsel %vm1538_vm14, %v1312_v24, %v1666_v35  ;;  %v3528_v43 = vpop.f32.mrb[36].mxu1  ;;  %v3048_v44 = vpack.c.bf16 %v1730_v39, %v1729_v27  ;;  %v1728_v46 = vsel %vm1472_vm15, %v1048_v29, %v1600_v38  ;;  %v1069_v47 = vadd.f32 %v3460_v10, %v3864_v3  ;;  %v3969_v48 = vpop.f32.mrb[37].mxu0 }
 0x130   : > { %v3208_v45 = vpack.c.bf16 %v1794_v40, %v1793_v28  ;;  %v3971_v49 = vpop.f32.mrb[37].mxu1  ;;  %v3043_v50 = vpack.c.bf16 %v1728_v46, %v1727_v36  ;;  %v1792_v51 = vsel %vm1536_vm0, %v1304_v30, %v1664_v41  ;;  %v1325_v52 = vadd.f32 %v3524_v11, %v3864_v3  ;;  %v3465_v54 = vpop.f32.mrb[38].mxu0 }
 0x131   : > { %v1061_v53 = vadd.f32 %v3864_v3, %v1060_v15  ;;  %v3529_v55 = vpop.f32.mrb[38].mxu1  ;;  %3304 = vst [vmem:[%s3881_s4 + $0x78] sm:$0xff] %v3048_v44   ;;  %v3203_v56 = vpack.c.bf16 %v1792_v51, %v1791_v37  ;;  %vm1477_vm1 = vcmp.ge.f32.partialorder %v1069_v47, 0.0  ;;  %v1605_v57 = vmul.f32 0.2, %v1069_v47  ;;  %v1079_v59 = vpop.f32.mrb[39].mxu0 }
 0x132   : > { %3336 = vst [vmem:[%s3881_s4 + $0x178] sm:$0xff] %v3208_v45   ;;  %v1317_v58 = vadd.f32 %v3864_v3, %v1316_v16  ;;  %v1335_v60 = vpop.f32.mrb[39].mxu1  ;;  %3303 = vst [vmem:[%s3881_s4 + $0x70] sm:$0xff] %v3043_v50   ;;  %vm1541_vm2 = vcmp.ge.f32.partialorder %v1325_v52, 0.0  ;;  %v1669_v61 = vmul.f32 0.2, %v1325_v52  ;;  %v1072_v1 = vadd.f32 %v3461_v20, %v3864_v3 }
 0x133   : > { %vm1475_vm3 = vcmp.ge.f32.partialorder %v1061_v53, 0.0  ;;  %v1603_v62 = vmul.f32 0.2, %v1061_v53  ;;  %3335 = vst [vmem:[%s3881_s4 + $0x170] sm:$0xff] %v3203_v56   ;;  %v1733_v63 = vsel %vm1477_vm1, %v1069_v47, %v1605_v57  ;;  %v1328_v5 = vadd.f32 %v3525_v25, %v3864_v3 }
 0x134   : > { %vm1539_vm4 = vcmp.ge.f32.partialorder %v1317_v58, 0.0  ;;  %v1667_v0 = vmul.f32 0.2, %v1317_v58  ;;  %v1797_v2 = vsel %vm1541_vm2, %v1325_v52, %v1669_v61  ;;  %v1064_v6 = vadd.f32 %v3864_v3, %v1063_v26 }
 0x135   : > { %v1731_v4 = vsel %vm1475_vm3, %v1061_v53, %v1603_v62  ;;  %vm1478_vm5 = vcmp.ge.f32.partialorder %v1072_v1, 0.0  ;;  %v1606_v8 = vmul.f32 0.2, %v1072_v1  ;;  %v1320_v9 = vadd.f32 %v3864_v3, %v1319_v31 }
 0x136   : > { %v1795_v7 = vsel %vm1539_vm4, %v1317_v58, %v1667_v0  ;;  %vm1542_vm6 = vcmp.ge.f32.partialorder %v1328_v5, 0.0  ;;  %v1670_v10 = vmul.f32 0.2, %v1328_v5  ;;  %vm1476_vm7 = vcmp.ge.f32.partialorder %v1064_v6, 0.0  ;;  %v3468_v15 = vpop.f32.mrb[40].mxu0 }
 0x137   : > { %v1604_v11 = vmul.f32 0.2, %v1064_v6  ;;  %v1734_v12 = vsel %vm1478_vm5, %v1072_v1, %v1606_v8  ;;  %vm1540_vm8 = vcmp.ge.f32.partialorder %v1320_v9, 0.0  ;;  %v1668_v13 = vmul.f32 0.2, %v1320_v9  ;;  %v3532_v16 = vpop.f32.mrb[40].mxu1 }
 0x138   : > { %v1085_v14 = vadd.f32 %v3464_v42, %v3864_v3  ;;  %v3058_v17 = vpack.c.bf16 %v1734_v12, %v1733_v63  ;;  %v1798_v18 = vsel %vm1542_vm6, %v1328_v5, %v1670_v10  ;;  %v1341_v20 = vadd.f32 %v3528_v43, %v3864_v3  ;;  %v1092_v21 = vpop.f32.mrb[41].mxu0  ;;  %v1348_v22 = vpop.f32.mrb[41].mxu1 }
 0x139   : > { %v1732_v19 = vsel %vm1476_vm7, %v1064_v6, %v1604_v11  ;;  %v3218_v23 = vpack.c.bf16 %v1798_v18, %v1797_v2  ;;  %v1796_v25 = vsel %vm1540_vm8, %v1320_v9, %v1668_v13  ;;  %v3986_v26 = vpop.f32.mrb[42].mxu0  ;;  %v3988_v27 = vpop.f32.mrb[42].mxu1  ;;  %v1077_v32 = vadd.f32 %v3864_v3, %v3969_v48 }
 0x13a   : > { %v3053_v24 = vpack.c.bf16 %v1732_v19, %v1731_v4  ;;  %vm1481_vm9 = vcmp.ge.f32.partialorder %v1085_v14, 0.0  ;;  %3306 = vst [vmem:[%s3881_s4 + $0x88] sm:$0xff] %v3058_v17   ;;  %v3213_v28 = vpack.c.bf16 %v1796_v25, %v1795_v7  ;;  %v1609_v29 = vmul.f32 0.2, %v1085_v14  ;;  %v3991_v31 = vpop.f32.mrb[43].mxu0  ;;  %v4001_v36 = vpop.f32.mrb[43].mxu1 }
 0x13b   : > { %vm1545_vm10 = vcmp.ge.f32.partialorder %v1341_v20, 0.0  ;;  %v1673_v30 = vmul.f32 0.2, %v1341_v20  ;;  %3338 = vst [vmem:[%s3881_s4 + $0x188] sm:$0xff] %v3218_v23   ;;  %v1333_v33 = vadd.f32 %v3864_v3, %v3971_v49  ;;  %v1088_v34 = vadd.f32 %v3465_v54, %v3864_v3 }
 0x13c   : > { %3305 = vst [vmem:[%s3881_s4 + $0x80] sm:$0xff] %v3053_v24   ;;  %v1344_v35 = vadd.f32 %v3529_v55, %v3864_v3  ;;  %3337 = vst [vmem:[%s3881_s4 + $0x180] sm:$0xff] %v3213_v28   ;;  %v1737_v37 = vsel %vm1481_vm9, %v1085_v14, %v1609_v29  ;;  %v1080_v39 = vadd.f32 %v3864_v3, %v1079_v59  ;;  %vm1479_vm11 = vcmp.ge.f32.partialorder %v1077_v32, 0.0  ;;  %v4032_v14 = vld [vmem:[%s4216_s2] ss:$0 sm:$0xff] }
 0x13d   : > { %v1801_v38 = vsel %vm1545_vm10, %v1341_v20, %v1673_v30  ;;  %v1336_v40 = vadd.f32 %v3864_v3, %v1335_v60  ;;  %v1607_v41 = vmul.f32 0.2, %v1077_v32  ;;  %vm1543_vm12 = vcmp.ge.f32.partialorder %v1333_v33, 0.0 }
 0x13e   : > { %v1671_v42 = vmul.f32 0.2, %v1333_v33  ;;  %vm1482_vm13 = vcmp.ge.f32.partialorder %v1088_v34, 0.0  ;;  %v1610_v43 = vmul.f32 0.2, %v1088_v34  ;;  %vm1546_vm14 = vcmp.ge.f32.partialorder %v1344_v35, 0.0 }
 0x13f   : > { %v1674_v44 = vmul.f32 0.2, %v1344_v35  ;;  %v1735_v45 = vsel %vm1479_vm11, %v1077_v32, %v1607_v41  ;;  %vm1480_vm15 = vcmp.ge.f32.partialorder %v1080_v39, 0.0  ;;  %v1608_v47 = vmul.f32 0.2, %v1080_v39  ;;  %v3472_v48 = vpop.f32.mrb[44].mxu0 }
 0x140   : > { %v1799_v46 = vsel %vm1543_vm12, %v1333_v33, %v1671_v42  ;;  %v3536_v49 = vpop.f32.mrb[44].mxu1  ;;  %v1738_v50 = vsel %vm1482_vm13, %v1088_v34, %v1610_v43  ;;  %vm1544_vm0 = vcmp.ge.f32.partialorder %v1336_v40, 0.0  ;;  %v1672_v52 = vmul.f32 0.2, %v1336_v40  ;;  %v4007_v53 = vpop.f32.mrb[45].mxu0 }
 0x141   : > { %v1802_v51 = vsel %vm1546_vm14, %v1344_v35, %v1674_v44  ;;  %v4009_v54 = vpop.f32.mrb[45].mxu1  ;;  %v3068_v55 = vpack.c.bf16 %v1738_v50, %v1737_v37  ;;  %v1736_v57 = vsel %vm1480_vm15, %v1080_v39, %v1608_v47  ;;  %v1101_v58 = vadd.f32 %v3468_v15, %v3864_v3  ;;  %v4012_v59 = vpop.f32.mrb[46].mxu0 }
 0x142   : > { %v3228_v56 = vpack.c.bf16 %v1802_v51, %v1801_v38  ;;  %v4014_v60 = vpop.f32.mrb[46].mxu1  ;;  %v3063_v61 = vpack.c.bf16 %v1736_v57, %v1735_v45  ;;  %v1800_v62 = vsel %vm1544_vm0, %v1336_v40, %v1672_v52  ;;  %v1357_v63 = vadd.f32 %v3532_v16, %v3864_v3  ;;  %v4018_v1 = vpop.f32.mrb[47].mxu0 }
 0x143   : > { %v1093_v0 = vadd.f32 %v3864_v3, %v1092_v21  ;;  %v4020_v2 = vpop.f32.mrb[47].mxu1  ;;  %3308 = vst [vmem:[%s3881_s4 + $0x98] sm:$0xff] %v3068_v55   ;;  %v3223_v4 = vpack.c.bf16 %v1800_v62, %v1799_v46  ;;  %vm1485_vm1 = vcmp.ge.f32.partialorder %v1101_v58, 0.0  ;;  %v1613_v5 = vmul.f32 0.2, %v1101_v58 }
 0x144   : > { %3340 = vst [vmem:[%s3881_s4 + $0x198] sm:$0xff] %v3228_v56   ;;  %v1349_v6 = vadd.f32 %v3864_v3, %v1348_v22  ;;  %3307 = vst [vmem:[%s3881_s4 + $0x90] sm:$0xff] %v3063_v61   ;;  %vm1549_vm2 = vcmp.ge.f32.partialorder %v1357_v63, 0.0  ;;  %v1677_v7 = vmul.f32 0.2, %v1357_v63  ;;  %v1104_v11 = vadd.f32 %v3986_v26, %v3864_v3 }
 0x145   : > { %vm1483_vm3 = vcmp.ge.f32.partialorder %v1093_v0, 0.0  ;;  %v1611_v8 = vmul.f32 0.2, %v1093_v0  ;;  %3339 = vst [vmem:[%s3881_s4 + $0x190] sm:$0xff] %v3223_v4   ;;  %v1741_v9 = vsel %vm1485_vm1, %v1101_v58, %v1613_v5  ;;  %v1360_v15 = vadd.f32 %v4032_v14, %v3988_v27 }
 0x146   : > { %vm1547_vm4 = vcmp.ge.f32.partialorder %v1349_v6, 0.0  ;;  %v1675_v10 = vmul.f32 0.2, %v1349_v6  ;;  %v1805_v12 = vsel %vm1549_vm2, %v1357_v63, %v1677_v7  ;;  %v1096_v16 = vadd.f32 %v4032_v14, %v3991_v31  ;;  %v4038_v17 = vpop.f32.mrb[48].mxu0 }
 0x147   : > { %v1739_v13 = vsel %vm1483_vm3, %v1093_v0, %v1611_v8  ;;  %v4040_v18 = vpop.f32.mrb[48].mxu1  ;;  %vm1486_vm5 = vcmp.ge.f32.partialorder %v1104_v11, 0.0  ;;  %v1614_v3 = vmul.f32 0.2, %v1104_v11  ;;  %v1352_v20 = vadd.f32 %v4032_v14, %v4001_v36  ;;  %v4044_v21 = vpop.f32.mrb[49].mxu0 }
 0x148   : > { %v1803_v19 = vsel %vm1547_vm4, %v1349_v6, %v1675_v10  ;;  %v4046_v22 = vpop.f32.mrb[49].mxu1  ;;  %vm1550_vm6 = vcmp.ge.f32.partialorder %v1360_v15, 0.0  ;;  %v1678_v23 = vmul.f32 0.2, %v1360_v15  ;;  %vm1484_vm7 = vcmp.ge.f32.partialorder %v1096_v16, 0.0  ;;  %v4049_v28 = vpop.f32.mrb[50].mxu0 }
 0x149   : > { %v1612_v24 = vmul.f32 0.2, %v1096_v16  ;;  %v1742_v25 = vsel %vm1486_vm5, %v1104_v11, %v1614_v3  ;;  %vm1548_vm8 = vcmp.ge.f32.partialorder %v1352_v20, 0.0  ;;  %v1676_v26 = vmul.f32 0.2, %v1352_v20  ;;  %v4051_v29 = vpop.f32.mrb[50].mxu1 }
 0x14a   : > { %v1117_v27 = vadd.f32 %v4032_v14, %v3472_v48  ;;  %v3078_v30 = vpack.c.bf16 %v1742_v25, %v1741_v9  ;;  %v1806_v31 = vsel %vm1550_vm6, %v1360_v15, %v1678_v23  ;;  %v1373_v33 = vadd.f32 %v4032_v14, %v3536_v49  ;;  %v4054_v34 = vpop.f32.mrb[51].mxu0  ;;  %v4056_v35 = vpop.f32.mrb[51].mxu1 }
 0x14b   : > { %v1740_v32 = vsel %vm1484_vm7, %v1096_v16, %v1612_v24  ;;  %v3238_v36 = vpack.c.bf16 %v1806_v31, %v1805_v12  ;;  %v1804_v38 = vsel %vm1548_vm8, %v1352_v20, %v1676_v26  ;;  %v1109_v42 = vadd.f32 %v4032_v14, %v4007_v53 }
 0x14c   : > { %v3073_v37 = vpack.c.bf16 %v1740_v32, %v1739_v13  ;;  %vm1489_vm9 = vcmp.ge.f32.partialorder %v1117_v27, 0.0  ;;  %3310 = vst [vmem:[%s3881_s4 + $0xa8] sm:$0xff] %v3078_v30   ;;  %v3233_v39 = vpack.c.bf16 %v1804_v38, %v1803_v19  ;;  %v1617_v40 = vmul.f32 0.2, %v1117_v27 }
 0x14d   : > { %vm1553_vm10 = vcmp.ge.f32.partialorder %v1373_v33, 0.0  ;;  %v1681_v41 = vmul.f32 0.2, %v1373_v33  ;;  %3342 = vst [vmem:[%s3881_s4 + $0x1a8] sm:$0xff] %v3238_v36   ;;  %v1365_v43 = vadd.f32 %v4032_v14, %v4009_v54  ;;  %v1120_v44 = vadd.f32 %v4032_v14, %v4012_v59 }
 0x14e   : > { %3309 = vst [vmem:[%s3881_s4 + $0xa0] sm:$0xff] %v3073_v37   ;;  %v1376_v45 = vadd.f32 %v4032_v14, %v4014_v60  ;;  %3341 = vst [vmem:[%s3881_s4 + $0x1a0] sm:$0xff] %v3233_v39   ;;  %v1745_v46 = vsel %vm1489_vm9, %v1117_v27, %v1617_v40  ;;  %v1112_v48 = vadd.f32 %v4032_v14, %v4018_v1  ;;  %v4074_v50 = vpop.f32.mrb[52].mxu0  ;;  %vm1487_vm11 = vcmp.ge.f32.partialorder %v1109_v42, 0.0 }
 0x14f   : > { %v1809_v47 = vsel %vm1553_vm10, %v1373_v33, %v1681_v41  ;;  %v1368_v49 = vadd.f32 %v4032_v14, %v4020_v2  ;;  %v4076_v51 = vpop.f32.mrb[52].mxu1  ;;  %v1615_v52 = vmul.f32 0.2, %v1109_v42  ;;  %vm1551_vm12 = vcmp.ge.f32.partialorder %v1365_v43, 0.0  ;;  %v4078_v59 = vpop.f32.mrb[53].mxu0 }
 0x150   : > { %v1679_v53 = vmul.f32 0.2, %v1365_v43  ;;  %vm1490_vm13 = vcmp.ge.f32.partialorder %v1120_v44, 0.0  ;;  %v1618_v54 = vmul.f32 0.2, %v1120_v44  ;;  %vm1554_vm14 = vcmp.ge.f32.partialorder %v1376_v45, 0.0 }
 0x151   : > { %v1682_v55 = vmul.f32 0.2, %v1376_v45  ;;  %v1743_v56 = vsel %vm1487_vm11, %v1109_v42, %v1615_v52  ;;  %vm1488_vm15 = vcmp.ge.f32.partialorder %v1112_v48, 0.0  ;;  %v1616_v58 = vmul.f32 0.2, %v1112_v48  ;;  %v4080_v60 = vpop.f32.mrb[53].mxu1 }
 0x152   : > { %v1807_v57 = vsel %vm1551_vm12, %v1365_v43, %v1679_v53  ;;  %v1746_v61 = vsel %vm1490_vm13, %v1120_v44, %v1618_v54  ;;  %vm1552_vm0 = vcmp.ge.f32.partialorder %v1368_v49, 0.0  ;;  %v1680_v63 = vmul.f32 0.2, %v1368_v49  ;;  %v4082_v0 = vpop.f32.mrb[54].mxu0  ;;  %v4084_v1 = vpop.f32.mrb[54].mxu1 }
 0x153   : > { %v1810_v62 = vsel %vm1554_vm14, %v1376_v45, %v1682_v55  ;;  %v3088_v2 = vpack.c.bf16 %v1746_v61, %v1745_v46  ;;  %v1744_v5 = vsel %vm1488_vm15, %v1112_v48, %v1616_v58  ;;  %v1133_v6 = vadd.f32 %v4032_v14, %v4038_v17  ;;  %v4088_v7 = vpop.f32.mrb[55].mxu0  ;;  %v4090_v8 = vpop.f32.mrb[55].mxu1 }
 0x154   : > { %v3248_v4 = vpack.c.bf16 %v1810_v62, %v1809_v47  ;;  %v3083_v9 = vpack.c.bf16 %v1744_v5, %v1743_v56  ;;  %v1808_v10 = vsel %vm1552_vm0, %v1368_v49, %v1680_v63  ;;  %v1389_v11 = vadd.f32 %v4032_v14, %v4040_v18 }
 0x155   : > { %v1125_v12 = vadd.f32 %v4032_v14, %v4044_v21  ;;  %3312 = vst [vmem:[%s3881_s4 + $0xb8] sm:$0xff] %v3088_v2   ;;  %v3243_v13 = vpack.c.bf16 %v1808_v10, %v1807_v57  ;;  %vm1493_vm1 = vcmp.ge.f32.partialorder %v1133_v6, 0.0  ;;  %v1621_v15 = vmul.f32 0.2, %v1133_v6 }
 0x156   : > { %3344 = vst [vmem:[%s3881_s4 + $0x1b8] sm:$0xff] %v3248_v4   ;;  %v1381_v16 = vadd.f32 %v4032_v14, %v4046_v22  ;;  %3311 = vst [vmem:[%s3881_s4 + $0xb0] sm:$0xff] %v3083_v9   ;;  %vm1557_vm2 = vcmp.ge.f32.partialorder %v1389_v11, 0.0  ;;  %v1685_v17 = vmul.f32 0.2, %v1389_v11  ;;  %v1136_v20 = vadd.f32 %v4032_v14, %v4049_v28  ;;  %v4104_v21 = vpop.f32.mrb[56].mxu0 }
 0x157   : > { %vm1491_vm3 = vcmp.ge.f32.partialorder %v1125_v12, 0.0  ;;  %v1619_v19 = vmul.f32 0.2, %v1125_v12  ;;  %3343 = vst [vmem:[%s3881_s4 + $0x1b0] sm:$0xff] %v3243_v13   ;;  %v1749_v3 = vsel %vm1493_vm1, %v1133_v6, %v1621_v15  ;;  %v4106_v23 = vpop.f32.mrb[56].mxu1  ;;  %v1392_v22 = vadd.f32 %v4032_v14, %v4051_v29  ;;  %v4112_v27 = vpop.f32.mrb[57].mxu0 }
 0x158   : > { %vm1555_vm4 = vcmp.ge.f32.partialorder %v1381_v16, 0.0  ;;  %v1683_v18 = vmul.f32 0.2, %v1381_v16  ;;  %v1813_v24 = vsel %vm1557_vm2, %v1389_v11, %v1685_v17  ;;  %v1128_v26 = vadd.f32 %v4032_v14, %v4054_v34  ;;  %v4114_v30 = vpop.f32.mrb[57].mxu1  ;;  %v4118_v33 = vpop.f32.mrb[58].mxu0 }
 0x159   : > { %v1747_v25 = vsel %vm1491_vm3, %v1125_v12, %v1619_v19  ;;  %vm1494_vm5 = vcmp.ge.f32.partialorder %v1136_v20, 0.0  ;;  %v1622_v32 = vmul.f32 0.2, %v1136_v20  ;;  %v1384_v28 = vadd.f32 %v4032_v14, %v4056_v35  ;;  %v4120_v36 = vpop.f32.mrb[58].mxu1  ;;  %v4124_v40 = vpop.f32.mrb[59].mxu0 }
 0x15a   : > { %v1811_v31 = vsel %vm1555_vm4, %v1381_v16, %v1683_v18  ;;  %vm1558_vm6 = vcmp.ge.f32.partialorder %v1392_v22, 0.0  ;;  %v1686_v37 = vmul.f32 0.2, %v1392_v22  ;;  %vm1492_vm7 = vcmp.ge.f32.partialorder %v1128_v26, 0.0  ;;  %v4126_v41 = vpop.f32.mrb[59].mxu1 }
 0x15b   : > { %v1620_v29 = vmul.f32 0.2, %v1128_v26  ;;  %v1750_v34 = vsel %vm1494_vm5, %v1136_v20, %v1622_v32  ;;  %vm1556_vm8 = vcmp.ge.f32.partialorder %v1384_v28, 0.0  ;;  %v1684_v38 = vmul.f32 0.2, %v1384_v28 }
 0x15c   : > { %v1149_v39 = vadd.f32 %v4032_v14, %v4074_v50  ;;  %v3098_v35 = vpack.c.bf16 %v1750_v34, %v1749_v3  ;;  %v1814_v42 = vsel %vm1558_vm6, %v1392_v22, %v1686_v37  ;;  %v1405_v44 = vadd.f32 %v4032_v14, %v4076_v51 }
 0x15d   : > { %v1748_v43 = vsel %vm1492_vm7, %v1128_v26, %v1620_v29  ;;  %v3258_v45 = vpack.c.bf16 %v1814_v42, %v1813_v24  ;;  %v1812_v47 = vsel %vm1556_vm8, %v1384_v28, %v1684_v38  ;;  %v1141_v53 = vadd.f32 %v4032_v14, %v4078_v59 }
 0x15e   : > { %v3093_v46 = vpack.c.bf16 %v1748_v43, %v1747_v25  ;;  %vm1497_vm9 = vcmp.ge.f32.partialorder %v1149_v39, 0.0  ;;  %3314 = vst [vmem:[%s3881_s4 + $0xc8] sm:$0xff] %v3098_v35   ;;  %v3253_v48 = vpack.c.bf16 %v1812_v47, %v1811_v31  ;;  %v1625_v49 = vmul.f32 0.2, %v1149_v39  ;;  %v4131_v52 = vpop.f32.mrb[60].mxu0 }
 0x15f   : > { %vm1561_vm10 = vcmp.ge.f32.partialorder %v1405_v44, 0.0  ;;  %v1689_v50 = vmul.f32 0.2, %v1405_v44  ;;  %3346 = vst [vmem:[%s3881_s4 + $0x1c8] sm:$0xff] %v3258_v45   ;;  %v1397_v51 = vadd.f32 %v4032_v14, %v4080_v60  ;;  %v1152_v54 = vadd.f32 %v4032_v14, %v4082_v0  ;;  %v4143_v56 = vpop.f32.mrb[60].mxu1  ;;  %v4145_v57 = vpop.f32.mrb[61].mxu0 }
 0x160   : > { %3313 = vst [vmem:[%s3881_s4 + $0xc0] sm:$0xff] %v3093_v46   ;;  %v1408_v55 = vadd.f32 %v4032_v14, %v4084_v1  ;;  %3345 = vst [vmem:[%s3881_s4 + $0x1c0] sm:$0xff] %v3253_v48   ;;  %v1753_v58 = vsel %vm1497_vm9, %v1149_v39, %v1625_v49  ;;  %v1144_v59 = vadd.f32 %v4032_v14, %v4088_v7  ;;  %v4153_v62 = vpop.f32.mrb[61].mxu1  ;;  %v4155_v63 = vpop.f32.mrb[62].mxu0  ;;  %vm1495_vm11 = vcmp.ge.f32.partialorder %v1141_v53, 0.0 }
 0x161   : > { %v1817_v61 = vsel %vm1561_vm10, %v1405_v44, %v1689_v50  ;;  %v1400_v60 = vadd.f32 %v4032_v14, %v4090_v8  ;;  %v1623_v0 = vmul.f32 0.2, %v1141_v53  ;;  %vm1559_vm12 = vcmp.ge.f32.partialorder %v1397_v51, 0.0  ;;  %v4157_v7 = vpop.f32.mrb[62].mxu1  ;;  %v4159_v8 = vpop.f32.mrb[63].mxu0 }
 0x162   : > { %v1687_v1 = vmul.f32 0.2, %v1397_v51  ;;  %vm1498_vm13 = vcmp.ge.f32.partialorder %v1152_v54, 0.0  ;;  %v1626_v2 = vmul.f32 0.2, %v1152_v54  ;;  %vm1562_vm14 = vcmp.ge.f32.partialorder %v1408_v55, 0.0 }
 0x163   : > { %v1690_v4 = vmul.f32 0.2, %v1408_v55  ;;  %v1751_v5 = vsel %vm1495_vm11, %v1141_v53, %v1623_v0  ;;  %vm1496_vm15 = vcmp.ge.f32.partialorder %v1144_v59, 0.0  ;;  %v1624_v9 = vmul.f32 0.2, %v1144_v59  ;;  %v1431_v13 = vpop.f32.mrb[63].mxu1 }
 0x164   : > { %v1815_v6 = vsel %vm1559_vm12, %v1397_v51, %v1687_v1  ;;  %v1754_v10 = vsel %vm1498_vm13, %v1152_v54, %v1626_v2  ;;  %vm1560_vm0 = vcmp.ge.f32.partialorder %v1400_v60, 0.0  ;;  %v1688_v12 = vmul.f32 0.2, %v1400_v60 }
 0x165   : > { %v1818_v11 = vsel %vm1562_vm14, %v1408_v55, %v1690_v4  ;;  %v3108_v15 = vpack.c.bf16 %v1754_v10, %v1753_v58  ;;  %v1752_v17 = vsel %vm1496_vm15, %v1144_v59, %v1624_v9  ;;  %v1165_v19 = vadd.f32 %v4032_v14, %v4104_v21 }
 0x166   : > { %v3268_v16 = vpack.c.bf16 %v1818_v11, %v1817_v61  ;;  %v3103_v3 = vpack.c.bf16 %v1752_v17, %v1751_v5  ;;  %v1816_v18 = vsel %vm1560_vm0, %v1400_v60, %v1688_v12  ;;  %v1421_v20 = vadd.f32 %v4032_v14, %v4106_v23 }
 0x167   : > { %v1157_v24 = vadd.f32 %v4032_v14, %v4112_v27  ;;  %3316 = vst [vmem:[%s3881_s4 + $0xd8] sm:$0xff] %v3108_v15   ;;  %v3263_v25 = vpack.c.bf16 %v1816_v18, %v1815_v6  ;;  %vm1501_vm1 = vcmp.ge.f32.partialorder %v1165_v19, 0.0  ;;  %v1629_v22 = vmul.f32 0.2, %v1165_v19 }
 0x168   : > { %3348 = vst [vmem:[%s3881_s4 + $0x1d8] sm:$0xff] %v3268_v16   ;;  %v1413_v26 = vadd.f32 %v4032_v14, %v4114_v30  ;;  %3315 = vst [vmem:[%s3881_s4 + $0xd0] sm:$0xff] %v3103_v3   ;;  %vm1565_vm2 = vcmp.ge.f32.partialorder %v1421_v20, 0.0  ;;  %v1693_v21 = vmul.f32 0.2, %v1421_v20  ;;  %v1168_v23 = vadd.f32 %v4032_v14, %v4118_v33 }
 0x169   : > { %vm1499_vm3 = vcmp.ge.f32.partialorder %v1157_v24, 0.0  ;;  %v1627_v31 = vmul.f32 0.2, %v1157_v24  ;;  %3347 = vst [vmem:[%s3881_s4 + $0x1d0] sm:$0xff] %v3263_v25   ;;  %v1757_v32 = vsel %vm1501_vm1, %v1165_v19, %v1629_v22  ;;  %v1424_v37 = vadd.f32 %v4032_v14, %v4120_v36 }
 0x16a   : > { %vm1563_vm4 = vcmp.ge.f32.partialorder %v1413_v26, 0.0  ;;  %v1821_v27 = vsel %vm1565_vm2, %v1421_v20, %v1693_v21  ;;  %v1691_v28 = vmul.f32 0.2, %v1413_v26  ;;  %v1160_v29 = vadd.f32 %v4032_v14, %v4124_v40 }
 0x16b   : > { %v1755_v30 = vsel %vm1499_vm3, %v1157_v24, %v1627_v31  ;;  %vm1502_vm5 = vcmp.ge.f32.partialorder %v1168_v23, 0.0  ;;  %v1630_v34 = vmul.f32 0.2, %v1168_v23  ;;  %v1416_v38 = vadd.f32 %v4032_v14, %v4126_v41 }
 0x16c   : > { %vm1566_vm6 = vcmp.ge.f32.partialorder %v1424_v37, 0.0  ;;  %v1694_v39 = vmul.f32 0.2, %v1424_v37  ;;  %vm1500_vm7 = vcmp.ge.f32.partialorder %v1160_v29, 0.0  ;;  %v1628_v35 = vmul.f32 0.2, %v1160_v29 }
 0x16d   : > { %v1758_v33 = vsel %vm1502_vm5, %v1168_v23, %v1630_v34  ;;  %vm1564_vm8 = vcmp.ge.f32.partialorder %v1416_v38, 0.0  ;;  %v1692_v42 = vmul.f32 0.2, %v1416_v38  ;;  %v1181_v36 = vadd.f32 %v4032_v14, %v4131_v52 }
 0x16e   : > { %v3118_v40 = vpack.c.bf16 %v1758_v33, %v1757_v32  ;;  %v1822_v43 = vsel %vm1566_vm6, %v1424_v37, %v1694_v39  ;;  %v1756_v44 = vsel %vm1500_vm7, %v1160_v29, %v1628_v35  ;;  %v1437_v45 = vadd.f32 %v4032_v14, %v4143_v56 }
 0x16f   : > { %v1819_v41 = vsel %vm1563_vm4, %v1413_v26, %v1691_v28  ;;  %v3278_v46 = vpack.c.bf16 %v1822_v43, %v1821_v27  ;;  %v3113_v47 = vpack.c.bf16 %v1756_v44, %v1755_v30  ;;  %v1820_v48 = vsel %vm1564_vm8, %v1416_v38, %v1692_v42 }
 0x170   : > { %3318 = vst [vmem:[%s3881_s4 + $0xe8] sm:$0xff] %v3118_v40   ;;  %v3273_v49 = vpack.c.bf16 %v1820_v48, %v1819_v41  ;;  %vm1505_vm9 = vcmp.ge.f32.partialorder %v1181_v36, 0.0  ;;  %v1633_v50 = vmul.f32 0.2, %v1181_v36  ;;  %v1697_v53 = vmul.f32 0.2, %v1437_v45 }
 0x171   : > { %3350 = vst [vmem:[%s3881_s4 + $0x1e8] sm:$0xff] %v3278_v46   ;;  %3317 = vst [vmem:[%s3881_s4 + $0xe0] sm:$0xff] %v3113_v47   ;;  %v1173_v52 = vadd.f32 %v4032_v14, %v4145_v57  ;;  %v1429_v51 = vadd.f32 %v4032_v14, %v4153_v62  ;;  %v1184_v54 = vadd.f32 %v4032_v14, %v4155_v63  ;;  %vm1569_vm10 = vcmp.ge.f32.partialorder %v1437_v45, 0.0 }
 0x172   : > { %v1440_v55 = vadd.f32 %v4032_v14, %v4157_v7  ;;  %3349 = vst [vmem:[%s3881_s4 + $0x1e0] sm:$0xff] %v3273_v49   ;;  %v1176_v56 = vadd.f32 %v4032_v14, %v4159_v8  ;;  %v1432_v58 = vadd.f32 %v4032_v14, %v1431_v13  ;;  %v1761_v61 = vsel %vm1505_vm9, %v1181_v36, %v1633_v50 }
 0x173   : > { %vm1503_vm11 = vcmp.ge.f32.partialorder %v1173_v52, 0.0  ;;  %v1631_v59 = vmul.f32 0.2, %v1173_v52  ;;  %v1695_v57 = vmul.f32 0.2, %v1429_v51  ;;  %vm1506_vm12 = vcmp.ge.f32.partialorder %v1184_v54, 0.0 }
 0x174   : > { %v1634_v60 = vmul.f32 0.2, %v1184_v54  ;;  %vm1570_vm13 = vcmp.ge.f32.partialorder %v1440_v55, 0.0  ;;  %v1698_v62 = vmul.f32 0.2, %v1440_v55  ;;  %v1825_v63 = vsel %vm1569_vm10, %v1437_v45, %v1697_v53 }
 0x175   : > { %vm1567_vm14 = vcmp.ge.f32.partialorder %v1429_v51, 0.0  ;;  %vm1504_vm15 = vcmp.ge.f32.partialorder %v1176_v56, 0.0  ;;  %v1632_v0 = vmul.f32 0.2, %v1176_v56  ;;  %vm1568_vm0 = vcmp.ge.f32.partialorder %v1432_v58, 0.0 }
 0x176   : > { %v1762_v1 = vsel %vm1506_vm12, %v1184_v54, %v1634_v60  ;;  %v1826_v2 = vsel %vm1570_vm13, %v1440_v55, %v1698_v62  ;;  %v1696_v14 = vmul.f32 0.2, %v1432_v58  ;;  %v1759_v4 = vsel %vm1503_vm11, %v1173_v52, %v1631_v59 }
 0x177   : > { %v3128_v5 = vpack.c.bf16 %v1762_v1, %v1761_v61  ;;  %v3288_v6 = vpack.c.bf16 %v1826_v2, %v1825_v63  ;;  %v1760_v9 = vsel %vm1504_vm15, %v1176_v56, %v1632_v0  ;;  %v1823_v7 = vsel %vm1567_vm14, %v1429_v51, %v1695_v57 }
 0x178   : > { %v3123_v8 = vpack.c.bf16 %v1760_v9, %v1759_v4  ;;  %v1824_v10 = vsel %vm1568_vm0, %v1432_v58, %v1696_v14 }
 0x179   : > { %3320 = vst [vmem:[%s3881_s4 + $0xf8] sm:$0xff] %v3128_v5   ;;  %3352 = vst [vmem:[%s3881_s4 + $0x1f8] sm:$0xff] %v3288_v6   ;;  %v3283_v11 = vpack.c.bf16 %v1824_v10, %v1823_v7 }
 0x17a   : > { %3319 = vst [vmem:[%s3881_s4 + $0xf0] sm:$0xff] %v3123_v8  }
 0x17b   : > { %3351 = vst [vmem:[%s3881_s4 + $0x1f0] sm:$0xff] %v3283_v11  }
 0x17c PF: > { %s13_s14 = sadd.s32 1, %s3674_s14   ;;  %s4218_s12 = smov %s3670_s13 }
 0x17d   : > { %p10_p5 = scmp.ge.s32.totalorder %s13_s14, 4   ;;  %s4219_s13 = smov %s4221_s15 }
 0x17f   :  { %12 = sbr.rel (!%p10_p5) target bundleno = 2 (0x2), region = 68 }

// kernel: discriminator_forward.9
= control target key start
LH: loop header
LB: loop body
LE: loop exit
PB: predicated region body
PF: predicated region fallthrough
CT: control target
= control target key end

     0   :  { %v8966_v0 = vmov 0   ;;  %s11250_s1 = inlined_call_operand.vmem [shape: bf16[2048,128], index: 1, kind: input, shape index: {}]   ;;  %s11251_s0 = inlined_call_operand.vmem [shape: bf16[512,2048], index: 0, kind: input, shape index: {}]   ;;  %s11252_s2 = inlined_call_operand.vmem [shape: f32[1,128], index: 2, kind: input, shape index: {}]   ;;  %s11253_s3 = inlined_call_operand.vmem [shape: bf16[512,128], index: 3, kind: output, shape index: {0}]   ;;  %s11254_s4 = inlined_call_operand.vmem [shape: f32[1,128], index: 4, kind: output, shape index: {1}]   ;;  %s11255_s5 = inlined_call_operand.vmem [shape: f32[1,128], index: 5, kind: output, shape index: {2}]  }
   0x1   :  { %4127 = vmatprep.subr.bf16.mxu1 %v8966_v0  ;;  %5283 = vmatprep.subr.bf16.mxu0 %v8966_v0  ;;  %v8837_v1 = vld [vmem:[%s11250_s1] sm:$0xff]   ;;  %v8839_v3 = vld [vmem:[%s11250_s1 + $0x8] sm:$0xff]   ;;  %v8841_v5 = vld [vmem:[%s11250_s1 + $0x10] sm:$0xff]  }
   0x2   :  { %v8838_v2 = vld [vmem:[%s11250_s1 + $0x200] sm:$0xff]   ;;  %4128 = vmatpush1.bf16.msra.mxu1 %v8837_v1  ;;  %v8840_v4 = vld [vmem:[%s11250_s1 + $0x208] sm:$0xff]   ;;  %v8842_v6 = vld [vmem:[%s11250_s1 + $0x210] sm:$0xff]  }
   0x3   :  { %5284 = vmatpush1.bf16.msra.mxu0 %v8838_v2  ;;  %4129 = vmatprep.subr.bf16.mxu1 %v8966_v0  ;;  %v8843_v7 = vld [vmem:[%s11250_s1 + $0x18] sm:$0xff]   ;;  %v8845_v9 = vld [vmem:[%s11250_s1 + $0x20] sm:$0xff]   ;;  %v8847_v11 = vld [vmem:[%s11250_s1 + $0x28] sm:$0xff]  }
   0x4   :  { %5285 = vmatprep.subr.bf16.mxu0 %v8966_v0  ;;  %v8844_v8 = vld [vmem:[%s11250_s1 + $0x218] sm:$0xff]   ;;  %v8846_v10 = vld [vmem:[%s11250_s1 + $0x220] sm:$0xff]   ;;  %v8848_v12 = vld [vmem:[%s11250_s1 + $0x228] sm:$0xff]  }
   0x5   :  { %v8849_v13 = vld [vmem:[%s11250_s1 + $0x30] sm:$0xff]   ;;  %v8851_v15 = vld [vmem:[%s11250_s1 + $0x38] sm:$0xff]   ;;  %v8853_v17 = vld [vmem:[%s11250_s1 + $0x40] sm:$0xff]  }
   0x6   :  { %4130 = vmatpush1.bf16.msra.mxu1 %v8839_v3  ;;  %v8850_v14 = vld [vmem:[%s11250_s1 + $0x230] sm:$0xff]   ;;  %v8852_v16 = vld [vmem:[%s11250_s1 + $0x238] sm:$0xff]   ;;  %v8854_v18 = vld [vmem:[%s11250_s1 + $0x240] sm:$0xff]  }
   0x7   :  { %5286 = vmatpush1.bf16.msra.mxu0 %v8840_v4  ;;  %4131 = vmatprep.subr.bf16.mxu1 %v8966_v0  ;;  %v9073_v19 = vld [vmem:[%s11251_s0] sm:$0xff]  ;;  %v8855_v24 = vld [vmem:[%s11250_s1 + $0x48] sm:$0xff]   ;;  %v8857_v27 = vld [vmem:[%s11250_s1 + $0x50] sm:$0xff]  }
   0x8   :  { %5287 = vmatprep.subr.bf16.mxu0 %v8966_v0  ;;  %v9078_v20 = vld [vmem:[%s11251_s0 + $0x40] sm:$0xff]  ;;  %v8856_v26 = vld [vmem:[%s11250_s1 + $0x248] sm:$0xff]   ;;  %v8858_v28 = vld [vmem:[%s11250_s1 + $0x250] sm:$0xff]  }
   0x9   :  { %v9083_v21 = vld [vmem:[%s11251_s0 + $0x20] sm:$0xff]  ;;  %v6981_v22 = vcombine.high %v9073_v19, %v9078_v20  ;;  %v8859_v29 = vld [vmem:[%s11250_s1 + $0x58] sm:$0xff]   ;;  %v8863_v33 = vld [vmem:[%s11250_s1 + $0x68] sm:$0xff]   ;;  %v6980_v42 = vcombine.low %v9073_v19, %v9078_v20 }
   0xa   :  { %4132 = vmatpush1.bf16.msra.mxu1 %v8841_v5  ;;  %v9090_v23 = vld [vmem:[%s11251_s0 + $0x60] sm:$0xff]  ;;  %v8860_v30 = vld [vmem:[%s11250_s1 + $0x258] sm:$0xff]   ;;  %v8864_v34 = vld [vmem:[%s11250_s1 + $0x268] sm:$0xff]  }
   0xb   :  { %5288 = vmatpush1.bf16.msra.mxu0 %v8842_v6  ;;  %4133 = vmatprep.subr.bf16.mxu1 %v8966_v0  ;;  %v6989_v25 = vcombine.high %v9083_v21, %v9090_v23  ;;  %v8861_v31 = vld [vmem:[%s11250_s1 + $0x60] sm:$0xff]   ;;  %v8865_v35 = vld [vmem:[%s11250_s1 + $0x70] sm:$0xff]   ;;  %v8867_v37 = vld [vmem:[%s11250_s1 + $0x78] sm:$0xff]   ;;  %v6988_v44 = vcombine.low %v9083_v21, %v9090_v23 }
   0xc   :  { %5289 = vmatprep.subr.bf16.mxu0 %v8966_v0  ;;  %4159 = vmatprep.mubr.bf16.mxu1 %v6981_v22  ;;  %v8862_v32 = vld [vmem:[%s11250_s1 + $0x260] sm:$0xff]   ;;  %v8866_v36 = vld [vmem:[%s11250_s1 + $0x270] sm:$0xff]   ;;  %v8868_v38 = vld [vmem:[%s11250_s1 + $0x278] sm:$0xff]  }
   0xd   :  { %5315 = vmatprep.mubr.bf16.mxu0 %v6989_v25  ;;  %v40_v39 = vld [vmem:[%s11251_s0 + $0x80] sm:$0xff]  ;;  %v8871_v51 = vld [vmem:[%s11250_s1 + $0x88] sm:$0xff]   ;;  %v8873_v59 = vld [vmem:[%s11250_s1 + $0x90] sm:$0xff]  }
   0xe   :  { %4134 = vmatpush1.bf16.msra.mxu1 %v8843_v7  ;;  %v48_v40 = vld [vmem:[%s11251_s0 + $0xc0] sm:$0xff]  ;;  %v8872_v52 = vld [vmem:[%s11250_s1 + $0x288] sm:$0xff]   ;;  %v8874_v60 = vld [vmem:[%s11250_s1 + $0x290] sm:$0xff]  }
   0xf   :  { %5290 = vmatpush1.bf16.msra.mxu0 %v8844_v8  ;;  %4135 = vmatprep.subr.bf16.mxu1 %v8966_v0  ;;  %v44_v41 = vld [vmem:[%s11251_s0 + $0xa0] sm:$0xff]  ;;  %v6997_v47 = vcombine.high %v40_v39, %v48_v40  ;;  %v6996_v55 = vcombine.low %v40_v39, %v48_v40  ;;  %v8875_v2 = vld [vmem:[%s11250_s1 + $0x98] sm:$0xff]   ;;  %v8882_v20 = vld [vmem:[%s11250_s1 + $0x2b0] sm:$0xff]  }
  0x10   :  { %5291 = vmatprep.subr.bf16.mxu0 %v8966_v0  ;;  %v52_v43 = vld [vmem:[%s11251_s0 + $0xe0] sm:$0xff]  ;;  %v8876_v3 = vld [vmem:[%s11250_s1 + $0x298] sm:$0xff]   ;;  %v8888_v39 = vld [vmem:[%s11250_s1 + $0x2c8] sm:$0xff]  }
  0x11   :  { %v8869_v45 = vld [vmem:[%s11250_s1 + $0x80] sm:$0xff]   ;;  %v7005_v48 = vcombine.high %v44_v41, %v52_v43  ;;  %v7004_v56 = vcombine.low %v44_v41, %v52_v43  ;;  %v8889_v41 = vld [vmem:[%s11250_s1 + $0xd0] sm:$0xff]  }
  0x12   :  { %4136 = vmatpush1.bf16.msra.mxu1 %v8845_v9  ;;  %v8870_v46 = vld [vmem:[%s11250_s1 + $0x280] sm:$0xff]  }
  0x13   :  { %5292 = vmatpush1.bf16.msra.mxu0 %v8846_v10  ;;  %4137 = vmatprep.subr.bf16.mxu1 %v8966_v0  ;;  %v56_v49 = vld [vmem:[%s11251_s0 + $0x100] sm:$0xff] }
  0x14   :  { %5293 = vmatprep.subr.bf16.mxu0 %v8966_v0  ;;  %v64_v50 = vld [vmem:[%s11251_s0 + $0x140] sm:$0xff] }
  0x15   :  { %v60_v53 = vld [vmem:[%s11251_s0 + $0x120] sm:$0xff]  ;;  %v7013_v57 = vcombine.high %v56_v49, %v64_v50  ;;  %v7012_v4 = vcombine.low %v56_v49, %v64_v50 }
  0x16   :  { %4138 = vmatpush1.bf16.msra.mxu1 %v8847_v11  ;;  %v68_v54 = vld [vmem:[%s11251_s0 + $0x160] sm:$0xff] }
  0x17   :  { %5294 = vmatpush1.bf16.msra.mxu0 %v8848_v12  ;;  %4139 = vmatprep.subr.bf16.mxu1 %v8966_v0  ;;  %v7021_v58 = vcombine.high %v60_v53, %v68_v54  ;;  %v72_v61 = vld [vmem:[%s11251_s0 + $0x180] sm:$0xff]  ;;  %v7020_v6 = vcombine.low %v60_v53, %v68_v54 }
  0x18   :  { %5295 = vmatprep.subr.bf16.mxu0 %v8966_v0  ;;  %v80_v62 = vld [vmem:[%s11251_s0 + $0x1c0] sm:$0xff] }
  0x19   :  { %v76_v63 = vld [vmem:[%s11251_s0 + $0x1a0] sm:$0xff]  ;;  %v7029_v7 = vcombine.high %v72_v61, %v80_v62 }
  0x1a   :  { %4140 = vmatpush1.bf16.msra.mxu1 %v8849_v13  ;;  %v84_v1 = vld [vmem:[%s11251_s0 + $0x1e0] sm:$0xff] }
  0x1b   :  { %5296 = vmatpush1.bf16.msra.mxu0 %v8850_v14  ;;  %4141 = vmatprep.subr.bf16.mxu1 %v8966_v0  ;;  %v8877_v5 = vld [vmem:[%s11250_s1 + $0xa0] sm:$0xff]   ;;  %v7037_v9 = vcombine.high %v76_v63, %v84_v1  ;;  %v8879_v14 = vld [vmem:[%s11250_s1 + $0xa8] sm:$0xff]  }
  0x1c   :  { %5297 = vmatprep.subr.bf16.mxu0 %v8966_v0  ;;  %v8878_v8 = vld [vmem:[%s11250_s1 + $0x2a0] sm:$0xff]  }
  0x1d   :  { %v88_v10 = vld [vmem:[%s11251_s0 + $0x200] sm:$0xff] }
  0x1e   :  { %4142 = vmatpush1.bf16.msra.mxu1 %v8851_v15  ;;  %v96_v11 = vld [vmem:[%s11251_s0 + $0x240] sm:$0xff]  ;;  %v8880_v15 = vld [vmem:[%s11250_s1 + $0x2a8] sm:$0xff]  }
  0x1f   :  { %5298 = vmatpush1.bf16.msra.mxu0 %v8852_v16  ;;  %4143 = vmatprep.subr.bf16.mxu1 %v8966_v0  ;;  %v92_v12 = vld [vmem:[%s11251_s0 + $0x220] sm:$0xff]  ;;  %v7028_v16 = vcombine.low %v72_v61, %v80_v62  ;;  %v7045_v19 = vcombine.high %v88_v10, %v96_v11 }
  0x20   :  { %5299 = vmatprep.subr.bf16.mxu0 %v8966_v0  ;;  %v100_v13 = vld [vmem:[%s11251_s0 + $0x260] sm:$0xff] }
  0x21   :  { %v7053_v21 = vcombine.high %v92_v12, %v100_v13  ;;  %v104_v22 = vld [vmem:[%s11251_s0 + $0x280] sm:$0xff] }
  0x22   :  { %4144 = vmatpush1.bf16.msra.mxu1 %v8853_v17  ;;  %v8881_v17 = vld [vmem:[%s11250_s1 + $0xb0] sm:$0xff]   ;;  %v112_v23 = vld [vmem:[%s11251_s0 + $0x2c0] sm:$0xff] }
  0x23   :  { %5300 = vmatpush1.bf16.msra.mxu0 %v8854_v18  ;;  %4145 = vmatprep.subr.bf16.mxu1 %v8966_v0  ;;  %v7036_v18 = vcombine.low %v76_v63, %v84_v1  ;;  %v116_v25 = vld [vmem:[%s11251_s0 + $0x2e0] sm:$0xff]  ;;  %v7060_v40 = vcombine.low %v104_v22, %v112_v23 }
  0x24   :  { %5301 = vmatprep.subr.bf16.mxu0 %v8966_v0  ;;  %v148_v49 = vld [vmem:[%s11251_s0 + $0x3e0] sm:$0xff] }
  0x25   :  { %v152_v54 = vld [vmem:[%s11251_s0 + $0x400] sm:$0xff] }
  0x26   :  { %4146 = vmatpush1.bf16.msra.mxu1 %v8855_v24  ;;  %v108_v24 = vld [vmem:[%s11251_s0 + $0x2a0] sm:$0xff] }
  0x27   :  { %5302 = vmatpush1.bf16.msra.mxu0 %v8856_v26  ;;  %4147 = vmatprep.subr.bf16.mxu1 %v8966_v0  ;;  %v8883_v26 = vld [vmem:[%s11250_s1 + $0xb8] sm:$0xff]   ;;  %v168_v1 = vld [vmem:[%s11251_s0 + $0x480] sm:$0xff] }
  0x28   :  { %5303 = vmatprep.subr.bf16.mxu0 %v8966_v0 }
  0x2a   :  { %4148 = vmatpush1.bf16.msra.mxu1 %v8857_v27  ;;  %v8884_v27 = vld [vmem:[%s11250_s1 + $0x2b8] sm:$0xff]  }
  0x2b   :  { %5304 = vmatpush1.bf16.msra.mxu0 %v8858_v28  ;;  %4149 = vmatprep.subr.bf16.mxu1 %v8966_v0  ;;  %v7044_v28 = vcombine.low %v88_v10, %v96_v11  ;;  %v8893_v10 = vld [vmem:[%s11250_s1 + $0xe0] sm:$0xff]  }
  0x2c   :  { %5305 = vmatprep.subr.bf16.mxu0 %v8966_v0  ;;  %v8894_v11 = vld [vmem:[%s11250_s1 + $0x2e0] sm:$0xff]  }
  0x2e   :  { %4150 = vmatpush1.bf16.msra.mxu1 %v8859_v29  ;;  %v8885_v29 = vld [vmem:[%s11250_s1 + $0xc0] sm:$0xff]  }
  0x2f   :  { %5306 = vmatpush1.bf16.msra.mxu0 %v8860_v30  ;;  %4151 = vmatprep.subr.bf16.mxu1 %v8966_v0  ;;  %v7052_v30 = vcombine.low %v92_v12, %v100_v13  ;;  %v192_v12 = vld [vmem:[%s11251_s0 + $0x540] sm:$0xff] }
  0x30   :  { %5307 = vmatprep.subr.bf16.mxu0 %v8966_v0  ;;  %v188_v13 = vld [vmem:[%s11251_s0 + $0x520] sm:$0xff] }
  0x32   :  { %4152 = vmatpush1.bf16.msra.mxu1 %v8861_v31  ;;  %v7061_v31 = vcombine.high %v104_v22, %v112_v23  ;;  %v212_v22 = vld [vmem:[%s11251_s0 + $0x5e0] sm:$0xff] }
  0x33   :  { %5308 = vmatpush1.bf16.msra.mxu0 %v8862_v32  ;;  %4153 = vmatprep.subr.bf16.mxu1 %v8966_v0  ;;  %v8886_v32 = vld [vmem:[%s11250_s1 + $0x2c0] sm:$0xff]  }
  0x34   :  { %5309 = vmatprep.subr.bf16.mxu0 %v8966_v0 }
  0x36   :  { %4154 = vmatpush1.bf16.msra.mxu1 %v8863_v33  ;;  %v7069_v33 = vcombine.high %v108_v24, %v116_v25 }
  0x37   :  { %5310 = vmatpush1.bf16.msra.mxu0 %v8864_v34  ;;  %4155 = vmatprep.subr.bf16.mxu1 %v8966_v0  ;;  %v120_v34 = vld [vmem:[%s11251_s0 + $0x300] sm:$0xff] }
  0x38   :  { %5311 = vmatprep.subr.bf16.mxu0 %v8966_v0 }
  0x3a   :  { %4156 = vmatpush1.bf16.msra.mxu1 %v8865_v35  ;;  %v128_v35 = vld [vmem:[%s11251_s0 + $0x340] sm:$0xff] }
  0x3b   :  { %5312 = vmatpush1.bf16.msra.mxu0 %v8866_v36  ;;  %4157 = vmatprep.subr.bf16.mxu1 %v8966_v0  ;;  %v124_v36 = vld [vmem:[%s11251_s0 + $0x320] sm:$0xff]  ;;  %v7077_v43 = vcombine.high %v120_v34, %v128_v35  ;;  %v7076_v50 = vcombine.low %v120_v34, %v128_v35 }
  0x3c   :  { %5313 = vmatprep.subr.bf16.mxu0 %v8966_v0 }
  0x3e   :  { %4158 = vmatpush1.bf16.msra.mxu1 %v8867_v37  ;;  %v132_v37 = vld [vmem:[%s11251_s0 + $0x360] sm:$0xff] }
  0x3f   :  { %5314 = vmatpush1.bf16.msra.mxu0 %v8868_v38  ;;  %4416 = vmatprep.subr.bf16.mxu1 %v8966_v0  ;;  %v8887_v38 = vld [vmem:[%s11250_s1 + $0xc8] sm:$0xff]  }
  0x40   :  { %5572 = vmatprep.subr.bf16.mxu0 %v8966_v0 }
  0x41   :  { %4160 = vmatmul.mubr.bf16.vlgmr.msra.gmra.mrb[0].mxu1 %v6980_v42  ;;  %v7068_v42 = vcombine.low %v108_v24, %v116_v25 }
  0x42   :  { %5316 = vmatmul.mubr.bf16.vlgmr.msra.gmra.mrb[0].mxu0 %v6988_v44  ;;  %4417 = vmatpush1.bf16.msra.mxu1 %v8869_v45  ;;  %v8890_v44 = vld [vmem:[%s11250_s1 + $0x2d0] sm:$0xff]   ;;  %v7085_v45 = vcombine.high %v124_v36, %v132_v37 }
  0x43   :  { %5573 = vmatpush1.bf16.msra.mxu0 %v8870_v46  ;;  %4167 = vmatprep.mubr.bf16.mxu1 %v6997_v47  ;;  %v136_v46 = vld [vmem:[%s11251_s0 + $0x380] sm:$0xff] }
  0x44   :  { %5323 = vmatprep.mubr.bf16.mxu0 %v7005_v48  ;;  %4418 = vmatprep.subr.bf16.mxu1 %v8966_v0  ;;  %v144_v47 = vld [vmem:[%s11251_s0 + $0x3c0] sm:$0xff] }
  0x45   :  { %5574 = vmatprep.subr.bf16.mxu0 %v8966_v0  ;;  %v140_v48 = vld [vmem:[%s11251_s0 + $0x3a0] sm:$0xff] }
  0x46   :  { %4419 = vmatpush1.bf16.msra.mxu1 %v8871_v51  ;;  %v7084_v51 = vcombine.low %v124_v36, %v132_v37  ;;  %v7101_v53 = vcombine.high %v140_v48, %v148_v49  ;;  %v7100_v61 = vcombine.low %v140_v48, %v148_v49  ;;  %v232_v37 = vld [vmem:[%s11251_s0 + $0x680] sm:$0xff] }
  0x47   :  { %5575 = vmatpush1.bf16.msra.mxu0 %v8872_v52  ;;  %4420 = vmatprep.subr.bf16.mxu1 %v8966_v0  ;;  %v7093_v52 = vcombine.high %v136_v46, %v144_v47  ;;  %v256_v48 = vld [vmem:[%s11251_s0 + $0x740] sm:$0xff] }
  0x48   :  { %5576 = vmatprep.subr.bf16.mxu0 %v8966_v0  ;;  %v252_v49 = vld [vmem:[%s11251_s0 + $0x720] sm:$0xff] }
  0x49   :  { %4168 = vmatmul.mubr.bf16.gmra.mrb[4].mxu1 %v6996_v55  ;;  %v8891_v55 = vld [vmem:[%s11250_s1 + $0xd8] sm:$0xff]  }
  0x4a   :  { %5324 = vmatmul.mubr.bf16.gmra.mrb[4].mxu0 %v7004_v56  ;;  %4175 = vmatprep.mubr.bf16.mxu1 %v7013_v57  ;;  %v8892_v56 = vld [vmem:[%s11250_s1 + $0x2d8] sm:$0xff]   ;;  %v160_v57 = vld [vmem:[%s11251_s0 + $0x440] sm:$0xff] }
  0x4b   :  { %5331 = vmatprep.mubr.bf16.mxu0 %v7021_v58  ;;  %4421 = vmatpush1.bf16.msra.mxu1 %v8873_v59  ;;  %v156_v58 = vld [vmem:[%s11251_s0 + $0x420] sm:$0xff]  ;;  %v7109_v62 = vcombine.high %v152_v54, %v160_v57 }
  0x4c   :  { %5577 = vmatpush1.bf16.msra.mxu0 %v8874_v60  ;;  %4422 = vmatprep.subr.bf16.mxu1 %v8966_v0  ;;  %v164_v59 = vld [vmem:[%s11251_s0 + $0x460] sm:$0xff]  ;;  %v7092_v60 = vcombine.low %v136_v46, %v144_v47  ;;  %v8898_v46 = vld [vmem:[%s11250_s1 + $0x2f0] sm:$0xff]  }
  0x4d   :  { %5578 = vmatprep.subr.bf16.mxu0 %v8966_v0  ;;  %v7117_v63 = vcombine.high %v156_v58, %v164_v59  ;;  %v248_v47 = vld [vmem:[%s11251_s0 + $0x700] sm:$0xff] }
  0x4f   :  { %4423 = vmatpush1.bf16.msra.mxu1 %v8875_v2  ;;  %v176_v2 = vld [vmem:[%s11251_s0 + $0x4c0] sm:$0xff] }
  0x50   :  { %5579 = vmatpush1.bf16.msra.mxu0 %v8876_v3  ;;  %4424 = vmatprep.subr.bf16.mxu1 %v8966_v0  ;;  %v172_v3 = vld [vmem:[%s11251_s0 + $0x4a0] sm:$0xff] }
  0x51   :  { %4176 = vmatmul.mubr.bf16.gmra.mrb[8].mxu1 %v7012_v4  ;;  %5580 = vmatprep.subr.bf16.mxu0 %v8966_v0  ;;  %v180_v4 = vld [vmem:[%s11251_s0 + $0x4e0] sm:$0xff] }
  0x52   :  { %5332 = vmatmul.mubr.bf16.gmra.mrb[8].mxu0 %v7020_v6  ;;  %4183 = vmatprep.mubr.bf16.mxu1 %v7029_v7  ;;  %v7116_v6 = vcombine.low %v156_v58, %v164_v59  ;;  %v7125_v7 = vcombine.high %v168_v1, %v176_v2  ;;  %v276_v58 = vld [vmem:[%s11251_s0 + $0x7e0] sm:$0xff]  ;;  %v7204_v59 = vcombine.low %v248_v47, %v256_v48 }
  0x53   :  { %5339 = vmatprep.mubr.bf16.mxu0 %v7037_v9  ;;  %4425 = vmatpush1.bf16.msra.mxu1 %v8877_v5  ;;  %v7108_v5 = vcombine.low %v152_v54, %v160_v57  ;;  %v184_v9 = vld [vmem:[%s11251_s0 + $0x500] sm:$0xff] }
  0x54   :  { %5581 = vmatpush1.bf16.msra.mxu0 %v8878_v8  ;;  %4426 = vmatprep.subr.bf16.mxu1 %v8966_v0  ;;  %v7133_v8 = vcombine.high %v172_v3, %v180_v4  ;;  %v7140_v23 = vcombine.low %v184_v9, %v192_v12  ;;  %v268_v57 = vld [vmem:[%s11251_s0 + $0x7a0] sm:$0xff] }
  0x55   :  { %5582 = vmatprep.subr.bf16.mxu0 %v8966_v0 }
  0x57   :  { %4427 = vmatpush1.bf16.msra.mxu1 %v8879_v14  ;;  %v196_v14 = vld [vmem:[%s11251_s0 + $0x560] sm:$0xff] }
  0x58   :  { %5583 = vmatpush1.bf16.msra.mxu0 %v8880_v15  ;;  %4428 = vmatprep.subr.bf16.mxu1 %v8966_v0  ;;  %v7124_v15 = vcombine.low %v168_v1, %v176_v2  ;;  %v7148_v24 = vcombine.low %v188_v13, %v196_v14  ;;  %v8900_v1 = vld [vmem:[%s11250_s1 + $0x2f8] sm:$0xff]   ;;  %v280_v2 = vld [vmem:[%s11251_s0 + $0x800] sm:$0xff] }
  0x59   :  { %4184 = vmatmul.mubr.bf16.gmra.mrb[12].mxu1 %v7028_v16  ;;  %5584 = vmatprep.subr.bf16.mxu0 %v8966_v0  ;;  %v7132_v16 = vcombine.low %v172_v3, %v180_v4  ;;  %v288_v3 = vld [vmem:[%s11251_s0 + $0x840] sm:$0xff] }
  0x5a   :  { %5340 = vmatmul.mubr.bf16.gmra.mrb[12].mxu0 %v7036_v18  ;;  %4191 = vmatprep.mubr.bf16.mxu1 %v7045_v19  ;;  %v7149_v18 = vcombine.high %v188_v13, %v196_v14  ;;  %v200_v19 = vld [vmem:[%s11251_s0 + $0x580] sm:$0xff]  ;;  %v7236_v14 = vcombine.low %v280_v2, %v288_v3 }
  0x5b   :  { %5347 = vmatprep.mubr.bf16.mxu0 %v7053_v21  ;;  %4429 = vmatpush1.bf16.msra.mxu1 %v8881_v17  ;;  %v7141_v17 = vcombine.high %v184_v9, %v192_v12  ;;  %v204_v21 = vld [vmem:[%s11251_s0 + $0x5a0] sm:$0xff] }
  0x5c   :  { %5585 = vmatpush1.bf16.msra.mxu0 %v8882_v20  ;;  %4430 = vmatprep.subr.bf16.mxu1 %v8966_v0  ;;  %v208_v20 = vld [vmem:[%s11251_s0 + $0x5c0] sm:$0xff]  ;;  %v7164_v34 = vcombine.low %v204_v21, %v212_v22 }
  0x5d   :  { %5586 = vmatprep.subr.bf16.mxu0 %v8966_v0  ;;  %v7157_v25 = vcombine.high %v200_v19, %v208_v20  ;;  %v284_v4 = vld [vmem:[%s11251_s0 + $0x820] sm:$0xff] }
  0x5e   :  { %v300_v12 = vld [vmem:[%s11251_s0 + $0x8a0] sm:$0xff] }
  0x5f   :  { %4431 = vmatpush1.bf16.msra.mxu1 %v8883_v26  ;;  %v7165_v26 = vcombine.high %v204_v21, %v212_v22  ;;  %v308_v13 = vld [vmem:[%s11251_s0 + $0x8e0] sm:$0xff] }
  0x60   :  { %5587 = vmatpush1.bf16.msra.mxu0 %v8884_v27  ;;  %4432 = vmatprep.subr.bf16.mxu1 %v8966_v0  ;;  %v8895_v27 = vld [vmem:[%s11250_s1 + $0xe8] sm:$0xff]   ;;  %v324_v21 = vld [vmem:[%s11251_s0 + $0x960] sm:$0xff] }
  0x61   :  { %4192 = vmatmul.mubr.bf16.gmra.mrb[16].mxu1 %v7044_v28  ;;  %5588 = vmatprep.subr.bf16.mxu0 %v8966_v0  ;;  %v8896_v28 = vld [vmem:[%s11250_s1 + $0x2e8] sm:$0xff]  }
  0x62   :  { %5348 = vmatmul.mubr.bf16.gmra.mrb[16].mxu0 %v7052_v30  ;;  %4199 = vmatprep.mubr.bf16.mxu1 %v7061_v31  ;;  %v224_v30 = vld [vmem:[%s11251_s0 + $0x640] sm:$0xff] }
  0x63   :  { %5355 = vmatprep.mubr.bf16.mxu0 %v7069_v33  ;;  %4433 = vmatpush1.bf16.msra.mxu1 %v8885_v29  ;;  %v216_v29 = vld [vmem:[%s11251_s0 + $0x600] sm:$0xff]  ;;  %v7156_v33 = vcombine.low %v200_v19, %v208_v20 }
  0x64   :  { %5589 = vmatpush1.bf16.msra.mxu0 %v8886_v32  ;;  %4434 = vmatprep.subr.bf16.mxu1 %v8966_v0  ;;  %v220_v31 = vld [vmem:[%s11251_s0 + $0x620] sm:$0xff]  ;;  %v7173_v35 = vcombine.high %v216_v29, %v224_v30 }
  0x65   :  { %5590 = vmatprep.subr.bf16.mxu0 %v8966_v0  ;;  %v228_v32 = vld [vmem:[%s11251_s0 + $0x660] sm:$0xff] }
  0x66   :  { %v7181_v36 = vcombine.high %v220_v31, %v228_v32  ;;  %v320_v19 = vld [vmem:[%s11251_s0 + $0x940] sm:$0xff] }
  0x67   :  { %4435 = vmatpush1.bf16.msra.mxu1 %v8887_v38  ;;  %v240_v38 = vld [vmem:[%s11251_s0 + $0x6c0] sm:$0xff] }
  0x68   :  { %5591 = vmatpush1.bf16.msra.mxu0 %v8888_v39  ;;  %4436 = vmatprep.subr.bf16.mxu1 %v8966_v0  ;;  %v236_v39 = vld [vmem:[%s11251_s0 + $0x6a0] sm:$0xff] }
  0x69   :  { %4200 = vmatmul.mubr.bf16.gmra.mrb[20].mxu1 %v7060_v40  ;;  %5592 = vmatprep.subr.bf16.mxu0 %v8966_v0  ;;  %v244_v40 = vld [vmem:[%s11251_s0 + $0x6e0] sm:$0xff] }
  0x6a   :  { %5356 = vmatmul.mubr.bf16.gmra.mrb[20].mxu0 %v7068_v42  ;;  %4207 = vmatprep.mubr.bf16.mxu1 %v7077_v43  ;;  %v7180_v42 = vcombine.low %v220_v31, %v228_v32  ;;  %v7189_v43 = vcombine.high %v232_v37, %v240_v38  ;;  %v316_v20 = vld [vmem:[%s11251_s0 + $0x920] sm:$0xff] }
  0x6b   :  { %5363 = vmatprep.mubr.bf16.mxu0 %v7085_v45  ;;  %4437 = vmatpush1.bf16.msra.mxu1 %v8889_v41  ;;  %v7172_v41 = vcombine.low %v216_v29, %v224_v30  ;;  %v8897_v45 = vld [vmem:[%s11250_s1 + $0xf0] sm:$0xff]   ;;  %v340_v29 = vld [vmem:[%s11251_s0 + $0x9e0] sm:$0xff]  ;;  %v7276_v31 = vcombine.low %v316_v20, %v324_v21 }
  0x6c   :  { %5593 = vmatpush1.bf16.msra.mxu0 %v8890_v44  ;;  %4438 = vmatprep.subr.bf16.mxu1 %v8966_v0  ;;  %v7197_v44 = vcombine.high %v236_v39, %v244_v40 }
  0x6d   :  { %5594 = vmatprep.subr.bf16.mxu0 %v8966_v0 }
  0x6f   :  { %4439 = vmatpush1.bf16.msra.mxu1 %v8891_v55  ;;  %v264_v55 = vld [vmem:[%s11251_s0 + $0x780] sm:$0xff] }
  0x70   :  { %5595 = vmatpush1.bf16.msra.mxu0 %v8892_v56  ;;  %4440 = vmatprep.subr.bf16.mxu1 %v8966_v0  ;;  %v272_v56 = vld [vmem:[%s11251_s0 + $0x7c0] sm:$0xff] }
  0x71   :  { %4208 = vmatmul.mubr.bf16.gmra.mrb[24].mxu1 %v7076_v50  ;;  %5596 = vmatprep.subr.bf16.mxu0 %v8966_v0  ;;  %v260_v50 = vld [vmem:[%s11251_s0 + $0x760] sm:$0xff] }
  0x72   :  { %5364 = vmatmul.mubr.bf16.gmra.mrb[24].mxu0 %v7084_v51  ;;  %4215 = vmatprep.mubr.bf16.mxu1 %v7093_v52  ;;  %v7188_v51 = vcombine.low %v232_v37, %v240_v38  ;;  %v7196_v52 = vcombine.low %v236_v39, %v244_v40  ;;  %v7213_v54 = vcombine.high %v252_v49, %v260_v50  ;;  %v356_v37 = vld [vmem:[%s11251_s0 + $0xa60] sm:$0xff] }
  0x73   :  { %5371 = vmatprep.mubr.bf16.mxu0 %v7101_v53  ;;  %4441 = vmatpush1.bf16.msra.mxu1 %v8893_v10  ;;  %v7205_v53 = vcombine.high %v248_v47, %v256_v48  ;;  %v296_v10 = vld [vmem:[%s11251_s0 + $0x880] sm:$0xff] }
  0x74   :  { %5597 = vmatpush1.bf16.msra.mxu0 %v8894_v11  ;;  %4442 = vmatprep.subr.bf16.mxu1 %v8966_v0  ;;  %v304_v11 = vld [vmem:[%s11251_s0 + $0x8c0] sm:$0xff] }
  0x75   :  { %5598 = vmatprep.subr.bf16.mxu0 %v8966_v0  ;;  %v7252_v22 = vcombine.low %v296_v10, %v304_v11 }
  0x77   :  { %4443 = vmatpush1.bf16.msra.mxu1 %v8895_v27  ;;  %v336_v27 = vld [vmem:[%s11251_s0 + $0x9c0] sm:$0xff] }
  0x78   :  { %5599 = vmatpush1.bf16.msra.mxu0 %v8896_v28  ;;  %4444 = vmatprep.subr.bf16.mxu1 %v8966_v0  ;;  %v332_v28 = vld [vmem:[%s11251_s0 + $0x9a0] sm:$0xff] }
  0x79   :  { %4216 = vmatmul.mubr.bf16.gmra.mrb[28].mxu1 %v7092_v60  ;;  %5600 = vmatprep.subr.bf16.mxu0 %v8966_v0  ;;  %v7212_v60 = vcombine.low %v252_v49, %v260_v50  ;;  %v7292_v39 = vcombine.low %v332_v28, %v340_v29  ;;  %v376_v50 = vld [vmem:[%s11251_s0 + $0xb00] sm:$0xff] }
  0x7a   :  { %5372 = vmatmul.mubr.bf16.gmra.mrb[28].mxu0 %v7100_v61  ;;  %4223 = vmatprep.mubr.bf16.mxu1 %v7109_v62  ;;  %v7221_v61 = vcombine.high %v264_v55, %v272_v56  ;;  %v7229_v62 = vcombine.high %v268_v57, %v276_v58 }
  0x7b   :  { %5379 = vmatprep.mubr.bf16.mxu0 %v7117_v63  ;;  %4445 = vmatpush1.bf16.msra.mxu1 %v8897_v45  ;;  %v8899_v63 = vld [vmem:[%s11250_s1 + $0xf8] sm:$0xff]   ;;  %v372_v45 = vld [vmem:[%s11251_s0 + $0xae0] sm:$0xff] }
  0x7c   :  { %5601 = vmatpush1.bf16.msra.mxu0 %v8898_v46  ;;  %4446 = vmatprep.subr.bf16.mxu1 %v8966_v0 }
  0x7d   :  { %5602 = vmatprep.subr.bf16.mxu0 %v8966_v0 }
  0x7f   :  { %4447 = vmatpush1.bf16.msra.mxu1 %v8899_v63 }
  0x80   :  { %5603 = vmatpush1.bf16.msra.mxu0 %v8900_v1  ;;  %4705 = vmatprep.subr.bf16.mxu1 %v8966_v0 }
  0x81   :  { %4224 = vmatmul.mubr.bf16.gmra.mrb[32].mxu1 %v7108_v5  ;;  %v292_v5 = vld [vmem:[%s11251_s0 + $0x860] sm:$0xff]  ;;  %5861 = vmatprep.subr.bf16.mxu0 %v8966_v0 }
  0x82   :  { %5380 = vmatmul.mubr.bf16.gmra.mrb[32].mxu0 %v7116_v6  ;;  %4231 = vmatprep.mubr.bf16.mxu1 %v7125_v7  ;;  %v7220_v6 = vcombine.low %v264_v55, %v272_v56  ;;  %v7228_v7 = vcombine.low %v268_v57, %v276_v58  ;;  %v7245_v9 = vcombine.high %v284_v4, %v292_v5  ;;  %v392_v58 = vld [vmem:[%s11251_s0 + $0xb80] sm:$0xff] }
  0x83   :  { %5387 = vmatprep.mubr.bf16.mxu0 %v7133_v8  ;;  %v7237_v8 = vcombine.high %v280_v2, %v288_v3  ;;  %v408_v3 = vld [vmem:[%s11251_s0 + $0xc00] sm:$0xff] }
  0x89   :  { %4232 = vmatmul.mubr.bf16.gmra.mrb[36].mxu1 %v7124_v15  ;;  %v7244_v15 = vcombine.low %v284_v4, %v292_v5  ;;  %v416_v4 = vld [vmem:[%s11251_s0 + $0xc40] sm:$0xff] }
  0x8a   :  { %5388 = vmatmul.mubr.bf16.gmra.mrb[36].mxu0 %v7132_v16  ;;  %4239 = vmatprep.mubr.bf16.mxu1 %v7141_v17  ;;  %v7253_v16 = vcombine.high %v296_v10, %v304_v11  ;;  %v7261_v17 = vcombine.high %v300_v12, %v308_v13  ;;  %v412_v5 = vld [vmem:[%s11251_s0 + $0xc20] sm:$0xff] }
  0x8b   :  { %5395 = vmatprep.mubr.bf16.mxu0 %v7149_v18  ;;  %v312_v18 = vld [vmem:[%s11251_s0 + $0x900] sm:$0xff] }
  0x8c   :  { %v7268_v30 = vcombine.low %v312_v18, %v320_v19  ;;  %v424_v11 = vld [vmem:[%s11251_s0 + $0xc80] sm:$0xff] }
  0x91   :  { %4240 = vmatmul.mubr.bf16.gmra.mrb[40].mxu1 %v7140_v23  ;;  %v7260_v23 = vcombine.low %v300_v12, %v308_v13  ;;  %v432_v12 = vld [vmem:[%s11251_s0 + $0xcc0] sm:$0xff] }
  0x92   :  { %5396 = vmatmul.mubr.bf16.gmra.mrb[40].mxu0 %v7148_v24  ;;  %4247 = vmatprep.mubr.bf16.mxu1 %v7157_v25  ;;  %v7269_v24 = vcombine.high %v312_v18, %v320_v19  ;;  %v7277_v25 = vcombine.high %v316_v20, %v324_v21  ;;  %v428_v13 = vld [vmem:[%s11251_s0 + $0xca0] sm:$0xff] }
  0x93   :  { %5403 = vmatprep.mubr.bf16.mxu0 %v7165_v26  ;;  %v328_v26 = vld [vmem:[%s11251_s0 + $0x980] sm:$0xff] }
  0x94   :  { %v7285_v32 = vcombine.high %v328_v26, %v336_v27  ;;  %v7284_v38 = vcombine.low %v328_v26, %v336_v27  ;;  %v440_v19 = vld [vmem:[%s11251_s0 + $0xd00] sm:$0xff] }
  0x95   :  { %v448_v20 = vld [vmem:[%s11251_s0 + $0xd40] sm:$0xff] }
  0x96   :  { %v444_v21 = vld [vmem:[%s11251_s0 + $0xd20] sm:$0xff] }
  0x97   :  { %v456_v27 = vld [vmem:[%s11251_s0 + $0xd80] sm:$0xff] }
  0x99   :  { %4248 = vmatmul.mubr.bf16.gmra.mrb[44].mxu1 %v7156_v33  ;;  %v7293_v33 = vcombine.high %v332_v28, %v340_v29  ;;  %v464_v28 = vld [vmem:[%s11251_s0 + $0xdc0] sm:$0xff] }
  0x9a   :  { %5404 = vmatmul.mubr.bf16.gmra.mrb[44].mxu0 %v7164_v34  ;;  %4255 = vmatprep.mubr.bf16.mxu1 %v7173_v35  ;;  %v344_v34 = vld [vmem:[%s11251_s0 + $0xa00] sm:$0xff] }
  0x9b   :  { %5411 = vmatprep.mubr.bf16.mxu0 %v7181_v36  ;;  %v352_v35 = vld [vmem:[%s11251_s0 + $0xa40] sm:$0xff] }
  0x9c   :  { %v348_v36 = vld [vmem:[%s11251_s0 + $0xa20] sm:$0xff]  ;;  %v7301_v40 = vcombine.high %v344_v34, %v352_v35  ;;  %v7300_v46 = vcombine.low %v344_v34, %v352_v35 }
  0x9d   :  { %v7308_v47 = vcombine.low %v348_v36, %v356_v37  ;;  %v460_v29 = vld [vmem:[%s11251_s0 + $0xda0] sm:$0xff] }
  0x9e   :  { %v472_v35 = vld [vmem:[%s11251_s0 + $0xe00] sm:$0xff] }
  0xa1   :  { %4256 = vmatmul.mubr.bf16.gmra.mrb[48].mxu1 %v7172_v41  ;;  %v7309_v41 = vcombine.high %v348_v36, %v356_v37  ;;  %v480_v36 = vld [vmem:[%s11251_s0 + $0xe40] sm:$0xff] }
  0xa2   :  { %5412 = vmatmul.mubr.bf16.gmra.mrb[48].mxu0 %v7180_v42  ;;  %4263 = vmatprep.mubr.bf16.mxu1 %v7189_v43  ;;  %v360_v42 = vld [vmem:[%s11251_s0 + $0xa80] sm:$0xff] }
  0xa3   :  { %5419 = vmatprep.mubr.bf16.mxu0 %v7197_v44  ;;  %v368_v43 = vld [vmem:[%s11251_s0 + $0xac0] sm:$0xff] }
  0xa4   :  { %v364_v44 = vld [vmem:[%s11251_s0 + $0xaa0] sm:$0xff]  ;;  %v7317_v48 = vcombine.high %v360_v42, %v368_v43 }
  0xa5   :  { %v7325_v49 = vcombine.high %v364_v44, %v372_v45  ;;  %v7324_v55 = vcombine.low %v364_v44, %v372_v45  ;;  %v476_v37 = vld [vmem:[%s11251_s0 + $0xe20] sm:$0xff] }
  0xa6   :  { %v496_v44 = vld [vmem:[%s11251_s0 + $0xec0] sm:$0xff] }
  0xa7   :  { %v492_v45 = vld [vmem:[%s11251_s0 + $0xea0] sm:$0xff] }
  0xa9   :  { %4264 = vmatmul.mubr.bf16.gmra.mrb[52].mxu1 %v7188_v51  ;;  %v384_v51 = vld [vmem:[%s11251_s0 + $0xb40] sm:$0xff] }
  0xaa   :  { %5420 = vmatmul.mubr.bf16.gmra.mrb[52].mxu0 %v7196_v52  ;;  %4271 = vmatprep.mubr.bf16.mxu1 %v7205_v53  ;;  %v380_v52 = vld [vmem:[%s11251_s0 + $0xb20] sm:$0xff]  ;;  %v7333_v56 = vcombine.high %v376_v50, %v384_v51 }
  0xab   :  { %5427 = vmatprep.mubr.bf16.mxu0 %v7213_v54  ;;  %v388_v53 = vld [vmem:[%s11251_s0 + $0xb60] sm:$0xff]  ;;  %v7316_v54 = vcombine.low %v360_v42, %v368_v43 }
  0xac   :  { %v7341_v57 = vcombine.high %v380_v52, %v388_v53  ;;  %v7340_v63 = vcombine.low %v380_v52, %v388_v53  ;;  %v488_v43 = vld [vmem:[%s11251_s0 + $0xe80] sm:$0xff] }
  0xad   :  { %v512_v52 = vld [vmem:[%s11251_s0 + $0xf40] sm:$0xff] }
  0xae   :  { %v508_v53 = vld [vmem:[%s11251_s0 + $0xf20] sm:$0xff] }
  0xb1   :  { %4272 = vmatmul.mubr.bf16.gmra.mrb[56].mxu1 %v7204_v59  ;;  %v400_v59 = vld [vmem:[%s11251_s0 + $0xbc0] sm:$0xff] }
  0xb2   :  { %5428 = vmatmul.mubr.bf16.gmra.mrb[56].mxu0 %v7212_v60  ;;  %4279 = vmatprep.mubr.bf16.mxu1 %v7221_v61  ;;  %v396_v60 = vld [vmem:[%s11251_s0 + $0xba0] sm:$0xff]  ;;  %v7349_v1 = vcombine.high %v392_v58, %v400_v59 }
  0xb3   :  { %5435 = vmatprep.mubr.bf16.mxu0 %v7229_v62  ;;  %v404_v61 = vld [vmem:[%s11251_s0 + $0xbe0] sm:$0xff]  ;;  %v7332_v62 = vcombine.low %v376_v50, %v384_v51 }
  0xb4   :  { %v7357_v2 = vcombine.high %v396_v60, %v404_v61  ;;  %v504_v51 = vld [vmem:[%s11251_s0 + $0xf00] sm:$0xff] }
  0xb9   :  { %4280 = vmatmul.mubr.bf16.gmra.mrb[60].mxu1 %v7220_v6  ;;  %v420_v6 = vld [vmem:[%s11251_s0 + $0xc60] sm:$0xff] }
  0xba   :  { %5436 = vmatmul.mubr.bf16.gmra.mrb[60].mxu0 %v7228_v7  ;;  %4287 = vmatprep.mubr.bf16.mxu1 %v7237_v8  ;;  %v7348_v7 = vcombine.low %v392_v58, %v400_v59  ;;  %v7356_v8 = vcombine.low %v396_v60, %v404_v61  ;;  %v7373_v10 = vcombine.high %v412_v5, %v420_v6  ;;  %v520_v59 = vld [vmem:[%s11251_s0 + $0xf80] sm:$0xff] }
  0xbb   :  { %5443 = vmatprep.mubr.bf16.mxu0 %v7245_v9  ;;  %v7365_v9 = vcombine.high %v408_v3, %v416_v4  ;;  %v528_v60 = vld [vmem:[%s11251_s0 + $0xfc0] sm:$0xff] }
  0xbc   :  { %v524_v61 = vld [vmem:[%s11251_s0 + $0xfa0] sm:$0xff] }
  0xc1   :  { %4288 = vmatmul.mubr.bf16.gmra.mrb[64].mxu1 %v7236_v14  ;;  %v436_v14 = vld [vmem:[%s11251_s0 + $0xce0] sm:$0xff] }
  0xc2   :  { %5444 = vmatmul.mubr.bf16.gmra.mrb[64].mxu0 %v7244_v15  ;;  %4295 = vmatprep.mubr.bf16.mxu1 %v7253_v16  ;;  %v7364_v15 = vcombine.low %v408_v3, %v416_v4  ;;  %v7372_v16 = vcombine.low %v412_v5, %v420_v6  ;;  %v7389_v18 = vcombine.high %v428_v13, %v436_v14  ;;  %v25_v4 = vld [vmem:[%s11251_s0 + $0x8] sm:$0xff] }
  0xc3   :  { %5451 = vmatprep.mubr.bf16.mxu0 %v7261_v17  ;;  %v7381_v17 = vcombine.high %v424_v11, %v432_v12  ;;  %v33_v5 = vld [vmem:[%s11251_s0 + $0x48] sm:$0xff] }
  0xc4   :  { %v29_v6 = vld [vmem:[%s11251_s0 + $0x28] sm:$0xff] }
  0xc9   :  { %4296 = vmatmul.mubr.bf16.gmra.mrb[68].mxu1 %v7252_v22  ;;  %v452_v22 = vld [vmem:[%s11251_s0 + $0xd60] sm:$0xff] }
  0xca   :  { %5452 = vmatmul.mubr.bf16.gmra.mrb[68].mxu0 %v7260_v23  ;;  %4303 = vmatprep.mubr.bf16.mxu1 %v7269_v24  ;;  %v7380_v23 = vcombine.low %v424_v11, %v432_v12  ;;  %v7388_v24 = vcombine.low %v428_v13, %v436_v14  ;;  %v7405_v26 = vcombine.high %v444_v21, %v452_v22  ;;  %v41_v12 = vld [vmem:[%s11251_s0 + $0x88] sm:$0xff] }
  0xcb   :  { %5459 = vmatprep.mubr.bf16.mxu0 %v7277_v25  ;;  %v7397_v25 = vcombine.high %v440_v19, %v448_v20  ;;  %v49_v13 = vld [vmem:[%s11251_s0 + $0xc8] sm:$0xff]  ;;  %v6982_v14 = vcombine.low %v25_v4, %v33_v5 }
  0xd1   :  { %4304 = vmatmul.mubr.bf16.gmra.mrb[72].mxu1 %v7268_v30  ;;  %v468_v30 = vld [vmem:[%s11251_s0 + $0xde0] sm:$0xff] }
  0xd2   :  { %5460 = vmatmul.mubr.bf16.gmra.mrb[72].mxu0 %v7276_v31  ;;  %4311 = vmatprep.mubr.bf16.mxu1 %v7285_v32  ;;  %v7396_v31 = vcombine.low %v440_v19, %v448_v20  ;;  %v7404_v32 = vcombine.low %v444_v21, %v452_v22  ;;  %v7421_v34 = vcombine.high %v460_v29, %v468_v30  ;;  %v8902_v19 = vld [vmem:[%s11250_s1 + $0x300] sm:$0xff]   ;;  %v8903_v22 = vld [vmem:[%s11250_s1 + $0x108] sm:$0xff]  }
  0xd3   :  { %5467 = vmatprep.mubr.bf16.mxu0 %v7293_v33  ;;  %v7413_v33 = vcombine.high %v456_v27, %v464_v28  ;;  %v6999_v20 = vcombine.high %v41_v12, %v49_v13 }
  0xd9   :  { %4312 = vmatmul.mubr.bf16.gmra.mrb[76].mxu1 %v7284_v38  ;;  %v484_v38 = vld [vmem:[%s11251_s0 + $0xe60] sm:$0xff] }
  0xda   :  { %5468 = vmatmul.mubr.bf16.gmra.mrb[76].mxu0 %v7292_v39  ;;  %4319 = vmatprep.mubr.bf16.mxu1 %v7301_v40  ;;  %v7412_v39 = vcombine.low %v456_v27, %v464_v28  ;;  %v7420_v40 = vcombine.low %v460_v29, %v468_v30  ;;  %v7437_v42 = vcombine.high %v476_v37, %v484_v38  ;;  %v69_v27 = vld [vmem:[%s11251_s0 + $0x168] sm:$0xff] }
  0xdb   :  { %5475 = vmatprep.mubr.bf16.mxu0 %v7309_v41  ;;  %v7429_v41 = vcombine.high %v472_v35, %v480_v36  ;;  %v6998_v28 = vcombine.low %v41_v12, %v49_v13  ;;  %v8920_v12 = vld [vmem:[%s11250_s1 + $0x348] sm:$0xff]  }
  0xe1   :  { %4320 = vmatmul.mubr.bf16.gmra.mrb[80].mxu1 %v7300_v46  ;;  %v500_v46 = vld [vmem:[%s11251_s0 + $0xee0] sm:$0xff] }
  0xe2   :  { %5476 = vmatmul.mubr.bf16.gmra.mrb[80].mxu0 %v7308_v47  ;;  %4327 = vmatprep.mubr.bf16.mxu1 %v7317_v48  ;;  %v7428_v47 = vcombine.low %v472_v35, %v480_v36  ;;  %v7436_v48 = vcombine.low %v476_v37, %v484_v38  ;;  %v7453_v50 = vcombine.high %v492_v45, %v500_v46  ;;  %v81_v35 = vld [vmem:[%s11251_s0 + $0x1c8] sm:$0xff]  ;;  %v8907_v36 = vld [vmem:[%s11250_s1 + $0x118] sm:$0xff]  }
  0xe3   :  { %5483 = vmatprep.mubr.bf16.mxu0 %v7325_v49  ;;  %v7445_v49 = vcombine.high %v488_v43, %v496_v44  ;;  %v77_v37 = vld [vmem:[%s11251_s0 + $0x1a8] sm:$0xff] }
  0xe4   :  { %v85_v38 = vld [vmem:[%s11251_s0 + $0x1e8] sm:$0xff] }
  0xe9   :  { %4328 = vmatmul.mubr.bf16.gmra.mrb[84].mxu1 %v7316_v54  ;;  %v516_v54 = vld [vmem:[%s11251_s0 + $0xf60] sm:$0xff] }
  0xea   :  { %5484 = vmatmul.mubr.bf16.gmra.mrb[84].mxu0 %v7324_v55  ;;  %4335 = vmatprep.mubr.bf16.mxu1 %v7333_v56  ;;  %v7444_v55 = vcombine.low %v488_v43, %v496_v44  ;;  %v7452_v56 = vcombine.low %v492_v45, %v500_v46  ;;  %v7469_v58 = vcombine.high %v508_v53, %v516_v54  ;;  %v8909_v44 = vld [vmem:[%s11250_s1 + $0x120] sm:$0xff]   ;;  %v89_v46 = vld [vmem:[%s11251_s0 + $0x208] sm:$0xff] }
  0xeb   :  { %5491 = vmatprep.mubr.bf16.mxu0 %v7341_v57  ;;  %v7461_v57 = vcombine.high %v504_v51, %v512_v52  ;;  %v7039_v43 = vcombine.high %v77_v37, %v85_v38  ;;  %v8910_v45 = vld [vmem:[%s11250_s1 + $0x320] sm:$0xff]  }
  0xf1   :  { %4336 = vmatmul.mubr.bf16.gmra.mrb[88].mxu1 %v7332_v62  ;;  %v532_v62 = vld [vmem:[%s11251_s0 + $0xfe0] sm:$0xff] }
  0xf2   :  { %5492 = vmatmul.mubr.bf16.gmra.mrb[88].mxu0 %v7340_v63  ;;  %4343 = vmatprep.mubr.bf16.mxu1 %v7349_v1  ;;  %v7460_v63 = vcombine.low %v504_v51, %v512_v52  ;;  %v7468_v1 = vcombine.low %v508_v53, %v516_v54  ;;  %v7485_v3 = vcombine.high %v524_v61, %v532_v62  ;;  %v8912_v51 = vld [vmem:[%s11250_s1 + $0x328] sm:$0xff]  }
  0xf3   :  { %5499 = vmatprep.mubr.bf16.mxu0 %v7357_v2  ;;  %v7477_v2 = vcombine.high %v520_v59, %v528_v60  ;;  %v7038_v53 = vcombine.low %v77_v37, %v85_v38  ;;  %v169_v37 = vld [vmem:[%s11251_s0 + $0x488] sm:$0xff] }
  0xf4   :  { %v177_v38 = vld [vmem:[%s11251_s0 + $0x4c8] sm:$0xff] }
  0xf9   :  { %4344 = vmatmul.mubr.bf16.gmra.mrb[92].mxu1 %v7348_v7  ;;  %v37_v7 = vld [vmem:[%s11251_s0 + $0x68] sm:$0xff] }
  0xfa   :  { %5500 = vmatmul.mubr.bf16.gmra.mrb[92].mxu0 %v7356_v8  ;;  %4351 = vmatprep.mubr.bf16.mxu1 %v7365_v9  ;;  %v7476_v8 = vcombine.low %v520_v59, %v528_v60  ;;  %v7484_v9 = vcombine.low %v524_v61, %v532_v62  ;;  %v6991_v11 = vcombine.high %v29_v6, %v37_v7  ;;  %v113_v59 = vld [vmem:[%s11251_s0 + $0x2c8] sm:$0xff]  ;;  %v8915_v60 = vld [vmem:[%s11250_s1 + $0x138] sm:$0xff]  }
  0xfb   :  { %5507 = vmatprep.mubr.bf16.mxu0 %v7373_v10  ;;  %v6983_v10 = vcombine.high %v25_v4, %v33_v5  ;;  %v109_v61 = vld [vmem:[%s11251_s0 + $0x2a8] sm:$0xff]  ;;  %v8917_v5 = vld [vmem:[%s11250_s1 + $0x140] sm:$0xff]  }
  0xfc   :  { %v117_v62 = vld [vmem:[%s11251_s0 + $0x2e8] sm:$0xff] }
  0xfd   :  { %v7071_v4 = vcombine.high %v109_v61, %v117_v62 }
 0x101   :  { %4352 = vmatmul.mubr.bf16.gmra.mrb[96].mxu1 %v7364_v15  ;;  %v45_v15 = vld [vmem:[%s11251_s0 + $0xa8] sm:$0xff] }
 0x102   :  { %5508 = vmatmul.mubr.bf16.gmra.mrb[96].mxu0 %v7372_v16  ;;  %4359 = vmatprep.mubr.bf16.mxu1 %v7381_v17  ;;  %v53_v16 = vld [vmem:[%s11251_s0 + $0xe8] sm:$0xff]  ;;  %v6990_v17 = vcombine.low %v29_v6, %v37_v7  ;;  %v8918_v6 = vld [vmem:[%s11250_s1 + $0x340] sm:$0xff]  }
 0x103   :  { %5515 = vmatprep.mubr.bf16.mxu0 %v7389_v18  ;;  %v8901_v18 = vld [vmem:[%s11250_s1 + $0x100] sm:$0xff]   ;;  %v7007_v21 = vcombine.high %v45_v15, %v53_v16  ;;  %v7006_v29 = vcombine.low %v45_v15, %v53_v16  ;;  %v121_v7 = vld [vmem:[%s11251_s0 + $0x308] sm:$0xff] }
 0x109   :  { %4360 = vmatmul.mubr.bf16.gmra.mrb[100].mxu1 %v7380_v23  ;;  %v57_v23 = vld [vmem:[%s11251_s0 + $0x108] sm:$0xff] }
 0x10a   :  { %5516 = vmatmul.mubr.bf16.gmra.mrb[100].mxu0 %v7388_v24  ;;  %4367 = vmatprep.mubr.bf16.mxu1 %v7397_v25  ;;  %v65_v24 = vld [vmem:[%s11251_s0 + $0x148] sm:$0xff] }
 0x10b   :  { %5523 = vmatprep.mubr.bf16.mxu0 %v7405_v26  ;;  %v8904_v25 = vld [vmem:[%s11250_s1 + $0x308] sm:$0xff]   ;;  %v7015_v30 = vcombine.high %v57_v23, %v65_v24 }
 0x10c   :  { %v61_v26 = vld [vmem:[%s11251_s0 + $0x128] sm:$0xff] }
 0x111   :  { %4368 = vmatmul.mubr.bf16.gmra.mrb[104].mxu1 %v7396_v31  ;;  %v7023_v31 = vcombine.high %v61_v26, %v69_v27 }
 0x112   :  { %5524 = vmatmul.mubr.bf16.gmra.mrb[104].mxu0 %v7404_v32  ;;  %4375 = vmatprep.mubr.bf16.mxu1 %v7413_v33  ;;  %v8905_v32 = vld [vmem:[%s11250_s1 + $0x110] sm:$0xff]  }
 0x113   :  { %5531 = vmatprep.mubr.bf16.mxu0 %v7421_v34  ;;  %v8906_v33 = vld [vmem:[%s11250_s1 + $0x310] sm:$0xff]   ;;  %v73_v34 = vld [vmem:[%s11251_s0 + $0x188] sm:$0xff] }
 0x114   :  { %v7030_v52 = vcombine.low %v73_v34, %v81_v35 }
 0x119   :  { %4376 = vmatmul.mubr.bf16.gmra.mrb[108].mxu1 %v7412_v39  ;;  %v8908_v39 = vld [vmem:[%s11250_s1 + $0x318] sm:$0xff]  }
 0x11a   :  { %5532 = vmatmul.mubr.bf16.gmra.mrb[108].mxu0 %v7420_v40  ;;  %4383 = vmatprep.mubr.bf16.mxu1 %v7429_v41  ;;  %v7014_v40 = vcombine.low %v57_v23, %v65_v24  ;;  %v7022_v41 = vcombine.low %v61_v26, %v69_v27  ;;  %v8923_v27 = vld [vmem:[%s11250_s1 + $0x158] sm:$0xff]  }
 0x11b   :  { %5539 = vmatprep.mubr.bf16.mxu0 %v7437_v42  ;;  %v7031_v42 = vcombine.high %v73_v34, %v81_v35 }
 0x121   :  { %4384 = vmatmul.mubr.bf16.gmra.mrb[112].mxu1 %v7428_v47  ;;  %v97_v47 = vld [vmem:[%s11251_s0 + $0x248] sm:$0xff] }
 0x122   :  { %5540 = vmatmul.mubr.bf16.gmra.mrb[112].mxu0 %v7436_v48  ;;  %4391 = vmatprep.mubr.bf16.mxu1 %v7445_v49  ;;  %v8911_v48 = vld [vmem:[%s11250_s1 + $0x128] sm:$0xff]   ;;  %v7047_v54 = vcombine.high %v89_v46, %v97_v47 }
 0x123   :  { %5547 = vmatprep.mubr.bf16.mxu0 %v7453_v50  ;;  %v93_v49 = vld [vmem:[%s11251_s0 + $0x228] sm:$0xff] }
 0x124   :  { %v101_v50 = vld [vmem:[%s11251_s0 + $0x268] sm:$0xff] }
 0x129   :  { %4392 = vmatmul.mubr.bf16.gmra.mrb[116].mxu1 %v7444_v55  ;;  %v7055_v55 = vcombine.high %v93_v49, %v101_v50 }
 0x12a   :  { %5548 = vmatmul.mubr.bf16.gmra.mrb[116].mxu0 %v7452_v56  ;;  %4399 = vmatprep.mubr.bf16.mxu1 %v7461_v57  ;;  %v8913_v56 = vld [vmem:[%s11250_s1 + $0x130] sm:$0xff]  }
 0x12b   :  { %5555 = vmatprep.mubr.bf16.mxu0 %v7469_v58  ;;  %v8914_v57 = vld [vmem:[%s11250_s1 + $0x330] sm:$0xff]   ;;  %v105_v58 = vld [vmem:[%s11251_s0 + $0x288] sm:$0xff] }
 0x12c   :  { %v7062_v13 = vcombine.low %v105_v58, %v113_v59 }
 0x131   :  { %4400 = vmatmul.mubr.bf16.gmra.mrb[120].mxu1 %v7460_v63  ;;  %v8916_v63 = vld [vmem:[%s11250_s1 + $0x338] sm:$0xff]  }
 0x132   :  { %5556 = vmatmul.mubr.bf16.gmra.mrb[120].mxu0 %v7468_v1  ;;  %4407 = vmatprep.mubr.bf16.mxu1 %v7477_v2  ;;  %v7046_v1 = vcombine.low %v89_v46, %v97_v47  ;;  %v7054_v2 = vcombine.low %v93_v49, %v101_v50  ;;  %v8926_v46 = vld [vmem:[%s11250_s1 + $0x360] sm:$0xff]   ;;  %v185_v47 = vld [vmem:[%s11251_s0 + $0x508] sm:$0xff] }
 0x133   :  { %5563 = vmatprep.mubr.bf16.mxu0 %v7485_v3  ;;  %v7063_v3 = vcombine.high %v105_v58, %v113_v59  ;;  %v189_v49 = vld [vmem:[%s11251_s0 + $0x528] sm:$0xff] }
 0x134   :  { %v197_v50 = vld [vmem:[%s11251_s0 + $0x568] sm:$0xff] }
 0x135   :  { %v213_v58 = vld [vmem:[%s11251_s0 + $0x5e8] sm:$0xff] }
 0x139   :  { %4408 = vmatmul.mubr.bf16.gmra.mrb[124].mxu1 %v7476_v8  ;;  %v129_v8 = vld [vmem:[%s11251_s0 + $0x348] sm:$0xff] }
 0x13a   :  { %5564 = vmatmul.mubr.bf16.gmra.mrb[124].mxu0 %v7484_v9  ;;  %4448 = vmatprep.mubr.bf16.mxu1 %v6983_v10  ;;  %v8919_v9 = vld [vmem:[%s11250_s1 + $0x148] sm:$0xff]   ;;  %v7079_v15 = vcombine.high %v121_v7, %v129_v8  ;;  %v7078_v23 = vcombine.low %v121_v7, %v129_v8 }
 0x13b   :  { %5604 = vmatprep.mubr.bf16.mxu0 %v6991_v11  ;;  %v125_v10 = vld [vmem:[%s11251_s0 + $0x328] sm:$0xff] }
 0x13c   :  { %v133_v11 = vld [vmem:[%s11251_s0 + $0x368] sm:$0xff] }
 0x13d   :  { %v7087_v16 = vcombine.high %v125_v10, %v133_v11  ;;  %v7086_v24 = vcombine.low %v125_v10, %v133_v11  ;;  %v233_v10 = vld [vmem:[%s11251_s0 + $0x688] sm:$0xff] }
 0x13e   :  { %v241_v11 = vld [vmem:[%s11251_s0 + $0x6c8] sm:$0xff] }
 0x141   :  { %4449 = vmatmul.mubr.bf16.vlgmr.msra.gmra.mrb[0].mxu1 %v6982_v14  ;;  %v7070_v14 = vcombine.low %v109_v61, %v117_v62 }
 0x142   :  { %5605 = vmatmul.mubr.bf16.vlgmr.msra.gmra.mrb[0].mxu0 %v6990_v17  ;;  %4706 = vmatpush1.bf16.msra.mxu1 %v8901_v18  ;;  %v8921_v17 = vld [vmem:[%s11250_s1 + $0x150] sm:$0xff]  }
 0x143   :  { %5862 = vmatpush1.bf16.msra.mxu0 %v8902_v19  ;;  %4456 = vmatprep.mubr.bf16.mxu1 %v6999_v20  ;;  %v8922_v18 = vld [vmem:[%s11250_s1 + $0x350] sm:$0xff]   ;;  %v137_v19 = vld [vmem:[%s11251_s0 + $0x388] sm:$0xff] }
 0x144   :  { %5612 = vmatprep.mubr.bf16.mxu0 %v7007_v21  ;;  %4707 = vmatprep.subr.bf16.mxu1 %v8966_v0  ;;  %v145_v20 = vld [vmem:[%s11251_s0 + $0x3c8] sm:$0xff] }
 0x145   :  { %5863 = vmatprep.subr.bf16.mxu0 %v8966_v0  ;;  %v141_v21 = vld [vmem:[%s11251_s0 + $0x3a8] sm:$0xff] }
 0x146   :  { %4708 = vmatpush1.bf16.msra.mxu1 %v8903_v22  ;;  %v149_v22 = vld [vmem:[%s11251_s0 + $0x3e8] sm:$0xff] }
 0x147   :  { %5864 = vmatpush1.bf16.msra.mxu0 %v8904_v25  ;;  %4709 = vmatprep.subr.bf16.mxu1 %v8966_v0  ;;  %v7095_v25 = vcombine.high %v137_v19, %v145_v20  ;;  %v7103_v26 = vcombine.high %v141_v21, %v149_v22  ;;  %v7102_v34 = vcombine.low %v141_v21, %v149_v22  ;;  %v257_v21 = vld [vmem:[%s11251_s0 + $0x748] sm:$0xff] }
 0x148   :  { %5865 = vmatprep.subr.bf16.mxu0 %v8966_v0  ;;  %v253_v22 = vld [vmem:[%s11251_s0 + $0x728] sm:$0xff] }
 0x149   :  { %4457 = vmatmul.mubr.bf16.gmra.mrb[4].mxu1 %v6998_v28  ;;  %v8924_v28 = vld [vmem:[%s11250_s1 + $0x358] sm:$0xff]  }
 0x14a   :  { %5613 = vmatmul.mubr.bf16.gmra.mrb[4].mxu0 %v7006_v29  ;;  %4464 = vmatprep.mubr.bf16.mxu1 %v7015_v30  ;;  %v153_v29 = vld [vmem:[%s11251_s0 + $0x408] sm:$0xff] }
 0x14b   :  { %5620 = vmatprep.mubr.bf16.mxu0 %v7023_v31  ;;  %4710 = vmatpush1.bf16.msra.mxu1 %v8905_v32  ;;  %v161_v30 = vld [vmem:[%s11251_s0 + $0x448] sm:$0xff] }
 0x14c   :  { %5866 = vmatpush1.bf16.msra.mxu0 %v8906_v33  ;;  %4711 = vmatprep.subr.bf16.mxu1 %v8966_v0  ;;  %v157_v31 = vld [vmem:[%s11251_s0 + $0x428] sm:$0xff]  ;;  %v7094_v33 = vcombine.low %v137_v19, %v145_v20  ;;  %v7111_v35 = vcombine.high %v153_v29, %v161_v30  ;;  %v8930_v19 = vld [vmem:[%s11250_s1 + $0x370] sm:$0xff]  }
 0x14d   :  { %5867 = vmatprep.subr.bf16.mxu0 %v8966_v0  ;;  %v165_v32 = vld [vmem:[%s11251_s0 + $0x468] sm:$0xff] }
 0x14e   :  { %v249_v20 = vld [vmem:[%s11251_s0 + $0x708] sm:$0xff] }
 0x14f   :  { %4712 = vmatpush1.bf16.msra.mxu1 %v8907_v36  ;;  %v7119_v36 = vcombine.high %v157_v31, %v165_v32 }
 0x150   :  { %5868 = vmatpush1.bf16.msra.mxu0 %v8908_v39  ;;  %4713 = vmatprep.subr.bf16.mxu1 %v8966_v0  ;;  %v173_v39 = vld [vmem:[%s11251_s0 + $0x4a8] sm:$0xff] }
 0x151   :  { %4465 = vmatmul.mubr.bf16.gmra.mrb[8].mxu1 %v7014_v40  ;;  %5869 = vmatprep.subr.bf16.mxu0 %v8966_v0  ;;  %v181_v40 = vld [vmem:[%s11251_s0 + $0x4e8] sm:$0xff] }
 0x152   :  { %5621 = vmatmul.mubr.bf16.gmra.mrb[8].mxu0 %v7022_v41  ;;  %4472 = vmatprep.mubr.bf16.mxu1 %v7031_v42  ;;  %v7110_v41 = vcombine.low %v153_v29, %v161_v30  ;;  %v7118_v42 = vcombine.low %v157_v31, %v165_v32  ;;  %v273_v29 = vld [vmem:[%s11251_s0 + $0x7c8] sm:$0xff]  ;;  %v7206_v32 = vcombine.low %v249_v20, %v257_v21 }
 0x153   :  { %5628 = vmatprep.mubr.bf16.mxu0 %v7039_v43  ;;  %4714 = vmatpush1.bf16.msra.mxu1 %v8909_v44  ;;  %v7127_v43 = vcombine.high %v169_v37, %v177_v38  ;;  %v7135_v44 = vcombine.high %v173_v39, %v181_v40  ;;  %v269_v30 = vld [vmem:[%s11251_s0 + $0x7a8] sm:$0xff] }
 0x154   :  { %5870 = vmatpush1.bf16.msra.mxu0 %v8910_v45  ;;  %4715 = vmatprep.subr.bf16.mxu1 %v8966_v0  ;;  %v8925_v45 = vld [vmem:[%s11250_s1 + $0x160] sm:$0xff]   ;;  %v277_v31 = vld [vmem:[%s11251_s0 + $0x7e8] sm:$0xff] }
 0x155   :  { %5871 = vmatprep.subr.bf16.mxu0 %v8966_v0 }
 0x157   :  { %4716 = vmatpush1.bf16.msra.mxu1 %v8911_v48  ;;  %v193_v48 = vld [vmem:[%s11251_s0 + $0x548] sm:$0xff] }
 0x158   :  { %5872 = vmatpush1.bf16.msra.mxu0 %v8912_v51  ;;  %4717 = vmatprep.subr.bf16.mxu1 %v8966_v0  ;;  %v7126_v51 = vcombine.low %v169_v37, %v177_v38  ;;  %v7142_v59 = vcombine.low %v185_v47, %v193_v48  ;;  %v8932_v37 = vld [vmem:[%s11250_s1 + $0x378] sm:$0xff]   ;;  %v281_v38 = vld [vmem:[%s11251_s0 + $0x808] sm:$0xff] }
 0x159   :  { %4473 = vmatmul.mubr.bf16.gmra.mrb[12].mxu1 %v7030_v52  ;;  %5873 = vmatprep.subr.bf16.mxu0 %v8966_v0  ;;  %v7134_v52 = vcombine.low %v173_v39, %v181_v40  ;;  %v289_v39 = vld [vmem:[%s11251_s0 + $0x848] sm:$0xff] }
 0x15a   :  { %5629 = vmatmul.mubr.bf16.gmra.mrb[12].mxu0 %v7038_v53  ;;  %4480 = vmatprep.mubr.bf16.mxu1 %v7047_v54  ;;  %v7143_v53 = vcombine.high %v185_v47, %v193_v48  ;;  %v7151_v54 = vcombine.high %v189_v49, %v197_v50  ;;  %v285_v40 = vld [vmem:[%s11251_s0 + $0x828] sm:$0xff] }
 0x15b   :  { %5636 = vmatprep.mubr.bf16.mxu0 %v7055_v55  ;;  %4718 = vmatpush1.bf16.msra.mxu1 %v8913_v56  ;;  %v201_v55 = vld [vmem:[%s11251_s0 + $0x588] sm:$0xff] }
 0x15c   :  { %5874 = vmatpush1.bf16.msra.mxu0 %v8914_v57  ;;  %4719 = vmatprep.subr.bf16.mxu1 %v8966_v0  ;;  %v209_v56 = vld [vmem:[%s11251_s0 + $0x5c8] sm:$0xff] }
 0x15d   :  { %5875 = vmatprep.subr.bf16.mxu0 %v8966_v0  ;;  %v205_v57 = vld [vmem:[%s11251_s0 + $0x5a8] sm:$0xff]  ;;  %v7159_v61 = vcombine.high %v201_v55, %v209_v56 }
 0x15e   :  { %v7167_v62 = vcombine.high %v205_v57, %v213_v58  ;;  %v7166_v7 = vcombine.low %v205_v57, %v213_v58  ;;  %v305_v47 = vld [vmem:[%s11251_s0 + $0x8c8] sm:$0xff] }
 0x15f   :  { %4720 = vmatpush1.bf16.msra.mxu1 %v8915_v60  ;;  %v7150_v60 = vcombine.low %v189_v49, %v197_v50  ;;  %v301_v48 = vld [vmem:[%s11251_s0 + $0x8a8] sm:$0xff]  ;;  %v7238_v50 = vcombine.low %v281_v38, %v289_v39 }
 0x160   :  { %5876 = vmatpush1.bf16.msra.mxu0 %v8916_v63  ;;  %4721 = vmatprep.subr.bf16.mxu1 %v8966_v0  ;;  %v8927_v63 = vld [vmem:[%s11250_s1 + $0x168] sm:$0xff]  }
 0x161   :  { %4481 = vmatmul.mubr.bf16.gmra.mrb[16].mxu1 %v7046_v1  ;;  %5877 = vmatprep.subr.bf16.mxu0 %v8966_v0  ;;  %v8928_v1 = vld [vmem:[%s11250_s1 + $0x368] sm:$0xff]  }
 0x162   :  { %5637 = vmatmul.mubr.bf16.gmra.mrb[16].mxu0 %v7054_v2  ;;  %4488 = vmatprep.mubr.bf16.mxu1 %v7063_v3  ;;  %v217_v2 = vld [vmem:[%s11251_s0 + $0x608] sm:$0xff] }
 0x163   :  { %5644 = vmatprep.mubr.bf16.mxu0 %v7071_v4  ;;  %4722 = vmatpush1.bf16.msra.mxu1 %v8917_v5  ;;  %v225_v3 = vld [vmem:[%s11251_s0 + $0x648] sm:$0xff] }
 0x164   :  { %5878 = vmatpush1.bf16.msra.mxu0 %v8918_v6  ;;  %4723 = vmatprep.subr.bf16.mxu1 %v8966_v0  ;;  %v221_v4 = vld [vmem:[%s11251_s0 + $0x628] sm:$0xff]  ;;  %v7158_v6 = vcombine.low %v201_v55, %v209_v56  ;;  %v7175_v8 = vcombine.high %v217_v2, %v225_v3 }
 0x165   :  { %5879 = vmatprep.subr.bf16.mxu0 %v8966_v0  ;;  %v229_v5 = vld [vmem:[%s11251_s0 + $0x668] sm:$0xff] }
 0x166   :  { %v309_v49 = vld [vmem:[%s11251_s0 + $0x8e8] sm:$0xff] }
 0x167   :  { %4724 = vmatpush1.bf16.msra.mxu1 %v8919_v9  ;;  %v7183_v9 = vcombine.high %v221_v4, %v229_v5  ;;  %v321_v55 = vld [vmem:[%s11251_s0 + $0x948] sm:$0xff] }
 0x168   :  { %5880 = vmatpush1.bf16.msra.mxu0 %v8920_v12  ;;  %4725 = vmatprep.subr.bf16.mxu1 %v8966_v0  ;;  %v237_v12 = vld [vmem:[%s11251_s0 + $0x6a8] sm:$0xff] }
 0x169   :  { %4489 = vmatmul.mubr.bf16.gmra.mrb[20].mxu1 %v7062_v13  ;;  %5881 = vmatprep.subr.bf16.mxu0 %v8966_v0  ;;  %v245_v13 = vld [vmem:[%s11251_s0 + $0x6e8] sm:$0xff] }
 0x16a   :  { %5645 = vmatmul.mubr.bf16.gmra.mrb[20].mxu0 %v7070_v14  ;;  %4496 = vmatprep.mubr.bf16.mxu1 %v7079_v15  ;;  %v7174_v14 = vcombine.low %v217_v2, %v225_v3  ;;  %v7182_v15 = vcombine.low %v221_v4, %v229_v5  ;;  %v317_v56 = vld [vmem:[%s11251_s0 + $0x928] sm:$0xff] }
 0x16b   :  { %5652 = vmatprep.mubr.bf16.mxu0 %v7087_v16  ;;  %4726 = vmatpush1.bf16.msra.mxu1 %v8921_v17  ;;  %v7191_v16 = vcombine.high %v233_v10, %v241_v11  ;;  %v7199_v17 = vcombine.high %v237_v12, %v245_v13  ;;  %v325_v57 = vld [vmem:[%s11251_s0 + $0x968] sm:$0xff] }
 0x16c   :  { %5882 = vmatpush1.bf16.msra.mxu0 %v8922_v18  ;;  %4727 = vmatprep.subr.bf16.mxu1 %v8966_v0  ;;  %v8929_v18 = vld [vmem:[%s11250_s1 + $0x170] sm:$0xff]   ;;  %v341_v2 = vld [vmem:[%s11251_s0 + $0x9e8] sm:$0xff]  ;;  %v7278_v4 = vcombine.low %v317_v56, %v325_v57 }
 0x16d   :  { %5883 = vmatprep.subr.bf16.mxu0 %v8966_v0 }
 0x16f   :  { %4728 = vmatpush1.bf16.msra.mxu1 %v8923_v27 }
 0x170   :  { %5884 = vmatpush1.bf16.msra.mxu0 %v8924_v28  ;;  %4729 = vmatprep.subr.bf16.mxu1 %v8966_v0  ;;  %v265_v28 = vld [vmem:[%s11251_s0 + $0x788] sm:$0xff] }
 0x171   :  { %4497 = vmatmul.mubr.bf16.gmra.mrb[24].mxu1 %v7078_v23  ;;  %5885 = vmatprep.subr.bf16.mxu0 %v8966_v0  ;;  %v261_v23 = vld [vmem:[%s11251_s0 + $0x768] sm:$0xff] }
 0x172   :  { %5653 = vmatmul.mubr.bf16.gmra.mrb[24].mxu0 %v7086_v24  ;;  %4504 = vmatprep.mubr.bf16.mxu1 %v7095_v25  ;;  %v7190_v24 = vcombine.low %v233_v10, %v241_v11  ;;  %v7198_v25 = vcombine.low %v237_v12, %v245_v13  ;;  %v7215_v27 = vcombine.high %v253_v22, %v261_v23  ;;  %v357_v10 = vld [vmem:[%s11251_s0 + $0xa68] sm:$0xff] }
 0x173   :  { %5660 = vmatprep.mubr.bf16.mxu0 %v7103_v26  ;;  %4730 = vmatpush1.bf16.msra.mxu1 %v8925_v45  ;;  %v7207_v26 = vcombine.high %v249_v20, %v257_v21 }
 0x174   :  { %5886 = vmatpush1.bf16.msra.mxu0 %v8926_v46  ;;  %4731 = vmatprep.subr.bf16.mxu1 %v8966_v0  ;;  %v297_v46 = vld [vmem:[%s11251_s0 + $0x888] sm:$0xff] }
 0x175   :  { %5887 = vmatprep.subr.bf16.mxu0 %v8966_v0  ;;  %v7254_v58 = vcombine.low %v297_v46, %v305_v47 }
 0x177   :  { %4732 = vmatpush1.bf16.msra.mxu1 %v8927_v63  ;;  %v337_v63 = vld [vmem:[%s11251_s0 + $0x9c8] sm:$0xff] }
 0x178   :  { %5888 = vmatpush1.bf16.msra.mxu0 %v8928_v1  ;;  %4733 = vmatprep.subr.bf16.mxu1 %v8966_v0  ;;  %v333_v1 = vld [vmem:[%s11251_s0 + $0x9a8] sm:$0xff] }
 0x179   :  { %4505 = vmatmul.mubr.bf16.gmra.mrb[28].mxu1 %v7094_v33  ;;  %5889 = vmatprep.subr.bf16.mxu0 %v8966_v0  ;;  %v7214_v33 = vcombine.low %v253_v22, %v261_v23  ;;  %v7294_v12 = vcombine.low %v333_v1, %v341_v2  ;;  %v377_v23 = vld [vmem:[%s11251_s0 + $0xb08] sm:$0xff] }
 0x17a   :  { %5661 = vmatmul.mubr.bf16.gmra.mrb[28].mxu0 %v7102_v34  ;;  %4512 = vmatprep.mubr.bf16.mxu1 %v7111_v35  ;;  %v7223_v34 = vcombine.high %v265_v28, %v273_v29  ;;  %v7231_v35 = vcombine.high %v269_v30, %v277_v31 }
 0x17b   :  { %5668 = vmatprep.mubr.bf16.mxu0 %v7119_v36  ;;  %4734 = vmatpush1.bf16.msra.mxu1 %v8929_v18  ;;  %v8931_v36 = vld [vmem:[%s11250_s1 + $0x178] sm:$0xff]   ;;  %v373_v18 = vld [vmem:[%s11251_s0 + $0xae8] sm:$0xff] }
 0x17c   :  { %5890 = vmatpush1.bf16.msra.mxu0 %v8930_v19  ;;  %4735 = vmatprep.subr.bf16.mxu1 %v8966_v0 }
 0x17d   :  { %5891 = vmatprep.subr.bf16.mxu0 %v8966_v0 }
 0x17f   :  { %4736 = vmatpush1.bf16.msra.mxu1 %v8931_v36 }
 0x180   :  { %5892 = vmatpush1.bf16.msra.mxu0 %v8932_v37  ;;  %4994 = vmatprep.subr.bf16.mxu1 %v8966_v0 }
 0x181   :  { %4513 = vmatmul.mubr.bf16.gmra.mrb[32].mxu1 %v7110_v41  ;;  %v293_v41 = vld [vmem:[%s11251_s0 + $0x868] sm:$0xff]  ;;  %6150 = vmatprep.subr.bf16.mxu0 %v8966_v0 }
 0x182   :  { %5669 = vmatmul.mubr.bf16.gmra.mrb[32].mxu0 %v7118_v42  ;;  %4520 = vmatprep.mubr.bf16.mxu1 %v7127_v43  ;;  %v7222_v42 = vcombine.low %v265_v28, %v273_v29  ;;  %v7230_v43 = vcombine.low %v269_v30, %v277_v31  ;;  %v7247_v45 = vcombine.high %v285_v40, %v293_v41  ;;  %v393_v31 = vld [vmem:[%s11251_s0 + $0xb88] sm:$0xff] }
 0x183   :  { %5676 = vmatprep.mubr.bf16.mxu0 %v7135_v44  ;;  %v7239_v44 = vcombine.high %v281_v38, %v289_v39  ;;  %v409_v39 = vld [vmem:[%s11251_s0 + $0xc08] sm:$0xff] }
 0x189   :  { %4521 = vmatmul.mubr.bf16.gmra.mrb[36].mxu1 %v7126_v51  ;;  %v7246_v51 = vcombine.low %v285_v40, %v293_v41  ;;  %v417_v40 = vld [vmem:[%s11251_s0 + $0xc48] sm:$0xff] }
 0x18a   :  { %5677 = vmatmul.mubr.bf16.gmra.mrb[36].mxu0 %v7134_v52  ;;  %4528 = vmatprep.mubr.bf16.mxu1 %v7143_v53  ;;  %v7255_v52 = vcombine.high %v297_v46, %v305_v47  ;;  %v7263_v53 = vcombine.high %v301_v48, %v309_v49  ;;  %v413_v41 = vld [vmem:[%s11251_s0 + $0xc28] sm:$0xff] }
 0x18b   :  { %5684 = vmatprep.mubr.bf16.mxu0 %v7151_v54  ;;  %v313_v54 = vld [vmem:[%s11251_s0 + $0x908] sm:$0xff] }
 0x18c   :  { %v7270_v3 = vcombine.low %v313_v54, %v321_v55  ;;  %v425_v47 = vld [vmem:[%s11251_s0 + $0xc88] sm:$0xff] }
 0x191   :  { %4529 = vmatmul.mubr.bf16.gmra.mrb[40].mxu1 %v7142_v59  ;;  %v7262_v59 = vcombine.low %v301_v48, %v309_v49  ;;  %v433_v48 = vld [vmem:[%s11251_s0 + $0xcc8] sm:$0xff] }
 0x192   :  { %5685 = vmatmul.mubr.bf16.gmra.mrb[40].mxu0 %v7150_v60  ;;  %4536 = vmatprep.mubr.bf16.mxu1 %v7159_v61  ;;  %v7271_v60 = vcombine.high %v313_v54, %v321_v55  ;;  %v7279_v61 = vcombine.high %v317_v56, %v325_v57  ;;  %v429_v49 = vld [vmem:[%s11251_s0 + $0xca8] sm:$0xff] }
 0x193   :  { %5692 = vmatprep.mubr.bf16.mxu0 %v7167_v62  ;;  %v329_v62 = vld [vmem:[%s11251_s0 + $0x988] sm:$0xff] }
 0x194   :  { %v7287_v5 = vcombine.high %v329_v62, %v337_v63  ;;  %v7286_v11 = vcombine.low %v329_v62, %v337_v63  ;;  %v441_v55 = vld [vmem:[%s11251_s0 + $0xd08] sm:$0xff] }
 0x195   :  { %v449_v56 = vld [vmem:[%s11251_s0 + $0xd48] sm:$0xff] }
 0x196   :  { %v445_v57 = vld [vmem:[%s11251_s0 + $0xd28] sm:$0xff] }
 0x197   :  { %v457_v63 = vld [vmem:[%s11251_s0 + $0xd88] sm:$0xff] }
 0x199   :  { %4537 = vmatmul.mubr.bf16.gmra.mrb[44].mxu1 %v7158_v6  ;;  %v7295_v6 = vcombine.high %v333_v1, %v341_v2  ;;  %v465_v1 = vld [vmem:[%s11251_s0 + $0xdc8] sm:$0xff] }
 0x19a   :  { %5693 = vmatmul.mubr.bf16.gmra.mrb[44].mxu0 %v7166_v7  ;;  %4544 = vmatprep.mubr.bf16.mxu1 %v7175_v8  ;;  %v345_v7 = vld [vmem:[%s11251_s0 + $0xa08] sm:$0xff] }
 0x19b   :  { %5700 = vmatprep.mubr.bf16.mxu0 %v7183_v9  ;;  %v353_v8 = vld [vmem:[%s11251_s0 + $0xa48] sm:$0xff] }
 0x19c   :  { %v349_v9 = vld [vmem:[%s11251_s0 + $0xa28] sm:$0xff]  ;;  %v7303_v13 = vcombine.high %v345_v7, %v353_v8  ;;  %v7302_v19 = vcombine.low %v345_v7, %v353_v8 }
 0x19d   :  { %v7310_v20 = vcombine.low %v349_v9, %v357_v10  ;;  %v461_v2 = vld [vmem:[%s11251_s0 + $0xda8] sm:$0xff] }
 0x19e   :  { %v473_v8 = vld [vmem:[%s11251_s0 + $0xe08] sm:$0xff] }
 0x1a1   :  { %4545 = vmatmul.mubr.bf16.gmra.mrb[48].mxu1 %v7174_v14  ;;  %v7311_v14 = vcombine.high %v349_v9, %v357_v10  ;;  %v481_v9 = vld [vmem:[%s11251_s0 + $0xe48] sm:$0xff] }
 0x1a2   :  { %5701 = vmatmul.mubr.bf16.gmra.mrb[48].mxu0 %v7182_v15  ;;  %4552 = vmatprep.mubr.bf16.mxu1 %v7191_v16  ;;  %v361_v15 = vld [vmem:[%s11251_s0 + $0xa88] sm:$0xff] }
 0x1a3   :  { %5708 = vmatprep.mubr.bf16.mxu0 %v7199_v17  ;;  %v369_v16 = vld [vmem:[%s11251_s0 + $0xac8] sm:$0xff] }
 0x1a4   :  { %v365_v17 = vld [vmem:[%s11251_s0 + $0xaa8] sm:$0xff]  ;;  %v7319_v21 = vcombine.high %v361_v15, %v369_v16 }
 0x1a5   :  { %v7327_v22 = vcombine.high %v365_v17, %v373_v18  ;;  %v7326_v28 = vcombine.low %v365_v17, %v373_v18  ;;  %v477_v10 = vld [vmem:[%s11251_s0 + $0xe28] sm:$0xff] }
 0x1a6   :  { %v497_v17 = vld [vmem:[%s11251_s0 + $0xec8] sm:$0xff] }
 0x1a7   :  { %v493_v18 = vld [vmem:[%s11251_s0 + $0xea8] sm:$0xff] }
 0x1a9   :  { %4553 = vmatmul.mubr.bf16.gmra.mrb[52].mxu1 %v7190_v24  ;;  %v385_v24 = vld [vmem:[%s11251_s0 + $0xb48] sm:$0xff] }
 0x1aa   :  { %5709 = vmatmul.mubr.bf16.gmra.mrb[52].mxu0 %v7198_v25  ;;  %4560 = vmatprep.mubr.bf16.mxu1 %v7207_v26  ;;  %v381_v25 = vld [vmem:[%s11251_s0 + $0xb28] sm:$0xff]  ;;  %v7335_v29 = vcombine.high %v377_v23, %v385_v24 }
 0x1ab   :  { %5716 = vmatprep.mubr.bf16.mxu0 %v7215_v27  ;;  %v389_v26 = vld [vmem:[%s11251_s0 + $0xb68] sm:$0xff]  ;;  %v7318_v27 = vcombine.low %v361_v15, %v369_v16 }
 0x1ac   :  { %v7343_v30 = vcombine.high %v381_v25, %v389_v26  ;;  %v7342_v36 = vcombine.low %v381_v25, %v389_v26  ;;  %v489_v16 = vld [vmem:[%s11251_s0 + $0xe88] sm:$0xff] }
 0x1ad   :  { %v513_v25 = vld [vmem:[%s11251_s0 + $0xf48] sm:$0xff] }
 0x1ae   :  { %v509_v26 = vld [vmem:[%s11251_s0 + $0xf28] sm:$0xff] }
 0x1b1   :  { %4561 = vmatmul.mubr.bf16.gmra.mrb[56].mxu1 %v7206_v32  ;;  %v401_v32 = vld [vmem:[%s11251_s0 + $0xbc8] sm:$0xff] }
 0x1b2   :  { %5717 = vmatmul.mubr.bf16.gmra.mrb[56].mxu0 %v7214_v33  ;;  %4568 = vmatprep.mubr.bf16.mxu1 %v7223_v34  ;;  %v397_v33 = vld [vmem:[%s11251_s0 + $0xba8] sm:$0xff]  ;;  %v7351_v37 = vcombine.high %v393_v31, %v401_v32 }
 0x1b3   :  { %5724 = vmatprep.mubr.bf16.mxu0 %v7231_v35  ;;  %v405_v34 = vld [vmem:[%s11251_s0 + $0xbe8] sm:$0xff]  ;;  %v7334_v35 = vcombine.low %v377_v23, %v385_v24 }
 0x1b4   :  { %v7359_v38 = vcombine.high %v397_v33, %v405_v34  ;;  %v505_v24 = vld [vmem:[%s11251_s0 + $0xf08] sm:$0xff] }
 0x1b9   :  { %4569 = vmatmul.mubr.bf16.gmra.mrb[60].mxu1 %v7222_v42  ;;  %v421_v42 = vld [vmem:[%s11251_s0 + $0xc68] sm:$0xff] }
 0x1ba   :  { %5725 = vmatmul.mubr.bf16.gmra.mrb[60].mxu0 %v7230_v43  ;;  %4576 = vmatprep.mubr.bf16.mxu1 %v7239_v44  ;;  %v7350_v43 = vcombine.low %v393_v31, %v401_v32  ;;  %v7358_v44 = vcombine.low %v397_v33, %v405_v34  ;;  %v7375_v46 = vcombine.high %v413_v41, %v421_v42  ;;  %v521_v32 = vld [vmem:[%s11251_s0 + $0xf88] sm:$0xff] }
 0x1bb   :  { %5732 = vmatprep.mubr.bf16.mxu0 %v7247_v45  ;;  %v7367_v45 = vcombine.high %v409_v39, %v417_v40  ;;  %v529_v33 = vld [vmem:[%s11251_s0 + $0xfc8] sm:$0xff] }
 0x1bc   :  { %v525_v34 = vld [vmem:[%s11251_s0 + $0xfa8] sm:$0xff] }
 0x1c1   :  { %4577 = vmatmul.mubr.bf16.gmra.mrb[64].mxu1 %v7238_v50  ;;  %v437_v50 = vld [vmem:[%s11251_s0 + $0xce8] sm:$0xff] }
 0x1c2   :  { %5733 = vmatmul.mubr.bf16.gmra.mrb[64].mxu0 %v7246_v51  ;;  %4584 = vmatprep.mubr.bf16.mxu1 %v7255_v52  ;;  %v7366_v51 = vcombine.low %v409_v39, %v417_v40  ;;  %v7374_v52 = vcombine.low %v413_v41, %v421_v42  ;;  %v7391_v54 = vcombine.high %v429_v49, %v437_v50  ;;  %v26_v40 = vld [vmem:[%s11251_s0 + $0x10] sm:$0xff] }
 0x1c3   :  { %5740 = vmatprep.mubr.bf16.mxu0 %v7263_v53  ;;  %v7383_v53 = vcombine.high %v425_v47, %v433_v48  ;;  %v34_v41 = vld [vmem:[%s11251_s0 + $0x50] sm:$0xff] }
 0x1c4   :  { %v30_v42 = vld [vmem:[%s11251_s0 + $0x30] sm:$0xff] }
 0x1c9   :  { %4585 = vmatmul.mubr.bf16.gmra.mrb[68].mxu1 %v7254_v58  ;;  %v453_v58 = vld [vmem:[%s11251_s0 + $0xd68] sm:$0xff] }
 0x1ca   :  { %5741 = vmatmul.mubr.bf16.gmra.mrb[68].mxu0 %v7262_v59  ;;  %4592 = vmatprep.mubr.bf16.mxu1 %v7271_v60  ;;  %v7382_v59 = vcombine.low %v425_v47, %v433_v48  ;;  %v7390_v60 = vcombine.low %v429_v49, %v437_v50  ;;  %v7407_v62 = vcombine.high %v445_v57, %v453_v58  ;;  %v42_v48 = vld [vmem:[%s11251_s0 + $0x90] sm:$0xff] }
 0x1cb   :  { %5748 = vmatprep.mubr.bf16.mxu0 %v7279_v61  ;;  %v7399_v61 = vcombine.high %v441_v55, %v449_v56  ;;  %v50_v49 = vld [vmem:[%s11251_s0 + $0xd0] sm:$0xff]  ;;  %v6984_v50 = vcombine.low %v26_v40, %v34_v41 }
 0x1d1   :  { %4593 = vmatmul.mubr.bf16.gmra.mrb[72].mxu1 %v7270_v3  ;;  %v469_v3 = vld [vmem:[%s11251_s0 + $0xde8] sm:$0xff] }
 0x1d2   :  { %5749 = vmatmul.mubr.bf16.gmra.mrb[72].mxu0 %v7278_v4  ;;  %4600 = vmatprep.mubr.bf16.mxu1 %v7287_v5  ;;  %v7398_v4 = vcombine.low %v441_v55, %v449_v56  ;;  %v7406_v5 = vcombine.low %v445_v57, %v453_v58  ;;  %v7423_v7 = vcombine.high %v461_v2, %v469_v3  ;;  %v8934_v55 = vld [vmem:[%s11250_s1 + $0x380] sm:$0xff]   ;;  %v8935_v58 = vld [vmem:[%s11250_s1 + $0x188] sm:$0xff]  }
 0x1d3   :  { %5756 = vmatprep.mubr.bf16.mxu0 %v7295_v6  ;;  %v7415_v6 = vcombine.high %v457_v63, %v465_v1  ;;  %v7001_v56 = vcombine.high %v42_v48, %v50_v49 }
 0x1d9   :  { %4601 = vmatmul.mubr.bf16.gmra.mrb[76].mxu1 %v7286_v11  ;;  %v485_v11 = vld [vmem:[%s11251_s0 + $0xe68] sm:$0xff] }
 0x1da   :  { %5757 = vmatmul.mubr.bf16.gmra.mrb[76].mxu0 %v7294_v12  ;;  %4608 = vmatprep.mubr.bf16.mxu1 %v7303_v13  ;;  %v7414_v12 = vcombine.low %v457_v63, %v465_v1  ;;  %v7422_v13 = vcombine.low %v461_v2, %v469_v3  ;;  %v7439_v15 = vcombine.high %v477_v10, %v485_v11  ;;  %v70_v63 = vld [vmem:[%s11251_s0 + $0x170] sm:$0xff] }
 0x1db   :  { %5764 = vmatprep.mubr.bf16.mxu0 %v7311_v14  ;;  %v7431_v14 = vcombine.high %v473_v8, %v481_v9  ;;  %v7000_v1 = vcombine.low %v42_v48, %v50_v49  ;;  %v8952_v48 = vld [vmem:[%s11250_s1 + $0x3c8] sm:$0xff]  }
 0x1e1   :  { %4609 = vmatmul.mubr.bf16.gmra.mrb[80].mxu1 %v7302_v19  ;;  %v501_v19 = vld [vmem:[%s11251_s0 + $0xee8] sm:$0xff] }
 0x1e2   :  { %5765 = vmatmul.mubr.bf16.gmra.mrb[80].mxu0 %v7310_v20  ;;  %4616 = vmatprep.mubr.bf16.mxu1 %v7319_v21  ;;  %v7430_v20 = vcombine.low %v473_v8, %v481_v9  ;;  %v7438_v21 = vcombine.low %v477_v10, %v485_v11  ;;  %v7455_v23 = vcombine.high %v493_v18, %v501_v19  ;;  %v82_v8 = vld [vmem:[%s11251_s0 + $0x1d0] sm:$0xff]  ;;  %v8939_v9 = vld [vmem:[%s11250_s1 + $0x198] sm:$0xff]  }
 0x1e3   :  { %5772 = vmatprep.mubr.bf16.mxu0 %v7327_v22  ;;  %v7447_v22 = vcombine.high %v489_v16, %v497_v17  ;;  %v78_v10 = vld [vmem:[%s11251_s0 + $0x1b0] sm:$0xff] }
 0x1e4   :  { %v86_v11 = vld [vmem:[%s11251_s0 + $0x1f0] sm:$0xff] }
 0x1e9   :  { %4617 = vmatmul.mubr.bf16.gmra.mrb[84].mxu1 %v7318_v27  ;;  %v517_v27 = vld [vmem:[%s11251_s0 + $0xf68] sm:$0xff] }
 0x1ea   :  { %5773 = vmatmul.mubr.bf16.gmra.mrb[84].mxu0 %v7326_v28  ;;  %4624 = vmatprep.mubr.bf16.mxu1 %v7335_v29  ;;  %v7446_v28 = vcombine.low %v489_v16, %v497_v17  ;;  %v7454_v29 = vcombine.low %v493_v18, %v501_v19  ;;  %v7471_v31 = vcombine.high %v509_v26, %v517_v27  ;;  %v8941_v17 = vld [vmem:[%s11250_s1 + $0x1a0] sm:$0xff]   ;;  %v90_v19 = vld [vmem:[%s11251_s0 + $0x210] sm:$0xff] }
 0x1eb   :  { %5780 = vmatprep.mubr.bf16.mxu0 %v7343_v30  ;;  %v7463_v30 = vcombine.high %v505_v24, %v513_v25  ;;  %v7041_v16 = vcombine.high %v78_v10, %v86_v11  ;;  %v8942_v18 = vld [vmem:[%s11250_s1 + $0x3a0] sm:$0xff]  }
 0x1f1   :  { %4625 = vmatmul.mubr.bf16.gmra.mrb[88].mxu1 %v7334_v35  ;;  %v533_v35 = vld [vmem:[%s11251_s0 + $0xfe8] sm:$0xff] }
 0x1f2   :  { %5781 = vmatmul.mubr.bf16.gmra.mrb[88].mxu0 %v7342_v36  ;;  %4632 = vmatprep.mubr.bf16.mxu1 %v7351_v37  ;;  %v7462_v36 = vcombine.low %v505_v24, %v513_v25  ;;  %v7470_v37 = vcombine.low %v509_v26, %v517_v27  ;;  %v7487_v39 = vcombine.high %v525_v34, %v533_v35  ;;  %v8944_v24 = vld [vmem:[%s11250_s1 + $0x3a8] sm:$0xff]  }
 0x1f3   :  { %5788 = vmatprep.mubr.bf16.mxu0 %v7359_v38  ;;  %v7479_v38 = vcombine.high %v521_v32, %v529_v33  ;;  %v7040_v26 = vcombine.low %v78_v10, %v86_v11  ;;  %v170_v10 = vld [vmem:[%s11251_s0 + $0x490] sm:$0xff] }
 0x1f4   :  { %v178_v11 = vld [vmem:[%s11251_s0 + $0x4d0] sm:$0xff] }
 0x1f9   :  { %4633 = vmatmul.mubr.bf16.gmra.mrb[92].mxu1 %v7350_v43  ;;  %v38_v43 = vld [vmem:[%s11251_s0 + $0x70] sm:$0xff] }
 0x1fa   :  { %5789 = vmatmul.mubr.bf16.gmra.mrb[92].mxu0 %v7358_v44  ;;  %4640 = vmatprep.mubr.bf16.mxu1 %v7367_v45  ;;  %v7478_v44 = vcombine.low %v521_v32, %v529_v33  ;;  %v7486_v45 = vcombine.low %v525_v34, %v533_v35  ;;  %v6993_v47 = vcombine.high %v30_v42, %v38_v43  ;;  %v114_v32 = vld [vmem:[%s11251_s0 + $0x2d0] sm:$0xff]  ;;  %v8947_v33 = vld [vmem:[%s11250_s1 + $0x1b8] sm:$0xff]  }
 0x1fb   :  { %5796 = vmatprep.mubr.bf16.mxu0 %v7375_v46  ;;  %v6985_v46 = vcombine.high %v26_v40, %v34_v41  ;;  %v110_v34 = vld [vmem:[%s11251_s0 + $0x2b0] sm:$0xff]  ;;  %v8949_v41 = vld [vmem:[%s11250_s1 + $0x1c0] sm:$0xff]  }
 0x1fc   :  { %v118_v35 = vld [vmem:[%s11251_s0 + $0x2f0] sm:$0xff] }
 0x1fd   :  { %v7073_v40 = vcombine.high %v110_v34, %v118_v35 }
 0x201   :  { %4641 = vmatmul.mubr.bf16.gmra.mrb[96].mxu1 %v7366_v51  ;;  %v46_v51 = vld [vmem:[%s11251_s0 + $0xb0] sm:$0xff] }
 0x202   :  { %5797 = vmatmul.mubr.bf16.gmra.mrb[96].mxu0 %v7374_v52  ;;  %4648 = vmatprep.mubr.bf16.mxu1 %v7383_v53  ;;  %v54_v52 = vld [vmem:[%s11251_s0 + $0xf0] sm:$0xff]  ;;  %v6992_v53 = vcombine.low %v30_v42, %v38_v43  ;;  %v8950_v42 = vld [vmem:[%s11250_s1 + $0x3c0] sm:$0xff]  }
 0x203   :  { %5804 = vmatprep.mubr.bf16.mxu0 %v7391_v54  ;;  %v8933_v54 = vld [vmem:[%s11250_s1 + $0x180] sm:$0xff]   ;;  %v7009_v57 = vcombine.high %v46_v51, %v54_v52  ;;  %v7008_v2 = vcombine.low %v46_v51, %v54_v52  ;;  %v122_v43 = vld [vmem:[%s11251_s0 + $0x310] sm:$0xff] }
 0x209   :  { %4649 = vmatmul.mubr.bf16.gmra.mrb[100].mxu1 %v7382_v59  ;;  %v58_v59 = vld [vmem:[%s11251_s0 + $0x110] sm:$0xff] }
 0x20a   :  { %5805 = vmatmul.mubr.bf16.gmra.mrb[100].mxu0 %v7390_v60  ;;  %4656 = vmatprep.mubr.bf16.mxu1 %v7399_v61  ;;  %v66_v60 = vld [vmem:[%s11251_s0 + $0x150] sm:$0xff]  ;;  %v8936_v61 = vld [vmem:[%s11250_s1 + $0x388] sm:$0xff]  }
 0x20b   :  { %5812 = vmatprep.mubr.bf16.mxu0 %v7407_v62  ;;  %v62_v62 = vld [vmem:[%s11251_s0 + $0x130] sm:$0xff]  ;;  %v7017_v3 = vcombine.high %v58_v59, %v66_v60 }
 0x211   :  { %4657 = vmatmul.mubr.bf16.gmra.mrb[104].mxu1 %v7398_v4  ;;  %v7025_v4 = vcombine.high %v62_v62, %v70_v63 }
 0x212   :  { %5813 = vmatmul.mubr.bf16.gmra.mrb[104].mxu0 %v7406_v5  ;;  %4664 = vmatprep.mubr.bf16.mxu1 %v7415_v6  ;;  %v8937_v5 = vld [vmem:[%s11250_s1 + $0x190] sm:$0xff]  }
 0x213   :  { %5820 = vmatprep.mubr.bf16.mxu0 %v7423_v7  ;;  %v8938_v6 = vld [vmem:[%s11250_s1 + $0x390] sm:$0xff]  }
 0x214   :  { %v74_v7 = vld [vmem:[%s11251_s0 + $0x190] sm:$0xff] }
 0x215   :  { %v7032_v25 = vcombine.low %v74_v7, %v82_v8 }
 0x219   :  { %4665 = vmatmul.mubr.bf16.gmra.mrb[108].mxu1 %v7414_v12  ;;  %v8940_v12 = vld [vmem:[%s11250_s1 + $0x398] sm:$0xff]  }
 0x21a   :  { %5821 = vmatmul.mubr.bf16.gmra.mrb[108].mxu0 %v7422_v13  ;;  %4672 = vmatprep.mubr.bf16.mxu1 %v7431_v14  ;;  %v7016_v13 = vcombine.low %v58_v59, %v66_v60  ;;  %v7024_v14 = vcombine.low %v62_v62, %v70_v63  ;;  %v8955_v63 = vld [vmem:[%s11250_s1 + $0x1d8] sm:$0xff]  }
 0x21b   :  { %5828 = vmatprep.mubr.bf16.mxu0 %v7439_v15  ;;  %v7033_v15 = vcombine.high %v74_v7, %v82_v8 }
 0x221   :  { %4673 = vmatmul.mubr.bf16.gmra.mrb[112].mxu1 %v7430_v20  ;;  %v98_v20 = vld [vmem:[%s11251_s0 + $0x250] sm:$0xff] }
 0x222   :  { %5829 = vmatmul.mubr.bf16.gmra.mrb[112].mxu0 %v7438_v21  ;;  %4680 = vmatprep.mubr.bf16.mxu1 %v7447_v22  ;;  %v8943_v21 = vld [vmem:[%s11250_s1 + $0x1a8] sm:$0xff]   ;;  %v94_v22 = vld [vmem:[%s11251_s0 + $0x230] sm:$0xff]  ;;  %v7049_v27 = vcombine.high %v90_v19, %v98_v20 }
 0x223   :  { %5836 = vmatprep.mubr.bf16.mxu0 %v7455_v23  ;;  %v102_v23 = vld [vmem:[%s11251_s0 + $0x270] sm:$0xff] }
 0x229   :  { %4681 = vmatmul.mubr.bf16.gmra.mrb[116].mxu1 %v7446_v28  ;;  %v7057_v28 = vcombine.high %v94_v22, %v102_v23 }
 0x22a   :  { %5837 = vmatmul.mubr.bf16.gmra.mrb[116].mxu0 %v7454_v29  ;;  %4688 = vmatprep.mubr.bf16.mxu1 %v7463_v30  ;;  %v8945_v29 = vld [vmem:[%s11250_s1 + $0x1b0] sm:$0xff]  }
 0x22b   :  { %5844 = vmatprep.mubr.bf16.mxu0 %v7471_v31  ;;  %v8946_v30 = vld [vmem:[%s11250_s1 + $0x3b0] sm:$0xff]  }
 0x22c   :  { %v106_v31 = vld [vmem:[%s11251_s0 + $0x290] sm:$0xff] }
 0x22d   :  { %v7064_v49 = vcombine.low %v106_v31, %v114_v32 }
 0x231   :  { %4689 = vmatmul.mubr.bf16.gmra.mrb[120].mxu1 %v7462_v36  ;;  %v8948_v36 = vld [vmem:[%s11250_s1 + $0x3b8] sm:$0xff]  }
 0x232   :  { %5845 = vmatmul.mubr.bf16.gmra.mrb[120].mxu0 %v7470_v37  ;;  %4696 = vmatprep.mubr.bf16.mxu1 %v7479_v38  ;;  %v7048_v37 = vcombine.low %v90_v19, %v98_v20  ;;  %v7056_v38 = vcombine.low %v94_v22, %v102_v23  ;;  %v8958_v19 = vld [vmem:[%s11250_s1 + $0x3e0] sm:$0xff]   ;;  %v186_v20 = vld [vmem:[%s11251_s0 + $0x510] sm:$0xff] }
 0x233   :  { %5852 = vmatprep.mubr.bf16.mxu0 %v7487_v39  ;;  %v7065_v39 = vcombine.high %v106_v31, %v114_v32  ;;  %v190_v22 = vld [vmem:[%s11251_s0 + $0x530] sm:$0xff] }
 0x234   :  { %v198_v23 = vld [vmem:[%s11251_s0 + $0x570] sm:$0xff] }
 0x235   :  { %v214_v31 = vld [vmem:[%s11251_s0 + $0x5f0] sm:$0xff] }
 0x239   :  { %4697 = vmatmul.mubr.bf16.gmra.mrb[124].mxu1 %v7478_v44  ;;  %v130_v44 = vld [vmem:[%s11251_s0 + $0x350] sm:$0xff] }
 0x23a   :  { %5853 = vmatmul.mubr.bf16.gmra.mrb[124].mxu0 %v7486_v45  ;;  %4737 = vmatprep.mubr.bf16.mxu1 %v6985_v46  ;;  %v8951_v45 = vld [vmem:[%s11250_s1 + $0x1c8] sm:$0xff]   ;;  %v126_v46 = vld [vmem:[%s11251_s0 + $0x330] sm:$0xff]  ;;  %v7081_v51 = vcombine.high %v122_v43, %v130_v44  ;;  %v7080_v59 = vcombine.low %v122_v43, %v130_v44 }
 0x23b   :  { %5893 = vmatprep.mubr.bf16.mxu0 %v6993_v47  ;;  %v134_v47 = vld [vmem:[%s11251_s0 + $0x370] sm:$0xff] }
 0x23c   :  { %v7089_v52 = vcombine.high %v126_v46, %v134_v47  ;;  %v7088_v60 = vcombine.low %v126_v46, %v134_v47  ;;  %v234_v46 = vld [vmem:[%s11251_s0 + $0x690] sm:$0xff] }
 0x23d   :  { %v242_v47 = vld [vmem:[%s11251_s0 + $0x6d0] sm:$0xff] }
 0x241   :  { %4738 = vmatmul.mubr.bf16.vlgmr.msra.gmra.mrb[0].mxu1 %v6984_v50  ;;  %v7072_v50 = vcombine.low %v110_v34, %v118_v35 }
 0x242   :  { %5894 = vmatmul.mubr.bf16.vlgmr.msra.gmra.mrb[0].mxu0 %v6992_v53  ;;  %4995 = vmatpush1.bf16.msra.mxu1 %v8933_v54  ;;  %v8953_v53 = vld [vmem:[%s11250_s1 + $0x1d0] sm:$0xff]  }
 0x243   :  { %6151 = vmatpush1.bf16.msra.mxu0 %v8934_v55  ;;  %4745 = vmatprep.mubr.bf16.mxu1 %v7001_v56  ;;  %v8954_v54 = vld [vmem:[%s11250_s1 + $0x3d0] sm:$0xff]  }
 0x244   :  { %5901 = vmatprep.mubr.bf16.mxu0 %v7009_v57  ;;  %4996 = vmatprep.subr.bf16.mxu1 %v8966_v0  ;;  %v138_v55 = vld [vmem:[%s11251_s0 + $0x390] sm:$0xff] }
 0x245   :  { %6152 = vmatprep.subr.bf16.mxu0 %v8966_v0  ;;  %v146_v56 = vld [vmem:[%s11251_s0 + $0x3d0] sm:$0xff] }
 0x246   :  { %4997 = vmatpush1.bf16.msra.mxu1 %v8935_v58  ;;  %v142_v57 = vld [vmem:[%s11251_s0 + $0x3b0] sm:$0xff] }
 0x247   :  { %6153 = vmatpush1.bf16.msra.mxu0 %v8936_v61  ;;  %4998 = vmatprep.subr.bf16.mxu1 %v8966_v0  ;;  %v150_v58 = vld [vmem:[%s11251_s0 + $0x3f0] sm:$0xff]  ;;  %v7097_v61 = vcombine.high %v138_v55, %v146_v56 }
 0x248   :  { %6154 = vmatprep.subr.bf16.mxu0 %v8966_v0  ;;  %v7105_v62 = vcombine.high %v142_v57, %v150_v58  ;;  %v7104_v7 = vcombine.low %v142_v57, %v150_v58  ;;  %v258_v57 = vld [vmem:[%s11251_s0 + $0x750] sm:$0xff] }
 0x249   :  { %4746 = vmatmul.mubr.bf16.gmra.mrb[4].mxu1 %v7000_v1  ;;  %v8956_v1 = vld [vmem:[%s11250_s1 + $0x3d8] sm:$0xff]   ;;  %v254_v58 = vld [vmem:[%s11251_s0 + $0x730] sm:$0xff] }
 0x24a   :  { %5902 = vmatmul.mubr.bf16.gmra.mrb[4].mxu0 %v7008_v2  ;;  %4753 = vmatprep.mubr.bf16.mxu1 %v7017_v3  ;;  %v154_v2 = vld [vmem:[%s11251_s0 + $0x410] sm:$0xff] }
 0x24b   :  { %5909 = vmatprep.mubr.bf16.mxu0 %v7025_v4  ;;  %4999 = vmatpush1.bf16.msra.mxu1 %v8937_v5  ;;  %v162_v3 = vld [vmem:[%s11251_s0 + $0x450] sm:$0xff] }
 0x24c   :  { %6155 = vmatpush1.bf16.msra.mxu0 %v8938_v6  ;;  %5000 = vmatprep.subr.bf16.mxu1 %v8966_v0  ;;  %v158_v4 = vld [vmem:[%s11251_s0 + $0x430] sm:$0xff]  ;;  %v7096_v6 = vcombine.low %v138_v55, %v146_v56  ;;  %v7113_v8 = vcombine.high %v154_v2, %v162_v3 }
 0x24d   :  { %6156 = vmatprep.subr.bf16.mxu0 %v8966_v0  ;;  %v166_v5 = vld [vmem:[%s11251_s0 + $0x470] sm:$0xff] }
 0x24e   :  { %v8962_v55 = vld [vmem:[%s11250_s1 + $0x3f0] sm:$0xff]  }
 0x24f   :  { %5001 = vmatpush1.bf16.msra.mxu1 %v8939_v9  ;;  %v7121_v9 = vcombine.high %v158_v4, %v166_v5  ;;  %v250_v56 = vld [vmem:[%s11251_s0 + $0x710] sm:$0xff] }
 0x250   :  { %6157 = vmatpush1.bf16.msra.mxu0 %v8940_v12  ;;  %5002 = vmatprep.subr.bf16.mxu1 %v8966_v0  ;;  %v174_v12 = vld [vmem:[%s11251_s0 + $0x4b0] sm:$0xff] }
 0x251   :  { %4754 = vmatmul.mubr.bf16.gmra.mrb[8].mxu1 %v7016_v13  ;;  %6158 = vmatprep.subr.bf16.mxu0 %v8966_v0  ;;  %v182_v13 = vld [vmem:[%s11251_s0 + $0x4f0] sm:$0xff] }
 0x252   :  { %5910 = vmatmul.mubr.bf16.gmra.mrb[8].mxu0 %v7024_v14  ;;  %4761 = vmatprep.mubr.bf16.mxu1 %v7033_v15  ;;  %v7112_v14 = vcombine.low %v154_v2, %v162_v3  ;;  %v7120_v15 = vcombine.low %v158_v4, %v166_v5  ;;  %v274_v2 = vld [vmem:[%s11251_s0 + $0x7d0] sm:$0xff]  ;;  %v7208_v4 = vcombine.low %v250_v56, %v258_v57 }
 0x253   :  { %5917 = vmatprep.mubr.bf16.mxu0 %v7041_v16  ;;  %5003 = vmatpush1.bf16.msra.mxu1 %v8941_v17  ;;  %v7129_v16 = vcombine.high %v170_v10, %v178_v11  ;;  %v7137_v17 = vcombine.high %v174_v12, %v182_v13  ;;  %v270_v3 = vld [vmem:[%s11251_s0 + $0x7b0] sm:$0xff] }
 0x254   :  { %6159 = vmatpush1.bf16.msra.mxu0 %v8942_v18  ;;  %5004 = vmatprep.subr.bf16.mxu1 %v8966_v0  ;;  %v8957_v18 = vld [vmem:[%s11250_s1 + $0x1e0] sm:$0xff]  }
 0x255   :  { %6160 = vmatprep.subr.bf16.mxu0 %v8966_v0 }
 0x257   :  { %5005 = vmatpush1.bf16.msra.mxu1 %v8943_v21  ;;  %v194_v21 = vld [vmem:[%s11251_s0 + $0x550] sm:$0xff] }
 0x258   :  { %6161 = vmatpush1.bf16.msra.mxu0 %v8944_v24  ;;  %5006 = vmatprep.subr.bf16.mxu1 %v8966_v0  ;;  %v7128_v24 = vcombine.low %v170_v10, %v178_v11  ;;  %v7144_v32 = vcombine.low %v186_v20, %v194_v21  ;;  %v282_v10 = vld [vmem:[%s11251_s0 + $0x810] sm:$0xff] }
 0x259   :  { %4762 = vmatmul.mubr.bf16.gmra.mrb[12].mxu1 %v7032_v25  ;;  %6162 = vmatprep.subr.bf16.mxu0 %v8966_v0  ;;  %v7136_v25 = vcombine.low %v174_v12, %v182_v13  ;;  %v290_v11 = vld [vmem:[%s11251_s0 + $0x850] sm:$0xff] }
 0x25a   :  { %5918 = vmatmul.mubr.bf16.gmra.mrb[12].mxu0 %v7040_v26  ;;  %4769 = vmatprep.mubr.bf16.mxu1 %v7049_v27  ;;  %v7145_v26 = vcombine.high %v186_v20, %v194_v21  ;;  %v7153_v27 = vcombine.high %v190_v22, %v198_v23  ;;  %v286_v12 = vld [vmem:[%s11251_s0 + $0x830] sm:$0xff] }
 0x25b   :  { %5925 = vmatprep.mubr.bf16.mxu0 %v7057_v28  ;;  %5007 = vmatpush1.bf16.msra.mxu1 %v8945_v29  ;;  %v202_v28 = vld [vmem:[%s11251_s0 + $0x590] sm:$0xff] }
 0x25c   :  { %6163 = vmatpush1.bf16.msra.mxu0 %v8946_v30  ;;  %5008 = vmatprep.subr.bf16.mxu1 %v8966_v0  ;;  %v210_v29 = vld [vmem:[%s11251_s0 + $0x5d0] sm:$0xff] }
 0x25d   :  { %6164 = vmatprep.subr.bf16.mxu0 %v8966_v0  ;;  %v206_v30 = vld [vmem:[%s11251_s0 + $0x5b0] sm:$0xff]  ;;  %v7161_v34 = vcombine.high %v202_v28, %v210_v29 }
 0x25e   :  { %v7169_v35 = vcombine.high %v206_v30, %v214_v31  ;;  %v7168_v43 = vcombine.low %v206_v30, %v214_v31  ;;  %v294_v13 = vld [vmem:[%s11251_s0 + $0x870] sm:$0xff] }
 0x25f   :  { %5009 = vmatpush1.bf16.msra.mxu1 %v8947_v33  ;;  %v7152_v33 = vcombine.low %v190_v22, %v198_v23  ;;  %v302_v20 = vld [vmem:[%s11251_s0 + $0x8b0] sm:$0xff]  ;;  %v7240_v22 = vcombine.low %v282_v10, %v290_v11  ;;  %v7248_v23 = vcombine.low %v286_v12, %v294_v13 }
 0x260   :  { %6165 = vmatpush1.bf16.msra.mxu0 %v8948_v36  ;;  %5010 = vmatprep.subr.bf16.mxu1 %v8966_v0  ;;  %v8959_v36 = vld [vmem:[%s11250_s1 + $0x1e8] sm:$0xff]   ;;  %v310_v21 = vld [vmem:[%s11251_s0 + $0x8f0] sm:$0xff] }
 0x261   :  { %4770 = vmatmul.mubr.bf16.gmra.mrb[16].mxu1 %v7048_v37  ;;  %6166 = vmatprep.subr.bf16.mxu0 %v8966_v0  ;;  %v8960_v37 = vld [vmem:[%s11250_s1 + $0x3e8] sm:$0xff]   ;;  %v7264_v31 = vcombine.low %v302_v20, %v310_v21 }
 0x262   :  { %5926 = vmatmul.mubr.bf16.gmra.mrb[16].mxu0 %v7056_v38  ;;  %4777 = vmatprep.mubr.bf16.mxu1 %v7065_v39  ;;  %v218_v38 = vld [vmem:[%s11251_s0 + $0x610] sm:$0xff] }
 0x263   :  { %5933 = vmatprep.mubr.bf16.mxu0 %v7073_v40  ;;  %5011 = vmatpush1.bf16.msra.mxu1 %v8949_v41  ;;  %v226_v39 = vld [vmem:[%s11251_s0 + $0x650] sm:$0xff] }
 0x264   :  { %6167 = vmatpush1.bf16.msra.mxu0 %v8950_v42  ;;  %5012 = vmatprep.subr.bf16.mxu1 %v8966_v0  ;;  %v222_v40 = vld [vmem:[%s11251_s0 + $0x630] sm:$0xff]  ;;  %v7160_v42 = vcombine.low %v202_v28, %v210_v29  ;;  %v7177_v44 = vcombine.high %v218_v38, %v226_v39 }
 0x265   :  { %6168 = vmatprep.subr.bf16.mxu0 %v8966_v0  ;;  %v230_v41 = vld [vmem:[%s11251_s0 + $0x670] sm:$0xff] }
 0x266   :  { %v318_v28 = vld [vmem:[%s11251_s0 + $0x930] sm:$0xff] }
 0x267   :  { %5013 = vmatpush1.bf16.msra.mxu1 %v8951_v45  ;;  %v7185_v45 = vcombine.high %v222_v40, %v230_v41  ;;  %v326_v29 = vld [vmem:[%s11251_s0 + $0x970] sm:$0xff] }
 0x268   :  { %6169 = vmatpush1.bf16.msra.mxu0 %v8952_v48  ;;  %5014 = vmatprep.subr.bf16.mxu1 %v8966_v0  ;;  %v238_v48 = vld [vmem:[%s11251_s0 + $0x6b0] sm:$0xff] }
 0x269   :  { %4778 = vmatmul.mubr.bf16.gmra.mrb[20].mxu1 %v7064_v49  ;;  %6170 = vmatprep.subr.bf16.mxu0 %v8966_v0  ;;  %v246_v49 = vld [vmem:[%s11251_s0 + $0x6f0] sm:$0xff] }
 0x26a   :  { %5934 = vmatmul.mubr.bf16.gmra.mrb[20].mxu0 %v7072_v50  ;;  %4785 = vmatprep.mubr.bf16.mxu1 %v7081_v51  ;;  %v7176_v50 = vcombine.low %v218_v38, %v226_v39  ;;  %v7184_v51 = vcombine.low %v222_v40, %v230_v41  ;;  %v7280_v39 = vcombine.low %v318_v28, %v326_v29 }
 0x26b   :  { %5941 = vmatprep.mubr.bf16.mxu0 %v7089_v52  ;;  %5015 = vmatpush1.bf16.msra.mxu1 %v8953_v53  ;;  %v7193_v52 = vcombine.high %v234_v46, %v242_v47  ;;  %v7201_v53 = vcombine.high %v238_v48, %v246_v49 }
 0x26c   :  { %6171 = vmatpush1.bf16.msra.mxu0 %v8954_v54  ;;  %5016 = vmatprep.subr.bf16.mxu1 %v8966_v0  ;;  %v8961_v54 = vld [vmem:[%s11250_s1 + $0x1f0] sm:$0xff]  }
 0x26d   :  { %6172 = vmatprep.subr.bf16.mxu0 %v8966_v0 }
 0x26f   :  { %5017 = vmatpush1.bf16.msra.mxu1 %v8955_v63 }
 0x270   :  { %6173 = vmatpush1.bf16.msra.mxu0 %v8956_v1  ;;  %5018 = vmatprep.subr.bf16.mxu1 %v8966_v0  ;;  %v266_v1 = vld [vmem:[%s11251_s0 + $0x790] sm:$0xff] }
 0x271   :  { %4786 = vmatmul.mubr.bf16.gmra.mrb[24].mxu1 %v7080_v59  ;;  %6174 = vmatprep.subr.bf16.mxu0 %v8966_v0  ;;  %v262_v59 = vld [vmem:[%s11251_s0 + $0x770] sm:$0xff] }
 0x272   :  { %5942 = vmatmul.mubr.bf16.gmra.mrb[24].mxu0 %v7088_v60  ;;  %4793 = vmatprep.mubr.bf16.mxu1 %v7097_v61  ;;  %v7192_v60 = vcombine.low %v234_v46, %v242_v47  ;;  %v7200_v61 = vcombine.low %v238_v48, %v246_v49  ;;  %v7217_v63 = vcombine.high %v254_v58, %v262_v59 }
 0x273   :  { %5949 = vmatprep.mubr.bf16.mxu0 %v7105_v62  ;;  %5019 = vmatpush1.bf16.msra.mxu1 %v8957_v18  ;;  %v7209_v62 = vcombine.high %v250_v56, %v258_v57  ;;  %v7216_v5 = vcombine.low %v254_v58, %v262_v59  ;;  %v298_v18 = vld [vmem:[%s11251_s0 + $0x890] sm:$0xff] }
 0x274   :  { %6175 = vmatpush1.bf16.msra.mxu0 %v8958_v19  ;;  %5020 = vmatprep.subr.bf16.mxu1 %v8966_v0  ;;  %v306_v19 = vld [vmem:[%s11251_s0 + $0x8d0] sm:$0xff] }
 0x275   :  { %6176 = vmatprep.subr.bf16.mxu0 %v8966_v0  ;;  %v7256_v30 = vcombine.low %v298_v18, %v306_v19  ;;  %v378_v58 = vld [vmem:[%s11251_s0 + $0xb10] sm:$0xff] }
 0x276   :  { %v386_v59 = vld [vmem:[%s11251_s0 + $0xb50] sm:$0xff] }
 0x277   :  { %5021 = vmatpush1.bf16.msra.mxu1 %v8959_v36  ;;  %v334_v36 = vld [vmem:[%s11251_s0 + $0x9b0] sm:$0xff] }
 0x278   :  { %6177 = vmatpush1.bf16.msra.mxu0 %v8960_v37  ;;  %5022 = vmatprep.subr.bf16.mxu1 %v8966_v0  ;;  %v342_v37 = vld [vmem:[%s11251_s0 + $0x9f0] sm:$0xff] }
 0x279   :  { %4794 = vmatmul.mubr.bf16.gmra.mrb[28].mxu1 %v7096_v6  ;;  %6178 = vmatprep.subr.bf16.mxu0 %v8966_v0  ;;  %v7225_v6 = vcombine.high %v266_v1, %v274_v2  ;;  %v7297_v41 = vcombine.high %v334_v36, %v342_v37  ;;  %v7296_v47 = vcombine.low %v334_v36, %v342_v37  ;;  %v462_v36 = vld [vmem:[%s11251_s0 + $0xdb0] sm:$0xff] }
 0x27a   :  { %5950 = vmatmul.mubr.bf16.gmra.mrb[28].mxu0 %v7104_v7  ;;  %4801 = vmatprep.mubr.bf16.mxu1 %v7113_v8  ;;  %v8963_v8 = vld [vmem:[%s11250_s1 + $0x1f8] sm:$0xff]   ;;  %v470_v37 = vld [vmem:[%s11251_s0 + $0xdf0] sm:$0xff] }
 0x27b   :  { %5957 = vmatprep.mubr.bf16.mxu0 %v7121_v9  ;;  %5023 = vmatpush1.bf16.msra.mxu1 %v8961_v54  ;;  %v8964_v9 = vld [vmem:[%s11250_s1 + $0x3f8] sm:$0xff]  }
 0x27c   :  { %6179 = vmatpush1.bf16.msra.mxu0 %v8962_v55  ;;  %5024 = vmatprep.subr.bf16.mxu1 %v8966_v0 }
 0x27d   :  { %6180 = vmatprep.subr.bf16.mxu0 %v8966_v0  ;;  %v278_v0 = vld [vmem:[%s11251_s0 + $0x7f0] sm:$0xff] }
 0x27e   :  { %v7233_v7 = vcombine.high %v270_v3, %v278_v0 }
 0x27f   :  { %5025 = vmatpush1.bf16.msra.mxu1 %v8963_v8 }
 0x280   :  { %6181 = vmatpush1.bf16.msra.mxu0 %v8964_v9 }
 0x281   :  { %4802 = vmatmul.mubr.bf16.gmra.mrb[32].mxu1 %v7112_v14  ;;  %v7224_v14 = vcombine.low %v266_v1, %v274_v2  ;;  %v7337_v1 = vcombine.high %v378_v58, %v386_v59 }
 0x282   :  { %5958 = vmatmul.mubr.bf16.gmra.mrb[32].mxu0 %v7120_v15  ;;  %4809 = vmatprep.mubr.bf16.mxu1 %v7129_v16  ;;  %v7232_v15 = vcombine.low %v270_v3, %v278_v0  ;;  %v7241_v16 = vcombine.high %v282_v10, %v290_v11  ;;  %v394_v3 = vld [vmem:[%s11251_s0 + $0xb90] sm:$0xff] }
 0x283   :  { %5965 = vmatprep.mubr.bf16.mxu0 %v7137_v17  ;;  %v7249_v17 = vcombine.high %v286_v12, %v294_v13  ;;  %v402_v0 = vld [vmem:[%s11251_s0 + $0xbd0] sm:$0xff] }
 0x284   :  { %v7353_v8 = vcombine.high %v394_v3, %v402_v0  ;;  %v410_v10 = vld [vmem:[%s11251_s0 + $0xc10] sm:$0xff] }
 0x285   :  { %v418_v11 = vld [vmem:[%s11251_s0 + $0xc50] sm:$0xff] }
 0x286   :  { %v414_v12 = vld [vmem:[%s11251_s0 + $0xc30] sm:$0xff] }
 0x287   :  { %v422_v13 = vld [vmem:[%s11251_s0 + $0xc70] sm:$0xff] }
 0x289   :  { %4810 = vmatmul.mubr.bf16.gmra.mrb[36].mxu1 %v7128_v24  ;;  %v7257_v24 = vcombine.high %v298_v18, %v306_v19  ;;  %v426_v18 = vld [vmem:[%s11251_s0 + $0xc90] sm:$0xff] }
 0x28a   :  { %5966 = vmatmul.mubr.bf16.gmra.mrb[36].mxu0 %v7136_v25  ;;  %4817 = vmatprep.mubr.bf16.mxu1 %v7145_v26  ;;  %v7265_v25 = vcombine.high %v302_v20, %v310_v21  ;;  %v314_v26 = vld [vmem:[%s11251_s0 + $0x910] sm:$0xff] }
 0x28b   :  { %5973 = vmatprep.mubr.bf16.mxu0 %v7153_v27  ;;  %v322_v27 = vld [vmem:[%s11251_s0 + $0x950] sm:$0xff] }
 0x28c   :  { %v7272_v38 = vcombine.low %v314_v26, %v322_v27  ;;  %v434_v19 = vld [vmem:[%s11251_s0 + $0xcd0] sm:$0xff] }
 0x28d   :  { %v430_v20 = vld [vmem:[%s11251_s0 + $0xcb0] sm:$0xff] }
 0x28e   :  { %v438_v21 = vld [vmem:[%s11251_s0 + $0xcf0] sm:$0xff] }
 0x291   :  { %4818 = vmatmul.mubr.bf16.gmra.mrb[40].mxu1 %v7144_v32  ;;  %v7273_v32 = vcombine.high %v314_v26, %v322_v27  ;;  %v442_v26 = vld [vmem:[%s11251_s0 + $0xd10] sm:$0xff] }
 0x292   :  { %5974 = vmatmul.mubr.bf16.gmra.mrb[40].mxu0 %v7152_v33  ;;  %4825 = vmatprep.mubr.bf16.mxu1 %v7161_v34  ;;  %v7281_v33 = vcombine.high %v318_v28, %v326_v29  ;;  %v330_v34 = vld [vmem:[%s11251_s0 + $0x990] sm:$0xff] }
 0x293   :  { %5981 = vmatprep.mubr.bf16.mxu0 %v7169_v35  ;;  %v338_v35 = vld [vmem:[%s11251_s0 + $0x9d0] sm:$0xff] }
 0x294   :  { %v7289_v40 = vcombine.high %v330_v34, %v338_v35  ;;  %v7288_v46 = vcombine.low %v330_v34, %v338_v35  ;;  %v450_v27 = vld [vmem:[%s11251_s0 + $0xd50] sm:$0xff] }
 0x295   :  { %v446_v28 = vld [vmem:[%s11251_s0 + $0xd30] sm:$0xff] }
 0x296   :  { %v454_v29 = vld [vmem:[%s11251_s0 + $0xd70] sm:$0xff] }
 0x297   :  { %v458_v34 = vld [vmem:[%s11251_s0 + $0xd90] sm:$0xff] }
 0x298   :  { %v466_v35 = vld [vmem:[%s11251_s0 + $0xdd0] sm:$0xff] }
 0x299   :  { %4826 = vmatmul.mubr.bf16.gmra.mrb[44].mxu1 %v7160_v42  ;;  %v346_v42 = vld [vmem:[%s11251_s0 + $0xa10] sm:$0xff] }
 0x29a   :  { %5982 = vmatmul.mubr.bf16.gmra.mrb[44].mxu0 %v7168_v43  ;;  %4833 = vmatprep.mubr.bf16.mxu1 %v7177_v44  ;;  %v354_v43 = vld [vmem:[%s11251_s0 + $0xa50] sm:$0xff] }
 0x29b   :  { %5989 = vmatprep.mubr.bf16.mxu0 %v7185_v45  ;;  %v350_v44 = vld [vmem:[%s11251_s0 + $0xa30] sm:$0xff]  ;;  %v7305_v48 = vcombine.high %v346_v42, %v354_v43  ;;  %v7304_v54 = vcombine.low %v346_v42, %v354_v43 }
 0x29c   :  { %v358_v45 = vld [vmem:[%s11251_s0 + $0xa70] sm:$0xff] }
 0x29d   :  { %v7313_v49 = vcombine.high %v350_v44, %v358_v45  ;;  %v7312_v55 = vcombine.low %v350_v44, %v358_v45  ;;  %v474_v42 = vld [vmem:[%s11251_s0 + $0xe10] sm:$0xff] }
 0x29e   :  { %v482_v43 = vld [vmem:[%s11251_s0 + $0xe50] sm:$0xff] }
 0x29f   :  { %v478_v44 = vld [vmem:[%s11251_s0 + $0xe30] sm:$0xff] }
 0x2a0   :  { %v486_v45 = vld [vmem:[%s11251_s0 + $0xe70] sm:$0xff] }
 0x2a1   :  { %4834 = vmatmul.mubr.bf16.gmra.mrb[48].mxu1 %v7176_v50  ;;  %v362_v50 = vld [vmem:[%s11251_s0 + $0xa90] sm:$0xff] }
 0x2a2   :  { %5990 = vmatmul.mubr.bf16.gmra.mrb[48].mxu0 %v7184_v51  ;;  %4841 = vmatprep.mubr.bf16.mxu1 %v7193_v52  ;;  %v370_v51 = vld [vmem:[%s11251_s0 + $0xad0] sm:$0xff] }
 0x2a3   :  { %5997 = vmatprep.mubr.bf16.mxu0 %v7201_v53  ;;  %v366_v52 = vld [vmem:[%s11251_s0 + $0xab0] sm:$0xff]  ;;  %v7321_v56 = vcombine.high %v362_v50, %v370_v51 }
 0x2a4   :  { %v374_v53 = vld [vmem:[%s11251_s0 + $0xaf0] sm:$0xff] }
 0x2a5   :  { %v7329_v57 = vcombine.high %v366_v52, %v374_v53 }
 0x2a9   :  { %4842 = vmatmul.mubr.bf16.gmra.mrb[52].mxu1 %v7192_v60  ;;  %v382_v60 = vld [vmem:[%s11251_s0 + $0xb30] sm:$0xff] }
 0x2aa   :  { %5998 = vmatmul.mubr.bf16.gmra.mrb[52].mxu0 %v7200_v61  ;;  %4849 = vmatprep.mubr.bf16.mxu1 %v7209_v62  ;;  %v390_v61 = vld [vmem:[%s11251_s0 + $0xb70] sm:$0xff]  ;;  %v7320_v62 = vcombine.low %v362_v50, %v370_v51 }
 0x2ab   :  { %6005 = vmatprep.mubr.bf16.mxu0 %v7217_v63  ;;  %v7328_v63 = vcombine.low %v366_v52, %v374_v53  ;;  %v7345_v2 = vcombine.high %v382_v60, %v390_v61  ;;  %v490_v50 = vld [vmem:[%s11251_s0 + $0xe90] sm:$0xff] }
 0x2ac   :  { %v498_v51 = vld [vmem:[%s11251_s0 + $0xed0] sm:$0xff] }
 0x2ad   :  { %v494_v52 = vld [vmem:[%s11251_s0 + $0xeb0] sm:$0xff] }
 0x2ae   :  { %v502_v53 = vld [vmem:[%s11251_s0 + $0xef0] sm:$0xff] }
 0x2b1   :  { %4850 = vmatmul.mubr.bf16.gmra.mrb[56].mxu1 %v7208_v4  ;;  %v398_v4 = vld [vmem:[%s11251_s0 + $0xbb0] sm:$0xff] }
 0x2b2   :  { %6006 = vmatmul.mubr.bf16.gmra.mrb[56].mxu0 %v7216_v5  ;;  %4857 = vmatprep.mubr.bf16.mxu1 %v7225_v6  ;;  %v406_v5 = vld [vmem:[%s11251_s0 + $0xbf0] sm:$0xff]  ;;  %v7336_v6 = vcombine.low %v378_v58, %v386_v59 }
 0x2b3   :  { %6013 = vmatprep.mubr.bf16.mxu0 %v7233_v7  ;;  %v7344_v7 = vcombine.low %v382_v60, %v390_v61  ;;  %v7361_v9 = vcombine.high %v398_v4, %v406_v5  ;;  %v506_v58 = vld [vmem:[%s11251_s0 + $0xf10] sm:$0xff] }
 0x2b4   :  { %v514_v59 = vld [vmem:[%s11251_s0 + $0xf50] sm:$0xff] }
 0x2b5   :  { %v510_v60 = vld [vmem:[%s11251_s0 + $0xf30] sm:$0xff] }
 0x2b6   :  { %v518_v61 = vld [vmem:[%s11251_s0 + $0xf70] sm:$0xff] }
 0x2b9   :  { %4858 = vmatmul.mubr.bf16.gmra.mrb[60].mxu1 %v7224_v14  ;;  %v7352_v14 = vcombine.low %v394_v3, %v402_v0  ;;  %v522_v3 = vld [vmem:[%s11251_s0 + $0xf90] sm:$0xff] }
 0x2ba   :  { %6014 = vmatmul.mubr.bf16.gmra.mrb[60].mxu0 %v7232_v15  ;;  %4865 = vmatprep.mubr.bf16.mxu1 %v7241_v16  ;;  %v7360_v15 = vcombine.low %v398_v4, %v406_v5  ;;  %v7369_v16 = vcombine.high %v410_v10, %v418_v11  ;;  %v530_v0 = vld [vmem:[%s11251_s0 + $0xfd0] sm:$0xff] }
 0x2bb   :  { %6021 = vmatprep.mubr.bf16.mxu0 %v7249_v17  ;;  %v7377_v17 = vcombine.high %v414_v12, %v422_v13  ;;  %v526_v4 = vld [vmem:[%s11251_s0 + $0xfb0] sm:$0xff] }
 0x2bc   :  { %v534_v5 = vld [vmem:[%s11251_s0 + $0xff0] sm:$0xff] }
 0x2c1   :  { %4866 = vmatmul.mubr.bf16.gmra.mrb[64].mxu1 %v7240_v22  ;;  %v7368_v22 = vcombine.low %v410_v10, %v418_v11  ;;  %v27_v10 = vld [vmem:[%s11251_s0 + $0x18] sm:$0xff] }
 0x2c2   :  { %6022 = vmatmul.mubr.bf16.gmra.mrb[64].mxu0 %v7248_v23  ;;  %4873 = vmatprep.mubr.bf16.mxu1 %v7257_v24  ;;  %v7376_v23 = vcombine.low %v414_v12, %v422_v13  ;;  %v7385_v24 = vcombine.high %v426_v18, %v434_v19  ;;  %v35_v11 = vld [vmem:[%s11251_s0 + $0x58] sm:$0xff] }
 0x2c3   :  { %6029 = vmatprep.mubr.bf16.mxu0 %v7265_v25  ;;  %v7393_v25 = vcombine.high %v430_v20, %v438_v21  ;;  %v31_v12 = vld [vmem:[%s11251_s0 + $0x38] sm:$0xff] }
 0x2c4   :  { %v39_v13 = vld [vmem:[%s11251_s0 + $0x78] sm:$0xff] }
 0x2c9   :  { %4874 = vmatmul.mubr.bf16.gmra.mrb[68].mxu1 %v7256_v30  ;;  %v7384_v30 = vcombine.low %v426_v18, %v434_v19  ;;  %v43_v18 = vld [vmem:[%s11251_s0 + $0x98] sm:$0xff] }
 0x2ca   :  { %6030 = vmatmul.mubr.bf16.gmra.mrb[68].mxu0 %v7264_v31  ;;  %4881 = vmatprep.mubr.bf16.mxu1 %v7273_v32  ;;  %v7392_v31 = vcombine.low %v430_v20, %v438_v21  ;;  %v7401_v32 = vcombine.high %v442_v26, %v450_v27  ;;  %v51_v19 = vld [vmem:[%s11251_s0 + $0xd8] sm:$0xff] }
 0x2cb   :  { %6037 = vmatprep.mubr.bf16.mxu0 %v7281_v33  ;;  %v7409_v33 = vcombine.high %v446_v28, %v454_v29  ;;  %v47_v20 = vld [vmem:[%s11251_s0 + $0xb8] sm:$0xff] }
 0x2cc   :  { %v55_v21 = vld [vmem:[%s11251_s0 + $0xf8] sm:$0xff] }
 0x2d1   :  { %4882 = vmatmul.mubr.bf16.gmra.mrb[72].mxu1 %v7272_v38  ;;  %v7400_v38 = vcombine.low %v442_v26, %v450_v27  ;;  %v59_v26 = vld [vmem:[%s11251_s0 + $0x118] sm:$0xff] }
 0x2d2   :  { %6038 = vmatmul.mubr.bf16.gmra.mrb[72].mxu0 %v7280_v39  ;;  %4889 = vmatprep.mubr.bf16.mxu1 %v7289_v40  ;;  %v7408_v39 = vcombine.low %v446_v28, %v454_v29  ;;  %v7417_v40 = vcombine.high %v458_v34, %v466_v35  ;;  %v67_v27 = vld [vmem:[%s11251_s0 + $0x158] sm:$0xff] }
 0x2d3   :  { %6045 = vmatprep.mubr.bf16.mxu0 %v7297_v41  ;;  %v7425_v41 = vcombine.high %v462_v36, %v470_v37  ;;  %v63_v28 = vld [vmem:[%s11251_s0 + $0x138] sm:$0xff] }
 0x2d4   :  { %v71_v29 = vld [vmem:[%s11251_s0 + $0x178] sm:$0xff] }
 0x2d9   :  { %4890 = vmatmul.mubr.bf16.gmra.mrb[76].mxu1 %v7288_v46  ;;  %v7416_v46 = vcombine.low %v458_v34, %v466_v35  ;;  %v75_v34 = vld [vmem:[%s11251_s0 + $0x198] sm:$0xff] }
 0x2da   :  { %6046 = vmatmul.mubr.bf16.gmra.mrb[76].mxu0 %v7296_v47  ;;  %4897 = vmatprep.mubr.bf16.mxu1 %v7305_v48  ;;  %v7424_v47 = vcombine.low %v462_v36, %v470_v37  ;;  %v7433_v48 = vcombine.high %v474_v42, %v482_v43  ;;  %v83_v35 = vld [vmem:[%s11251_s0 + $0x1d8] sm:$0xff] }
 0x2db   :  { %6053 = vmatprep.mubr.bf16.mxu0 %v7313_v49  ;;  %v7441_v49 = vcombine.high %v478_v44, %v486_v45  ;;  %v79_v36 = vld [vmem:[%s11251_s0 + $0x1b8] sm:$0xff] }
 0x2dc   :  { %v87_v37 = vld [vmem:[%s11251_s0 + $0x1f8] sm:$0xff] }
 0x2e1   :  { %4898 = vmatmul.mubr.bf16.gmra.mrb[80].mxu1 %v7304_v54  ;;  %v7432_v54 = vcombine.low %v474_v42, %v482_v43  ;;  %v91_v42 = vld [vmem:[%s11251_s0 + $0x218] sm:$0xff] }
 0x2e2   :  { %6054 = vmatmul.mubr.bf16.gmra.mrb[80].mxu0 %v7312_v55  ;;  %4905 = vmatprep.mubr.bf16.mxu1 %v7321_v56  ;;  %v7440_v55 = vcombine.low %v478_v44, %v486_v45  ;;  %v7449_v56 = vcombine.high %v490_v50, %v498_v51  ;;  %v99_v43 = vld [vmem:[%s11251_s0 + $0x258] sm:$0xff] }
 0x2e3   :  { %6061 = vmatprep.mubr.bf16.mxu0 %v7329_v57  ;;  %v7457_v57 = vcombine.high %v494_v52, %v502_v53  ;;  %v95_v44 = vld [vmem:[%s11251_s0 + $0x238] sm:$0xff] }
 0x2e4   :  { %v103_v45 = vld [vmem:[%s11251_s0 + $0x278] sm:$0xff] }
 0x2e9   :  { %4906 = vmatmul.mubr.bf16.gmra.mrb[84].mxu1 %v7320_v62  ;;  %v7448_v62 = vcombine.low %v490_v50, %v498_v51  ;;  %v107_v50 = vld [vmem:[%s11251_s0 + $0x298] sm:$0xff] }
 0x2ea   :  { %6062 = vmatmul.mubr.bf16.gmra.mrb[84].mxu0 %v7328_v63  ;;  %4913 = vmatprep.mubr.bf16.mxu1 %v7337_v1  ;;  %v7456_v63 = vcombine.low %v494_v52, %v502_v53  ;;  %v7465_v1 = vcombine.high %v506_v58, %v514_v59  ;;  %v115_v51 = vld [vmem:[%s11251_s0 + $0x2d8] sm:$0xff] }
 0x2eb   :  { %6069 = vmatprep.mubr.bf16.mxu0 %v7345_v2  ;;  %v7473_v2 = vcombine.high %v510_v60, %v518_v61  ;;  %v111_v52 = vld [vmem:[%s11251_s0 + $0x2b8] sm:$0xff] }
 0x2ec   :  { %v119_v53 = vld [vmem:[%s11251_s0 + $0x2f8] sm:$0xff] }
 0x2f1   :  { %4914 = vmatmul.mubr.bf16.gmra.mrb[88].mxu1 %v7336_v6  ;;  %v7464_v6 = vcombine.low %v506_v58, %v514_v59  ;;  %v123_v58 = vld [vmem:[%s11251_s0 + $0x318] sm:$0xff] }
 0x2f2   :  { %6070 = vmatmul.mubr.bf16.gmra.mrb[88].mxu0 %v7344_v7  ;;  %4921 = vmatprep.mubr.bf16.mxu1 %v7353_v8  ;;  %v7472_v7 = vcombine.low %v510_v60, %v518_v61  ;;  %v7481_v8 = vcombine.high %v522_v3, %v530_v0  ;;  %v131_v59 = vld [vmem:[%s11251_s0 + $0x358] sm:$0xff] }
 0x2f3   :  { %6077 = vmatprep.mubr.bf16.mxu0 %v7361_v9  ;;  %v7489_v9 = vcombine.high %v526_v4, %v534_v5  ;;  %v127_v60 = vld [vmem:[%s11251_s0 + $0x338] sm:$0xff] }
 0x2f4   :  { %v135_v61 = vld [vmem:[%s11251_s0 + $0x378] sm:$0xff] }
 0x2f9   :  { %4922 = vmatmul.mubr.bf16.gmra.mrb[92].mxu1 %v7352_v14  ;;  %v7480_v14 = vcombine.low %v522_v3, %v530_v0  ;;  %v139_v3 = vld [vmem:[%s11251_s0 + $0x398] sm:$0xff] }
 0x2fa   :  { %6078 = vmatmul.mubr.bf16.gmra.mrb[92].mxu0 %v7360_v15  ;;  %4929 = vmatprep.mubr.bf16.mxu1 %v7369_v16  ;;  %v7488_v15 = vcombine.low %v526_v4, %v534_v5  ;;  %v6987_v16 = vcombine.high %v27_v10, %v35_v11  ;;  %v147_v0 = vld [vmem:[%s11251_s0 + $0x3d8] sm:$0xff] }
 0x2fb   :  { %6085 = vmatprep.mubr.bf16.mxu0 %v7377_v17  ;;  %v6995_v17 = vcombine.high %v31_v12, %v39_v13  ;;  %v143_v4 = vld [vmem:[%s11251_s0 + $0x3b8] sm:$0xff] }
 0x2fc   :  { %v151_v5 = vld [vmem:[%s11251_s0 + $0x3f8] sm:$0xff] }
 0x301   :  { %4930 = vmatmul.mubr.bf16.gmra.mrb[96].mxu1 %v7368_v22  ;;  %v6986_v22 = vcombine.low %v27_v10, %v35_v11  ;;  %v155_v10 = vld [vmem:[%s11251_s0 + $0x418] sm:$0xff] }
 0x302   :  { %6086 = vmatmul.mubr.bf16.gmra.mrb[96].mxu0 %v7376_v23  ;;  %4937 = vmatprep.mubr.bf16.mxu1 %v7385_v24  ;;  %v6994_v23 = vcombine.low %v31_v12, %v39_v13  ;;  %v7003_v24 = vcombine.high %v43_v18, %v51_v19  ;;  %v163_v11 = vld [vmem:[%s11251_s0 + $0x458] sm:$0xff] }
 0x303   :  { %6093 = vmatprep.mubr.bf16.mxu0 %v7393_v25  ;;  %v7011_v25 = vcombine.high %v47_v20, %v55_v21  ;;  %v159_v12 = vld [vmem:[%s11251_s0 + $0x438] sm:$0xff] }
 0x304   :  { %v167_v13 = vld [vmem:[%s11251_s0 + $0x478] sm:$0xff] }
 0x309   :  { %4938 = vmatmul.mubr.bf16.gmra.mrb[100].mxu1 %v7384_v30  ;;  %v7002_v30 = vcombine.low %v43_v18, %v51_v19  ;;  %v171_v18 = vld [vmem:[%s11251_s0 + $0x498] sm:$0xff] }
 0x30a   :  { %6094 = vmatmul.mubr.bf16.gmra.mrb[100].mxu0 %v7392_v31  ;;  %4945 = vmatprep.mubr.bf16.mxu1 %v7401_v32  ;;  %v7010_v31 = vcombine.low %v47_v20, %v55_v21  ;;  %v7019_v32 = vcombine.high %v59_v26, %v67_v27  ;;  %v179_v19 = vld [vmem:[%s11251_s0 + $0x4d8] sm:$0xff] }
 0x30b   :  { %6101 = vmatprep.mubr.bf16.mxu0 %v7409_v33  ;;  %v7027_v33 = vcombine.high %v63_v28, %v71_v29  ;;  %v175_v20 = vld [vmem:[%s11251_s0 + $0x4b8] sm:$0xff] }
 0x30c   :  { %v183_v21 = vld [vmem:[%s11251_s0 + $0x4f8] sm:$0xff] }
 0x311   :  { %4946 = vmatmul.mubr.bf16.gmra.mrb[104].mxu1 %v7400_v38  ;;  %v7018_v38 = vcombine.low %v59_v26, %v67_v27  ;;  %v187_v26 = vld [vmem:[%s11251_s0 + $0x518] sm:$0xff] }
 0x312   :  { %6102 = vmatmul.mubr.bf16.gmra.mrb[104].mxu0 %v7408_v39  ;;  %4953 = vmatprep.mubr.bf16.mxu1 %v7417_v40  ;;  %v7026_v39 = vcombine.low %v63_v28, %v71_v29  ;;  %v7035_v40 = vcombine.high %v75_v34, %v83_v35  ;;  %v195_v27 = vld [vmem:[%s11251_s0 + $0x558] sm:$0xff] }
 0x313   :  { %6109 = vmatprep.mubr.bf16.mxu0 %v7425_v41  ;;  %v7043_v41 = vcombine.high %v79_v36, %v87_v37  ;;  %v191_v28 = vld [vmem:[%s11251_s0 + $0x538] sm:$0xff] }
 0x314   :  { %v199_v29 = vld [vmem:[%s11251_s0 + $0x578] sm:$0xff] }
 0x319   :  { %4954 = vmatmul.mubr.bf16.gmra.mrb[108].mxu1 %v7416_v46  ;;  %v7034_v46 = vcombine.low %v75_v34, %v83_v35  ;;  %v203_v34 = vld [vmem:[%s11251_s0 + $0x598] sm:$0xff] }
 0x31a   :  { %6110 = vmatmul.mubr.bf16.gmra.mrb[108].mxu0 %v7424_v47  ;;  %4961 = vmatprep.mubr.bf16.mxu1 %v7433_v48  ;;  %v7042_v47 = vcombine.low %v79_v36, %v87_v37  ;;  %v7051_v48 = vcombine.high %v91_v42, %v99_v43  ;;  %v211_v35 = vld [vmem:[%s11251_s0 + $0x5d8] sm:$0xff] }
 0x31b   :  { %6117 = vmatprep.mubr.bf16.mxu0 %v7441_v49  ;;  %v7059_v49 = vcombine.high %v95_v44, %v103_v45  ;;  %v207_v36 = vld [vmem:[%s11251_s0 + $0x5b8] sm:$0xff] }
 0x31c   :  { %v215_v37 = vld [vmem:[%s11251_s0 + $0x5f8] sm:$0xff] }
 0x321   :  { %4962 = vmatmul.mubr.bf16.gmra.mrb[112].mxu1 %v7432_v54  ;;  %v7050_v54 = vcombine.low %v91_v42, %v99_v43  ;;  %v219_v42 = vld [vmem:[%s11251_s0 + $0x618] sm:$0xff] }
 0x322   :  { %6118 = vmatmul.mubr.bf16.gmra.mrb[112].mxu0 %v7440_v55  ;;  %4969 = vmatprep.mubr.bf16.mxu1 %v7449_v56  ;;  %v7058_v55 = vcombine.low %v95_v44, %v103_v45  ;;  %v7067_v56 = vcombine.high %v107_v50, %v115_v51  ;;  %v227_v43 = vld [vmem:[%s11251_s0 + $0x658] sm:$0xff] }
 0x323   :  { %6125 = vmatprep.mubr.bf16.mxu0 %v7457_v57  ;;  %v7075_v57 = vcombine.high %v111_v52, %v119_v53  ;;  %v223_v44 = vld [vmem:[%s11251_s0 + $0x638] sm:$0xff] }
 0x324   :  { %v231_v45 = vld [vmem:[%s11251_s0 + $0x678] sm:$0xff] }
 0x329   :  { %4970 = vmatmul.mubr.bf16.gmra.mrb[116].mxu1 %v7448_v62  ;;  %v7066_v62 = vcombine.low %v107_v50, %v115_v51  ;;  %v235_v50 = vld [vmem:[%s11251_s0 + $0x698] sm:$0xff] }
 0x32a   :  { %6126 = vmatmul.mubr.bf16.gmra.mrb[116].mxu0 %v7456_v63  ;;  %4977 = vmatprep.mubr.bf16.mxu1 %v7465_v1  ;;  %v7074_v63 = vcombine.low %v111_v52, %v119_v53  ;;  %v7083_v1 = vcombine.high %v123_v58, %v131_v59  ;;  %v243_v51 = vld [vmem:[%s11251_s0 + $0x6d8] sm:$0xff] }
 0x32b   :  { %6133 = vmatprep.mubr.bf16.mxu0 %v7473_v2  ;;  %v7091_v2 = vcombine.high %v127_v60, %v135_v61  ;;  %v239_v52 = vld [vmem:[%s11251_s0 + $0x6b8] sm:$0xff] }
 0x32c   :  { %v247_v53 = vld [vmem:[%s11251_s0 + $0x6f8] sm:$0xff] }
 0x331   :  { %4978 = vmatmul.mubr.bf16.gmra.mrb[120].mxu1 %v7464_v6  ;;  %v7082_v6 = vcombine.low %v123_v58, %v131_v59  ;;  %v251_v58 = vld [vmem:[%s11251_s0 + $0x718] sm:$0xff] }
 0x332   :  { %6134 = vmatmul.mubr.bf16.gmra.mrb[120].mxu0 %v7472_v7  ;;  %4985 = vmatprep.mubr.bf16.mxu1 %v7481_v8  ;;  %v7090_v7 = vcombine.low %v127_v60, %v135_v61  ;;  %v7099_v8 = vcombine.high %v139_v3, %v147_v0  ;;  %v259_v59 = vld [vmem:[%s11251_s0 + $0x758] sm:$0xff] }
 0x333   :  { %6141 = vmatprep.mubr.bf16.mxu0 %v7489_v9  ;;  %v7107_v9 = vcombine.high %v143_v4, %v151_v5  ;;  %v255_v60 = vld [vmem:[%s11251_s0 + $0x738] sm:$0xff] }
 0x334   :  { %v263_v61 = vld [vmem:[%s11251_s0 + $0x778] sm:$0xff] }
 0x339   :  { %4986 = vmatmul.mubr.bf16.gmra.mrb[124].mxu1 %v7480_v14  ;;  %v7098_v14 = vcombine.low %v139_v3, %v147_v0  ;;  %v267_v3 = vld [vmem:[%s11251_s0 + $0x798] sm:$0xff] }
 0x33a   :  { %6142 = vmatmul.mubr.bf16.gmra.mrb[124].mxu0 %v7488_v15  ;;  %5026 = vmatprep.mubr.bf16.mxu1 %v6987_v16  ;;  %v7106_v15 = vcombine.low %v143_v4, %v151_v5  ;;  %v7115_v16 = vcombine.high %v155_v10, %v163_v11  ;;  %v275_v0 = vld [vmem:[%s11251_s0 + $0x7d8] sm:$0xff] }
 0x33b   :  { %6182 = vmatprep.mubr.bf16.mxu0 %v6995_v17  ;;  %v7123_v17 = vcombine.high %v159_v12, %v167_v13  ;;  %v271_v4 = vld [vmem:[%s11251_s0 + $0x7b8] sm:$0xff] }
 0x33c   :  { %v279_v5 = vld [vmem:[%s11251_s0 + $0x7f8] sm:$0xff] }
 0x341   :  { %5027 = vmatmul.mubr.bf16.vlgmr.msra.gmra.mrb[0].mxu1 %v6986_v22  ;;  %v7114_v22 = vcombine.low %v155_v10, %v163_v11  ;;  %v283_v10 = vld [vmem:[%s11251_s0 + $0x818] sm:$0xff] }
 0x342   :  { %6183 = vmatmul.mubr.bf16.vlgmr.msra.gmra.mrb[0].mxu0 %v6994_v23  ;;  %5034 = vmatprep.mubr.bf16.mxu1 %v7003_v24  ;;  %v7122_v23 = vcombine.low %v159_v12, %v167_v13  ;;  %v7131_v24 = vcombine.high %v171_v18, %v179_v19  ;;  %v291_v11 = vld [vmem:[%s11251_s0 + $0x858] sm:$0xff] }
 0x343   :  { %6190 = vmatprep.mubr.bf16.mxu0 %v7011_v25  ;;  %v7139_v25 = vcombine.high %v175_v20, %v183_v21  ;;  %v287_v12 = vld [vmem:[%s11251_s0 + $0x838] sm:$0xff] }
 0x344   :  { %v295_v13 = vld [vmem:[%s11251_s0 + $0x878] sm:$0xff] }
 0x349   :  { %5035 = vmatmul.mubr.bf16.gmra.mrb[4].mxu1 %v7002_v30  ;;  %v7130_v30 = vcombine.low %v171_v18, %v179_v19  ;;  %v299_v18 = vld [vmem:[%s11251_s0 + $0x898] sm:$0xff] }
 0x34a   :  { %6191 = vmatmul.mubr.bf16.gmra.mrb[4].mxu0 %v7010_v31  ;;  %5042 = vmatprep.mubr.bf16.mxu1 %v7019_v32  ;;  %v7138_v31 = vcombine.low %v175_v20, %v183_v21  ;;  %v7147_v32 = vcombine.high %v187_v26, %v195_v27  ;;  %v307_v19 = vld [vmem:[%s11251_s0 + $0x8d8] sm:$0xff] }
 0x34b   :  { %6198 = vmatprep.mubr.bf16.mxu0 %v7027_v33  ;;  %v7155_v33 = vcombine.high %v191_v28, %v199_v29  ;;  %v303_v20 = vld [vmem:[%s11251_s0 + $0x8b8] sm:$0xff] }
 0x34c   :  { %v311_v21 = vld [vmem:[%s11251_s0 + $0x8f8] sm:$0xff] }
 0x351   :  { %5043 = vmatmul.mubr.bf16.gmra.mrb[8].mxu1 %v7018_v38  ;;  %v7146_v38 = vcombine.low %v187_v26, %v195_v27  ;;  %v315_v26 = vld [vmem:[%s11251_s0 + $0x918] sm:$0xff] }
 0x352   :  { %6199 = vmatmul.mubr.bf16.gmra.mrb[8].mxu0 %v7026_v39  ;;  %5050 = vmatprep.mubr.bf16.mxu1 %v7035_v40  ;;  %v7154_v39 = vcombine.low %v191_v28, %v199_v29  ;;  %v7163_v40 = vcombine.high %v203_v34, %v211_v35  ;;  %v323_v27 = vld [vmem:[%s11251_s0 + $0x958] sm:$0xff] }
 0x353   :  { %6206 = vmatprep.mubr.bf16.mxu0 %v7043_v41  ;;  %v7171_v41 = vcombine.high %v207_v36, %v215_v37  ;;  %v319_v28 = vld [vmem:[%s11251_s0 + $0x938] sm:$0xff] }
 0x354   :  { %v327_v29 = vld [vmem:[%s11251_s0 + $0x978] sm:$0xff] }
 0x359   :  { %5051 = vmatmul.mubr.bf16.gmra.mrb[12].mxu1 %v7034_v46  ;;  %v7162_v46 = vcombine.low %v203_v34, %v211_v35  ;;  %v331_v34 = vld [vmem:[%s11251_s0 + $0x998] sm:$0xff] }
 0x35a   :  { %6207 = vmatmul.mubr.bf16.gmra.mrb[12].mxu0 %v7042_v47  ;;  %5058 = vmatprep.mubr.bf16.mxu1 %v7051_v48  ;;  %v7170_v47 = vcombine.low %v207_v36, %v215_v37  ;;  %v7179_v48 = vcombine.high %v219_v42, %v227_v43  ;;  %v339_v35 = vld [vmem:[%s11251_s0 + $0x9d8] sm:$0xff] }
 0x35b   :  { %6214 = vmatprep.mubr.bf16.mxu0 %v7059_v49  ;;  %v7187_v49 = vcombine.high %v223_v44, %v231_v45  ;;  %v335_v36 = vld [vmem:[%s11251_s0 + $0x9b8] sm:$0xff] }
 0x35c   :  { %v343_v37 = vld [vmem:[%s11251_s0 + $0x9f8] sm:$0xff] }
 0x361   :  { %5059 = vmatmul.mubr.bf16.gmra.mrb[16].mxu1 %v7050_v54  ;;  %v7178_v54 = vcombine.low %v219_v42, %v227_v43  ;;  %v347_v42 = vld [vmem:[%s11251_s0 + $0xa18] sm:$0xff] }
 0x362   :  { %6215 = vmatmul.mubr.bf16.gmra.mrb[16].mxu0 %v7058_v55  ;;  %5066 = vmatprep.mubr.bf16.mxu1 %v7067_v56  ;;  %v7186_v55 = vcombine.low %v223_v44, %v231_v45  ;;  %v7195_v56 = vcombine.high %v235_v50, %v243_v51  ;;  %v355_v43 = vld [vmem:[%s11251_s0 + $0xa58] sm:$0xff] }
 0x363   :  { %6222 = vmatprep.mubr.bf16.mxu0 %v7075_v57  ;;  %v7203_v57 = vcombine.high %v239_v52, %v247_v53  ;;  %v351_v44 = vld [vmem:[%s11251_s0 + $0xa38] sm:$0xff] }
 0x364   :  { %v359_v45 = vld [vmem:[%s11251_s0 + $0xa78] sm:$0xff] }
 0x369   :  { %5067 = vmatmul.mubr.bf16.gmra.mrb[20].mxu1 %v7066_v62  ;;  %v7194_v62 = vcombine.low %v235_v50, %v243_v51  ;;  %v363_v50 = vld [vmem:[%s11251_s0 + $0xa98] sm:$0xff] }
 0x36a   :  { %6223 = vmatmul.mubr.bf16.gmra.mrb[20].mxu0 %v7074_v63  ;;  %5074 = vmatprep.mubr.bf16.mxu1 %v7083_v1  ;;  %v7202_v63 = vcombine.low %v239_v52, %v247_v53  ;;  %v7211_v1 = vcombine.high %v251_v58, %v259_v59  ;;  %v371_v51 = vld [vmem:[%s11251_s0 + $0xad8] sm:$0xff] }
 0x36b   :  { %6230 = vmatprep.mubr.bf16.mxu0 %v7091_v2  ;;  %v7219_v2 = vcombine.high %v255_v60, %v263_v61  ;;  %v367_v52 = vld [vmem:[%s11251_s0 + $0xab8] sm:$0xff] }
 0x36c   :  { %v375_v53 = vld [vmem:[%s11251_s0 + $0xaf8] sm:$0xff] }
 0x371   :  { %5075 = vmatmul.mubr.bf16.gmra.mrb[24].mxu1 %v7082_v6  ;;  %v7210_v6 = vcombine.low %v251_v58, %v259_v59  ;;  %v379_v58 = vld [vmem:[%s11251_s0 + $0xb18] sm:$0xff] }
 0x372   :  { %6231 = vmatmul.mubr.bf16.gmra.mrb[24].mxu0 %v7090_v7  ;;  %5082 = vmatprep.mubr.bf16.mxu1 %v7099_v8  ;;  %v7218_v7 = vcombine.low %v255_v60, %v263_v61  ;;  %v7227_v8 = vcombine.high %v267_v3, %v275_v0  ;;  %v387_v59 = vld [vmem:[%s11251_s0 + $0xb58] sm:$0xff] }
 0x373   :  { %6238 = vmatprep.mubr.bf16.mxu0 %v7107_v9  ;;  %v7235_v9 = vcombine.high %v271_v4, %v279_v5  ;;  %v383_v60 = vld [vmem:[%s11251_s0 + $0xb38] sm:$0xff] }
 0x374   :  { %v391_v61 = vld [vmem:[%s11251_s0 + $0xb78] sm:$0xff] }
 0x379   :  { %5083 = vmatmul.mubr.bf16.gmra.mrb[28].mxu1 %v7098_v14  ;;  %v7226_v14 = vcombine.low %v267_v3, %v275_v0  ;;  %v395_v3 = vld [vmem:[%s11251_s0 + $0xb98] sm:$0xff] }
 0x37a   :  { %6239 = vmatmul.mubr.bf16.gmra.mrb[28].mxu0 %v7106_v15  ;;  %5090 = vmatprep.mubr.bf16.mxu1 %v7115_v16  ;;  %v7234_v15 = vcombine.low %v271_v4, %v279_v5  ;;  %v7243_v16 = vcombine.high %v283_v10, %v291_v11  ;;  %v403_v0 = vld [vmem:[%s11251_s0 + $0xbd8] sm:$0xff] }
 0x37b   :  { %6246 = vmatprep.mubr.bf16.mxu0 %v7123_v17  ;;  %v7251_v17 = vcombine.high %v287_v12, %v295_v13  ;;  %v399_v4 = vld [vmem:[%s11251_s0 + $0xbb8] sm:$0xff] }
 0x37c   :  { %v407_v5 = vld [vmem:[%s11251_s0 + $0xbf8] sm:$0xff] }
 0x381   :  { %5091 = vmatmul.mubr.bf16.gmra.mrb[32].mxu1 %v7114_v22  ;;  %v7242_v22 = vcombine.low %v283_v10, %v291_v11  ;;  %v411_v10 = vld [vmem:[%s11251_s0 + $0xc18] sm:$0xff] }
 0x382   :  { %6247 = vmatmul.mubr.bf16.gmra.mrb[32].mxu0 %v7122_v23  ;;  %5098 = vmatprep.mubr.bf16.mxu1 %v7131_v24  ;;  %v7250_v23 = vcombine.low %v287_v12, %v295_v13  ;;  %v7259_v24 = vcombine.high %v299_v18, %v307_v19  ;;  %v419_v11 = vld [vmem:[%s11251_s0 + $0xc58] sm:$0xff] }
 0x383   :  { %6254 = vmatprep.mubr.bf16.mxu0 %v7139_v25  ;;  %v7267_v25 = vcombine.high %v303_v20, %v311_v21  ;;  %v415_v12 = vld [vmem:[%s11251_s0 + $0xc38] sm:$0xff] }
 0x384   :  { %v423_v13 = vld [vmem:[%s11251_s0 + $0xc78] sm:$0xff] }
 0x389   :  { %5099 = vmatmul.mubr.bf16.gmra.mrb[36].mxu1 %v7130_v30  ;;  %v7258_v30 = vcombine.low %v299_v18, %v307_v19  ;;  %v427_v18 = vld [vmem:[%s11251_s0 + $0xc98] sm:$0xff] }
 0x38a   :  { %6255 = vmatmul.mubr.bf16.gmra.mrb[36].mxu0 %v7138_v31  ;;  %5106 = vmatprep.mubr.bf16.mxu1 %v7147_v32  ;;  %v7266_v31 = vcombine.low %v303_v20, %v311_v21  ;;  %v7275_v32 = vcombine.high %v315_v26, %v323_v27  ;;  %v435_v19 = vld [vmem:[%s11251_s0 + $0xcd8] sm:$0xff] }
 0x38b   :  { %6262 = vmatprep.mubr.bf16.mxu0 %v7155_v33  ;;  %v7283_v33 = vcombine.high %v319_v28, %v327_v29  ;;  %v431_v20 = vld [vmem:[%s11251_s0 + $0xcb8] sm:$0xff] }
 0x38c   :  { %v439_v21 = vld [vmem:[%s11251_s0 + $0xcf8] sm:$0xff] }
 0x391   :  { %5107 = vmatmul.mubr.bf16.gmra.mrb[40].mxu1 %v7146_v38  ;;  %v7274_v38 = vcombine.low %v315_v26, %v323_v27  ;;  %v443_v26 = vld [vmem:[%s11251_s0 + $0xd18] sm:$0xff] }
 0x392   :  { %6263 = vmatmul.mubr.bf16.gmra.mrb[40].mxu0 %v7154_v39  ;;  %5114 = vmatprep.mubr.bf16.mxu1 %v7163_v40  ;;  %v7282_v39 = vcombine.low %v319_v28, %v327_v29  ;;  %v7291_v40 = vcombine.high %v331_v34, %v339_v35  ;;  %v451_v27 = vld [vmem:[%s11251_s0 + $0xd58] sm:$0xff] }
 0x393   :  { %6270 = vmatprep.mubr.bf16.mxu0 %v7171_v41  ;;  %v7299_v41 = vcombine.high %v335_v36, %v343_v37  ;;  %v447_v28 = vld [vmem:[%s11251_s0 + $0xd38] sm:$0xff] }
 0x394   :  { %v455_v29 = vld [vmem:[%s11251_s0 + $0xd78] sm:$0xff] }
 0x399   :  { %5115 = vmatmul.mubr.bf16.gmra.mrb[44].mxu1 %v7162_v46  ;;  %v7290_v46 = vcombine.low %v331_v34, %v339_v35  ;;  %v459_v34 = vld [vmem:[%s11251_s0 + $0xd98] sm:$0xff] }
 0x39a   :  { %6271 = vmatmul.mubr.bf16.gmra.mrb[44].mxu0 %v7170_v47  ;;  %5122 = vmatprep.mubr.bf16.mxu1 %v7179_v48  ;;  %v7298_v47 = vcombine.low %v335_v36, %v343_v37  ;;  %v7307_v48 = vcombine.high %v347_v42, %v355_v43  ;;  %v467_v35 = vld [vmem:[%s11251_s0 + $0xdd8] sm:$0xff] }
 0x39b   :  { %6278 = vmatprep.mubr.bf16.mxu0 %v7187_v49  ;;  %v7315_v49 = vcombine.high %v351_v44, %v359_v45  ;;  %v463_v36 = vld [vmem:[%s11251_s0 + $0xdb8] sm:$0xff] }
 0x39c   :  { %v471_v37 = vld [vmem:[%s11251_s0 + $0xdf8] sm:$0xff] }
 0x3a1   :  { %5123 = vmatmul.mubr.bf16.gmra.mrb[48].mxu1 %v7178_v54  ;;  %v7306_v54 = vcombine.low %v347_v42, %v355_v43  ;;  %v11017_v42 = vld [vmem:[%s11252_s2] ss:$0 sm:$0xff]  ;;  %v475_v43 = vld [vmem:[%s11251_s0 + $0xe18] sm:$0xff] }
 0x3a2   :  { %6279 = vmatmul.mubr.bf16.gmra.mrb[48].mxu0 %v7186_v55  ;;  %5130 = vmatprep.mubr.bf16.mxu1 %v7195_v56  ;;  %v7314_v55 = vcombine.low %v351_v44, %v359_v45  ;;  %v7323_v56 = vcombine.high %v363_v50, %v371_v51  ;;  %v483_v44 = vld [vmem:[%s11251_s0 + $0xe58] sm:$0xff] }
 0x3a3   :  { %6286 = vmatprep.mubr.bf16.mxu0 %v7203_v57  ;;  %v7331_v57 = vcombine.high %v367_v52, %v375_v53 }
 0x3a9   :  { %5131 = vmatmul.mubr.bf16.gmra.mrb[52].mxu1 %v7194_v62  ;;  %v7322_v62 = vcombine.low %v363_v50, %v371_v51  ;;  %v7418_v51 = vcombine.low %v459_v34, %v467_v35 }
 0x3aa   :  { %6287 = vmatmul.mubr.bf16.gmra.mrb[52].mxu0 %v7202_v63  ;;  %5138 = vmatprep.mubr.bf16.mxu1 %v7211_v1  ;;  %v7330_v63 = vcombine.low %v367_v52, %v375_v53  ;;  %v7339_v1 = vcombine.high %v379_v58, %v387_v59 }
 0x3ab   :  { %6294 = vmatprep.mubr.bf16.mxu0 %v7219_v2  ;;  %v7347_v2 = vcombine.high %v383_v60, %v391_v61 }
 0x3b1   :  { %5139 = vmatmul.mubr.bf16.gmra.mrb[56].mxu1 %v7210_v6  ;;  %v7338_v6 = vcombine.low %v379_v58, %v387_v59 }
 0x3b2   :  { %6295 = vmatmul.mubr.bf16.gmra.mrb[56].mxu0 %v7218_v7  ;;  %5146 = vmatprep.mubr.bf16.mxu1 %v7227_v8  ;;  %v7346_v7 = vcombine.low %v383_v60, %v391_v61  ;;  %v7355_v8 = vcombine.high %v395_v3, %v403_v0 }
 0x3b3   :  { %6302 = vmatprep.mubr.bf16.mxu0 %v7235_v9  ;;  %v7363_v9 = vcombine.high %v399_v4, %v407_v5 }
 0x3b9   :  { %5147 = vmatmul.mubr.bf16.gmra.mrb[60].mxu1 %v7226_v14  ;;  %v7354_v14 = vcombine.low %v395_v3, %v403_v0  ;;  %v491_v0 = vld [vmem:[%s11251_s0 + $0xe98] sm:$0xff] }
 0x3ba   :  { %6303 = vmatmul.mubr.bf16.gmra.mrb[60].mxu0 %v7234_v15  ;;  %5154 = vmatprep.mubr.bf16.mxu1 %v7243_v16  ;;  %v7362_v15 = vcombine.low %v399_v4, %v407_v5  ;;  %v7371_v16 = vcombine.high %v411_v10, %v419_v11  ;;  %v499_v4 = vld [vmem:[%s11251_s0 + $0xed8] sm:$0xff] }
 0x3bb   :  { %6310 = vmatprep.mubr.bf16.mxu0 %v7251_v17  ;;  %v7379_v17 = vcombine.high %v415_v12, %v423_v13 }
 0x3c1   :  { %5155 = vmatmul.mubr.bf16.gmra.mrb[64].mxu1 %v7242_v22  ;;  %v7370_v22 = vcombine.low %v411_v10, %v419_v11 }
 0x3c2   :  { %6311 = vmatmul.mubr.bf16.gmra.mrb[64].mxu0 %v7250_v23  ;;  %5162 = vmatprep.mubr.bf16.mxu1 %v7259_v24  ;;  %v7378_v23 = vcombine.low %v415_v12, %v423_v13  ;;  %v7387_v24 = vcombine.high %v427_v18, %v435_v19  ;;  %v7434_v12 = vcombine.low %v475_v43, %v483_v44 }
 0x3c3   :  { %6318 = vmatprep.mubr.bf16.mxu0 %v7267_v25  ;;  %v7395_v25 = vcombine.high %v431_v20, %v439_v21 }
 0x3c9   :  { %5163 = vmatmul.mubr.bf16.gmra.mrb[68].mxu1 %v7258_v30  ;;  %v7386_v30 = vcombine.low %v427_v18, %v435_v19 }
 0x3ca   :  { %6319 = vmatmul.mubr.bf16.gmra.mrb[68].mxu0 %v7266_v31  ;;  %5170 = vmatprep.mubr.bf16.mxu1 %v7275_v32  ;;  %v7394_v31 = vcombine.low %v431_v20, %v439_v21  ;;  %v7403_v32 = vcombine.high %v443_v26, %v451_v27 }
 0x3cb   :  { %6326 = vmatprep.mubr.bf16.mxu0 %v7283_v33  ;;  %v7411_v33 = vcombine.high %v447_v28, %v455_v29 }
 0x3d1   :  { %5171 = vmatmul.mubr.bf16.gmra.mrb[72].mxu1 %v7274_v38  ;;  %v7402_v38 = vcombine.low %v443_v26, %v451_v27 }
 0x3d2   :  { %6327 = vmatmul.mubr.bf16.gmra.mrb[72].mxu0 %v7282_v39  ;;  %5178 = vmatprep.mubr.bf16.mxu1 %v7291_v40  ;;  %v7410_v39 = vcombine.low %v447_v28, %v455_v29  ;;  %v7419_v40 = vcombine.high %v459_v34, %v467_v35  ;;  %v519_v34 = vld [vmem:[%s11251_s0 + $0xf78] sm:$0xff] }
 0x3d3   :  { %6334 = vmatprep.mubr.bf16.mxu0 %v7299_v41  ;;  %v7427_v41 = vcombine.high %v463_v36, %v471_v37 }
 0x3d9   :  { %5179 = vmatmul.mubr.bf16.gmra.mrb[76].mxu1 %v7290_v46  ;;  %v479_v46 = vld [vmem:[%s11251_s0 + $0xe38] sm:$0xff] }
 0x3da   :  { %6335 = vmatmul.mubr.bf16.gmra.mrb[76].mxu0 %v7298_v47  ;;  %5186 = vmatprep.mubr.bf16.mxu1 %v7307_v48  ;;  %v487_v47 = vld [vmem:[%s11251_s0 + $0xe78] sm:$0xff] }
 0x3db   :  { %6342 = vmatprep.mubr.bf16.mxu0 %v7315_v49  ;;  %v7443_v60 = vcombine.high %v479_v46, %v487_v47 }
 0x3e1   :  { %5187 = vmatmul.mubr.bf16.gmra.mrb[80].mxu1 %v7306_v54  ;;  %v7426_v54 = vcombine.low %v463_v36, %v471_v37 }
 0x3e2   :  { %6343 = vmatmul.mubr.bf16.gmra.mrb[80].mxu0 %v7314_v55  ;;  %5194 = vmatprep.mubr.bf16.mxu1 %v7323_v56  ;;  %v7435_v55 = vcombine.high %v475_v43, %v483_v44 }
 0x3e3   :  { %6350 = vmatprep.mubr.bf16.mxu0 %v7331_v57 }
 0x3e9   :  { %5195 = vmatmul.mubr.bf16.gmra.mrb[84].mxu1 %v7322_v62 }
 0x3ea   :  { %6351 = vmatmul.mubr.bf16.gmra.mrb[84].mxu0 %v7330_v63  ;;  %5202 = vmatprep.mubr.bf16.mxu1 %v7339_v1 }
 0x3eb   :  { %6358 = vmatprep.mubr.bf16.mxu0 %v7347_v2 }
 0x3f1   :  { %5203 = vmatmul.mubr.bf16.gmra.mrb[88].mxu1 %v7338_v6  ;;  %v495_v6 = vld [vmem:[%s11251_s0 + $0xeb8] sm:$0xff] }
 0x3f2   :  { %6359 = vmatmul.mubr.bf16.gmra.mrb[88].mxu0 %v7346_v7  ;;  %5210 = vmatprep.mubr.bf16.mxu1 %v7355_v8  ;;  %v503_v7 = vld [vmem:[%s11251_s0 + $0xef8] sm:$0xff] }
 0x3f3   :  { %6366 = vmatprep.mubr.bf16.mxu0 %v7363_v9  ;;  %v7459_v21 = vcombine.high %v495_v6, %v503_v7  ;;  %v7458_v43 = vcombine.low %v495_v6, %v503_v7 }
 0x3f9   :  { %5211 = vmatmul.mubr.bf16.gmra.mrb[92].mxu1 %v7354_v14 }
 0x3fa   :  { %6367 = vmatmul.mubr.bf16.gmra.mrb[92].mxu0 %v7362_v15  ;;  %5218 = vmatprep.mubr.bf16.mxu1 %v7371_v16  ;;  %v7442_v15 = vcombine.low %v479_v46, %v487_v47  ;;  %v7451_v16 = vcombine.high %v491_v0, %v499_v4 }
 0x3fb   :  { %6374 = vmatprep.mubr.bf16.mxu0 %v7379_v17 }
 0x401   :  { %5219 = vmatmul.mubr.bf16.gmra.mrb[96].mxu1 %v7370_v22 }
 0x402   :  { %6375 = vmatmul.mubr.bf16.gmra.mrb[96].mxu0 %v7378_v23  ;;  %5226 = vmatprep.mubr.bf16.mxu1 %v7387_v24 }
 0x403   :  { %6382 = vmatprep.mubr.bf16.mxu0 %v7395_v25 }
 0x409   :  { %5227 = vmatmul.mubr.bf16.gmra.mrb[100].mxu1 %v7386_v30  ;;  %v507_v30 = vld [vmem:[%s11251_s0 + $0xf18] sm:$0xff] }
 0x40a   :  { %6383 = vmatmul.mubr.bf16.gmra.mrb[100].mxu0 %v7394_v31  ;;  %5234 = vmatprep.mubr.bf16.mxu1 %v7403_v32  ;;  %v515_v31 = vld [vmem:[%s11251_s0 + $0xf58] sm:$0xff] }
 0x40b   :  { %6390 = vmatprep.mubr.bf16.mxu0 %v7411_v33  ;;  %v511_v33 = vld [vmem:[%s11251_s0 + $0xf38] sm:$0xff]  ;;  %v7467_v44 = vcombine.high %v507_v30, %v515_v31 }
 0x40c   :  { %v7474_v6 = vcombine.low %v511_v33, %v519_v34 }
 0x411   :  { %5235 = vmatmul.mubr.bf16.gmra.mrb[104].mxu1 %v7402_v38 }
 0x412   :  { %6391 = vmatmul.mubr.bf16.gmra.mrb[104].mxu0 %v7410_v39  ;;  %5242 = vmatprep.mubr.bf16.mxu1 %v7419_v40  ;;  %v7450_v39 = vcombine.low %v491_v0, %v499_v4  ;;  %v7466_v0 = vcombine.low %v507_v30, %v515_v31 }
 0x413   :  { %6398 = vmatprep.mubr.bf16.mxu0 %v7427_v41 }
 0x414   :  { %v5028_v45 = vpop.f32.mrb[0].mxu1 }
 0x415   :  { %v7939_v48 = vadd.f32 %v11017_v42, %v5028_v45  ;;  %v6184_v49 = vpop.f32.mrb[0].mxu0  ;;  %v5030_v50 = vpop.f32.mrb[1].mxu1 }
 0x416   :  { %v6186_v52 = vpop.f32.mrb[1].mxu0  ;;  %v5031_v53 = vpop.f32.mrb[2].mxu1 }
 0x417   :  { %v7940_v56 = vadd.f32 %v7939_v48, %v6184_v49  ;;  %v7941_v57 = vadd.f32 %v11017_v42, %v5031_v53  ;;  %v6187_v58 = vpop.f32.mrb[2].mxu0  ;;  %v5033_v59 = vpop.f32.mrb[3].mxu1  ;;  %v7475_v49 = vcombine.high %v511_v33, %v519_v34 }
 0x418   :  { %v6189_v61 = vpop.f32.mrb[3].mxu0  ;;  %v531_v59 = vld [vmem:[%s11251_s0 + $0xfd8] sm:$0xff] }
 0x419   :  { %v7942_v62 = vadd.f32 %v7941_v57, %v6187_v58  ;;  %5243 = vmatmul.mubr.bf16.gmra.mrb[108].mxu1 %v7418_v51  ;;  %v6832_v63 = vmul.f32 %v7940_v56, %v7940_v56  ;;  %v523_v58 = vld [vmem:[%s11251_s0 + $0xf98] sm:$0xff] }
 0x41a   :  { %6399 = vmatmul.mubr.bf16.gmra.mrb[108].mxu0 %v7426_v54  ;;  %5250 = vmatprep.mubr.bf16.mxu1 %v7435_v55  ;;  %v527_v61 = vld [vmem:[%s11251_s0 + $0xfb8] sm:$0xff]  ;;  %v7483_v7 = vcombine.high %v523_v58, %v531_v59 }
 0x41b   :  { %v7751_v1 = vpack.c.bf16 %v7942_v62, %v7940_v56  ;;  %v6760_v2 = vadd.f32 %v7942_v62, %v7940_v56  ;;  %v6833_v3 = vmul.f32 %v7942_v62, %v7942_v62  ;;  %6406 = vmatprep.mubr.bf16.mxu0 %v7443_v60  ;;  %v535_v62 = vld [vmem:[%s11251_s0 + $0xff8] sm:$0xff] }
 0x41c   :  { %v5036_v5 = vpop.f32.mrb[4].mxu1 }
 0x41d   :  { %7752 = vst [vmem:[%s11253_s3] sm:$0xff] %v7751_v1   ;;  %v6896_v8 = vadd.f32 %v6833_v3, %v6832_v63  ;;  %v7943_v9 = vadd.f32 %v11017_v42, %v5036_v5  ;;  %v6192_v10 = vpop.f32.mrb[4].mxu0  ;;  %v5038_v11 = vpop.f32.mrb[5].mxu1 }
 0x41e   :  { %v6194_v13 = vpop.f32.mrb[5].mxu0  ;;  %v5039_v14 = vpop.f32.mrb[6].mxu1 }
 0x41f   :  { %v7944_v17 = vadd.f32 %v7943_v9, %v6192_v10  ;;  %v7945_v18 = vadd.f32 %v11017_v42, %v5039_v14  ;;  %v6195_v19 = vpop.f32.mrb[6].mxu0  ;;  %v5041_v20 = vpop.f32.mrb[7].mxu1 }
 0x420   :  { %v6197_v22 = vpop.f32.mrb[7].mxu0 }
 0x421   :  { %v6761_v23 = vadd.f32 %v7944_v17, %v6760_v2  ;;  %v6834_v24 = vmul.f32 %v7944_v17, %v7944_v17  ;;  %v7946_v25 = vadd.f32 %v7945_v18, %v6195_v19  ;;  %5251 = vmatmul.mubr.bf16.gmra.mrb[112].mxu1 %v7434_v12  ;;  %v7491_v12 = vcombine.high %v527_v61, %v535_v62 }
 0x422   :  { %6407 = vmatmul.mubr.bf16.gmra.mrb[112].mxu0 %v7442_v15  ;;  %5258 = vmatprep.mubr.bf16.mxu1 %v7451_v16 }
 0x423   :  { %v6897_v26 = vadd.f32 %v6896_v8, %v6834_v24  ;;  %v7756_v27 = vpack.c.bf16 %v7946_v25, %v7944_v17  ;;  %v6762_v28 = vadd.f32 %v7946_v25, %v6761_v23  ;;  %v6835_v29 = vmul.f32 %v7946_v25, %v7946_v25  ;;  %6414 = vmatprep.mubr.bf16.mxu0 %v7459_v21 }
 0x424   :  { %v5044_v32 = vpop.f32.mrb[8].mxu1 }
 0x425   :  { %7908 = vst [vmem:[%s11253_s3 + $0x8] sm:$0xff] %v7756_v27   ;;  %v6898_v35 = vadd.f32 %v6897_v26, %v6835_v29  ;;  %v7947_v36 = vadd.f32 %v11017_v42, %v5044_v32  ;;  %v6200_v37 = vpop.f32.mrb[8].mxu0  ;;  %v5046_v38 = vpop.f32.mrb[9].mxu1  ;;  %v7482_v26 = vcombine.low %v523_v58, %v531_v59  ;;  %v7490_v29 = vcombine.low %v527_v61, %v535_v62 }
 0x426   :  { %v6202_v40 = vpop.f32.mrb[9].mxu0  ;;  %v5047_v41 = vpop.f32.mrb[10].mxu1 }
 0x427   :  { %v7948_v45 = vadd.f32 %v7947_v36, %v6200_v37  ;;  %v7949_v46 = vadd.f32 %v11017_v42, %v5047_v41  ;;  %v6203_v47 = vpop.f32.mrb[10].mxu0  ;;  %v5049_v48 = vpop.f32.mrb[11].mxu1 }
 0x428   :  { %v6205_v50 = vpop.f32.mrb[11].mxu0 }
 0x429   :  { %v6763_v51 = vadd.f32 %v7948_v45, %v6762_v28  ;;  %v6836_v52 = vmul.f32 %v7948_v45, %v7948_v45  ;;  %v7950_v53 = vadd.f32 %v7949_v46, %v6203_v47  ;;  %5259 = vmatmul.mubr.bf16.gmra.mrb[116].mxu1 %v7450_v39 }
 0x42a   :  { %6415 = vmatmul.mubr.bf16.gmra.mrb[116].mxu0 %v7458_v43  ;;  %5266 = vmatprep.mubr.bf16.mxu1 %v7467_v44 }
 0x42b   :  { %v6899_v54 = vadd.f32 %v6898_v35, %v6836_v52  ;;  %v7761_v55 = vpack.c.bf16 %v7950_v53, %v7948_v45  ;;  %v6764_v56 = vadd.f32 %v7950_v53, %v6763_v51  ;;  %v6837_v57 = vmul.f32 %v7950_v53, %v7950_v53  ;;  %6422 = vmatprep.mubr.bf16.mxu0 %v7475_v49 }
 0x42c   :  { %v5052_v60 = vpop.f32.mrb[12].mxu1 }
 0x42d   :  { %7909 = vst [vmem:[%s11253_s3 + $0x10] sm:$0xff] %v7761_v55   ;;  %v6900_v63 = vadd.f32 %v6899_v54, %v6837_v57  ;;  %v7951_v1 = vadd.f32 %v11017_v42, %v5052_v60  ;;  %v6208_v2 = vpop.f32.mrb[12].mxu0  ;;  %v5054_v3 = vpop.f32.mrb[13].mxu1 }
 0x42e   :  { %v6210_v4 = vpop.f32.mrb[13].mxu0  ;;  %v5055_v5 = vpop.f32.mrb[14].mxu1 }
 0x42f   :  { %v7952_v8 = vadd.f32 %v7951_v1, %v6208_v2  ;;  %v7953_v9 = vadd.f32 %v11017_v42, %v5055_v5  ;;  %v6211_v10 = vpop.f32.mrb[14].mxu0  ;;  %v5057_v11 = vpop.f32.mrb[15].mxu1 }
 0x430   :  { %v6213_v13 = vpop.f32.mrb[15].mxu0 }
 0x431   :  { %v6765_v14 = vadd.f32 %v7952_v8, %v6764_v56  ;;  %v6838_v15 = vmul.f32 %v7952_v8, %v7952_v8  ;;  %v7954_v16 = vadd.f32 %v7953_v9, %v6211_v10  ;;  %5267 = vmatmul.mubr.bf16.gmra.mrb[120].mxu1 %v7466_v0 }
 0x432   :  { %6423 = vmatmul.mubr.bf16.gmra.mrb[120].mxu0 %v7474_v6  ;;  %5274 = vmatprep.mubr.bf16.mxu1 %v7483_v7 }
 0x433   :  { %v6901_v17 = vadd.f32 %v6900_v63, %v6838_v15  ;;  %v7766_v18 = vpack.c.bf16 %v7954_v16, %v7952_v8  ;;  %v6766_v19 = vadd.f32 %v7954_v16, %v6765_v14  ;;  %v6839_v20 = vmul.f32 %v7954_v16, %v7954_v16  ;;  %6430 = vmatprep.mubr.bf16.mxu0 %v7491_v12 }
 0x434   :  { %v5060_v21 = vpop.f32.mrb[16].mxu1 }
 0x435   :  { %7910 = vst [vmem:[%s11253_s3 + $0x18] sm:$0xff] %v7766_v18   ;;  %v6902_v22 = vadd.f32 %v6901_v17, %v6839_v20  ;;  %v7955_v23 = vadd.f32 %v11017_v42, %v5060_v21  ;;  %v6216_v24 = vpop.f32.mrb[16].mxu0  ;;  %v5062_v25 = vpop.f32.mrb[17].mxu1 }
 0x436   :  { %v6218_v27 = vpop.f32.mrb[17].mxu0  ;;  %v5063_v28 = vpop.f32.mrb[18].mxu1 }
 0x437   :  { %v7956_v30 = vadd.f32 %v7955_v23, %v6216_v24  ;;  %v7957_v31 = vadd.f32 %v11017_v42, %v5063_v28  ;;  %v6219_v32 = vpop.f32.mrb[18].mxu0  ;;  %v5065_v33 = vpop.f32.mrb[19].mxu1 }
 0x438   :  { %v6221_v34 = vpop.f32.mrb[19].mxu0 }
 0x439   :  { %v6767_v35 = vadd.f32 %v7956_v30, %v6766_v19  ;;  %v6840_v36 = vmul.f32 %v7956_v30, %v7956_v30  ;;  %v7958_v37 = vadd.f32 %v7957_v31, %v6219_v32  ;;  %5275 = vmatmul.mubr.bf16.gmra.mrb[124].mxu1 %v7482_v26 }
 0x43a   :  { %6431 = vmatmul.mubr.bf16.gmra.mrb[124].mxu0 %v7490_v29 }
 0x43b   :  { %v6903_v38 = vadd.f32 %v6902_v22, %v6840_v36  ;;  %v7771_v39 = vpack.c.bf16 %v7958_v37, %v7956_v30  ;;  %v6768_v40 = vadd.f32 %v7958_v37, %v6767_v35  ;;  %v6841_v41 = vmul.f32 %v7958_v37, %v7958_v37 }
 0x43c   :  { %v5068_v43 = vpop.f32.mrb[20].mxu1 }
 0x43d   :  { %7911 = vst [vmem:[%s11253_s3 + $0x20] sm:$0xff] %v7771_v39   ;;  %v6904_v44 = vadd.f32 %v6903_v38, %v6841_v41  ;;  %v7959_v45 = vadd.f32 %v11017_v42, %v5068_v43  ;;  %v6224_v46 = vpop.f32.mrb[20].mxu0  ;;  %v5070_v47 = vpop.f32.mrb[21].mxu1 }
 0x43e   :  { %v6226_v48 = vpop.f32.mrb[21].mxu0  ;;  %v5071_v49 = vpop.f32.mrb[22].mxu1 }
 0x43f   :  { %v7960_v50 = vadd.f32 %v7959_v45, %v6224_v46  ;;  %v7961_v51 = vadd.f32 %v11017_v42, %v5071_v49  ;;  %v6227_v52 = vpop.f32.mrb[22].mxu0  ;;  %v5073_v53 = vpop.f32.mrb[23].mxu1 }
 0x440   :  { %v6229_v54 = vpop.f32.mrb[23].mxu0 }
 0x441   :  { %v6769_v55 = vadd.f32 %v7960_v50, %v6768_v40  ;;  %v6842_v56 = vmul.f32 %v7960_v50, %v7960_v50  ;;  %v7962_v57 = vadd.f32 %v7961_v51, %v6227_v52 }
 0x443   :  { %v6905_v58 = vadd.f32 %v6904_v44, %v6842_v56  ;;  %v7776_v59 = vpack.c.bf16 %v7962_v57, %v7960_v50  ;;  %v6770_v60 = vadd.f32 %v7962_v57, %v6769_v55  ;;  %v6843_v61 = vmul.f32 %v7962_v57, %v7962_v57 }
 0x444   :  { %v5076_v62 = vpop.f32.mrb[24].mxu1 }
 0x445   :  { %7912 = vst [vmem:[%s11253_s3 + $0x28] sm:$0xff] %v7776_v59   ;;  %v6906_v63 = vadd.f32 %v6905_v58, %v6843_v61  ;;  %v7963_v1 = vadd.f32 %v11017_v42, %v5076_v62  ;;  %v6232_v2 = vpop.f32.mrb[24].mxu0  ;;  %v5078_v3 = vpop.f32.mrb[25].mxu1 }
 0x446   :  { %v6234_v0 = vpop.f32.mrb[25].mxu0  ;;  %v5079_v4 = vpop.f32.mrb[26].mxu1 }
 0x447   :  { %v7964_v5 = vadd.f32 %v7963_v1, %v6232_v2  ;;  %v7965_v6 = vadd.f32 %v11017_v42, %v5079_v4  ;;  %v6235_v7 = vpop.f32.mrb[26].mxu0  ;;  %v5081_v8 = vpop.f32.mrb[27].mxu1 }
 0x448   :  { %v6237_v9 = vpop.f32.mrb[27].mxu0 }
 0x449   :  { %v6771_v10 = vadd.f32 %v7964_v5, %v6770_v60  ;;  %v6844_v11 = vmul.f32 %v7964_v5, %v7964_v5  ;;  %v7966_v12 = vadd.f32 %v7965_v6, %v6235_v7 }
 0x44b   :  { %v6907_v13 = vadd.f32 %v6906_v63, %v6844_v11  ;;  %v7781_v14 = vpack.c.bf16 %v7966_v12, %v7964_v5  ;;  %v6772_v15 = vadd.f32 %v7966_v12, %v6771_v10  ;;  %v6845_v16 = vmul.f32 %v7966_v12, %v7966_v12 }
 0x44c   :  { %v5084_v17 = vpop.f32.mrb[28].mxu1 }
 0x44d   :  { %7913 = vst [vmem:[%s11253_s3 + $0x30] sm:$0xff] %v7781_v14   ;;  %v6908_v18 = vadd.f32 %v6907_v13, %v6845_v16  ;;  %v7967_v19 = vadd.f32 %v11017_v42, %v5084_v17  ;;  %v6240_v20 = vpop.f32.mrb[28].mxu0  ;;  %v5086_v21 = vpop.f32.mrb[29].mxu1 }
 0x44e   :  { %v6242_v22 = vpop.f32.mrb[29].mxu0  ;;  %v5087_v23 = vpop.f32.mrb[30].mxu1 }
 0x44f   :  { %v7968_v24 = vadd.f32 %v7967_v19, %v6240_v20  ;;  %v7969_v25 = vadd.f32 %v11017_v42, %v5087_v23  ;;  %v6243_v26 = vpop.f32.mrb[30].mxu0  ;;  %v5089_v27 = vpop.f32.mrb[31].mxu1 }
 0x450   :  { %v6245_v28 = vpop.f32.mrb[31].mxu0 }
 0x451   :  { %v6773_v29 = vadd.f32 %v7968_v24, %v6772_v15  ;;  %v6846_v30 = vmul.f32 %v7968_v24, %v7968_v24  ;;  %v7970_v31 = vadd.f32 %v7969_v25, %v6243_v26 }
 0x453   :  { %v6909_v32 = vadd.f32 %v6908_v18, %v6846_v30  ;;  %v7786_v33 = vpack.c.bf16 %v7970_v31, %v7968_v24  ;;  %v6774_v34 = vadd.f32 %v7970_v31, %v6773_v29  ;;  %v6847_v35 = vmul.f32 %v7970_v31, %v7970_v31 }
 0x454   :  { %v5092_v36 = vpop.f32.mrb[32].mxu1 }
 0x455   :  { %7914 = vst [vmem:[%s11253_s3 + $0x38] sm:$0xff] %v7786_v33   ;;  %v6910_v37 = vadd.f32 %v6909_v32, %v6847_v35  ;;  %v7971_v38 = vadd.f32 %v11017_v42, %v5092_v36  ;;  %v6248_v39 = vpop.f32.mrb[32].mxu0  ;;  %v5094_v40 = vpop.f32.mrb[33].mxu1 }
 0x456   :  { %v6250_v41 = vpop.f32.mrb[33].mxu0  ;;  %v5095_v43 = vpop.f32.mrb[34].mxu1 }
 0x457   :  { %v7972_v44 = vadd.f32 %v7971_v38, %v6248_v39  ;;  %v7973_v45 = vadd.f32 %v11017_v42, %v5095_v43  ;;  %v6251_v46 = vpop.f32.mrb[34].mxu0  ;;  %v5097_v47 = vpop.f32.mrb[35].mxu1 }
 0x458   :  { %v6253_v48 = vpop.f32.mrb[35].mxu0 }
 0x459   :  { %v6775_v49 = vadd.f32 %v7972_v44, %v6774_v34  ;;  %v6848_v50 = vmul.f32 %v7972_v44, %v7972_v44  ;;  %v7974_v51 = vadd.f32 %v7973_v45, %v6251_v46 }
 0x45b   :  { %v6911_v52 = vadd.f32 %v6910_v37, %v6848_v50  ;;  %v7791_v53 = vpack.c.bf16 %v7974_v51, %v7972_v44  ;;  %v6776_v54 = vadd.f32 %v7974_v51, %v6775_v49  ;;  %v6849_v55 = vmul.f32 %v7974_v51, %v7974_v51 }
 0x45c   :  { %v5100_v56 = vpop.f32.mrb[36].mxu1 }
 0x45d   :  { %7915 = vst [vmem:[%s11253_s3 + $0x40] sm:$0xff] %v7791_v53   ;;  %v6912_v57 = vadd.f32 %v6911_v52, %v6849_v55  ;;  %v7975_v58 = vadd.f32 %v11017_v42, %v5100_v56  ;;  %v6256_v59 = vpop.f32.mrb[36].mxu0  ;;  %v5102_v60 = vpop.f32.mrb[37].mxu1 }
 0x45e   :  { %v6258_v61 = vpop.f32.mrb[37].mxu0  ;;  %v5103_v62 = vpop.f32.mrb[38].mxu1 }
 0x45f   :  { %v7976_v63 = vadd.f32 %v7975_v58, %v6256_v59  ;;  %v7977_v1 = vadd.f32 %v11017_v42, %v5103_v62  ;;  %v6259_v2 = vpop.f32.mrb[38].mxu0  ;;  %v5105_v3 = vpop.f32.mrb[39].mxu1 }
 0x460   :  { %v6261_v0 = vpop.f32.mrb[39].mxu0 }
 0x461   :  { %v6777_v4 = vadd.f32 %v7976_v63, %v6776_v54  ;;  %v6850_v5 = vmul.f32 %v7976_v63, %v7976_v63  ;;  %v7978_v6 = vadd.f32 %v7977_v1, %v6259_v2 }
 0x463   :  { %v6913_v7 = vadd.f32 %v6912_v57, %v6850_v5  ;;  %v7796_v8 = vpack.c.bf16 %v7978_v6, %v7976_v63  ;;  %v6778_v9 = vadd.f32 %v7978_v6, %v6777_v4  ;;  %v6851_v10 = vmul.f32 %v7978_v6, %v7978_v6 }
 0x464   :  { %v5108_v11 = vpop.f32.mrb[40].mxu1 }
 0x465   :  { %7916 = vst [vmem:[%s11253_s3 + $0x48] sm:$0xff] %v7796_v8   ;;  %v6914_v12 = vadd.f32 %v6913_v7, %v6851_v10  ;;  %v7979_v13 = vadd.f32 %v11017_v42, %v5108_v11  ;;  %v6264_v14 = vpop.f32.mrb[40].mxu0  ;;  %v5110_v15 = vpop.f32.mrb[41].mxu1 }
 0x466   :  { %v6266_v16 = vpop.f32.mrb[41].mxu0  ;;  %v5111_v17 = vpop.f32.mrb[42].mxu1 }
 0x467   :  { %v7980_v18 = vadd.f32 %v7979_v13, %v6264_v14  ;;  %v7981_v19 = vadd.f32 %v11017_v42, %v5111_v17  ;;  %v6267_v20 = vpop.f32.mrb[42].mxu0  ;;  %v5113_v21 = vpop.f32.mrb[43].mxu1 }
 0x468   :  { %v6269_v22 = vpop.f32.mrb[43].mxu0 }
 0x469   :  { %v6779_v23 = vadd.f32 %v7980_v18, %v6778_v9  ;;  %v6852_v24 = vmul.f32 %v7980_v18, %v7980_v18  ;;  %v7982_v25 = vadd.f32 %v7981_v19, %v6267_v20 }
 0x46b   :  { %v6915_v26 = vadd.f32 %v6914_v12, %v6852_v24  ;;  %v7801_v27 = vpack.c.bf16 %v7982_v25, %v7980_v18  ;;  %v6780_v28 = vadd.f32 %v7982_v25, %v6779_v23  ;;  %v6853_v29 = vmul.f32 %v7982_v25, %v7982_v25 }
 0x46c   :  { %v5116_v30 = vpop.f32.mrb[44].mxu1 }
 0x46d   :  { %7917 = vst [vmem:[%s11253_s3 + $0x50] sm:$0xff] %v7801_v27   ;;  %v6916_v31 = vadd.f32 %v6915_v26, %v6853_v29  ;;  %v7983_v32 = vadd.f32 %v11017_v42, %v5116_v30  ;;  %v6272_v33 = vpop.f32.mrb[44].mxu0  ;;  %v5118_v34 = vpop.f32.mrb[45].mxu1 }
 0x46e   :  { %v6274_v35 = vpop.f32.mrb[45].mxu0  ;;  %v5119_v36 = vpop.f32.mrb[46].mxu1 }
 0x46f   :  { %v7984_v37 = vadd.f32 %v7983_v32, %v6272_v33  ;;  %v7985_v38 = vadd.f32 %v11017_v42, %v5119_v36  ;;  %v6275_v39 = vpop.f32.mrb[46].mxu0  ;;  %v5121_v40 = vpop.f32.mrb[47].mxu1 }
 0x470   :  { %v6277_v41 = vpop.f32.mrb[47].mxu0 }
 0x471   :  { %v6781_v43 = vadd.f32 %v7984_v37, %v6780_v28  ;;  %v6854_v44 = vmul.f32 %v7984_v37, %v7984_v37  ;;  %v7986_v45 = vadd.f32 %v7985_v38, %v6275_v39 }
 0x473   :  { %v6917_v46 = vadd.f32 %v6916_v31, %v6854_v44  ;;  %v7806_v47 = vpack.c.bf16 %v7986_v45, %v7984_v37  ;;  %v6782_v48 = vadd.f32 %v7986_v45, %v6781_v43  ;;  %v6855_v49 = vmul.f32 %v7986_v45, %v7986_v45 }
 0x474   :  { %v5124_v50 = vpop.f32.mrb[48].mxu1 }
 0x475   :  { %7918 = vst [vmem:[%s11253_s3 + $0x58] sm:$0xff] %v7806_v47   ;;  %v6918_v51 = vadd.f32 %v6917_v46, %v6855_v49  ;;  %v7987_v52 = vadd.f32 %v11017_v42, %v5124_v50  ;;  %v6280_v53 = vpop.f32.mrb[48].mxu0  ;;  %v5126_v54 = vpop.f32.mrb[49].mxu1 }
 0x476   :  { %v6282_v55 = vpop.f32.mrb[49].mxu0  ;;  %v5127_v56 = vpop.f32.mrb[50].mxu1 }
 0x477   :  { %v7988_v57 = vadd.f32 %v7987_v52, %v6280_v53  ;;  %v7989_v58 = vadd.f32 %v11017_v42, %v5127_v56  ;;  %v6283_v59 = vpop.f32.mrb[50].mxu0  ;;  %v5129_v60 = vpop.f32.mrb[51].mxu1 }
 0x478   :  { %v6285_v61 = vpop.f32.mrb[51].mxu0 }
 0x479   :  { %v6783_v62 = vadd.f32 %v7988_v57, %v6782_v48  ;;  %v6856_v63 = vmul.f32 %v7988_v57, %v7988_v57  ;;  %v7990_v1 = vadd.f32 %v7989_v58, %v6283_v59 }
 0x47b   :  { %v6919_v2 = vadd.f32 %v6918_v51, %v6856_v63  ;;  %v7811_v3 = vpack.c.bf16 %v7990_v1, %v7988_v57  ;;  %v6784_v0 = vadd.f32 %v7990_v1, %v6783_v62  ;;  %v6857_v4 = vmul.f32 %v7990_v1, %v7990_v1 }
 0x47c   :  { %v5132_v5 = vpop.f32.mrb[52].mxu1 }
 0x47d   :  { %7919 = vst [vmem:[%s11253_s3 + $0x60] sm:$0xff] %v7811_v3   ;;  %v6920_v6 = vadd.f32 %v6919_v2, %v6857_v4  ;;  %v7991_v7 = vadd.f32 %v11017_v42, %v5132_v5  ;;  %v6288_v8 = vpop.f32.mrb[52].mxu0  ;;  %v5134_v9 = vpop.f32.mrb[53].mxu1  ;;  %v8967_v4 = vmov 0.0  }
 0x47e   :  { %v6290_v10 = vpop.f32.mrb[53].mxu0  ;;  %v5135_v11 = vpop.f32.mrb[54].mxu1  ;;  %22 = vst [vmem:[%s11254_s4] sm:$0x1] %v8967_v4  ;;  %23 = vst [vmem:[%s11255_s5] sm:$0x1] %v8967_v4 }
 0x47f   :  { %v7992_v12 = vadd.f32 %v7991_v7, %v6288_v8  ;;  %v7993_v13 = vadd.f32 %v11017_v42, %v5135_v11  ;;  %v6291_v14 = vpop.f32.mrb[54].mxu0  ;;  %v5137_v15 = vpop.f32.mrb[55].mxu1 }
 0x480   :  { %v6293_v16 = vpop.f32.mrb[55].mxu0 }
 0x481   :  { %v6785_v17 = vadd.f32 %v7992_v12, %v6784_v0  ;;  %v6858_v18 = vmul.f32 %v7992_v12, %v7992_v12  ;;  %v7994_v19 = vadd.f32 %v7993_v13, %v6291_v14 }
 0x483   :  { %v6921_v20 = vadd.f32 %v6920_v6, %v6858_v18  ;;  %v7816_v21 = vpack.c.bf16 %v7994_v19, %v7992_v12  ;;  %v6786_v22 = vadd.f32 %v7994_v19, %v6785_v17  ;;  %v6859_v23 = vmul.f32 %v7994_v19, %v7994_v19 }
 0x484   :  { %v5140_v24 = vpop.f32.mrb[56].mxu1 }
 0x485   :  { %7920 = vst [vmem:[%s11253_s3 + $0x68] sm:$0xff] %v7816_v21   ;;  %v6922_v25 = vadd.f32 %v6921_v20, %v6859_v23  ;;  %v7995_v26 = vadd.f32 %v11017_v42, %v5140_v24  ;;  %v6296_v27 = vpop.f32.mrb[56].mxu0  ;;  %v5142_v28 = vpop.f32.mrb[57].mxu1 }
 0x486   :  { %v6298_v29 = vpop.f32.mrb[57].mxu0  ;;  %v5143_v30 = vpop.f32.mrb[58].mxu1 }
 0x487   :  { %v7996_v31 = vadd.f32 %v7995_v26, %v6296_v27  ;;  %v7997_v32 = vadd.f32 %v11017_v42, %v5143_v30  ;;  %v6299_v33 = vpop.f32.mrb[58].mxu0  ;;  %v5145_v34 = vpop.f32.mrb[59].mxu1 }
 0x488   :  { %v6301_v35 = vpop.f32.mrb[59].mxu0 }
 0x489   :  { %v6787_v36 = vadd.f32 %v7996_v31, %v6786_v22  ;;  %v6860_v37 = vmul.f32 %v7996_v31, %v7996_v31  ;;  %v7998_v38 = vadd.f32 %v7997_v32, %v6299_v33 }
 0x48b   :  { %v6923_v39 = vadd.f32 %v6922_v25, %v6860_v37  ;;  %v7821_v40 = vpack.c.bf16 %v7998_v38, %v7996_v31  ;;  %v6788_v41 = vadd.f32 %v7998_v38, %v6787_v36  ;;  %v6861_v43 = vmul.f32 %v7998_v38, %v7998_v38 }
 0x48c   :  { %v5148_v44 = vpop.f32.mrb[60].mxu1 }
 0x48d   :  { %7921 = vst [vmem:[%s11253_s3 + $0x70] sm:$0xff] %v7821_v40   ;;  %v6924_v45 = vadd.f32 %v6923_v39, %v6861_v43  ;;  %v7999_v46 = vadd.f32 %v11017_v42, %v5148_v44  ;;  %v6304_v47 = vpop.f32.mrb[60].mxu0  ;;  %v5150_v48 = vpop.f32.mrb[61].mxu1 }
 0x48e   :  { %v6306_v49 = vpop.f32.mrb[61].mxu0  ;;  %v5151_v50 = vpop.f32.mrb[62].mxu1 }
 0x48f   :  { %v8000_v51 = vadd.f32 %v7999_v46, %v6304_v47  ;;  %v8001_v52 = vadd.f32 %v11017_v42, %v5151_v50  ;;  %v6307_v53 = vpop.f32.mrb[62].mxu0  ;;  %v5153_v54 = vpop.f32.mrb[63].mxu1 }
 0x490   :  { %v6309_v55 = vpop.f32.mrb[63].mxu0 }
 0x491   :  { %v6789_v56 = vadd.f32 %v8000_v51, %v6788_v41  ;;  %v6862_v57 = vmul.f32 %v8000_v51, %v8000_v51  ;;  %v8002_v58 = vadd.f32 %v8001_v52, %v6307_v53 }
 0x493   :  { %v6925_v59 = vadd.f32 %v6924_v45, %v6862_v57  ;;  %v7826_v60 = vpack.c.bf16 %v8002_v58, %v8000_v51  ;;  %v6790_v61 = vadd.f32 %v8002_v58, %v6789_v56  ;;  %v6863_v62 = vmul.f32 %v8002_v58, %v8002_v58 }
 0x494   :  { %v5156_v63 = vpop.f32.mrb[64].mxu1 }
 0x495   :  { %7922 = vst [vmem:[%s11253_s3 + $0x78] sm:$0xff] %v7826_v60   ;;  %v6926_v1 = vadd.f32 %v6925_v59, %v6863_v62  ;;  %v8003_v2 = vadd.f32 %v11017_v42, %v5156_v63  ;;  %v6312_v3 = vpop.f32.mrb[64].mxu0  ;;  %v5158_v0 = vpop.f32.mrb[65].mxu1 }
 0x496   :  { %v6314_v5 = vpop.f32.mrb[65].mxu0  ;;  %v5159_v6 = vpop.f32.mrb[66].mxu1 }
 0x497   :  { %v8004_v7 = vadd.f32 %v8003_v2, %v6312_v3  ;;  %v8005_v8 = vadd.f32 %v11017_v42, %v5159_v6  ;;  %v6315_v9 = vpop.f32.mrb[66].mxu0  ;;  %v5161_v10 = vpop.f32.mrb[67].mxu1 }
 0x498   :  { %v6317_v11 = vpop.f32.mrb[67].mxu0 }
 0x499   :  { %v6791_v12 = vadd.f32 %v8004_v7, %v6790_v61  ;;  %v6864_v13 = vmul.f32 %v8004_v7, %v8004_v7  ;;  %v8006_v14 = vadd.f32 %v8005_v8, %v6315_v9 }
 0x49b   :  { %v6927_v15 = vadd.f32 %v6926_v1, %v6864_v13  ;;  %v7831_v16 = vpack.c.bf16 %v8006_v14, %v8004_v7  ;;  %v6792_v17 = vadd.f32 %v8006_v14, %v6791_v12  ;;  %v6865_v18 = vmul.f32 %v8006_v14, %v8006_v14 }
 0x49c   :  { %v5164_v19 = vpop.f32.mrb[68].mxu1 }
 0x49d   :  { %7923 = vst [vmem:[%s11253_s3 + $0x80] sm:$0xff] %v7831_v16   ;;  %v6928_v20 = vadd.f32 %v6927_v15, %v6865_v18  ;;  %v8007_v21 = vadd.f32 %v11017_v42, %v5164_v19  ;;  %v6320_v22 = vpop.f32.mrb[68].mxu0  ;;  %v5166_v23 = vpop.f32.mrb[69].mxu1 }
 0x49e   :  { %v6322_v24 = vpop.f32.mrb[69].mxu0  ;;  %v5167_v25 = vpop.f32.mrb[70].mxu1 }
 0x49f   :  { %v8008_v26 = vadd.f32 %v8007_v21, %v6320_v22  ;;  %v8009_v27 = vadd.f32 %v11017_v42, %v5167_v25  ;;  %v6323_v28 = vpop.f32.mrb[70].mxu0  ;;  %v5169_v29 = vpop.f32.mrb[71].mxu1 }
 0x4a0   :  { %v6325_v30 = vpop.f32.mrb[71].mxu0 }
 0x4a1   :  { %v6793_v31 = vadd.f32 %v8008_v26, %v6792_v17  ;;  %v6866_v32 = vmul.f32 %v8008_v26, %v8008_v26  ;;  %v8010_v33 = vadd.f32 %v8009_v27, %v6323_v28 }
 0x4a3   :  { %v6929_v34 = vadd.f32 %v6928_v20, %v6866_v32  ;;  %v7836_v35 = vpack.c.bf16 %v8010_v33, %v8008_v26  ;;  %v6794_v36 = vadd.f32 %v8010_v33, %v6793_v31  ;;  %v6867_v37 = vmul.f32 %v8010_v33, %v8010_v33 }
 0x4a4   :  { %v5172_v38 = vpop.f32.mrb[72].mxu1 }
 0x4a5   :  { %7924 = vst [vmem:[%s11253_s3 + $0x88] sm:$0xff] %v7836_v35   ;;  %v6930_v39 = vadd.f32 %v6929_v34, %v6867_v37  ;;  %v8011_v40 = vadd.f32 %v11017_v42, %v5172_v38  ;;  %v6328_v41 = vpop.f32.mrb[72].mxu0  ;;  %v5174_v43 = vpop.f32.mrb[73].mxu1 }
 0x4a6   :  { %v6330_v44 = vpop.f32.mrb[73].mxu0  ;;  %v5175_v45 = vpop.f32.mrb[74].mxu1 }
 0x4a7   :  { %v8012_v46 = vadd.f32 %v8011_v40, %v6328_v41  ;;  %v8013_v47 = vadd.f32 %v11017_v42, %v5175_v45  ;;  %v6331_v48 = vpop.f32.mrb[74].mxu0  ;;  %v5177_v49 = vpop.f32.mrb[75].mxu1 }
 0x4a8   :  { %v6333_v50 = vpop.f32.mrb[75].mxu0 }
 0x4a9   :  { %v6795_v51 = vadd.f32 %v8012_v46, %v6794_v36  ;;  %v6868_v52 = vmul.f32 %v8012_v46, %v8012_v46  ;;  %v8014_v53 = vadd.f32 %v8013_v47, %v6331_v48 }
 0x4ab   :  { %v6931_v54 = vadd.f32 %v6930_v39, %v6868_v52  ;;  %v7841_v55 = vpack.c.bf16 %v8014_v53, %v8012_v46  ;;  %v6796_v56 = vadd.f32 %v8014_v53, %v6795_v51  ;;  %v6869_v57 = vmul.f32 %v8014_v53, %v8014_v53 }
 0x4ac   :  { %v5180_v58 = vpop.f32.mrb[76].mxu1 }
 0x4ad   :  { %7925 = vst [vmem:[%s11253_s3 + $0x90] sm:$0xff] %v7841_v55   ;;  %v6932_v59 = vadd.f32 %v6931_v54, %v6869_v57  ;;  %v8015_v60 = vadd.f32 %v11017_v42, %v5180_v58  ;;  %v6336_v61 = vpop.f32.mrb[76].mxu0  ;;  %v5182_v62 = vpop.f32.mrb[77].mxu1 }
 0x4ae   :  { %v6338_v63 = vpop.f32.mrb[77].mxu0  ;;  %v5183_v1 = vpop.f32.mrb[78].mxu1 }
 0x4af   :  { %v8016_v2 = vadd.f32 %v8015_v60, %v6336_v61  ;;  %v8017_v3 = vadd.f32 %v11017_v42, %v5183_v1  ;;  %v6339_v0 = vpop.f32.mrb[78].mxu0  ;;  %v5185_v4 = vpop.f32.mrb[79].mxu1 }
 0x4b0   :  { %v6341_v5 = vpop.f32.mrb[79].mxu0 }
 0x4b1   :  { %v6797_v6 = vadd.f32 %v8016_v2, %v6796_v56  ;;  %v6870_v7 = vmul.f32 %v8016_v2, %v8016_v2  ;;  %v8018_v8 = vadd.f32 %v8017_v3, %v6339_v0 }
 0x4b3   :  { %v6933_v9 = vadd.f32 %v6932_v59, %v6870_v7  ;;  %v7846_v10 = vpack.c.bf16 %v8018_v8, %v8016_v2  ;;  %v6798_v11 = vadd.f32 %v8018_v8, %v6797_v6  ;;  %v6871_v12 = vmul.f32 %v8018_v8, %v8018_v8 }
 0x4b4   :  { %v5188_v13 = vpop.f32.mrb[80].mxu1 }
 0x4b5   :  { %7926 = vst [vmem:[%s11253_s3 + $0x98] sm:$0xff] %v7846_v10   ;;  %v6934_v14 = vadd.f32 %v6933_v9, %v6871_v12  ;;  %v8019_v15 = vadd.f32 %v11017_v42, %v5188_v13  ;;  %v6344_v16 = vpop.f32.mrb[80].mxu0  ;;  %v5190_v17 = vpop.f32.mrb[81].mxu1 }
 0x4b6   :  { %v6346_v18 = vpop.f32.mrb[81].mxu0  ;;  %v5191_v19 = vpop.f32.mrb[82].mxu1 }
 0x4b7   :  { %v8020_v20 = vadd.f32 %v8019_v15, %v6344_v16  ;;  %v8021_v21 = vadd.f32 %v11017_v42, %v5191_v19  ;;  %v6347_v22 = vpop.f32.mrb[82].mxu0  ;;  %v5193_v23 = vpop.f32.mrb[83].mxu1 }
 0x4b8   :  { %v6349_v24 = vpop.f32.mrb[83].mxu0 }
 0x4b9   :  { %v6799_v25 = vadd.f32 %v8020_v20, %v6798_v11  ;;  %v6872_v26 = vmul.f32 %v8020_v20, %v8020_v20  ;;  %v8022_v27 = vadd.f32 %v8021_v21, %v6347_v22 }
 0x4bb   :  { %v6935_v28 = vadd.f32 %v6934_v14, %v6872_v26  ;;  %v7851_v29 = vpack.c.bf16 %v8022_v27, %v8020_v20  ;;  %v6800_v30 = vadd.f32 %v8022_v27, %v6799_v25  ;;  %v6873_v31 = vmul.f32 %v8022_v27, %v8022_v27 }
 0x4bc   :  { %v5196_v32 = vpop.f32.mrb[84].mxu1 }
 0x4bd   :  { %7927 = vst [vmem:[%s11253_s3 + $0xa0] sm:$0xff] %v7851_v29   ;;  %v6936_v33 = vadd.f32 %v6935_v28, %v6873_v31  ;;  %v8023_v34 = vadd.f32 %v11017_v42, %v5196_v32  ;;  %v6352_v35 = vpop.f32.mrb[84].mxu0  ;;  %v5198_v36 = vpop.f32.mrb[85].mxu1 }
 0x4be   :  { %v6354_v37 = vpop.f32.mrb[85].mxu0  ;;  %v5199_v38 = vpop.f32.mrb[86].mxu1 }
 0x4bf   :  { %v8024_v39 = vadd.f32 %v8023_v34, %v6352_v35  ;;  %v8025_v40 = vadd.f32 %v11017_v42, %v5199_v38  ;;  %v6355_v41 = vpop.f32.mrb[86].mxu0  ;;  %v5201_v43 = vpop.f32.mrb[87].mxu1 }
 0x4c0   :  { %v6357_v44 = vpop.f32.mrb[87].mxu0 }
 0x4c1   :  { %v6801_v45 = vadd.f32 %v8024_v39, %v6800_v30  ;;  %v6874_v46 = vmul.f32 %v8024_v39, %v8024_v39  ;;  %v8026_v47 = vadd.f32 %v8025_v40, %v6355_v41 }
 0x4c3   :  { %v6937_v48 = vadd.f32 %v6936_v33, %v6874_v46  ;;  %v7856_v49 = vpack.c.bf16 %v8026_v47, %v8024_v39  ;;  %v6802_v50 = vadd.f32 %v8026_v47, %v6801_v45  ;;  %v6875_v51 = vmul.f32 %v8026_v47, %v8026_v47 }
 0x4c4   :  { %v5204_v52 = vpop.f32.mrb[88].mxu1 }
 0x4c5   :  { %7928 = vst [vmem:[%s11253_s3 + $0xa8] sm:$0xff] %v7856_v49   ;;  %v6938_v53 = vadd.f32 %v6937_v48, %v6875_v51  ;;  %v8027_v54 = vadd.f32 %v11017_v42, %v5204_v52  ;;  %v6360_v55 = vpop.f32.mrb[88].mxu0  ;;  %v5206_v56 = vpop.f32.mrb[89].mxu1 }
 0x4c6   :  { %v6362_v57 = vpop.f32.mrb[89].mxu0  ;;  %v5207_v58 = vpop.f32.mrb[90].mxu1 }
 0x4c7   :  { %v8028_v59 = vadd.f32 %v8027_v54, %v6360_v55  ;;  %v8029_v60 = vadd.f32 %v11017_v42, %v5207_v58  ;;  %v6363_v61 = vpop.f32.mrb[90].mxu0  ;;  %v5209_v62 = vpop.f32.mrb[91].mxu1  ;;  %v11191_v42 = vld [vmem:[%s11252_s2] ss:$0 sm:$0xff] }
 0x4c8   :  { %v6365_v63 = vpop.f32.mrb[91].mxu0 }
 0x4c9   :  { %v6803_v1 = vadd.f32 %v8028_v59, %v6802_v50  ;;  %v6876_v2 = vmul.f32 %v8028_v59, %v8028_v59  ;;  %v8030_v3 = vadd.f32 %v8029_v60, %v6363_v61 }
 0x4cb   :  { %v6939_v0 = vadd.f32 %v6938_v53, %v6876_v2  ;;  %v7861_v4 = vpack.c.bf16 %v8030_v3, %v8028_v59  ;;  %v6804_v5 = vadd.f32 %v8030_v3, %v6803_v1  ;;  %v6877_v6 = vmul.f32 %v8030_v3, %v8030_v3 }
 0x4cc   :  { %v5212_v7 = vpop.f32.mrb[92].mxu1 }
 0x4cd   :  { %7929 = vst [vmem:[%s11253_s3 + $0xb0] sm:$0xff] %v7861_v4   ;;  %v6940_v8 = vadd.f32 %v6939_v0, %v6877_v6  ;;  %v8031_v9 = vadd.f32 %v11191_v42, %v5212_v7  ;;  %v6368_v10 = vpop.f32.mrb[92].mxu0  ;;  %v5214_v11 = vpop.f32.mrb[93].mxu1 }
 0x4ce   :  { %v6370_v12 = vpop.f32.mrb[93].mxu0  ;;  %v5215_v13 = vpop.f32.mrb[94].mxu1 }
 0x4cf   :  { %v8032_v14 = vadd.f32 %v8031_v9, %v6368_v10  ;;  %v8033_v15 = vadd.f32 %v11191_v42, %v5215_v13  ;;  %v6371_v16 = vpop.f32.mrb[94].mxu0  ;;  %v5217_v17 = vpop.f32.mrb[95].mxu1 }
 0x4d0   :  { %v6373_v18 = vpop.f32.mrb[95].mxu0 }
 0x4d1   :  { %v6805_v19 = vadd.f32 %v8032_v14, %v6804_v5  ;;  %v6878_v20 = vmul.f32 %v8032_v14, %v8032_v14  ;;  %v8034_v21 = vadd.f32 %v8033_v15, %v6371_v16 }
 0x4d3   :  { %v6941_v22 = vadd.f32 %v6940_v8, %v6878_v20  ;;  %v7866_v23 = vpack.c.bf16 %v8034_v21, %v8032_v14  ;;  %v6806_v24 = vadd.f32 %v8034_v21, %v6805_v19  ;;  %v6879_v25 = vmul.f32 %v8034_v21, %v8034_v21 }
 0x4d4   :  { %v5220_v26 = vpop.f32.mrb[96].mxu1 }
 0x4d5   :  { %7930 = vst [vmem:[%s11253_s3 + $0xb8] sm:$0xff] %v7866_v23   ;;  %v6942_v27 = vadd.f32 %v6941_v22, %v6879_v25  ;;  %v8035_v28 = vadd.f32 %v11191_v42, %v5220_v26  ;;  %v6376_v29 = vpop.f32.mrb[96].mxu0  ;;  %v5222_v30 = vpop.f32.mrb[97].mxu1 }
 0x4d6   :  { %v6378_v31 = vpop.f32.mrb[97].mxu0  ;;  %v5223_v32 = vpop.f32.mrb[98].mxu1 }
 0x4d7   :  { %v8036_v33 = vadd.f32 %v8035_v28, %v6376_v29  ;;  %v8037_v34 = vadd.f32 %v11191_v42, %v5223_v32  ;;  %v6379_v35 = vpop.f32.mrb[98].mxu0  ;;  %v5225_v36 = vpop.f32.mrb[99].mxu1 }
 0x4d8   :  { %v6381_v37 = vpop.f32.mrb[99].mxu0 }
 0x4d9   :  { %v6807_v38 = vadd.f32 %v8036_v33, %v6806_v24  ;;  %v6880_v39 = vmul.f32 %v8036_v33, %v8036_v33  ;;  %v8038_v40 = vadd.f32 %v8037_v34, %v6379_v35 }
 0x4db   :  { %v6943_v41 = vadd.f32 %v6942_v27, %v6880_v39  ;;  %v7871_v43 = vpack.c.bf16 %v8038_v40, %v8036_v33  ;;  %v6808_v44 = vadd.f32 %v8038_v40, %v6807_v38  ;;  %v6881_v45 = vmul.f32 %v8038_v40, %v8038_v40 }
 0x4dc   :  { %v5228_v46 = vpop.f32.mrb[100].mxu1 }
 0x4dd   :  { %7931 = vst [vmem:[%s11253_s3 + $0xc0] sm:$0xff] %v7871_v43   ;;  %v6944_v47 = vadd.f32 %v6943_v41, %v6881_v45  ;;  %v8039_v48 = vadd.f32 %v11191_v42, %v5228_v46  ;;  %v6384_v49 = vpop.f32.mrb[100].mxu0  ;;  %v5230_v50 = vpop.f32.mrb[101].mxu1 }
 0x4de   :  { %v6386_v51 = vpop.f32.mrb[101].mxu0  ;;  %v5231_v52 = vpop.f32.mrb[102].mxu1 }
 0x4df   :  { %v8040_v53 = vadd.f32 %v8039_v48, %v6384_v49  ;;  %v8041_v54 = vadd.f32 %v11191_v42, %v5231_v52  ;;  %v6387_v55 = vpop.f32.mrb[102].mxu0  ;;  %v5233_v56 = vpop.f32.mrb[103].mxu1 }
 0x4e0   :  { %v6389_v57 = vpop.f32.mrb[103].mxu0 }
 0x4e1   :  { %v6809_v58 = vadd.f32 %v8040_v53, %v6808_v44  ;;  %v6882_v59 = vmul.f32 %v8040_v53, %v8040_v53  ;;  %v8042_v60 = vadd.f32 %v8041_v54, %v6387_v55 }
 0x4e3   :  { %v6945_v61 = vadd.f32 %v6944_v47, %v6882_v59  ;;  %v7876_v62 = vpack.c.bf16 %v8042_v60, %v8040_v53  ;;  %v6810_v63 = vadd.f32 %v8042_v60, %v6809_v58  ;;  %v6883_v1 = vmul.f32 %v8042_v60, %v8042_v60 }
 0x4e4   :  { %v5236_v2 = vpop.f32.mrb[104].mxu1 }
 0x4e5   :  { %7932 = vst [vmem:[%s11253_s3 + $0xc8] sm:$0xff] %v7876_v62   ;;  %v6946_v3 = vadd.f32 %v6945_v61, %v6883_v1  ;;  %v8043_v0 = vadd.f32 %v11191_v42, %v5236_v2  ;;  %v6392_v4 = vpop.f32.mrb[104].mxu0  ;;  %v5238_v5 = vpop.f32.mrb[105].mxu1 }
 0x4e6   :  { %v6394_v6 = vpop.f32.mrb[105].mxu0  ;;  %v5239_v7 = vpop.f32.mrb[106].mxu1 }
 0x4e7   :  { %v8044_v8 = vadd.f32 %v8043_v0, %v6392_v4  ;;  %v8045_v9 = vadd.f32 %v11191_v42, %v5239_v7  ;;  %v6395_v10 = vpop.f32.mrb[106].mxu0  ;;  %v5241_v11 = vpop.f32.mrb[107].mxu1 }
 0x4e8   :  { %v6397_v12 = vpop.f32.mrb[107].mxu0 }
 0x4e9   :  { %v6811_v13 = vadd.f32 %v8044_v8, %v6810_v63  ;;  %v6884_v14 = vmul.f32 %v8044_v8, %v8044_v8  ;;  %v8046_v15 = vadd.f32 %v8045_v9, %v6395_v10 }
 0x4eb   :  { %v6947_v16 = vadd.f32 %v6946_v3, %v6884_v14  ;;  %v7881_v17 = vpack.c.bf16 %v8046_v15, %v8044_v8  ;;  %v6812_v18 = vadd.f32 %v8046_v15, %v6811_v13  ;;  %v6885_v19 = vmul.f32 %v8046_v15, %v8046_v15 }
 0x4ec   :  { %v5244_v20 = vpop.f32.mrb[108].mxu1 }
 0x4ed   :  { %7933 = vst [vmem:[%s11253_s3 + $0xd0] sm:$0xff] %v7881_v17   ;;  %v6948_v21 = vadd.f32 %v6947_v16, %v6885_v19  ;;  %v8047_v22 = vadd.f32 %v11191_v42, %v5244_v20  ;;  %v6400_v23 = vpop.f32.mrb[108].mxu0  ;;  %v5246_v24 = vpop.f32.mrb[109].mxu1 }
 0x4ee   :  { %v6402_v25 = vpop.f32.mrb[109].mxu0  ;;  %v5247_v26 = vpop.f32.mrb[110].mxu1 }
 0x4ef   :  { %v8048_v27 = vadd.f32 %v8047_v22, %v6400_v23  ;;  %v8049_v28 = vadd.f32 %v11191_v42, %v5247_v26  ;;  %v6403_v29 = vpop.f32.mrb[110].mxu0  ;;  %v5249_v30 = vpop.f32.mrb[111].mxu1 }
 0x4f0   :  { %v6405_v31 = vpop.f32.mrb[111].mxu0 }
 0x4f1   :  { %v6813_v32 = vadd.f32 %v8048_v27, %v6812_v18  ;;  %v6886_v33 = vmul.f32 %v8048_v27, %v8048_v27  ;;  %v8050_v34 = vadd.f32 %v8049_v28, %v6403_v29 }
 0x4f3   :  { %v6949_v35 = vadd.f32 %v6948_v21, %v6886_v33  ;;  %v7886_v36 = vpack.c.bf16 %v8050_v34, %v8048_v27  ;;  %v6814_v37 = vadd.f32 %v8050_v34, %v6813_v32  ;;  %v6887_v38 = vmul.f32 %v8050_v34, %v8050_v34 }
 0x4f4   :  { %v5252_v39 = vpop.f32.mrb[112].mxu1 }
 0x4f5   :  { %7934 = vst [vmem:[%s11253_s3 + $0xd8] sm:$0xff] %v7886_v36   ;;  %v6950_v40 = vadd.f32 %v6949_v35, %v6887_v38  ;;  %v8051_v41 = vadd.f32 %v11191_v42, %v5252_v39  ;;  %v6408_v43 = vpop.f32.mrb[112].mxu0  ;;  %v5254_v44 = vpop.f32.mrb[113].mxu1 }
 0x4f6   :  { %v6410_v45 = vpop.f32.mrb[113].mxu0  ;;  %v5255_v46 = vpop.f32.mrb[114].mxu1 }
 0x4f7   :  { %v8052_v47 = vadd.f32 %v8051_v41, %v6408_v43  ;;  %v8053_v48 = vadd.f32 %v11191_v42, %v5255_v46  ;;  %v6411_v49 = vpop.f32.mrb[114].mxu0  ;;  %v5257_v50 = vpop.f32.mrb[115].mxu1 }
 0x4f8   :  { %v6413_v51 = vpop.f32.mrb[115].mxu0 }
 0x4f9   :  { %v6815_v52 = vadd.f32 %v8052_v47, %v6814_v37  ;;  %v6888_v53 = vmul.f32 %v8052_v47, %v8052_v47  ;;  %v8054_v54 = vadd.f32 %v8053_v48, %v6411_v49 }
 0x4fb   :  { %v6951_v55 = vadd.f32 %v6950_v40, %v6888_v53  ;;  %v7891_v56 = vpack.c.bf16 %v8054_v54, %v8052_v47  ;;  %v6816_v57 = vadd.f32 %v8054_v54, %v6815_v52  ;;  %v6889_v58 = vmul.f32 %v8054_v54, %v8054_v54 }
 0x4fc   :  { %v5260_v59 = vpop.f32.mrb[116].mxu1 }
 0x4fd   :  { %7935 = vst [vmem:[%s11253_s3 + $0xe0] sm:$0xff] %v7891_v56   ;;  %v6952_v60 = vadd.f32 %v6951_v55, %v6889_v58  ;;  %v8055_v61 = vadd.f32 %v11191_v42, %v5260_v59  ;;  %v6416_v62 = vpop.f32.mrb[116].mxu0  ;;  %v5262_v63 = vpop.f32.mrb[117].mxu1 }
 0x4fe   :  { %v6418_v1 = vpop.f32.mrb[117].mxu0  ;;  %v5263_v2 = vpop.f32.mrb[118].mxu1 }
 0x4ff   :  { %v8056_v3 = vadd.f32 %v8055_v61, %v6416_v62  ;;  %v8057_v0 = vadd.f32 %v11191_v42, %v5263_v2  ;;  %v6419_v4 = vpop.f32.mrb[118].mxu0  ;;  %v5265_v5 = vpop.f32.mrb[119].mxu1  ;;  %v6759_v62 = vld [vmem:[%s11254_s4] sm:$0x1] }
 0x500   :  { %v6421_v6 = vpop.f32.mrb[119].mxu0  ;;  %v6831_v2 = vld [vmem:[%s11255_s5] sm:$0x1] }
 0x501   :  { %v6817_v7 = vadd.f32 %v8056_v3, %v6816_v57  ;;  %v6890_v8 = vmul.f32 %v8056_v3, %v8056_v3  ;;  %v8058_v9 = vadd.f32 %v8057_v0, %v6419_v4 }
 0x503   :  { %v6953_v10 = vadd.f32 %v6952_v60, %v6890_v8  ;;  %v7896_v11 = vpack.c.bf16 %v8058_v9, %v8056_v3  ;;  %v6818_v12 = vadd.f32 %v8058_v9, %v6817_v7  ;;  %v6891_v13 = vmul.f32 %v8058_v9, %v8058_v9 }
 0x504   :  { %v5268_v14 = vpop.f32.mrb[120].mxu1 }
 0x505   :  { %7936 = vst [vmem:[%s11253_s3 + $0xe8] sm:$0xff] %v7896_v11   ;;  %v6954_v15 = vadd.f32 %v6953_v10, %v6891_v13  ;;  %v8059_v16 = vadd.f32 %v11191_v42, %v5268_v14  ;;  %v6424_v17 = vpop.f32.mrb[120].mxu0  ;;  %v5270_v18 = vpop.f32.mrb[121].mxu1 }
 0x506   :  { %v6426_v19 = vpop.f32.mrb[121].mxu0  ;;  %v5271_v20 = vpop.f32.mrb[122].mxu1 }
 0x507   :  { %v8060_v21 = vadd.f32 %v8059_v16, %v6424_v17  ;;  %v8061_v22 = vadd.f32 %v11191_v42, %v5271_v20  ;;  %v6427_v23 = vpop.f32.mrb[122].mxu0  ;;  %v5273_v24 = vpop.f32.mrb[123].mxu1 }
 0x508   :  { %v6429_v25 = vpop.f32.mrb[123].mxu0 }
 0x509   :  { %v6819_v26 = vadd.f32 %v8060_v21, %v6818_v12  ;;  %v6892_v27 = vmul.f32 %v8060_v21, %v8060_v21  ;;  %v8062_v28 = vadd.f32 %v8061_v22, %v6427_v23 }
 0x50b   :  { %v6955_v29 = vadd.f32 %v6954_v15, %v6892_v27  ;;  %v7901_v30 = vpack.c.bf16 %v8062_v28, %v8060_v21  ;;  %v6820_v31 = vadd.f32 %v8062_v28, %v6819_v26  ;;  %v6893_v32 = vmul.f32 %v8062_v28, %v8062_v28 }
 0x50c   :  { %v5276_v33 = vpop.f32.mrb[124].mxu1 }
 0x50d   :  { %7937 = vst [vmem:[%s11253_s3 + $0xf0] sm:$0xff] %v7901_v30   ;;  %v6956_v34 = vadd.f32 %v6955_v29, %v6893_v32  ;;  %v8063_v35 = vadd.f32 %v11191_v42, %v5276_v33  ;;  %v6432_v36 = vpop.f32.mrb[124].mxu0  ;;  %v5278_v37 = vpop.f32.mrb[125].mxu1 }
 0x50e   :  { %v6434_v38 = vpop.f32.mrb[125].mxu0  ;;  %v5279_v39 = vpop.f32.mrb[126].mxu1 }
 0x50f   :  { %v8064_v40 = vadd.f32 %v8063_v35, %v6432_v36  ;;  %v8065_v41 = vadd.f32 %v11191_v42, %v5279_v39  ;;  %v6435_v43 = vpop.f32.mrb[126].mxu0  ;;  %v5281_v44 = vpop.f32.mrb[127].mxu1 }
 0x510   :  { %v6437_v45 = vpop.f32.mrb[127].mxu0 }
 0x511   :  { %v6821_v46 = vadd.f32 %v8064_v40, %v6820_v31  ;;  %v6894_v47 = vmul.f32 %v8064_v40, %v8064_v40  ;;  %v8066_v48 = vadd.f32 %v8065_v41, %v6435_v43 }
 0x513   :  { %v6957_v49 = vadd.f32 %v6956_v34, %v6894_v47  ;;  %v7906_v50 = vpack.c.bf16 %v8066_v48, %v8064_v40  ;;  %v6822_v51 = vadd.f32 %v8066_v48, %v6821_v46  ;;  %v6895_v52 = vmul.f32 %v8066_v48, %v8066_v48 }
 0x515   :  { %7938 = vst [vmem:[%s11253_s3 + $0xf8] sm:$0xff] %v7906_v50   ;;  %v6823_v53 = vrot.slane %v6822_v51, 4  ;;  %v6958_v54 = vadd.f32 %v6957_v49, %v6895_v52 }
 0x517   :  { %v6824_v55 = vadd.f32 %v6823_v53, %v6822_v51  ;;  %v6959_v56 = vrot.slane %v6958_v54, 4 }
 0x519   :  { %v6825_v57 = vrot.slane %v6824_v55, 2  ;;  %v6960_v42 = vadd.f32 %v6959_v56, %v6958_v54 }
 0x51b   :  { %v6826_v58 = vadd.f32 %v6825_v57, %v6824_v55  ;;  %v6961_v59 = vrot.slane %v6960_v42, 2 }
 0x51d   :  { %v6827_v60 = vrot.slane %v6826_v58, 1  ;;  %v6962_v61 = vadd.f32 %v6961_v59, %v6960_v42 }
 0x51f   :  { %v6828_v63 = vadd.f32 %v6827_v60, %v6826_v58  ;;  %v6963_v1 = vrot.slane %v6962_v61, 1 }
 0x521   :  { %v6829_v3 = vadd.f32 %v6828_v63, %v6759_v62  ;;  %v6964_v0 = vadd.f32 %v6963_v1, %v6962_v61 }
 0x523   :  { %6830 = vst [vmem:[%s11254_s4] sm:$0x1] %v6829_v3  ;;  %v6965_v4 = vadd.f32 %v6964_v0, %v6831_v2 }
 0x525   :  { %6966 = vst [vmem:[%s11255_s5] sm:$0x1] %v6965_v4 }

// kernel: discriminator_forward.10
= control target key start
LH: loop header
LB: loop body
LE: loop exit
PB: predicated region body
PF: predicated region fallthrough
CT: control target
= control target key end

     0   :  { %v163_v4 = vlaneseq  ;;  %s1932_s1 = inlined_call_operand.vmem [shape: f32[1,128], index: 1, kind: input, shape index: {}]   ;;  %s1933_s2 = inlined_call_operand.vmem [shape: f32[1,128], index: 2, kind: input, shape index: {}]   ;;  %s1934_s0 = inlined_call_operand.vmem [shape: bf16[512,128], index: 0, kind: input, shape index: {}]   ;;  %s1935_s3 = inlined_call_operand.vmem [shape: f32[1,128], index: 3, kind: input, shape index: {}]   ;;  %s1936_s4 = inlined_call_operand.vmem [shape: f32[1,128], index: 4, kind: input, shape index: {}]   ;;  %s1937_s5 = inlined_call_operand.vmem [shape: bf16[512,128], index: 5, kind: output, shape index: {}]  }
   0x1   :  { %v20_v0 = vld [vmem:[%s1932_s1] sm:$0x1]  ;;  %v1348_v9 = vld [vmem:[%s1934_s0 + $0x8] sm:$0xff]   ;;  %v1353_v11 = vld [vmem:[%s1934_s0 + $0x10] sm:$0xff]  }
   0x2   :  { %v22_v1 = vld [vmem:[%s1933_s2] sm:$0x1]  ;;  %v1334_v2 = vmul.f32 0.001953125, %v20_v0  ;;  %v1343_v8 = vshrl.u32 %v163_v4, 7  ;;  %v1358_v12 = vld [vmem:[%s1934_s0 + $0x18] sm:$0xff]   ;;  %v1370_v16 = vld [vmem:[%s1934_s0 + $0x28] sm:$0xff]   ;;  %v952_v19 = vunpack.c.l.bf16 %v1348_v9  ;;  %v953_v20 = vunpack.c.h.bf16 %v1348_v9 }
   0x3   :  { %v23_v3 = vmul.f32 0.001953125, %v22_v1  ;;  %v1341_v7 = vld [vmem:[%s1934_s0] sm:$0xff]   ;;  %v1378_v21 = vld [vmem:[%s1934_s0 + $0x30] sm:$0xff]   ;;  %v1383_v22 = vld [vmem:[%s1934_s0 + $0x38] sm:$0xff]   ;;  %v956_v23 = vunpack.c.l.bf16 %v1353_v11  ;;  %v957_v24 = vunpack.c.h.bf16 %v1353_v11  ;;  %v960_v25 = vunpack.c.l.bf16 %v1358_v12 }
   0x4   :  { %v24_v5 = vmul.f32 %v1334_v2, %v1334_v2  ;;  %v948_v13 = vunpack.c.l.bf16 %v1341_v7  ;;  %v949_v14 = vunpack.c.h.bf16 %v1341_v7  ;;  %v1365_v15 = vld [vmem:[%s1934_s0 + $0x20] sm:$0xff]   ;;  %v165_v18 = vsub.s32 0, %v1343_v8  ;;  %v1397_v28 = vld [vmem:[%s1934_s0 + $0x48] sm:$0xff]   ;;  %v1405_v32 = vld [vmem:[%s1934_s0 + $0x50] sm:$0xff]  }
   0x5   :  { %v961_v26 = vunpack.c.h.bf16 %v1358_v12  ;;  %v1392_v27 = vld [vmem:[%s1934_s0 + $0x40] sm:$0xff]   ;;  %v964_v29 = vunpack.c.l.bf16 %v1365_v15  ;;  %v965_v30 = vunpack.c.h.bf16 %v1365_v15  ;;  %v968_v31 = vunpack.c.l.bf16 %v1370_v16  ;;  %v1410_v33 = vld [vmem:[%s1934_s0 + $0x58] sm:$0xff]   ;;  %v1424_v39 = vld [vmem:[%s1934_s0 + $0x68] sm:$0xff]  }
   0x6   :  { %v25_v6 = vsub.f32 %v23_v3, %v24_v5  ;;  %v969_v34 = vunpack.c.h.bf16 %v1370_v16  ;;  %v972_v35 = vunpack.c.l.bf16 %v1378_v21  ;;  %v973_v36 = vunpack.c.h.bf16 %v1378_v21  ;;  %v1419_v38 = vld [vmem:[%s1934_s0 + $0x60] sm:$0xff]   ;;  %v1433_v44 = vld [vmem:[%s1934_s0 + $0x70] sm:$0xff]   ;;  %v1438_v45 = vld [vmem:[%s1934_s0 + $0x78] sm:$0xff]  }
   0x7   :  { %v976_v37 = vunpack.c.l.bf16 %v1383_v22  ;;  %v977_v40 = vunpack.c.h.bf16 %v1383_v22  ;;  %v980_v41 = vunpack.c.l.bf16 %v1392_v27  ;;  %v1447_v50 = vld [vmem:[%s1934_s0 + $0x80] sm:$0xff]   ;;  %v1452_v51 = vld [vmem:[%s1934_s0 + $0x88] sm:$0xff]   ;;  %v1461_v56 = vld [vmem:[%s1934_s0 + $0x90] sm:$0xff]  }
   0x8   :  { %v26_v10 = vmax.f32 %v25_v6, 0.0  ;;  %v1466_v57 = vld [vmem:[%s1934_s0 + $0x98] sm:$0xff]   ;;  %v1475_v62 = vld [vmem:[%s1934_s0 + $0xa0] sm:$0xff]   ;;  %v1480_v63 = vld [vmem:[%s1934_s0 + $0xa8] sm:$0xff]  }
   0x9   :  { %v1489_v5 = vld [vmem:[%s1934_s0 + $0xb0] sm:$0xff]   ;;  %v1494_v6 = vld [vmem:[%s1934_s0 + $0xb8] sm:$0xff]   ;;  %v1503_v4 = vld [vmem:[%s1934_s0 + $0xc0] sm:$0xff]  }
   0xa   :  { %v28_v17 = vadd.f32 1e-05, %v26_v10  ;;  %v1508_v0 = vld [vmem:[%s1934_s0 + $0xc8] sm:$0xff]   ;;  %v27_v10 = vld [vmem:[%s1935_s3] sm:$0x1]  ;;  %v1520_v60 = vld [vmem:[%s1934_s0 + $0xd0] sm:$0xff]  }
   0xb   :  { %v1529_v1 = vld [vmem:[%s1934_s0 + $0xd8] sm:$0xff]   ;;  %v1534_v61 = vld [vmem:[%s1934_s0 + $0xe0] sm:$0xff]   ;;  %v1543_v54 = vld [vmem:[%s1934_s0 + $0xe8] sm:$0xff]  }
   0xc   :  { %1296 = vrsqrt.f32 %v28_v17  ;;  %v1551_v59 = vld [vmem:[%s1934_s0 + $0xf0] sm:$0xff]   ;;  %v1556_v55 = vld [vmem:[%s1934_s0 + $0xf8] sm:$0xff]   ;;  %v1061_v52 = vunpack.c.h.bf16 %v1534_v61  ;;  %v1064_v47 = vunpack.c.l.bf16 %v1543_v54 }
   0xd   :  { %v1068_v43 = vunpack.c.l.bf16 %v1551_v59  ;;  %v1072_v49 = vunpack.c.l.bf16 %v1556_v55  ;;  %v1073_v48 = vunpack.c.h.bf16 %v1556_v55 }
  0x16   :  { %v1297_v3 = vpop.eup %1296 }
  0x17   :  { %v30_v53 = vmul.f32 %v1297_v3, %v27_v10  ;;  %v31_v3 = vld [vmem:[%s1936_s4] sm:$0x1] }
  0x19   :  { %v32_v58 = vmul.f32 %v30_v53, %v1334_v2  ;;  %v1568_v17 = vrot.slane %v30_v53, %v165_v18 }
  0x1b   :  { %v33_v42 = vsub.f32 %v31_v3, %v32_v58  ;;  %v168_v2 = vmul.f32 %v948_v13, %v1568_v17  ;;  %v169_v53 = vmul.f32 %v949_v14, %v1568_v17  ;;  %v170_v46 = vmul.f32 %v952_v19, %v1568_v17 }
  0x1c   :  { %v171_v10 = vmul.f32 %v953_v20, %v1568_v17  ;;  %v172_v58 = vmul.f32 %v956_v23, %v1568_v17  ;;  %v173_v13 = vmul.f32 %v957_v24, %v1568_v17  ;;  %v174_v7 = vmul.f32 %v960_v25, %v1568_v17 }
  0x1d   :  { %v1599_v14 = vrot.slane %v33_v42, %v165_v18  ;;  %v175_v9 = vmul.f32 %v961_v26, %v1568_v17  ;;  %v176_v19 = vmul.f32 %v964_v29, %v1568_v17  ;;  %v177_v11 = vmul.f32 %v965_v30, %v1568_v17 }
  0x1e   :  { %v178_v20 = vmul.f32 %v968_v31, %v1568_v17  ;;  %v179_v8 = vmul.f32 %v969_v34, %v1568_v17  ;;  %v180_v12 = vmul.f32 %v972_v35, %v1568_v17  ;;  %v181_v18 = vmul.f32 %v973_v36, %v1568_v17 }
  0x1f   :  { %v238_v23 = vadd.f32 %v1599_v14, %v168_v2  ;;  %v239_v15 = vadd.f32 %v1599_v14, %v169_v53  ;;  %v240_v24 = vadd.f32 %v1599_v14, %v170_v46  ;;  %v241_v25 = vadd.f32 %v1599_v14, %v171_v10 }
  0x20   :  { %v242_v26 = vadd.f32 %v1599_v14, %v172_v58  ;;  %v243_v16 = vadd.f32 %v1599_v14, %v173_v13  ;;  %v244_v29 = vadd.f32 %v1599_v14, %v174_v7  ;;  %v245_v30 = vadd.f32 %v1599_v14, %v175_v9 }
  0x21   :  { %vm302_vm0 = vcmp.ge.f32.partialorder %v238_v23, 0.0  ;;  %vm303_vm1 = vcmp.ge.f32.partialorder %v239_v15, 0.0  ;;  %v366_v21 = vmul.f32 0.2, %v238_v23  ;;  %v367_v31 = vmul.f32 0.2, %v239_v15 }
  0x22   :  { %vm304_vm2 = vcmp.ge.f32.partialorder %v240_v24, 0.0  ;;  %vm305_vm3 = vcmp.ge.f32.partialorder %v241_v25, 0.0  ;;  %v368_v34 = vmul.f32 0.2, %v240_v24  ;;  %v369_v35 = vmul.f32 0.2, %v241_v25 }
  0x23   :  { %v430_v36 = vsel %vm302_vm0, %v238_v23, %v366_v21  ;;  %v431_v42 = vsel %vm303_vm1, %v239_v15, %v367_v31  ;;  %vm306_vm4 = vcmp.ge.f32.partialorder %v242_v26, 0.0  ;;  %vm307_vm5 = vcmp.ge.f32.partialorder %v243_v16, 0.0 }
  0x24   :  { %v1077_v46 = vpack.c.bf16 %v431_v42, %v430_v36  ;;  %v432_v3 = vsel %vm304_vm2, %v240_v24, %v368_v34  ;;  %v433_v10 = vsel %vm305_vm3, %v241_v25, %v369_v35  ;;  %v370_v2 = vmul.f32 0.2, %v242_v26 }
  0x25   :  { %v1082_v53 = vpack.c.bf16 %v433_v10, %v432_v3  ;;  %v371_v58 = vmul.f32 0.2, %v243_v16  ;;  %vm308_vm6 = vcmp.ge.f32.partialorder %v244_v29, 0.0  ;;  %vm309_vm7 = vcmp.ge.f32.partialorder %v245_v30, 0.0 }
  0x26   :  { %1078 = vst [vmem:[%s1937_s5] sm:$0xff] %v1077_v46   ;;  %v434_v13 = vsel %vm306_vm4, %v242_v26, %v370_v2  ;;  %v372_v7 = vmul.f32 0.2, %v244_v29  ;;  %v373_v9 = vmul.f32 0.2, %v245_v30  ;;  %v246_v23 = vadd.f32 %v1599_v14, %v176_v19 }
  0x27   :  { %1265 = vst [vmem:[%s1937_s5 + $0x8] sm:$0xff] %v1082_v53   ;;  %v435_v15 = vsel %vm307_vm5, %v243_v16, %v371_v58  ;;  %v247_v24 = vadd.f32 %v1599_v14, %v177_v11  ;;  %v248_v25 = vadd.f32 %v1599_v14, %v178_v20  ;;  %v249_v21 = vadd.f32 %v1599_v14, %v179_v8 }
  0x28   :  { %v1087_v31 = vpack.c.bf16 %v435_v15, %v434_v13  ;;  %v436_v34 = vsel %vm308_vm6, %v244_v29, %v372_v7  ;;  %v437_v35 = vsel %vm309_vm7, %v245_v30, %v373_v9  ;;  %vm310_vm8 = vcmp.ge.f32.partialorder %v246_v23, 0.0 }
  0x29   :  { %v1092_v26 = vpack.c.bf16 %v437_v35, %v436_v34  ;;  %vm311_vm9 = vcmp.ge.f32.partialorder %v247_v24, 0.0  ;;  %v374_v36 = vmul.f32 0.2, %v246_v23  ;;  %v375_v42 = vmul.f32 0.2, %v247_v24 }
  0x2a   :  { %1266 = vst [vmem:[%s1937_s5 + $0x10] sm:$0xff] %v1087_v31   ;;  %vm312_vm10 = vcmp.ge.f32.partialorder %v248_v25, 0.0  ;;  %vm313_vm11 = vcmp.ge.f32.partialorder %v249_v21, 0.0  ;;  %v376_v19 = vmul.f32 0.2, %v248_v25  ;;  %v250_v16 = vadd.f32 %v1599_v14, %v180_v12 }
  0x2b   :  { %v377_v11 = vmul.f32 0.2, %v249_v21  ;;  %1267 = vst [vmem:[%s1937_s5 + $0x18] sm:$0xff] %v1092_v26   ;;  %v438_v20 = vsel %vm310_vm8, %v246_v23, %v374_v36  ;;  %v439_v8 = vsel %vm311_vm9, %v247_v24, %v375_v42  ;;  %v251_v29 = vadd.f32 %v1599_v14, %v181_v18 }
  0x2c   :  { %v1097_v30 = vpack.c.bf16 %v439_v8, %v438_v20  ;;  %v440_v46 = vsel %vm312_vm10, %v248_v25, %v376_v19  ;;  %v182_v10 = vmul.f32 %v976_v37, %v1568_v17  ;;  %vm314_vm12 = vcmp.ge.f32.partialorder %v250_v16, 0.0 }
  0x2d   :  { %v441_v3 = vsel %vm313_vm11, %v249_v21, %v377_v11  ;;  %vm315_vm13 = vcmp.ge.f32.partialorder %v251_v29, 0.0  ;;  %v378_v53 = vmul.f32 0.2, %v250_v16  ;;  %v379_v58 = vmul.f32 0.2, %v251_v29 }
  0x2e   :  { %v1102_v2 = vpack.c.bf16 %v441_v3, %v440_v46  ;;  %1268 = vst [vmem:[%s1937_s5 + $0x20] sm:$0xff] %v1097_v30   ;;  %v183_v12 = vmul.f32 %v977_v40, %v1568_v17  ;;  %v252_v18 = vadd.f32 %v1599_v14, %v182_v10  ;;  %v184_v13 = vmul.f32 %v980_v41, %v1568_v17 }
  0x2f   :  { %v442_v37 = vsel %vm314_vm12, %v250_v16, %v378_v53  ;;  %v1938_v7 = vunpack.c.h.bf16 %v1392_v27  ;;  %v1939_v23 = vunpack.c.l.bf16 %v1397_v28  ;;  %v1940_v40 = vunpack.c.h.bf16 %v1397_v28 }
  0x30   :  { %1269 = vst [vmem:[%s1937_s5 + $0x28] sm:$0xff] %v1102_v2   ;;  %v443_v24 = vsel %vm315_vm13, %v251_v29, %v379_v58  ;;  %v253_v41 = vadd.f32 %v1599_v14, %v183_v12  ;;  %vm316_vm14 = vcmp.ge.f32.partialorder %v252_v18, 0.0  ;;  %v380_v25 = vmul.f32 0.2, %v252_v18 }
  0x31   :  { %v185_v9 = vmul.f32 %v1938_v7, %v1568_v17  ;;  %v186_v22 = vmul.f32 %v1939_v23, %v1568_v17  ;;  %v187_v15 = vmul.f32 %v1940_v40, %v1568_v17  ;;  %v1107_v21 = vpack.c.bf16 %v443_v24, %v442_v37 }
  0x32   :  { %v254_v31 = vadd.f32 %v1599_v14, %v184_v13  ;;  %vm317_vm15 = vcmp.ge.f32.partialorder %v253_v41, 0.0  ;;  %v381_v35 = vmul.f32 0.2, %v253_v41  ;;  %v444_v26 = vsel %vm316_vm14, %v252_v18, %v380_v25 }
  0x33   :  { %v255_v34 = vadd.f32 %v1599_v14, %v185_v9  ;;  %v256_v27 = vadd.f32 %v1599_v14, %v186_v22  ;;  %v257_v36 = vadd.f32 %v1599_v14, %v187_v15  ;;  %1270 = vst [vmem:[%s1937_s5 + $0x30] sm:$0xff] %v1107_v21   ;;  %v1941_v3 = vunpack.c.l.bf16 %v1405_v32 }
  0x34   :  { %vm318_vm0 = vcmp.ge.f32.partialorder %v254_v31, 0.0  ;;  %v382_v28 = vmul.f32 0.2, %v254_v31  ;;  %v445_v19 = vsel %vm317_vm15, %v253_v41, %v381_v35  ;;  %v1942_v2 = vunpack.c.h.bf16 %v1405_v32 }
  0x35   :  { %vm319_vm1 = vcmp.ge.f32.partialorder %v255_v34, 0.0  ;;  %v383_v42 = vmul.f32 0.2, %v255_v34  ;;  %vm320_vm2 = vcmp.ge.f32.partialorder %v256_v27, 0.0  ;;  %vm321_vm3 = vcmp.ge.f32.partialorder %v257_v36, 0.0 }
  0x36   :  { %v384_v11 = vmul.f32 0.2, %v256_v27  ;;  %v1112_v20 = vpack.c.bf16 %v445_v19, %v444_v26  ;;  %v446_v8 = vsel %vm318_vm0, %v254_v31, %v382_v28  ;;  %v385_v29 = vmul.f32 0.2, %v257_v36 }
  0x37   :  { %v447_v16 = vsel %vm319_vm1, %v255_v34, %v383_v42  ;;  %v188_v10 = vmul.f32 %v1941_v3, %v1568_v17  ;;  %v189_v53 = vmul.f32 %v1942_v2, %v1568_v17  ;;  %v1943_v12 = vunpack.c.l.bf16 %v1410_v33 }
  0x38   :  { %v1117_v30 = vpack.c.bf16 %v447_v16, %v446_v8  ;;  %v448_v46 = vsel %vm320_vm2, %v256_v27, %v384_v11  ;;  %1271 = vst [vmem:[%s1937_s5 + $0x38] sm:$0xff] %v1112_v20   ;;  %v449_v58 = vsel %vm321_vm3, %v257_v36, %v385_v29  ;;  %v1944_v13 = vunpack.c.h.bf16 %v1410_v33 }
  0x39   :  { %v190_v18 = vmul.f32 %v1943_v12, %v1568_v17  ;;  %v1945_v7 = vunpack.c.l.bf16 %v1419_v38  ;;  %v1122_v32 = vpack.c.bf16 %v449_v58, %v448_v46  ;;  %v258_v23 = vadd.f32 %v1599_v14, %v188_v10 }
  0x3a   :  { %v191_v37 = vmul.f32 %v1944_v13, %v1568_v17  ;;  %1272 = vst [vmem:[%s1937_s5 + $0x40] sm:$0xff] %v1117_v30   ;;  %v259_v22 = vadd.f32 %v1599_v14, %v189_v53  ;;  %v1946_v40 = vunpack.c.h.bf16 %v1419_v38  ;;  %v1947_v25 = vunpack.c.l.bf16 %v1424_v39 }
  0x3b   :  { %v192_v9 = vmul.f32 %v1945_v7, %v1568_v17  ;;  %v260_v33 = vadd.f32 %v1599_v14, %v190_v18  ;;  %1273 = vst [vmem:[%s1937_s5 + $0x48] sm:$0xff] %v1122_v32   ;;  %vm322_vm4 = vcmp.ge.f32.partialorder %v258_v23, 0.0  ;;  %v386_v31 = vmul.f32 0.2, %v258_v23 }
  0x3c   :  { %v193_v15 = vmul.f32 %v1946_v40, %v1568_v17  ;;  %v261_v24 = vadd.f32 %v1599_v14, %v191_v37  ;;  %v194_v21 = vmul.f32 %v1947_v25, %v1568_v17  ;;  %vm323_vm5 = vcmp.ge.f32.partialorder %v259_v22, 0.0 }
  0x3d   :  { %v262_v41 = vadd.f32 %v1599_v14, %v192_v9  ;;  %v387_v34 = vmul.f32 0.2, %v259_v22  ;;  %vm324_vm6 = vcmp.ge.f32.partialorder %v260_v33, 0.0  ;;  %v388_v38 = vmul.f32 0.2, %v260_v33 }
  0x3e   :  { %vm325_vm7 = vcmp.ge.f32.partialorder %v261_v24, 0.0  ;;  %v389_v27 = vmul.f32 0.2, %v261_v24  ;;  %v450_v35 = vsel %vm322_vm4, %v258_v23, %v386_v31  ;;  %v263_v36 = vadd.f32 %v1599_v14, %v193_v15 }
  0x3f   :  { %v451_v26 = vsel %vm323_vm5, %v259_v22, %v387_v34  ;;  %vm326_vm8 = vcmp.ge.f32.partialorder %v262_v41, 0.0  ;;  %v452_v42 = vsel %vm324_vm6, %v260_v33, %v388_v38  ;;  %v390_v11 = vmul.f32 0.2, %v262_v41 }
  0x40   :  { %v1127_v28 = vpack.c.bf16 %v451_v26, %v450_v35  ;;  %v453_v19 = vsel %vm325_vm7, %v261_v24, %v389_v27  ;;  %vm327_vm9 = vcmp.ge.f32.partialorder %v263_v36, 0.0  ;;  %v391_v8 = vmul.f32 0.2, %v263_v36 }
  0x41   :  { %v1132_v20 = vpack.c.bf16 %v453_v19, %v452_v42  ;;  %v1948_v16 = vunpack.c.h.bf16 %v1424_v39  ;;  %v454_v30 = vsel %vm326_vm8, %v262_v41, %v390_v11  ;;  %v264_v46 = vadd.f32 %v1599_v14, %v194_v21 }
  0x42   :  { %1274 = vst [vmem:[%s1937_s5 + $0x50] sm:$0xff] %v1127_v28   ;;  %v1949_v3 = vunpack.c.l.bf16 %v1433_v44  ;;  %v1950_v2 = vunpack.c.h.bf16 %v1433_v44  ;;  %v455_v39 = vsel %vm327_vm9, %v263_v36, %v391_v8  ;;  %v1951_v12 = vunpack.c.l.bf16 %v1438_v45 }
  0x43   :  { %v195_v29 = vmul.f32 %v1948_v16, %v1568_v17  ;;  %1275 = vst [vmem:[%s1937_s5 + $0x58] sm:$0xff] %v1132_v20   ;;  %v1952_v13 = vunpack.c.h.bf16 %v1438_v45  ;;  %v1137_v7 = vpack.c.bf16 %v455_v39, %v454_v30  ;;  %vm328_vm10 = vcmp.ge.f32.partialorder %v264_v46, 0.0 }
  0x44   :  { %v196_v10 = vmul.f32 %v1949_v3, %v1568_v17  ;;  %v197_v53 = vmul.f32 %v1950_v2, %v1568_v17  ;;  %v198_v18 = vmul.f32 %v1951_v12, %v1568_v17  ;;  %v392_v9 = vmul.f32 0.2, %v264_v46 }
  0x45   :  { %v265_v58 = vadd.f32 %v1599_v14, %v195_v29  ;;  %v199_v37 = vmul.f32 %v1952_v13, %v1568_v17  ;;  %1276 = vst [vmem:[%s1937_s5 + $0x60] sm:$0xff] %v1137_v7   ;;  %v1953_v38 = vunpack.c.l.bf16 %v1447_v50  ;;  %v1954_v35 = vunpack.c.h.bf16 %v1447_v50 }
  0x46   :  { %v266_v44 = vadd.f32 %v1599_v14, %v196_v10  ;;  %v267_v23 = vadd.f32 %v1599_v14, %v197_v53  ;;  %v268_v22 = vadd.f32 %v1599_v14, %v198_v18  ;;  %v456_v40 = vsel %vm328_vm10, %v264_v46, %v392_v9 }
  0x47   :  { %vm329_vm11 = vcmp.ge.f32.partialorder %v265_v58, 0.0  ;;  %v393_v32 = vmul.f32 0.2, %v265_v58  ;;  %v269_v45 = vadd.f32 %v1599_v14, %v199_v37  ;;  %v200_v27 = vmul.f32 %v1953_v38, %v1568_v17 }
  0x48   :  { %vm330_vm12 = vcmp.ge.f32.partialorder %v266_v44, 0.0  ;;  %v394_v15 = vmul.f32 0.2, %v266_v44  ;;  %vm331_vm13 = vcmp.ge.f32.partialorder %v267_v23, 0.0  ;;  %v395_v24 = vmul.f32 0.2, %v267_v23 }
  0x49   :  { %v457_v33 = vsel %vm329_vm11, %v265_v58, %v393_v32  ;;  %vm332_vm14 = vcmp.ge.f32.partialorder %v268_v22, 0.0  ;;  %vm333_vm15 = vcmp.ge.f32.partialorder %v269_v45, 0.0  ;;  %v396_v21 = vmul.f32 0.2, %v268_v22 }
  0x4a   :  { %v1142_v41 = vpack.c.bf16 %v457_v33, %v456_v40  ;;  %v458_v25 = vsel %vm330_vm12, %v266_v44, %v394_v15  ;;  %v459_v31 = vsel %vm331_vm13, %v267_v23, %v395_v24  ;;  %v397_v34 = vmul.f32 0.2, %v269_v45 }
  0x4b   :  { %v201_v26 = vmul.f32 %v1954_v35, %v1568_v17  ;;  %v1147_v36 = vpack.c.bf16 %v459_v31, %v458_v25  ;;  %v460_v28 = vsel %vm332_vm14, %v268_v22, %v396_v21  ;;  %v1955_v42 = vunpack.c.l.bf16 %v1452_v51 }
  0x4c   :  { %1277 = vst [vmem:[%s1937_s5 + $0x68] sm:$0xff] %v1142_v41   ;;  %v1956_v11 = vunpack.c.h.bf16 %v1452_v51  ;;  %v461_v8 = vsel %vm333_vm15, %v269_v45, %v397_v34  ;;  %v270_v16 = vadd.f32 %v1599_v14, %v200_v27  ;;  %v1957_v29 = vunpack.c.l.bf16 %v1461_v56 }
  0x4d   :  { %v202_v19 = vmul.f32 %v1955_v42, %v1568_v17  ;;  %v271_v50 = vadd.f32 %v1599_v14, %v201_v26  ;;  %1278 = vst [vmem:[%s1937_s5 + $0x70] sm:$0xff] %v1147_v36   ;;  %v1152_v46 = vpack.c.bf16 %v461_v8, %v460_v28  ;;  %v1958_v51 = vunpack.c.h.bf16 %v1461_v56 }
  0x4e   :  { %v203_v20 = vmul.f32 %v1956_v11, %v1568_v17  ;;  %v204_v30 = vmul.f32 %v1957_v29, %v1568_v17  ;;  %vm334_vm0 = vcmp.ge.f32.partialorder %v270_v16, 0.0  ;;  %v398_v53 = vmul.f32 0.2, %v270_v16 }
  0x4f   :  { %v272_v3 = vadd.f32 %v1599_v14, %v202_v19  ;;  %v205_v2 = vmul.f32 %v1958_v51, %v1568_v17  ;;  %vm335_vm1 = vcmp.ge.f32.partialorder %v271_v50, 0.0  ;;  %v399_v39 = vmul.f32 0.2, %v271_v50  ;;  %1279 = vst [vmem:[%s1937_s5 + $0x78] sm:$0xff] %v1152_v46  }
  0x50   :  { %v273_v10 = vadd.f32 %v1599_v14, %v203_v20  ;;  %v462_v18 = vsel %vm334_vm0, %v270_v16, %v398_v53  ;;  %v274_v37 = vadd.f32 %v1599_v14, %v204_v30  ;;  %v1959_v32 = vunpack.c.l.bf16 %v1466_v57 }
  0x51   :  { %vm336_vm2 = vcmp.ge.f32.partialorder %v272_v3, 0.0  ;;  %v400_v58 = vmul.f32 0.2, %v272_v3  ;;  %v463_v13 = vsel %vm335_vm1, %v271_v50, %v399_v39  ;;  %v275_v7 = vadd.f32 %v1599_v14, %v205_v2 }
  0x52   :  { %vm337_vm3 = vcmp.ge.f32.partialorder %v273_v10, 0.0  ;;  %v401_v12 = vmul.f32 0.2, %v273_v10  ;;  %v1157_v56 = vpack.c.bf16 %v463_v13, %v462_v18  ;;  %v206_v23 = vmul.f32 %v1959_v32, %v1568_v17 }
  0x53   :  { %v464_v9 = vsel %vm336_vm2, %v272_v3, %v400_v58  ;;  %vm338_vm4 = vcmp.ge.f32.partialorder %v274_v37, 0.0  ;;  %vm339_vm5 = vcmp.ge.f32.partialorder %v275_v7, 0.0  ;;  %v402_v40 = vmul.f32 0.2, %v274_v37 }
  0x54   :  { %v465_v44 = vsel %vm337_vm3, %v273_v10, %v401_v12  ;;  %1280 = vst [vmem:[%s1937_s5 + $0x80] sm:$0xff] %v1157_v56   ;;  %v403_v15 = vmul.f32 0.2, %v275_v7  ;;  %v1960_v45 = vunpack.c.h.bf16 %v1466_v57  ;;  %v276_v24 = vadd.f32 %v1599_v14, %v206_v23 }
  0x55   :  { %v1162_v22 = vpack.c.bf16 %v465_v44, %v464_v9  ;;  %v1961_v41 = vunpack.c.l.bf16 %v1475_v62  ;;  %v466_v21 = vsel %vm338_vm4, %v274_v37, %v402_v40  ;;  %v1962_v31 = vunpack.c.h.bf16 %v1475_v62 }
  0x56   :  { %v207_v33 = vmul.f32 %v1960_v45, %v1568_v17  ;;  %v1963_v38 = vunpack.c.l.bf16 %v1480_v63  ;;  %v1964_v27 = vunpack.c.h.bf16 %v1480_v63  ;;  %v467_v26 = vsel %vm339_vm5, %v275_v7, %v403_v15 }
  0x57   :  { %v208_v25 = vmul.f32 %v1961_v41, %v1568_v17  ;;  %1281 = vst [vmem:[%s1937_s5 + $0x88] sm:$0xff] %v1162_v22   ;;  %v209_v34 = vmul.f32 %v1962_v31, %v1568_v17  ;;  %vm340_vm6 = vcmp.ge.f32.partialorder %v276_v24, 0.0  ;;  %v404_v28 = vmul.f32 0.2, %v276_v24 }
  0x58   :  { %v210_v57 = vmul.f32 %v1963_v38, %v1568_v17  ;;  %v211_v35 = vmul.f32 %v1964_v27, %v1568_v17  ;;  %v277_v36 = vadd.f32 %v1599_v14, %v207_v33  ;;  %v1167_v42 = vpack.c.bf16 %v467_v26, %v466_v21 }
  0x59   :  { %v278_v19 = vadd.f32 %v1599_v14, %v208_v25  ;;  %v279_v11 = vadd.f32 %v1599_v14, %v209_v34  ;;  %v468_v8 = vsel %vm340_vm6, %v276_v24, %v404_v28  ;;  %v1965_v39 = vunpack.c.l.bf16 %v1489_v5 }
  0x5a   :  { %v280_v62 = vadd.f32 %v1599_v14, %v210_v57  ;;  %vm341_vm7 = vcmp.ge.f32.partialorder %v277_v36, 0.0  ;;  %v405_v20 = vmul.f32 0.2, %v277_v36  ;;  %v281_v16 = vadd.f32 %v1599_v14, %v211_v35  ;;  %1282 = vst [vmem:[%s1937_s5 + $0x90] sm:$0xff] %v1167_v42  }
  0x5b   :  { %vm342_vm8 = vcmp.ge.f32.partialorder %v278_v19, 0.0  ;;  %vm343_vm9 = vcmp.ge.f32.partialorder %v279_v11, 0.0  ;;  %v406_v63 = vmul.f32 0.2, %v278_v19  ;;  %v407_v50 = vmul.f32 0.2, %v279_v11 }
  0x5c   :  { %v469_v29 = vsel %vm341_vm7, %v277_v36, %v405_v20  ;;  %vm344_vm10 = vcmp.ge.f32.partialorder %v280_v62, 0.0  ;;  %vm345_vm11 = vcmp.ge.f32.partialorder %v281_v16, 0.0  ;;  %v408_v30 = vmul.f32 0.2, %v280_v62 }
  0x5d   :  { %v1172_v46 = vpack.c.bf16 %v469_v29, %v468_v8  ;;  %v470_v3 = vsel %vm342_vm8, %v278_v19, %v406_v63  ;;  %v471_v10 = vsel %vm343_vm9, %v279_v11, %v407_v50  ;;  %v409_v51 = vmul.f32 0.2, %v281_v16 }
  0x5e   :  { %v1177_v2 = vpack.c.bf16 %v471_v10, %v470_v3  ;;  %v472_v53 = vsel %vm344_vm10, %v280_v62, %v408_v30  ;;  %v212_v58 = vmul.f32 %v1965_v39, %v1568_v17  ;;  %v1966_v12 = vunpack.c.h.bf16 %v1489_v5 }
  0x5f   :  { %1283 = vst [vmem:[%s1937_s5 + $0x98] sm:$0xff] %v1172_v46   ;;  %v473_v13 = vsel %vm345_vm11, %v281_v16, %v409_v51  ;;  %v1967_v37 = vunpack.c.l.bf16 %v1494_v6  ;;  %v1968_v56 = vunpack.c.h.bf16 %v1494_v6  ;;  %v1969_v44 = vunpack.c.l.bf16 %v1503_v4 }
  0x60   :  { %v213_v18 = vmul.f32 %v1966_v12, %v1568_v17  ;;  %1284 = vst [vmem:[%s1937_s5 + $0xa0] sm:$0xff] %v1177_v2   ;;  %v1182_v5 = vpack.c.bf16 %v473_v13, %v472_v53  ;;  %v282_v23 = vadd.f32 %v1599_v14, %v212_v58  ;;  %v1970_v40 = vunpack.c.h.bf16 %v1503_v4 }
  0x61   :  { %v214_v7 = vmul.f32 %v1967_v37, %v1568_v17  ;;  %v215_v9 = vmul.f32 %v1968_v56, %v1568_v17  ;;  %v216_v32 = vmul.f32 %v1969_v44, %v1568_v17  ;;  %v1971_v24 = vunpack.c.l.bf16 %v1508_v0 }
  0x62   :  { %v283_v22 = vadd.f32 %v1599_v14, %v213_v18  ;;  %v217_v15 = vmul.f32 %v1970_v40, %v1568_v17  ;;  %1285 = vst [vmem:[%s1937_s5 + $0xa8] sm:$0xff] %v1182_v5   ;;  %vm346_vm12 = vcmp.ge.f32.partialorder %v282_v23, 0.0  ;;  %v410_v25 = vmul.f32 0.2, %v282_v23 }
  0x63   :  { %v284_v6 = vadd.f32 %v1599_v14, %v214_v7  ;;  %v285_v45 = vadd.f32 %v1599_v14, %v215_v9  ;;  %v286_v33 = vadd.f32 %v1599_v14, %v216_v32  ;;  %v218_v41 = vmul.f32 %v1971_v24, %v1568_v17 }
  0x64   :  { %vm347_vm13 = vcmp.ge.f32.partialorder %v283_v22, 0.0  ;;  %v411_v21 = vmul.f32 0.2, %v283_v22  ;;  %v474_v34 = vsel %vm346_vm12, %v282_v23, %v410_v25  ;;  %v287_v57 = vadd.f32 %v1599_v14, %v217_v15 }
  0x65   :  { %vm348_vm14 = vcmp.ge.f32.partialorder %v284_v6, 0.0  ;;  %vm349_vm15 = vcmp.ge.f32.partialorder %v285_v45, 0.0  ;;  %v412_v4 = vmul.f32 0.2, %v284_v6  ;;  %v413_v31 = vmul.f32 0.2, %v285_v45 }
  0x66   :  { %v475_v38 = vsel %vm347_vm13, %v283_v22, %v411_v21  ;;  %vm350_vm0 = vcmp.ge.f32.partialorder %v286_v33, 0.0  ;;  %v414_v36 = vmul.f32 0.2, %v286_v33  ;;  %vm351_vm1 = vcmp.ge.f32.partialorder %v287_v57, 0.0 }
  0x67   :  { %v1187_v27 = vpack.c.bf16 %v475_v38, %v474_v34  ;;  %v476_v35 = vsel %vm348_vm14, %v284_v6, %v412_v4  ;;  %v477_v26 = vsel %vm349_vm15, %v285_v45, %v413_v31  ;;  %v415_v42 = vmul.f32 0.2, %v287_v57 }
  0x68   :  { %v1192_v28 = vpack.c.bf16 %v477_v26, %v476_v35  ;;  %v1972_v19 = vunpack.c.h.bf16 %v1508_v0  ;;  %v478_v62 = vsel %vm350_vm0, %v286_v33, %v414_v36  ;;  %v288_v20 = vadd.f32 %v1599_v14, %v218_v41 }
  0x69   :  { %1286 = vst [vmem:[%s1937_s5 + $0xb0] sm:$0xff] %v1187_v27   ;;  %v1973_v8 = vunpack.c.l.bf16 %v1520_v60  ;;  %v1974_v63 = vunpack.c.h.bf16 %v1520_v60  ;;  %v479_v0 = vsel %vm351_vm1, %v287_v57, %v415_v42  ;;  %v1975_v30 = vunpack.c.l.bf16 %v1529_v1 }
  0x6a   :  { %v219_v11 = vmul.f32 %v1972_v19, %v1568_v17  ;;  %1287 = vst [vmem:[%s1937_s5 + $0xb8] sm:$0xff] %v1192_v28   ;;  %v1976_v3 = vunpack.c.h.bf16 %v1529_v1  ;;  %v1197_v51 = vpack.c.bf16 %v479_v0, %v478_v62  ;;  %vm352_vm2 = vcmp.ge.f32.partialorder %v288_v20, 0.0 }
  0x6b   :  { %v220_v16 = vmul.f32 %v1973_v8, %v1568_v17  ;;  %v221_v50 = vmul.f32 %v1974_v63, %v1568_v17  ;;  %v222_v46 = vmul.f32 %v1975_v30, %v1568_v17  ;;  %v416_v2 = vmul.f32 0.2, %v288_v20 }
  0x6c   :  { %v289_v29 = vadd.f32 %v1599_v14, %v219_v11  ;;  %v223_v10 = vmul.f32 %v1976_v3, %v1568_v17  ;;  %1288 = vst [vmem:[%s1937_s5 + $0xc0] sm:$0xff] %v1197_v51   ;;  %v1977_v5 = vunpack.c.l.bf16 %v1534_v61  ;;  %v225_v22 = vmul.f32 %v1061_v52, %v1568_v17 }
  0x6d   :  { %v290_v60 = vadd.f32 %v1599_v14, %v220_v16  ;;  %v291_v39 = vadd.f32 %v1599_v14, %v221_v50  ;;  %v292_v58 = vadd.f32 %v1599_v14, %v222_v46  ;;  %v480_v12 = vsel %vm352_vm2, %v288_v20, %v416_v2 }
  0x6e   :  { %vm353_vm3 = vcmp.ge.f32.partialorder %v289_v29, 0.0  ;;  %v417_v53 = vmul.f32 0.2, %v289_v29  ;;  %v293_v1 = vadd.f32 %v1599_v14, %v223_v10  ;;  %v224_v23 = vmul.f32 %v1977_v5, %v1568_v17 }
  0x6f   :  { %vm354_vm4 = vcmp.ge.f32.partialorder %v290_v60, 0.0  ;;  %v418_v18 = vmul.f32 0.2, %v290_v60  ;;  %vm355_vm5 = vcmp.ge.f32.partialorder %v291_v39, 0.0  ;;  %v419_v37 = vmul.f32 0.2, %v291_v39 }
  0x70   :  { %v481_v13 = vsel %vm353_vm3, %v289_v29, %v417_v53  ;;  %vm356_vm6 = vcmp.ge.f32.partialorder %v292_v58, 0.0  ;;  %vm357_vm7 = vcmp.ge.f32.partialorder %v293_v1, 0.0  ;;  %v420_v9 = vmul.f32 0.2, %v292_v58 }
  0x71   :  { %v1202_v7 = vpack.c.bf16 %v481_v13, %v480_v12  ;;  %v482_v56 = vsel %vm354_vm4, %v290_v60, %v418_v18  ;;  %v483_v44 = vsel %vm355_vm5, %v291_v39, %v419_v37  ;;  %v421_v32 = vmul.f32 0.2, %v293_v1 }
  0x72   :  { %v1207_v40 = vpack.c.bf16 %v483_v44, %v482_v56  ;;  %v484_v15 = vsel %vm356_vm6, %v292_v58, %v420_v9  ;;  %v226_v6 = vmul.f32 %v1064_v47, %v1568_v17  ;;  %v1978_v45 = vunpack.c.h.bf16 %v1543_v54 }
  0x73   :  { %1289 = vst [vmem:[%s1937_s5 + $0xc8] sm:$0xff] %v1202_v7   ;;  %v485_v24 = vsel %vm357_vm7, %v293_v1, %v421_v32  ;;  %v294_v41 = vadd.f32 %v1599_v14, %v224_v23  ;;  %v295_v61 = vadd.f32 %v1599_v14, %v225_v22  ;;  %v228_v52 = vmul.f32 %v1068_v43, %v1568_v17 }
  0x74   :  { %v227_v33 = vmul.f32 %v1978_v45, %v1568_v17  ;;  %1290 = vst [vmem:[%s1937_s5 + $0xd0] sm:$0xff] %v1207_v40   ;;  %v1212_v25 = vpack.c.bf16 %v485_v24, %v484_v15  ;;  %v296_v47 = vadd.f32 %v1599_v14, %v226_v6  ;;  %v1979_v54 = vunpack.c.h.bf16 %v1551_v59 }
  0x75   :  { %vm358_vm8 = vcmp.ge.f32.partialorder %v294_v41, 0.0  ;;  %vm359_vm9 = vcmp.ge.f32.partialorder %v295_v61, 0.0  ;;  %v422_v31 = vmul.f32 0.2, %v294_v41  ;;  %v423_v34 = vmul.f32 0.2, %v295_v61 }
  0x76   :  { %v297_v21 = vadd.f32 %v1599_v14, %v227_v33  ;;  %v229_v4 = vmul.f32 %v1979_v54, %v1568_v17  ;;  %1291 = vst [vmem:[%s1937_s5 + $0xd8] sm:$0xff] %v1212_v25   ;;  %vm360_vm10 = vcmp.ge.f32.partialorder %v296_v47, 0.0  ;;  %v424_v43 = vmul.f32 0.2, %v296_v47 }
  0x77   :  { %v486_v57 = vsel %vm358_vm8, %v294_v41, %v422_v31  ;;  %v487_v27 = vsel %vm359_vm9, %v295_v61, %v423_v34  ;;  %v298_v35 = vadd.f32 %v1599_v14, %v228_v52  ;;  %v230_v42 = vmul.f32 %v1072_v49, %v1568_v17 }
  0x78   :  { %vm361_vm11 = vcmp.ge.f32.partialorder %v297_v21, 0.0  ;;  %v425_v38 = vmul.f32 0.2, %v297_v21  ;;  %v299_v26 = vadd.f32 %v1599_v14, %v229_v4  ;;  %v1217_v59 = vpack.c.bf16 %v487_v27, %v486_v57 }
  0x79   :  { %v488_v36 = vsel %vm360_vm10, %v296_v47, %v424_v43  ;;  %vm362_vm12 = vcmp.ge.f32.partialorder %v298_v35, 0.0  ;;  %v426_v11 = vmul.f32 0.2, %v298_v35  ;;  %v231_v20 = vmul.f32 %v1073_v48, %v1568_v17 }
  0x7a   :  { %v489_v28 = vsel %vm361_vm11, %v297_v21, %v425_v38  ;;  %vm363_vm13 = vcmp.ge.f32.partialorder %v299_v26, 0.0  ;;  %1292 = vst [vmem:[%s1937_s5 + $0xe0] sm:$0xff] %v1217_v59   ;;  %v427_v62 = vmul.f32 0.2, %v299_v26  ;;  %v300_v8 = vadd.f32 %v1599_v14, %v230_v42 }
  0x7b   :  { %v1222_v19 = vpack.c.bf16 %v489_v28, %v488_v36  ;;  %v490_v49 = vsel %vm362_vm12, %v298_v35, %v426_v11  ;;  %v301_v63 = vadd.f32 %v1599_v14, %v231_v20 }
  0x7c   :  { %v491_v16 = vsel %vm363_vm13, %v299_v26, %v427_v62  ;;  %vm364_vm14 = vcmp.ge.f32.partialorder %v300_v8, 0.0  ;;  %v428_v50 = vmul.f32 0.2, %v300_v8 }
  0x7d   :  { %1293 = vst [vmem:[%s1937_s5 + $0xe8] sm:$0xff] %v1222_v19   ;;  %v1227_v0 = vpack.c.bf16 %v491_v16, %v490_v49  ;;  %vm365_vm15 = vcmp.ge.f32.partialorder %v301_v63, 0.0  ;;  %v429_v29 = vmul.f32 0.2, %v301_v63 }
  0x7e   :  { %v492_v30 = vsel %vm364_vm14, %v300_v8, %v428_v50 }
  0x7f   :  { %1294 = vst [vmem:[%s1937_s5 + $0xf0] sm:$0xff] %v1227_v0   ;;  %v493_v48 = vsel %vm365_vm15, %v301_v63, %v429_v29 }
  0x80   :  { %v1232_v55 = vpack.c.bf16 %v493_v48, %v492_v30 }
  0x82   :  { %1295 = vst [vmem:[%s1937_s5 + $0xf8] sm:$0xff] %v1232_v55  }

// kernel: discriminator_forward.12
= control target key start
LH: loop header
LB: loop body
LE: loop exit
PB: predicated region body
PF: predicated region fallthrough
CT: control target
= control target key end

     0   :  { %v67_v8 = vlaneseq  ;;  %s496_s1 = inlined_call_operand.vmem [shape: f32[1,128], index: 1, kind: input, shape index: {}]   ;;  %s497_s2 = inlined_call_operand.vmem [shape: f32[1,128], index: 2, kind: input, shape index: {}]   ;;  %s498_s0 = inlined_call_operand.vmem [shape: bf16[128,128], index: 0, kind: input, shape index: {}]   ;;  %s499_s3 = inlined_call_operand.vmem [shape: f32[1,128], index: 3, kind: input, shape index: {}]   ;;  %s500_s4 = inlined_call_operand.vmem [shape: f32[1,128], index: 4, kind: input, shape index: {}]   ;;  %s501_s5 = inlined_call_operand.vmem [shape: bf16[128,128], index: 5, kind: output, shape index: {}]  }
   0x1   :  { %v20_v0 = vld [vmem:[%s496_s1] sm:$0x1]  ;;  %v346_v11 = vld [vmem:[%s498_s0 + $0x8] sm:$0xff]   ;;  %v347_v13 = vld [vmem:[%s498_s0 + $0x10] sm:$0xff]  }
   0x2   :  { %v22_v1 = vld [vmem:[%s497_s2] sm:$0x1]  ;;  %v21_v2 = vmul.f32 0.0078125, %v20_v0  ;;  %v68_v9 = vshrl.u32 %v67_v8, 7  ;;  %v348_v15 = vld [vmem:[%s498_s0 + $0x18] sm:$0xff]   ;;  %v280_v20 = vunpack.c.l.bf16 %v346_v11  ;;  %v350_v21 = vld [vmem:[%s498_s0 + $0x28] sm:$0xff]   ;;  %v281_v23 = vunpack.c.h.bf16 %v346_v11 }
   0x3   :  { %v23_v3 = vmul.f32 0.0078125, %v22_v1  ;;  %v275_v10 = vld [vmem:[%s498_s0] sm:$0xff]   ;;  %v284_v24 = vunpack.c.l.bf16 %v347_v13  ;;  %v285_v25 = vunpack.c.h.bf16 %v347_v13  ;;  %v351_v26 = vld [vmem:[%s498_s0 + $0x30] sm:$0xff]   ;;  %v425_v27 = vld [vmem:[%s498_s0 + $0x38] sm:$0xff]   ;;  %v288_v29 = vunpack.c.l.bf16 %v348_v15 }
   0x4   :  { %v24_v4 = vmul.f32 %v21_v2, %v21_v2  ;;  %v27_v12 = vld [vmem:[%s499_s3] sm:$0x1]  ;;  %v69_v14 = vsub.s32 0, %v68_v9  ;;  %v276_v18 = vunpack.c.l.bf16 %v275_v10  ;;  %v277_v19 = vunpack.c.h.bf16 %v275_v10 }
   0x5   :  { %v349_v16 = vld [vmem:[%s498_s0 + $0x20] sm:$0xff]   ;;  %v289_v30 = vunpack.c.h.bf16 %v348_v15  ;;  %v296_v35 = vunpack.c.l.bf16 %v350_v21  ;;  %v297_v36 = vunpack.c.h.bf16 %v350_v21  ;;  %v300_v37 = vunpack.c.l.bf16 %v351_v26 }
   0x6   :  { %v25_v5 = vsub.f32 %v23_v3, %v24_v4  ;;  %v31_v28 = vld [vmem:[%s500_s4] sm:$0x1]  ;;  %v292_v31 = vunpack.c.l.bf16 %v349_v16  ;;  %v293_v32 = vunpack.c.h.bf16 %v349_v16  ;;  %v301_v38 = vunpack.c.h.bf16 %v351_v26 }
   0x7   :  { %v304_v39 = vunpack.c.l.bf16 %v425_v27  ;;  %v305_v40 = vunpack.c.h.bf16 %v425_v27 }
   0x8   :  { %v26_v6 = vmax.f32 %v25_v5, 0.0 }
   0xa   :  { %v28_v7 = vadd.f32 1e-05, %v26_v6 }
   0xc   :  { %360 = vrsqrt.f32 %v28_v7 }
  0x16   :  { %v361_v17 = vpop.eup %360 }
  0x17   :  { %v30_v22 = vmul.f32 %v361_v17, %v27_v12 }
  0x19   :  { %v32_v33 = vmul.f32 %v30_v22, %v21_v2  ;;  %v430_v34 = vrot.slane %v30_v22, %v69_v14 }
  0x1b   :  { %v33_v41 = vsub.f32 %v31_v28, %v32_v33  ;;  %v72_v42 = vmul.f32 %v276_v18, %v430_v34  ;;  %v73_v43 = vmul.f32 %v277_v19, %v430_v34  ;;  %v74_v44 = vmul.f32 %v280_v20, %v430_v34 }
  0x1c   :  { %v75_v45 = vmul.f32 %v281_v23, %v430_v34  ;;  %v76_v46 = vmul.f32 %v284_v24, %v430_v34  ;;  %v77_v47 = vmul.f32 %v285_v25, %v430_v34  ;;  %v78_v48 = vmul.f32 %v288_v29, %v430_v34 }
  0x1d   :  { %v441_v49 = vrot.slane %v33_v41, %v69_v14  ;;  %v79_v50 = vmul.f32 %v289_v30, %v430_v34  ;;  %v80_v51 = vmul.f32 %v292_v31, %v430_v34  ;;  %v81_v52 = vmul.f32 %v293_v32, %v430_v34 }
  0x1e   :  { %v82_v53 = vmul.f32 %v296_v35, %v430_v34  ;;  %v83_v54 = vmul.f32 %v297_v36, %v430_v34  ;;  %v84_v55 = vmul.f32 %v300_v37, %v430_v34  ;;  %v85_v56 = vmul.f32 %v301_v38, %v430_v34 }
  0x1f   :  { %v94_v57 = vadd.f32 %v441_v49, %v72_v42  ;;  %v95_v58 = vadd.f32 %v441_v49, %v73_v43  ;;  %v96_v59 = vadd.f32 %v441_v49, %v74_v44  ;;  %v97_v60 = vadd.f32 %v441_v49, %v75_v45 }
  0x20   :  { %v98_v61 = vadd.f32 %v441_v49, %v76_v46  ;;  %v99_v62 = vadd.f32 %v441_v49, %v77_v47  ;;  %v100_v63 = vadd.f32 %v441_v49, %v78_v48  ;;  %v101_v0 = vadd.f32 %v441_v49, %v79_v50 }
  0x21   :  { %vm110_vm0 = vcmp.ge.f32.partialorder %v94_v57, 0.0  ;;  %vm111_vm1 = vcmp.ge.f32.partialorder %v95_v58, 0.0  ;;  %v126_v1 = vmul.f32 0.2, %v94_v57  ;;  %v127_v2 = vmul.f32 0.2, %v95_v58 }
  0x22   :  { %vm112_vm2 = vcmp.ge.f32.partialorder %v96_v59, 0.0  ;;  %vm113_vm3 = vcmp.ge.f32.partialorder %v97_v60, 0.0  ;;  %v128_v3 = vmul.f32 0.2, %v96_v59  ;;  %v129_v4 = vmul.f32 0.2, %v97_v60 }
  0x23   :  { %v142_v5 = vsel %vm110_vm0, %v94_v57, %v126_v1  ;;  %v143_v6 = vsel %vm111_vm1, %v95_v58, %v127_v2  ;;  %vm114_vm4 = vcmp.ge.f32.partialorder %v98_v61, 0.0  ;;  %vm115_vm5 = vcmp.ge.f32.partialorder %v99_v62, 0.0 }
  0x24   :  { %v309_v7 = vpack.c.bf16 %v143_v6, %v142_v5  ;;  %v144_v8 = vsel %vm112_vm2, %v96_v59, %v128_v3  ;;  %v145_v9 = vsel %vm113_vm3, %v97_v60, %v129_v4  ;;  %v130_v10 = vmul.f32 0.2, %v98_v61 }
  0x25   :  { %v314_v11 = vpack.c.bf16 %v145_v9, %v144_v8  ;;  %v131_v12 = vmul.f32 0.2, %v99_v62  ;;  %vm116_vm6 = vcmp.ge.f32.partialorder %v100_v63, 0.0  ;;  %vm117_vm7 = vcmp.ge.f32.partialorder %v101_v0, 0.0 }
  0x26   :  { %310 = vst [vmem:[%s501_s5] sm:$0xff] %v309_v7   ;;  %v146_v13 = vsel %vm114_vm4, %v98_v61, %v130_v10  ;;  %v132_v14 = vmul.f32 0.2, %v100_v63  ;;  %v133_v15 = vmul.f32 0.2, %v101_v0  ;;  %v102_v16 = vadd.f32 %v441_v49, %v80_v51 }
  0x27   :  { %353 = vst [vmem:[%s501_s5 + $0x8] sm:$0xff] %v314_v11   ;;  %v147_v17 = vsel %vm115_vm5, %v99_v62, %v131_v12  ;;  %v103_v18 = vadd.f32 %v441_v49, %v81_v52  ;;  %v104_v19 = vadd.f32 %v441_v49, %v82_v53  ;;  %v105_v20 = vadd.f32 %v441_v49, %v83_v54 }
  0x28   :  { %v319_v21 = vpack.c.bf16 %v147_v17, %v146_v13  ;;  %v148_v22 = vsel %vm116_vm6, %v100_v63, %v132_v14  ;;  %v149_v23 = vsel %vm117_vm7, %v101_v0, %v133_v15  ;;  %vm118_vm8 = vcmp.ge.f32.partialorder %v102_v16, 0.0 }
  0x29   :  { %v324_v24 = vpack.c.bf16 %v149_v23, %v148_v22  ;;  %vm119_vm9 = vcmp.ge.f32.partialorder %v103_v18, 0.0  ;;  %v134_v25 = vmul.f32 0.2, %v102_v16  ;;  %v135_v26 = vmul.f32 0.2, %v103_v18 }
  0x2a   :  { %354 = vst [vmem:[%s501_s5 + $0x10] sm:$0xff] %v319_v21   ;;  %vm120_vm10 = vcmp.ge.f32.partialorder %v104_v19, 0.0  ;;  %vm121_vm11 = vcmp.ge.f32.partialorder %v105_v20, 0.0  ;;  %v136_v28 = vmul.f32 0.2, %v104_v19  ;;  %v106_v32 = vadd.f32 %v441_v49, %v84_v55 }
  0x2b   :  { %v137_v29 = vmul.f32 0.2, %v105_v20  ;;  %355 = vst [vmem:[%s501_s5 + $0x18] sm:$0xff] %v324_v24   ;;  %v150_v30 = vsel %vm118_vm8, %v102_v16, %v134_v25  ;;  %v151_v31 = vsel %vm119_vm9, %v103_v18, %v135_v26  ;;  %v107_v33 = vadd.f32 %v441_v49, %v85_v56 }
  0x2c   :  { %v329_v35 = vpack.c.bf16 %v151_v31, %v150_v30  ;;  %v152_v36 = vsel %vm120_vm10, %v104_v19, %v136_v28  ;;  %v86_v38 = vmul.f32 %v304_v39, %v430_v34  ;;  %vm122_vm12 = vcmp.ge.f32.partialorder %v106_v32, 0.0 }
  0x2d   :  { %v153_v37 = vsel %vm121_vm11, %v105_v20, %v137_v29  ;;  %vm123_vm13 = vcmp.ge.f32.partialorder %v107_v33, 0.0  ;;  %v138_v42 = vmul.f32 0.2, %v106_v32  ;;  %v139_v43 = vmul.f32 0.2, %v107_v33 }
  0x2e   :  { %v334_v41 = vpack.c.bf16 %v153_v37, %v152_v36  ;;  %356 = vst [vmem:[%s501_s5 + $0x20] sm:$0xff] %v329_v35   ;;  %v87_v44 = vmul.f32 %v305_v40, %v430_v34  ;;  %v108_v45 = vadd.f32 %v441_v49, %v86_v38 }
  0x2f   :  { %v154_v39 = vsel %vm122_vm12, %v106_v32, %v138_v42  ;;  %v155_v46 = vsel %vm123_vm13, %v107_v33, %v139_v43 }
  0x30   :  { %357 = vst [vmem:[%s501_s5 + $0x28] sm:$0xff] %v334_v41   ;;  %v109_v47 = vadd.f32 %v441_v49, %v87_v44  ;;  %vm124_vm14 = vcmp.ge.f32.partialorder %v108_v45, 0.0  ;;  %v140_v48 = vmul.f32 0.2, %v108_v45  ;;  %v339_v50 = vpack.c.bf16 %v155_v46, %v154_v39 }
  0x32   :  { %vm125_vm15 = vcmp.ge.f32.partialorder %v109_v47, 0.0  ;;  %v141_v51 = vmul.f32 0.2, %v109_v47  ;;  %v156_v52 = vsel %vm124_vm14, %v108_v45, %v140_v48  ;;  %358 = vst [vmem:[%s501_s5 + $0x30] sm:$0xff] %v339_v50  }
  0x34   :  { %v157_v27 = vsel %vm125_vm15, %v109_v47, %v141_v51 }
  0x35   :  { %v344_v34 = vpack.c.bf16 %v157_v27, %v156_v52 }
  0x37   :  { %359 = vst [vmem:[%s501_s5 + $0x38] sm:$0xff] %v344_v34  }

// kernel: discriminator_forward.11
= control target key start
LH: loop header
LB: loop body
LE: loop exit
PB: predicated region body
PF: predicated region fallthrough
CT: control target
= control target key end

     0   :  { %s4738_s1 = inlined_call_operand.vmem [shape: bf16[2048,128], index: 1, kind: input, shape index: {}]   ;;  %s4739_s0 = inlined_call_operand.vmem [shape: bf16[128,2048], index: 0, kind: input, shape index: {}]   ;;  %s4740_s2 = inlined_call_operand.vmem [shape: f32[1,128], index: 2, kind: input, shape index: {}]   ;;  %s4741_s4 = inlined_call_operand.vmem [shape: f32[1,128], index: 4, kind: output, shape index: {1}]   ;;  %s4742_s5 = inlined_call_operand.vmem [shape: f32[1,128], index: 5, kind: output, shape index: {2}]   ;;  %s4743_s3 = inlined_call_operand.vmem [shape: bf16[128,128], index: 3, kind: output, shape index: {0}]  }
   0x1   :  { %v3604_v0 = vld [vmem:[%s4738_s1 + $0x40] sm:$0xff]   ;;  %v3608_v4 = vld [vmem:[%s4738_s1 + $0x48] sm:$0xff]   ;;  %v3612_v8 = vld [vmem:[%s4738_s1 + $0x50] sm:$0xff]  }
   0x2   :  { %v3605_v1 = vld [vmem:[%s4738_s1 + $0xc0] sm:$0xff]   ;;  %3091 = vmatprep.subr.bf16.mxu0 %v3604_v0  ;;  %v3609_v5 = vld [vmem:[%s4738_s1 + $0xc8] sm:$0xff]   ;;  %v3613_v9 = vld [vmem:[%s4738_s1 + $0xd0] sm:$0xff]  }
   0x3   :  { %v3606_v2 = vld [vmem:[%s4738_s1] sm:$0xff]   ;;  %3155 = vmatprep.subr.bf16.mxu1 %v3605_v1  ;;  %v3610_v6 = vld [vmem:[%s4738_s1 + $0x8] sm:$0xff]   ;;  %v3614_v10 = vld [vmem:[%s4738_s1 + $0x10] sm:$0xff]  }
   0x4   :  { %v3607_v3 = vld [vmem:[%s4738_s1 + $0x80] sm:$0xff]   ;;  %3092 = vmatpush3.bf16.msra.mxu0 %v3606_v2  ;;  %v3611_v7 = vld [vmem:[%s4738_s1 + $0x88] sm:$0xff]   ;;  %v3615_v11 = vld [vmem:[%s4738_s1 + $0x90] sm:$0xff]  }
   0x5   :  { %3156 = vmatpush3.bf16.msra.mxu1 %v3607_v3  ;;  %3093 = vmatprep.subr.bf16.mxu0 %v3608_v4  ;;  %v3616_v12 = vld [vmem:[%s4738_s1 + $0x58] sm:$0xff]   ;;  %v3620_v16 = vld [vmem:[%s4738_s1 + $0x60] sm:$0xff]   ;;  %v3624_v20 = vld [vmem:[%s4738_s1 + $0x68] sm:$0xff]  }
   0x6   :  { %3157 = vmatprep.subr.bf16.mxu1 %v3609_v5  ;;  %v3617_v13 = vld [vmem:[%s4738_s1 + $0xd8] sm:$0xff]   ;;  %v3621_v17 = vld [vmem:[%s4738_s1 + $0xe0] sm:$0xff]   ;;  %v3625_v21 = vld [vmem:[%s4738_s1 + $0xe8] sm:$0xff]  }
   0x7   :  { %v3618_v14 = vld [vmem:[%s4738_s1 + $0x18] sm:$0xff]   ;;  %v3622_v18 = vld [vmem:[%s4738_s1 + $0x20] sm:$0xff]   ;;  %v3626_v22 = vld [vmem:[%s4738_s1 + $0x28] sm:$0xff]  }
   0x8   :  { %3094 = vmatpush3.bf16.msra.mxu0 %v3610_v6  ;;  %v3619_v15 = vld [vmem:[%s4738_s1 + $0x98] sm:$0xff]   ;;  %v3623_v19 = vld [vmem:[%s4738_s1 + $0xa0] sm:$0xff]   ;;  %v3627_v23 = vld [vmem:[%s4738_s1 + $0xa8] sm:$0xff]  }
   0x9   :  { %3158 = vmatpush3.bf16.msra.mxu1 %v3611_v7  ;;  %3095 = vmatprep.subr.bf16.mxu0 %v3612_v8  ;;  %v3628_v24 = vld [vmem:[%s4738_s1 + $0x70] sm:$0xff]   ;;  %v3632_v28 = vld [vmem:[%s4738_s1 + $0x78] sm:$0xff]   ;;  %v24_v32 = vld [vmem:[%s4739_s0] sm:$0xff] }
   0xa   :  { %3159 = vmatprep.subr.bf16.mxu1 %v3613_v9  ;;  %v3629_v25 = vld [vmem:[%s4738_s1 + $0xf0] sm:$0xff]   ;;  %v3633_v29 = vld [vmem:[%s4738_s1 + $0xf8] sm:$0xff]   ;;  %v32_v33 = vld [vmem:[%s4739_s0 + $0x40] sm:$0xff] }
   0xb   :  { %v3630_v26 = vld [vmem:[%s4738_s1 + $0x30] sm:$0xff]   ;;  %v3634_v30 = vld [vmem:[%s4738_s1 + $0x38] sm:$0xff]   ;;  %v25_v34 = vld [vmem:[%s4739_s0 + $0x8] sm:$0xff]  ;;  %v2756_v35 = vcombine.low %v24_v32, %v32_v33  ;;  %v2757_v36 = vcombine.high %v24_v32, %v32_v33 }
   0xc   :  { %3096 = vmatpush3.bf16.msra.mxu0 %v3614_v10  ;;  %v3631_v27 = vld [vmem:[%s4738_s1 + $0xb0] sm:$0xff]   ;;  %v3635_v31 = vld [vmem:[%s4738_s1 + $0xb8] sm:$0xff]   ;;  %v33_v37 = vld [vmem:[%s4739_s0 + $0x48] sm:$0xff] }
   0xd   :  { %3160 = vmatpush3.bf16.msra.mxu1 %v3615_v11  ;;  %3097 = vmatprep.subr.bf16.mxu0 %v3616_v12  ;;  %v2758_v38 = vcombine.low %v25_v34, %v33_v37  ;;  %v2759_v39 = vcombine.high %v25_v34, %v33_v37  ;;  %v3636_v40 = vld [vmem:[%s4738_s1 + $0x140] sm:$0xff]   ;;  %v41_v47 = vld [vmem:[%s4739_s0 + $0x88] sm:$0xff]  ;;  %v3644_v62 = vld [vmem:[%s4738_s1 + $0x150] sm:$0xff]  }
   0xe   :  { %3161 = vmatprep.subr.bf16.mxu1 %v3617_v13  ;;  %1855 = vmatprep.mubr.bf16.mxu0 %v2757_v36  ;;  %v3637_v41 = vld [vmem:[%s4738_s1 + $0x100] sm:$0xff]   ;;  %v49_v48 = vld [vmem:[%s4739_s0 + $0xc8] sm:$0xff]  ;;  %v3645_v63 = vld [vmem:[%s4738_s1 + $0x110] sm:$0xff]  }
   0xf   :  { %1952 = vmatprep.mubr.bf16.mxu1 %v2759_v39  ;;  %v3638_v42 = vld [vmem:[%s4738_s1 + $0x1c0] sm:$0xff]   ;;  %v2775_v49 = vcombine.high %v41_v47, %v49_v48  ;;  %v3640_v50 = vld [vmem:[%s4738_s1 + $0x148] sm:$0xff]   ;;  %v2774_v53 = vcombine.low %v41_v47, %v49_v48  ;;  %v3646_v0 = vld [vmem:[%s4738_s1 + $0x1d0] sm:$0xff]  }
  0x10   :  { %3098 = vmatpush3.bf16.msra.mxu0 %v3618_v14  ;;  %v3639_v43 = vld [vmem:[%s4738_s1 + $0x180] sm:$0xff]   ;;  %v3641_v52 = vld [vmem:[%s4738_s1 + $0x108] sm:$0xff]   ;;  %v3647_v1 = vld [vmem:[%s4738_s1 + $0x190] sm:$0xff]  }
  0x11   :  { %3162 = vmatpush3.bf16.msra.mxu1 %v3619_v15  ;;  %3099 = vmatprep.subr.bf16.mxu0 %v3620_v16  ;;  %v40_v44 = vld [vmem:[%s4739_s0 + $0x80] sm:$0xff]  ;;  %v3642_v54 = vld [vmem:[%s4738_s1 + $0x1c8] sm:$0xff]   ;;  %v3648_v10 = vld [vmem:[%s4738_s1 + $0x158] sm:$0xff]  }
  0x12   :  { %3163 = vmatprep.subr.bf16.mxu1 %v3621_v17  ;;  %v48_v45 = vld [vmem:[%s4739_s0 + $0xc0] sm:$0xff]  ;;  %v3643_v55 = vld [vmem:[%s4738_s1 + $0x188] sm:$0xff]   ;;  %v3649_v11 = vld [vmem:[%s4738_s1 + $0x118] sm:$0xff]  }
  0x13   :  { %v2773_v46 = vcombine.high %v40_v44, %v48_v45  ;;  %v2772_v51 = vcombine.low %v40_v44, %v48_v45  ;;  %v56_v56 = vld [vmem:[%s4739_s0 + $0x100] sm:$0xff]  ;;  %v57_v58 = vld [vmem:[%s4739_s0 + $0x108] sm:$0xff]  ;;  %v3650_v12 = vld [vmem:[%s4738_s1 + $0x1d8] sm:$0xff]  }
  0x14   :  { %3100 = vmatpush3.bf16.msra.mxu0 %v3622_v18  ;;  %v64_v57 = vld [vmem:[%s4739_s0 + $0x140] sm:$0xff]  ;;  %v65_v59 = vld [vmem:[%s4739_s0 + $0x148] sm:$0xff]  ;;  %v3651_v13 = vld [vmem:[%s4738_s1 + $0x198] sm:$0xff]  }
  0x15   :  { %3164 = vmatpush3.bf16.msra.mxu1 %v3623_v19  ;;  %3101 = vmatprep.subr.bf16.mxu0 %v3624_v20  ;;  %v2789_v60 = vcombine.high %v56_v56, %v64_v57  ;;  %v2791_v61 = vcombine.high %v57_v58, %v65_v59  ;;  %v2788_v2 = vcombine.low %v56_v56, %v64_v57  ;;  %v72_v3 = vld [vmem:[%s4739_s0 + $0x180] sm:$0xff]  ;;  %v73_v5 = vld [vmem:[%s4739_s0 + $0x188] sm:$0xff]  ;;  %v3661_v39 = vld [vmem:[%s4738_s1 + $0x130] sm:$0xff]  }
  0x16   :  { %3165 = vmatprep.subr.bf16.mxu1 %v3625_v21  ;;  %v80_v4 = vld [vmem:[%s4739_s0 + $0x1c0] sm:$0xff]  ;;  %v2790_v6 = vcombine.low %v57_v58, %v65_v59  ;;  %v81_v8 = vld [vmem:[%s4739_s0 + $0x1c8] sm:$0xff]  ;;  %v3665_v48 = vld [vmem:[%s4738_s1 + $0x138] sm:$0xff]  }
  0x17   :  { %v2805_v7 = vcombine.high %v72_v3, %v80_v4  ;;  %v2807_v9 = vcombine.high %v73_v5, %v81_v8  ;;  %v88_v14 = vld [vmem:[%s4739_s0 + $0x200] sm:$0xff]  ;;  %v89_v16 = vld [vmem:[%s4739_s0 + $0x208] sm:$0xff]  ;;  %v2804_v19 = vcombine.low %v72_v3, %v80_v4  ;;  %v2806_v21 = vcombine.low %v73_v5, %v81_v8  ;;  %v35_v3 = vld [vmem:[%s4739_s0 + $0x58] sm:$0xff] }
  0x18   :  { %3102 = vmatpush3.bf16.msra.mxu0 %v3626_v22  ;;  %v96_v15 = vld [vmem:[%s4739_s0 + $0x240] sm:$0xff]  ;;  %v97_v17 = vld [vmem:[%s4739_s0 + $0x248] sm:$0xff]  ;;  %v42_v8 = vld [vmem:[%s4739_s0 + $0x90] sm:$0xff] }
  0x19   :  { %3166 = vmatpush3.bf16.msra.mxu1 %v3627_v23  ;;  %3103 = vmatprep.subr.bf16.mxu0 %v3628_v24  ;;  %v3652_v18 = vld [vmem:[%s4738_s1 + $0x160] sm:$0xff]   ;;  %v2821_v22 = vcombine.high %v88_v14, %v96_v15  ;;  %v2823_v24 = vcombine.high %v89_v16, %v97_v17  ;;  %v3658_v32 = vld [vmem:[%s4738_s1 + $0x1e8] sm:$0xff]   ;;  %v2820_v34 = vcombine.low %v88_v14, %v96_v15 }
  0x1a   :  { %3167 = vmatprep.subr.bf16.mxu1 %v3629_v25  ;;  %v3653_v20 = vld [vmem:[%s4738_s1 + $0x120] sm:$0xff]   ;;  %v3659_v33 = vld [vmem:[%s4738_s1 + $0x1a8] sm:$0xff]  }
  0x1b   :  { %v3654_v23 = vld [vmem:[%s4738_s1 + $0x1e0] sm:$0xff]   ;;  %v121_v44 = vld [vmem:[%s4739_s0 + $0x308] sm:$0xff] }
  0x1c   :  { %3104 = vmatpush3.bf16.msra.mxu0 %v3630_v26  ;;  %v3655_v25 = vld [vmem:[%s4738_s1 + $0x1a0] sm:$0xff]   ;;  %v129_v45 = vld [vmem:[%s4739_s0 + $0x348] sm:$0xff] }
  0x1d   :  { %3168 = vmatpush3.bf16.msra.mxu1 %v3631_v27  ;;  %3105 = vmatprep.subr.bf16.mxu0 %v3632_v28  ;;  %v104_v26 = vld [vmem:[%s4739_s0 + $0x280] sm:$0xff]  ;;  %v3656_v28 = vld [vmem:[%s4738_s1 + $0x168] sm:$0xff]  }
  0x1e   :  { %3169 = vmatprep.subr.bf16.mxu1 %v3633_v29  ;;  %v112_v27 = vld [vmem:[%s4739_s0 + $0x2c0] sm:$0xff]  ;;  %v105_v29 = vld [vmem:[%s4739_s0 + $0x288] sm:$0xff] }
  0x1f   :  { %v2837_v36 = vcombine.high %v104_v26, %v112_v27  ;;  %v2836_v47 = vcombine.low %v104_v26, %v112_v27  ;;  %v3668_v56 = vld [vmem:[%s4738_s1 + $0x240] sm:$0xff]   ;;  %v137_v57 = vld [vmem:[%s4739_s0 + $0x388] sm:$0xff]  ;;  %v3676_v26 = vld [vmem:[%s4738_s1 + $0x250] sm:$0xff]  }
  0x20   :  { %3106 = vmatpush3.bf16.msra.mxu0 %v3634_v30  ;;  %v113_v30 = vld [vmem:[%s4739_s0 + $0x2c8] sm:$0xff]  ;;  %v3670_v58 = vld [vmem:[%s4738_s1 + $0x2c0] sm:$0xff]   ;;  %v3678_v27 = vld [vmem:[%s4738_s1 + $0x2d0] sm:$0xff]  }
  0x21   :  { %3170 = vmatpush3.bf16.msra.mxu1 %v3635_v31  ;;  %3219 = vmatprep.subr.bf16.mxu0 %v3636_v40  ;;  %v3657_v31 = vld [vmem:[%s4738_s1 + $0x128] sm:$0xff]   ;;  %v2839_v37 = vcombine.high %v105_v29, %v113_v30  ;;  %v3662_v40 = vld [vmem:[%s4738_s1 + $0x1f0] sm:$0xff]   ;;  %v3671_v15 = vld [vmem:[%s4738_s1 + $0x280] sm:$0xff]  }
  0x22   :  { %3283 = vmatprep.subr.bf16.mxu1 %v3638_v42  ;;  %v128_v42 = vld [vmem:[%s4739_s0 + $0x340] sm:$0xff]  ;;  %v145_v59 = vld [vmem:[%s4739_s0 + $0x3c8] sm:$0xff] }
  0x23   :  { %1856 = vmatmul.mubr.bf16.vlgmr.msra.gmra.mrb[0].mxu0 %v2756_v35  ;;  %v2822_v35 = vcombine.low %v89_v16, %v97_v17  ;;  %v2870_v5 = vcombine.low %v137_v57, %v145_v59  ;;  %v3672_v17 = vld [vmem:[%s4738_s1 + $0x248] sm:$0xff]  }
  0x24   :  { %1953 = vmatmul.mubr.bf16.vlgmr.msra.gmra.mrb[0].mxu1 %v2758_v38  ;;  %3220 = vmatpush3.bf16.msra.mxu0 %v3637_v41  ;;  %v3660_v38 = vld [vmem:[%s4738_s1 + $0x170] sm:$0xff]   ;;  %v120_v41 = vld [vmem:[%s4739_s0 + $0x300] sm:$0xff] }
  0x25   :  { %3284 = vmatpush3.bf16.msra.mxu1 %v3639_v43  ;;  %1863 = vmatprep.mubr.bf16.mxu0 %v2773_v46  ;;  %v3663_v43 = vld [vmem:[%s4738_s1 + $0x1b0] sm:$0xff]   ;;  %v3664_v46 = vld [vmem:[%s4738_s1 + $0x178] sm:$0xff]  }
  0x26   :  { %1960 = vmatprep.mubr.bf16.mxu1 %v2775_v49  ;;  %3221 = vmatprep.subr.bf16.mxu0 %v3640_v50  ;;  %v2838_v49 = vcombine.low %v105_v29, %v113_v30  ;;  %v2853_v50 = vcombine.high %v120_v41, %v128_v42 }
  0x27   :  { %3285 = vmatprep.subr.bf16.mxu1 %v3642_v54  ;;  %v136_v54 = vld [vmem:[%s4739_s0 + $0x380] sm:$0xff] }
  0x28   :  { %3222 = vmatpush3.bf16.msra.mxu0 %v3641_v52  ;;  %v2855_v52 = vcombine.high %v121_v44, %v129_v45 }
  0x29   :  { %3286 = vmatpush3.bf16.msra.mxu1 %v3643_v55  ;;  %3223 = vmatprep.subr.bf16.mxu0 %v3644_v62  ;;  %v144_v55 = vld [vmem:[%s4739_s0 + $0x3c0] sm:$0xff] }
  0x2a   :  { %3287 = vmatprep.subr.bf16.mxu1 %v3646_v0  ;;  %v2869_v62 = vcombine.high %v136_v54, %v144_v55  ;;  %v26_v0 = vld [vmem:[%s4739_s0 + $0x10] sm:$0xff]  ;;  %v2868_v4 = vcombine.low %v136_v54, %v144_v55  ;;  %v91_v54 = vld [vmem:[%s4739_s0 + $0x218] sm:$0xff] }
  0x2b   :  { %1864 = vmatmul.mubr.bf16.gmra.mrb[4].mxu0 %v2772_v51  ;;  %v3666_v51 = vld [vmem:[%s4738_s1 + $0x1f8] sm:$0xff]  }
  0x2c   :  { %1961 = vmatmul.mubr.bf16.gmra.mrb[4].mxu1 %v2774_v53  ;;  %1871 = vmatprep.mubr.bf16.mxu0 %v2789_v60  ;;  %v3667_v53 = vld [vmem:[%s4738_s1 + $0x1b8] sm:$0xff]   ;;  %v2852_v60 = vcombine.low %v120_v41, %v128_v42  ;;  %v3684_v42 = vld [vmem:[%s4738_s1 + $0x260] sm:$0xff]  }
  0x2d   :  { %1968 = vmatprep.mubr.bf16.mxu1 %v2791_v61  ;;  %3224 = vmatpush3.bf16.msra.mxu0 %v3645_v63  ;;  %v2854_v61 = vcombine.low %v121_v44, %v129_v45  ;;  %v2871_v63 = vcombine.high %v137_v57, %v145_v59  ;;  %v3683_v41 = vld [vmem:[%s4738_s1 + $0x298] sm:$0xff]   ;;  %v3686_v44 = vld [vmem:[%s4738_s1 + $0x2e0] sm:$0xff]   ;;  %v3691_v57 = vld [vmem:[%s4738_s1 + $0x2a8] sm:$0xff]  }
  0x2e   :  { %3288 = vmatpush3.bf16.msra.mxu1 %v3647_v1  ;;  %3225 = vmatprep.subr.bf16.mxu0 %v3648_v10  ;;  %v34_v1 = vld [vmem:[%s4739_s0 + $0x50] sm:$0xff]  ;;  %v99_v55 = vld [vmem:[%s4739_s0 + $0x258] sm:$0xff] }
  0x2f   :  { %3289 = vmatprep.subr.bf16.mxu1 %v3650_v12  ;;  %v2760_v10 = vcombine.low %v26_v0, %v34_v1  ;;  %v43_v12 = vld [vmem:[%s4739_s0 + $0x98] sm:$0xff] }
  0x31   :  { %3226 = vmatpush3.bf16.msra.mxu0 %v3649_v11  ;;  %v3669_v11 = vld [vmem:[%s4738_s1 + $0x200] sm:$0xff]  }
  0x32   :  { %3290 = vmatpush3.bf16.msra.mxu1 %v3651_v13  ;;  %3227 = vmatprep.subr.bf16.mxu0 %v3652_v18  ;;  %v51_v13 = vld [vmem:[%s4739_s0 + $0xd8] sm:$0xff] }
  0x33   :  { %1872 = vmatmul.mubr.bf16.gmra.mrb[8].mxu0 %v2788_v2  ;;  %3291 = vmatprep.subr.bf16.mxu1 %v3654_v23  ;;  %v27_v2 = vld [vmem:[%s4739_s0 + $0x18] sm:$0xff]  ;;  %v2779_v18 = vcombine.high %v43_v12, %v51_v13  ;;  %v66_v23 = vld [vmem:[%s4739_s0 + $0x150] sm:$0xff]  ;;  %v2778_v29 = vcombine.low %v43_v12, %v51_v13  ;;  %v3702_v12 = vld [vmem:[%s4738_s1 + $0x3c0] sm:$0xff]   ;;  %v2826_v13 = vcombine.low %v91_v54, %v99_v55 }
  0x34   :  { %1969 = vmatmul.mubr.bf16.gmra.mrb[8].mxu1 %v2790_v6  ;;  %1879 = vmatprep.mubr.bf16.mxu0 %v2805_v7  ;;  %v2761_v6 = vcombine.high %v26_v0, %v34_v1  ;;  %v2763_v7 = vcombine.high %v27_v2, %v35_v3  ;;  %v2762_v14 = vcombine.low %v27_v2, %v35_v3  ;;  %v3693_v0 = vld [vmem:[%s4738_s1 + $0x230] sm:$0xff]   ;;  %v3696_v2 = vld [vmem:[%s4738_s1 + $0x278] sm:$0xff]  }
  0x35   :  { %1976 = vmatprep.mubr.bf16.mxu1 %v2807_v9  ;;  %3228 = vmatpush3.bf16.msra.mxu0 %v3653_v20  ;;  %v50_v9 = vld [vmem:[%s4739_s0 + $0xd0] sm:$0xff]  ;;  %v3674_v20 = vld [vmem:[%s4738_s1 + $0x2c8] sm:$0xff]  }
  0x36   :  { %3292 = vmatpush3.bf16.msra.mxu1 %v3655_v25  ;;  %3229 = vmatprep.subr.bf16.mxu0 %v3656_v28  ;;  %v2777_v16 = vcombine.high %v42_v8, %v50_v9  ;;  %v67_v25 = vld [vmem:[%s4739_s0 + $0x158] sm:$0xff]  ;;  %v2776_v28 = vcombine.low %v42_v8, %v50_v9  ;;  %v3695_v1 = vld [vmem:[%s4738_s1 + $0x2b0] sm:$0xff]  }
  0x37   :  { %3293 = vmatprep.subr.bf16.mxu1 %v3658_v32  ;;  %v3677_v32 = vld [vmem:[%s4738_s1 + $0x210] sm:$0xff]   ;;  %v3697_v8 = vld [vmem:[%s4738_s1 + $0x238] sm:$0xff]  }
  0x38   :  { %v106_v3 = vld [vmem:[%s4739_s0 + $0x290] sm:$0xff]  ;;  %v3699_v9 = vld [vmem:[%s4738_s1 + $0x2b8] sm:$0xff]  }
  0x39   :  { %3230 = vmatpush3.bf16.msra.mxu0 %v3657_v31 }
  0x3a   :  { %3294 = vmatpush3.bf16.msra.mxu1 %v3659_v33  ;;  %3231 = vmatprep.subr.bf16.mxu0 %v3660_v38  ;;  %v3679_v33 = vld [vmem:[%s4738_s1 + $0x290] sm:$0xff]   ;;  %v75_v38 = vld [vmem:[%s4739_s0 + $0x198] sm:$0xff] }
  0x3b   :  { %1880 = vmatmul.mubr.bf16.gmra.mrb[12].mxu0 %v2804_v19  ;;  %3295 = vmatprep.subr.bf16.mxu1 %v3662_v40  ;;  %v3673_v19 = vld [vmem:[%s4738_s1 + $0x208] sm:$0xff]   ;;  %v3681_v40 = vld [vmem:[%s4738_s1 + $0x218] sm:$0xff]  }
  0x3c   :  { %1977 = vmatmul.mubr.bf16.gmra.mrb[12].mxu1 %v2806_v21  ;;  %1887 = vmatprep.mubr.bf16.mxu0 %v2821_v22  ;;  %v3675_v21 = vld [vmem:[%s4738_s1 + $0x288] sm:$0xff]   ;;  %v58_v22 = vld [vmem:[%s4739_s0 + $0x110] sm:$0xff] }
  0x3d   :  { %1984 = vmatprep.mubr.bf16.mxu1 %v2823_v24  ;;  %3232 = vmatpush3.bf16.msra.mxu0 %v3661_v39  ;;  %v59_v24 = vld [vmem:[%s4739_s0 + $0x118] sm:$0xff]  ;;  %v2793_v30 = vcombine.high %v58_v22, %v66_v23 }
  0x3e   :  { %3296 = vmatpush3.bf16.msra.mxu1 %v3663_v43  ;;  %3233 = vmatprep.subr.bf16.mxu0 %v3664_v46  ;;  %v2795_v31 = vcombine.high %v59_v24, %v67_v25  ;;  %v83_v39 = vld [vmem:[%s4739_s0 + $0x1d8] sm:$0xff]  ;;  %v2792_v43 = vcombine.low %v58_v22, %v66_v23  ;;  %v2794_v45 = vcombine.low %v59_v24, %v67_v25  ;;  %v138_v24 = vld [vmem:[%s4739_s0 + $0x390] sm:$0xff] }
  0x3f   :  { %3297 = vmatprep.subr.bf16.mxu1 %v3666_v51  ;;  %v90_v51 = vld [vmem:[%s4739_s0 + $0x210] sm:$0xff] }
  0x40   :  { %v146_v25 = vld [vmem:[%s4739_s0 + $0x3d0] sm:$0xff] }
  0x41   :  { %3234 = vmatpush3.bf16.msra.mxu0 %v3665_v48  ;;  %v2811_v48 = vcombine.high %v75_v38, %v83_v39 }
  0x42   :  { %3298 = vmatpush3.bf16.msra.mxu1 %v3667_v53  ;;  %3347 = vmatprep.subr.bf16.mxu0 %v3668_v56  ;;  %v98_v53 = vld [vmem:[%s4739_s0 + $0x250] sm:$0xff]  ;;  %v3689_v56 = vld [vmem:[%s4738_s1 + $0x228] sm:$0xff]  }
  0x43   :  { %1888 = vmatmul.mubr.bf16.gmra.mrb[16].mxu0 %v2820_v34  ;;  %3411 = vmatprep.subr.bf16.mxu1 %v3670_v58  ;;  %v3680_v34 = vld [vmem:[%s4738_s1 + $0x258] sm:$0xff]   ;;  %v3692_v58 = vld [vmem:[%s4738_s1 + $0x270] sm:$0xff]  }
  0x44   :  { %1985 = vmatmul.mubr.bf16.gmra.mrb[16].mxu1 %v2822_v35  ;;  %1895 = vmatprep.mubr.bf16.mxu0 %v2837_v36  ;;  %v74_v35 = vld [vmem:[%s4739_s0 + $0x190] sm:$0xff] }
  0x45   :  { %1992 = vmatprep.mubr.bf16.mxu1 %v2839_v37  ;;  %v82_v36 = vld [vmem:[%s4739_s0 + $0x1d0] sm:$0xff]  ;;  %v3682_v37 = vld [vmem:[%s4738_s1 + $0x2d8] sm:$0xff]  }
  0x46   :  { %v2809_v46 = vcombine.high %v74_v35, %v82_v36  ;;  %v2808_v59 = vcombine.low %v74_v35, %v82_v36  ;;  %v37_v35 = vld [vmem:[%s4739_s0 + $0x68] sm:$0xff]  ;;  %v2872_v36 = vcombine.low %v138_v24, %v146_v25 }
  0x4b   :  { %1896 = vmatmul.mubr.bf16.gmra.mrb[20].mxu0 %v2836_v47  ;;  %v3685_v47 = vld [vmem:[%s4738_s1 + $0x220] sm:$0xff]  }
  0x4c   :  { %1993 = vmatmul.mubr.bf16.gmra.mrb[20].mxu1 %v2838_v49  ;;  %1903 = vmatprep.mubr.bf16.mxu0 %v2853_v50  ;;  %v3687_v49 = vld [vmem:[%s4738_s1 + $0x2a0] sm:$0xff]   ;;  %v3688_v50 = vld [vmem:[%s4738_s1 + $0x268] sm:$0xff]  }
  0x4d   :  { %2000 = vmatprep.mubr.bf16.mxu1 %v2855_v52  ;;  %v3690_v52 = vld [vmem:[%s4738_s1 + $0x2e8] sm:$0xff]  }
  0x53   :  { %1904 = vmatmul.mubr.bf16.gmra.mrb[24].mxu0 %v2852_v60  ;;  %v3694_v60 = vld [vmem:[%s4738_s1 + $0x2f0] sm:$0xff]  }
  0x54   :  { %2001 = vmatmul.mubr.bf16.gmra.mrb[24].mxu1 %v2854_v61  ;;  %1911 = vmatprep.mubr.bf16.mxu0 %v2869_v62  ;;  %v2810_v61 = vcombine.low %v75_v38, %v83_v39  ;;  %v2825_v62 = vcombine.high %v90_v51, %v98_v53 }
  0x55   :  { %2008 = vmatprep.mubr.bf16.mxu1 %v2871_v63  ;;  %v2827_v63 = vcombine.high %v91_v54, %v99_v55  ;;  %v60_v54 = vld [vmem:[%s4739_s0 + $0x120] sm:$0xff] }
  0x56   :  { %v68_v55 = vld [vmem:[%s4739_s0 + $0x160] sm:$0xff] }
  0x5b   :  { %1912 = vmatmul.mubr.bf16.gmra.mrb[28].mxu0 %v2868_v4  ;;  %v114_v4 = vld [vmem:[%s4739_s0 + $0x2d0] sm:$0xff] }
  0x5c   :  { %2009 = vmatmul.mubr.bf16.gmra.mrb[28].mxu1 %v2870_v5  ;;  %2049 = vmatprep.mubr.bf16.mxu0 %v2761_v6  ;;  %v3698_v5 = vld [vmem:[%s4738_s1 + $0x2f8] sm:$0xff]  }
  0x5d   :  { %2146 = vmatprep.mubr.bf16.mxu1 %v2763_v7  ;;  %v107_v6 = vld [vmem:[%s4739_s0 + $0x298] sm:$0xff] }
  0x5e   :  { %v115_v7 = vld [vmem:[%s4739_s0 + $0x2d8] sm:$0xff] }
  0x63   :  { %2050 = vmatmul.mubr.bf16.vlgmr.msra.gmra.mrb[32].mxu0 %v2760_v10  ;;  %v3700_v10 = vld [vmem:[%s4738_s1 + $0x340] sm:$0xff]  }
  0x64   :  { %2147 = vmatmul.mubr.bf16.vlgmr.msra.gmra.mrb[32].mxu1 %v2762_v14  ;;  %3348 = vmatpush3.bf16.msra.mxu0 %v3669_v11  ;;  %v2824_v11 = vcombine.low %v90_v51, %v98_v53  ;;  %v2841_v14 = vcombine.high %v106_v3, %v114_v4  ;;  %v3706_v51 = vld [vmem:[%s4738_s1 + $0x3c8] sm:$0xff]  }
  0x65   :  { %3412 = vmatpush3.bf16.msra.mxu1 %v3671_v15  ;;  %2057 = vmatprep.mubr.bf16.mxu0 %v2777_v16  ;;  %v2843_v15 = vcombine.high %v107_v6, %v115_v7  ;;  %v122_v16 = vld [vmem:[%s4739_s0 + $0x310] sm:$0xff]  ;;  %v3707_v53 = vld [vmem:[%s4738_s1 + $0x388] sm:$0xff]  }
  0x66   :  { %2154 = vmatprep.mubr.bf16.mxu1 %v2779_v18  ;;  %3349 = vmatprep.subr.bf16.mxu0 %v3672_v17  ;;  %v130_v17 = vld [vmem:[%s4739_s0 + $0x350] sm:$0xff]  ;;  %v123_v18 = vld [vmem:[%s4739_s0 + $0x318] sm:$0xff] }
  0x67   :  { %3413 = vmatprep.subr.bf16.mxu1 %v3674_v20  ;;  %v2840_v20 = vcombine.low %v106_v3, %v114_v4  ;;  %v2857_v22 = vcombine.high %v122_v16, %v130_v17  ;;  %v3714_v3 = vld [vmem:[%s4738_s1 + $0x3d8] sm:$0xff]   ;;  %v76_v4 = vld [vmem:[%s4739_s0 + $0x1a0] sm:$0xff] }
  0x68   :  { %3350 = vmatpush3.bf16.msra.mxu0 %v3673_v19  ;;  %v131_v19 = vld [vmem:[%s4739_s0 + $0x358] sm:$0xff] }
  0x69   :  { %3414 = vmatpush3.bf16.msra.mxu1 %v3675_v21  ;;  %3351 = vmatprep.subr.bf16.mxu0 %v3676_v26  ;;  %v2842_v21 = vcombine.low %v107_v6, %v115_v7  ;;  %v2859_v23 = vcombine.high %v123_v18, %v131_v19  ;;  %v139_v26 = vld [vmem:[%s4739_s0 + $0x398] sm:$0xff]  ;;  %v77_v6 = vld [vmem:[%s4739_s0 + $0x1a8] sm:$0xff] }
  0x6a   :  { %3415 = vmatprep.subr.bf16.mxu1 %v3678_v27  ;;  %v147_v27 = vld [vmem:[%s4739_s0 + $0x3d8] sm:$0xff] }
  0x6b   :  { %2058 = vmatmul.mubr.bf16.gmra.mrb[36].mxu0 %v2776_v28  ;;  %v2856_v28 = vcombine.low %v122_v16, %v130_v17  ;;  %v3713_v7 = vld [vmem:[%s4738_s1 + $0x318] sm:$0xff]   ;;  %v3717_v16 = vld [vmem:[%s4738_s1 + $0x320] sm:$0xff]  }
  0x6c   :  { %2155 = vmatmul.mubr.bf16.gmra.mrb[36].mxu1 %v2778_v29  ;;  %2065 = vmatprep.mubr.bf16.mxu0 %v2793_v30  ;;  %v2858_v29 = vcombine.low %v123_v18, %v131_v19  ;;  %v2873_v30 = vcombine.high %v138_v24, %v146_v25  ;;  %v3719_v17 = vld [vmem:[%s4738_s1 + $0x3a0] sm:$0xff]   ;;  %v3720_v18 = vld [vmem:[%s4738_s1 + $0x368] sm:$0xff]  }
  0x6d   :  { %2162 = vmatprep.mubr.bf16.mxu1 %v2795_v31  ;;  %3352 = vmatpush3.bf16.msra.mxu0 %v3677_v32  ;;  %v2875_v31 = vcombine.high %v139_v26, %v147_v27  ;;  %v28_v32 = vld [vmem:[%s4739_s0 + $0x20] sm:$0xff]  ;;  %v3722_v19 = vld [vmem:[%s4738_s1 + $0x3e8] sm:$0xff]  }
  0x6e   :  { %3416 = vmatpush3.bf16.msra.mxu1 %v3679_v33  ;;  %3353 = vmatprep.subr.bf16.mxu0 %v3680_v34  ;;  %v36_v33 = vld [vmem:[%s4739_s0 + $0x60] sm:$0xff]  ;;  %v29_v34 = vld [vmem:[%s4739_s0 + $0x28] sm:$0xff] }
  0x6f   :  { %3417 = vmatprep.subr.bf16.mxu1 %v3682_v37  ;;  %v2874_v37 = vcombine.low %v139_v26, %v147_v27  ;;  %v2765_v38 = vcombine.high %v28_v32, %v36_v33  ;;  %v2767_v39 = vcombine.high %v29_v34, %v37_v35  ;;  %v101_v24 = vld [vmem:[%s4739_s0 + $0x268] sm:$0xff]  ;;  %v3724_v26 = vld [vmem:[%s4738_s1 + $0x370] sm:$0xff]  }
  0x70   :  { %v3723_v25 = vld [vmem:[%s4738_s1 + $0x3a8] sm:$0xff]  }
  0x71   :  { %3354 = vmatpush3.bf16.msra.mxu0 %v3681_v40  ;;  %v44_v40 = vld [vmem:[%s4739_s0 + $0xa0] sm:$0xff] }
  0x72   :  { %3418 = vmatpush3.bf16.msra.mxu1 %v3683_v41  ;;  %3355 = vmatprep.subr.bf16.mxu0 %v3684_v42  ;;  %v52_v41 = vld [vmem:[%s4739_s0 + $0xe0] sm:$0xff]  ;;  %v2764_v42 = vcombine.low %v28_v32, %v36_v33  ;;  %v3725_v32 = vld [vmem:[%s4738_s1 + $0x330] sm:$0xff]  }
  0x73   :  { %2066 = vmatmul.mubr.bf16.gmra.mrb[40].mxu0 %v2792_v43  ;;  %3419 = vmatprep.subr.bf16.mxu1 %v3686_v44  ;;  %v45_v43 = vld [vmem:[%s4739_s0 + $0xa8] sm:$0xff]  ;;  %v3727_v33 = vld [vmem:[%s4738_s1 + $0x3b0] sm:$0xff]  }
  0x74   :  { %2163 = vmatmul.mubr.bf16.gmra.mrb[40].mxu1 %v2794_v45  ;;  %2073 = vmatprep.mubr.bf16.mxu0 %v2809_v46  ;;  %v53_v44 = vld [vmem:[%s4739_s0 + $0xe8] sm:$0xff]  ;;  %v2766_v45 = vcombine.low %v29_v34, %v37_v35  ;;  %v3701_v46 = vld [vmem:[%s4738_s1 + $0x300] sm:$0xff]   ;;  %v3728_v34 = vld [vmem:[%s4738_s1 + $0x378] sm:$0xff]  }
  0x75   :  { %2170 = vmatprep.mubr.bf16.mxu1 %v2811_v48  ;;  %3356 = vmatpush3.bf16.msra.mxu0 %v3685_v47  ;;  %v3703_v47 = vld [vmem:[%s4738_s1 + $0x380] sm:$0xff]   ;;  %v2781_v48 = vcombine.high %v44_v40, %v52_v41  ;;  %v3730_v35 = vld [vmem:[%s4738_s1 + $0x3f8] sm:$0xff]  }
  0x76   :  { %3420 = vmatpush3.bf16.msra.mxu1 %v3687_v49  ;;  %3357 = vmatprep.subr.bf16.mxu0 %v3688_v50  ;;  %v2783_v49 = vcombine.high %v45_v43, %v53_v44  ;;  %v3704_v50 = vld [vmem:[%s4738_s1 + $0x348] sm:$0xff]  }
  0x77   :  { %3421 = vmatprep.subr.bf16.mxu1 %v3690_v52  ;;  %v3705_v52 = vld [vmem:[%s4738_s1 + $0x308] sm:$0xff]  }
  0x79   :  { %3358 = vmatpush3.bf16.msra.mxu0 %v3689_v56  ;;  %v3708_v56 = vld [vmem:[%s4738_s1 + $0x350] sm:$0xff]  }
  0x7a   :  { %3422 = vmatpush3.bf16.msra.mxu1 %v3691_v57  ;;  %3359 = vmatprep.subr.bf16.mxu0 %v3692_v58  ;;  %v61_v57 = vld [vmem:[%s4739_s0 + $0x128] sm:$0xff] }
  0x7b   :  { %2074 = vmatmul.mubr.bf16.gmra.mrb[44].mxu0 %v2808_v59  ;;  %3423 = vmatprep.subr.bf16.mxu1 %v3694_v60  ;;  %v69_v58 = vld [vmem:[%s4739_s0 + $0x168] sm:$0xff]  ;;  %v3710_v59 = vld [vmem:[%s4738_s1 + $0x3d0] sm:$0xff]   ;;  %v2780_v60 = vcombine.low %v44_v40, %v52_v41  ;;  %v3731_v41 = vld [vmem:[%s4738_s1 + $0x3b8] sm:$0xff]  }
  0x7c   :  { %2171 = vmatmul.mubr.bf16.gmra.mrb[44].mxu1 %v2810_v61  ;;  %2081 = vmatprep.mubr.bf16.mxu0 %v2825_v62  ;;  %v2782_v61 = vcombine.low %v45_v43, %v53_v44  ;;  %v2797_v62 = vcombine.high %v60_v54, %v68_v55  ;;  %v117_v40 = vld [vmem:[%s4739_s0 + $0x2e8] sm:$0xff] }
  0x7d   :  { %2178 = vmatprep.mubr.bf16.mxu1 %v2827_v63  ;;  %3360 = vmatpush3.bf16.msra.mxu0 %v3693_v0  ;;  %v2799_v63 = vcombine.high %v61_v57, %v69_v58  ;;  %v3709_v0 = vld [vmem:[%s4738_s1 + $0x310] sm:$0xff]  }
  0x7e   :  { %3424 = vmatpush3.bf16.msra.mxu1 %v3695_v1  ;;  %3361 = vmatprep.subr.bf16.mxu0 %v3696_v2  ;;  %v3711_v1 = vld [vmem:[%s4738_s1 + $0x390] sm:$0xff]   ;;  %v3712_v2 = vld [vmem:[%s4738_s1 + $0x358] sm:$0xff]  }
  0x7f   :  { %3425 = vmatprep.subr.bf16.mxu1 %v3698_v5  ;;  %v84_v5 = vld [vmem:[%s4739_s0 + $0x1e0] sm:$0xff] }
  0x80   :  { %v2812_v27 = vcombine.low %v76_v4, %v84_v5 }
  0x81   :  { %3362 = vmatpush3.bf16.msra.mxu0 %v3697_v8  ;;  %v85_v8 = vld [vmem:[%s4739_s0 + $0x1e8] sm:$0xff] }
  0x82   :  { %3426 = vmatpush3.bf16.msra.mxu1 %v3699_v9  ;;  %3475 = vmatprep.subr.bf16.mxu0 %v3700_v10  ;;  %v3715_v9 = vld [vmem:[%s4738_s1 + $0x398] sm:$0xff]   ;;  %v3716_v10 = vld [vmem:[%s4738_s1 + $0x360] sm:$0xff]  }
  0x83   :  { %2082 = vmatmul.mubr.bf16.gmra.mrb[48].mxu0 %v2824_v11  ;;  %3539 = vmatprep.subr.bf16.mxu1 %v3702_v12  ;;  %v2796_v11 = vcombine.low %v60_v54, %v68_v55  ;;  %v3718_v12 = vld [vmem:[%s4738_s1 + $0x3e0] sm:$0xff]  }
  0x84   :  { %2179 = vmatmul.mubr.bf16.gmra.mrb[48].mxu1 %v2826_v13  ;;  %2089 = vmatprep.mubr.bf16.mxu0 %v2841_v14  ;;  %v2798_v13 = vcombine.low %v61_v57, %v69_v58  ;;  %v2813_v14 = vcombine.high %v76_v4, %v84_v5  ;;  %v140_v54 = vld [vmem:[%s4739_s0 + $0x3a0] sm:$0xff]  ;;  %v149_v57 = vld [vmem:[%s4739_s0 + $0x3e8] sm:$0xff] }
  0x85   :  { %2186 = vmatprep.mubr.bf16.mxu1 %v2843_v15  ;;  %v2815_v15 = vcombine.high %v77_v6, %v85_v8  ;;  %v148_v55 = vld [vmem:[%s4739_s0 + $0x3e0] sm:$0xff] }
  0x8b   :  { %2090 = vmatmul.mubr.bf16.gmra.mrb[52].mxu0 %v2840_v20  ;;  %v92_v20 = vld [vmem:[%s4739_s0 + $0x220] sm:$0xff] }
  0x8c   :  { %2187 = vmatmul.mubr.bf16.gmra.mrb[52].mxu1 %v2842_v21  ;;  %2097 = vmatprep.mubr.bf16.mxu0 %v2857_v22  ;;  %v100_v21 = vld [vmem:[%s4739_s0 + $0x260] sm:$0xff]  ;;  %v93_v22 = vld [vmem:[%s4739_s0 + $0x228] sm:$0xff] }
  0x8d   :  { %2194 = vmatprep.mubr.bf16.mxu1 %v2859_v23  ;;  %v3721_v23 = vld [vmem:[%s4738_s1 + $0x328] sm:$0xff]   ;;  %v2830_v43 = vcombine.low %v93_v22, %v101_v24 }
  0x93   :  { %2098 = vmatmul.mubr.bf16.gmra.mrb[56].mxu0 %v2856_v28  ;;  %v3726_v28 = vld [vmem:[%s4738_s1 + $0x3f0] sm:$0xff]  }
  0x94   :  { %2195 = vmatmul.mubr.bf16.gmra.mrb[56].mxu1 %v2858_v29  ;;  %2105 = vmatprep.mubr.bf16.mxu0 %v2873_v30  ;;  %v2814_v29 = vcombine.low %v77_v6, %v85_v8  ;;  %v2829_v30 = vcombine.high %v92_v20, %v100_v21  ;;  %v46_v6 = vld [vmem:[%s4739_s0 + $0xb0] sm:$0xff]  ;;  %v47_v8 = vld [vmem:[%s4739_s0 + $0xb8] sm:$0xff] }
  0x95   :  { %2202 = vmatprep.mubr.bf16.mxu1 %v2875_v31  ;;  %v2831_v31 = vcombine.high %v93_v22, %v101_v24  ;;  %v78_v22 = vld [vmem:[%s4739_s0 + $0x1b0] sm:$0xff]  ;;  %v79_v24 = vld [vmem:[%s4739_s0 + $0x1b8] sm:$0xff] }
  0x9b   :  { %2106 = vmatmul.mubr.bf16.gmra.mrb[60].mxu0 %v2872_v36  ;;  %v108_v36 = vld [vmem:[%s4739_s0 + $0x2a0] sm:$0xff] }
  0x9c   :  { %2203 = vmatmul.mubr.bf16.gmra.mrb[60].mxu1 %v2874_v37  ;;  %2243 = vmatprep.mubr.bf16.mxu0 %v2765_v38  ;;  %v116_v37 = vld [vmem:[%s4739_s0 + $0x2e0] sm:$0xff]  ;;  %v3729_v38 = vld [vmem:[%s4738_s1 + $0x338] sm:$0xff]  }
  0x9d   :  { %2340 = vmatprep.mubr.bf16.mxu1 %v2767_v39  ;;  %v109_v39 = vld [vmem:[%s4739_s0 + $0x2a8] sm:$0xff]  ;;  %v2845_v44 = vcombine.high %v108_v36, %v116_v37 }
  0xa3   :  { %2244 = vmatmul.mubr.bf16.vlgmr.msra.gmra.mrb[64].mxu0 %v2764_v42  ;;  %v2828_v42 = vcombine.low %v92_v20, %v100_v21 }
  0xa4   :  { %2341 = vmatmul.mubr.bf16.vlgmr.msra.gmra.mrb[64].mxu1 %v2766_v45  ;;  %3476 = vmatpush3.bf16.msra.mxu0 %v3701_v46  ;;  %v2847_v45 = vcombine.high %v109_v39, %v117_v40  ;;  %v124_v46 = vld [vmem:[%s4739_s0 + $0x320] sm:$0xff] }
  0xa5   :  { %3540 = vmatpush3.bf16.msra.mxu1 %v3703_v47  ;;  %2251 = vmatprep.mubr.bf16.mxu0 %v2781_v48  ;;  %v132_v47 = vld [vmem:[%s4739_s0 + $0x360] sm:$0xff]  ;;  %v125_v48 = vld [vmem:[%s4739_s0 + $0x328] sm:$0xff] }
  0xa6   :  { %2348 = vmatprep.mubr.bf16.mxu1 %v2783_v49  ;;  %3477 = vmatprep.subr.bf16.mxu0 %v3704_v50  ;;  %v133_v49 = vld [vmem:[%s4739_s0 + $0x368] sm:$0xff]  ;;  %v2844_v50 = vcombine.low %v108_v36, %v116_v37  ;;  %v2860_v58 = vcombine.low %v124_v46, %v132_v47  ;;  %v4498_v36 = vld [vmem:[%s4740_s2] ss:$0 sm:$0xff] }
  0xa7   :  { %3541 = vmatprep.subr.bf16.mxu1 %v3706_v51  ;;  %v2846_v51 = vcombine.low %v109_v39, %v117_v40 }
  0xa8   :  { %3478 = vmatpush3.bf16.msra.mxu0 %v3705_v52  ;;  %v2861_v52 = vcombine.high %v124_v46, %v132_v47 }
  0xa9   :  { %3542 = vmatpush3.bf16.msra.mxu1 %v3707_v53  ;;  %3479 = vmatprep.subr.bf16.mxu0 %v3708_v56  ;;  %v2863_v53 = vcombine.high %v125_v48, %v133_v49  ;;  %v141_v56 = vld [vmem:[%s4739_s0 + $0x3a8] sm:$0xff] }
  0xaa   :  { %3543 = vmatprep.subr.bf16.mxu1 %v3710_v59  ;;  %v2862_v59 = vcombine.low %v125_v48, %v133_v49 }
  0xab   :  { %2252 = vmatmul.mubr.bf16.gmra.mrb[68].mxu0 %v2780_v60  ;;  %v2877_v60 = vcombine.high %v140_v54, %v148_v55 }
  0xac   :  { %2349 = vmatmul.mubr.bf16.gmra.mrb[68].mxu1 %v2782_v61  ;;  %2259 = vmatprep.mubr.bf16.mxu0 %v2797_v62  ;;  %v2879_v61 = vcombine.high %v141_v56, %v149_v57  ;;  %v30_v62 = vld [vmem:[%s4739_s0 + $0x30] sm:$0xff] }
  0xad   :  { %2356 = vmatprep.mubr.bf16.mxu1 %v2799_v63  ;;  %3480 = vmatpush3.bf16.msra.mxu0 %v3709_v0  ;;  %v38_v63 = vld [vmem:[%s4739_s0 + $0x70] sm:$0xff]  ;;  %v31_v0 = vld [vmem:[%s4739_s0 + $0x38] sm:$0xff] }
  0xae   :  { %3544 = vmatpush3.bf16.msra.mxu1 %v3711_v1  ;;  %3481 = vmatprep.subr.bf16.mxu0 %v3712_v2  ;;  %v39_v1 = vld [vmem:[%s4739_s0 + $0x78] sm:$0xff]  ;;  %v2876_v2 = vcombine.low %v140_v54, %v148_v55  ;;  %v2769_v4 = vcombine.high %v30_v62, %v38_v63  ;;  %v110_v54 = vld [vmem:[%s4739_s0 + $0x2b0] sm:$0xff] }
  0xaf   :  { %3545 = vmatprep.subr.bf16.mxu1 %v3714_v3  ;;  %v2878_v3 = vcombine.low %v141_v56, %v149_v57  ;;  %v2771_v5 = vcombine.high %v31_v0, %v39_v1  ;;  %v118_v55 = vld [vmem:[%s4739_s0 + $0x2f0] sm:$0xff] }
  0xb1   :  { %3482 = vmatpush3.bf16.msra.mxu0 %v3713_v7  ;;  %v54_v7 = vld [vmem:[%s4739_s0 + $0xf0] sm:$0xff] }
  0xb2   :  { %3546 = vmatpush3.bf16.msra.mxu1 %v3715_v9  ;;  %3483 = vmatprep.subr.bf16.mxu0 %v3716_v10  ;;  %v55_v9 = vld [vmem:[%s4739_s0 + $0xf8] sm:$0xff]  ;;  %v2768_v10 = vcombine.low %v30_v62, %v38_v63 }
  0xb3   :  { %2260 = vmatmul.mubr.bf16.gmra.mrb[72].mxu0 %v2796_v11  ;;  %3547 = vmatprep.subr.bf16.mxu1 %v3718_v12  ;;  %v2770_v11 = vcombine.low %v31_v0, %v39_v1  ;;  %v2785_v12 = vcombine.high %v46_v6, %v54_v7 }
  0xb4   :  { %2357 = vmatmul.mubr.bf16.gmra.mrb[72].mxu1 %v2798_v13  ;;  %2267 = vmatprep.mubr.bf16.mxu0 %v2813_v14  ;;  %v2787_v13 = vcombine.high %v47_v8, %v55_v9  ;;  %v62_v14 = vld [vmem:[%s4739_s0 + $0x130] sm:$0xff] }
  0xb5   :  { %2364 = vmatprep.mubr.bf16.mxu1 %v2815_v15  ;;  %3484 = vmatpush3.bf16.msra.mxu0 %v3717_v16  ;;  %v70_v15 = vld [vmem:[%s4739_s0 + $0x170] sm:$0xff]  ;;  %v63_v16 = vld [vmem:[%s4739_s0 + $0x138] sm:$0xff] }
  0xb6   :  { %3548 = vmatpush3.bf16.msra.mxu1 %v3719_v17  ;;  %3485 = vmatprep.subr.bf16.mxu0 %v3720_v18  ;;  %v71_v17 = vld [vmem:[%s4739_s0 + $0x178] sm:$0xff]  ;;  %v2784_v18 = vcombine.low %v46_v6, %v54_v7  ;;  %v2801_v20 = vcombine.high %v62_v14, %v70_v15 }
  0xb7   :  { %3549 = vmatprep.subr.bf16.mxu1 %v3722_v19  ;;  %v2786_v19 = vcombine.low %v47_v8, %v55_v9  ;;  %v2803_v21 = vcombine.high %v63_v16, %v71_v17 }
  0xb9   :  { %3486 = vmatpush3.bf16.msra.mxu0 %v3721_v23  ;;  %v86_v23 = vld [vmem:[%s4739_s0 + $0x1f0] sm:$0xff] }
  0xba   :  { %3550 = vmatpush3.bf16.msra.mxu1 %v3723_v25  ;;  %3487 = vmatprep.subr.bf16.mxu0 %v3724_v26  ;;  %v87_v25 = vld [vmem:[%s4739_s0 + $0x1f8] sm:$0xff]  ;;  %v2800_v26 = vcombine.low %v62_v14, %v70_v15  ;;  %v126_v14 = vld [vmem:[%s4739_s0 + $0x330] sm:$0xff] }
  0xbb   :  { %2268 = vmatmul.mubr.bf16.gmra.mrb[76].mxu0 %v2812_v27  ;;  %3551 = vmatprep.subr.bf16.mxu1 %v3726_v28  ;;  %v2802_v27 = vcombine.low %v63_v16, %v71_v17  ;;  %v2817_v28 = vcombine.high %v78_v22, %v86_v23  ;;  %v134_v15 = vld [vmem:[%s4739_s0 + $0x370] sm:$0xff] }
  0xbc   :  { %2365 = vmatmul.mubr.bf16.gmra.mrb[76].mxu1 %v2814_v29  ;;  %2275 = vmatprep.mubr.bf16.mxu0 %v2829_v30  ;;  %v2819_v29 = vcombine.high %v79_v24, %v87_v25  ;;  %v94_v30 = vld [vmem:[%s4739_s0 + $0x230] sm:$0xff] }
  0xbd   :  { %2372 = vmatprep.mubr.bf16.mxu1 %v2831_v31  ;;  %3488 = vmatpush3.bf16.msra.mxu0 %v3725_v32  ;;  %v102_v31 = vld [vmem:[%s4739_s0 + $0x270] sm:$0xff] }
  0xbe   :  { %3552 = vmatpush3.bf16.msra.mxu1 %v3727_v33  ;;  %3489 = vmatprep.subr.bf16.mxu0 %v3728_v34  ;;  %v95_v33 = vld [vmem:[%s4739_s0 + $0x238] sm:$0xff]  ;;  %v2832_v62 = vcombine.low %v94_v30, %v102_v31 }
  0xbf   :  { %3553 = vmatprep.subr.bf16.mxu1 %v3730_v35  ;;  %v103_v34 = vld [vmem:[%s4739_s0 + $0x278] sm:$0xff] }
  0xc0   :  { %v2835_v47 = vcombine.high %v95_v33, %v103_v34 }
  0xc1   :  { %3490 = vmatpush3.bf16.msra.mxu0 %v3729_v38  ;;  %v2816_v38 = vcombine.low %v78_v22, %v86_v23  ;;  %v2848_v22 = vcombine.low %v110_v54, %v118_v55 }
  0xc2   :  { %3554 = vmatpush3.bf16.msra.mxu1 %v3731_v41 }
  0xc3   :  { %2276 = vmatmul.mubr.bf16.gmra.mrb[80].mxu0 %v2828_v42  ;;  %v2818_v42 = vcombine.low %v79_v24, %v87_v25 }
  0xc4   :  { %2373 = vmatmul.mubr.bf16.gmra.mrb[80].mxu1 %v2830_v43  ;;  %2283 = vmatprep.mubr.bf16.mxu0 %v2845_v44  ;;  %v2833_v43 = vcombine.high %v94_v30, %v102_v31 }
  0xc5   :  { %2380 = vmatprep.mubr.bf16.mxu1 %v2847_v45 }
  0xcb   :  { %2284 = vmatmul.mubr.bf16.gmra.mrb[84].mxu0 %v2844_v50 }
  0xcc   :  { %2381 = vmatmul.mubr.bf16.gmra.mrb[84].mxu1 %v2846_v51  ;;  %2291 = vmatprep.mubr.bf16.mxu0 %v2861_v52 }
  0xcd   :  { %2388 = vmatprep.mubr.bf16.mxu1 %v2863_v53 }
  0xd3   :  { %2292 = vmatmul.mubr.bf16.gmra.mrb[88].mxu0 %v2860_v58  ;;  %v111_v58 = vld [vmem:[%s4739_s0 + $0x2b8] sm:$0xff] }
  0xd4   :  { %2389 = vmatmul.mubr.bf16.gmra.mrb[88].mxu1 %v2862_v59  ;;  %2299 = vmatprep.mubr.bf16.mxu0 %v2877_v60  ;;  %v119_v59 = vld [vmem:[%s4739_s0 + $0x2f8] sm:$0xff] }
  0xd5   :  { %2396 = vmatprep.mubr.bf16.mxu1 %v2879_v61  ;;  %v2851_v7 = vcombine.high %v111_v58, %v119_v59 }
  0xdb   :  { %2300 = vmatmul.mubr.bf16.gmra.mrb[92].mxu0 %v2876_v2  ;;  %v2834_v2 = vcombine.low %v95_v33, %v103_v34 }
  0xdc   :  { %2397 = vmatmul.mubr.bf16.gmra.mrb[92].mxu1 %v2878_v3  ;;  %2437 = vmatprep.mubr.bf16.mxu0 %v2769_v4  ;;  %v2849_v3 = vcombine.high %v110_v54, %v118_v55 }
  0xdd   :  { %2534 = vmatprep.mubr.bf16.mxu1 %v2771_v5 }
  0xe3   :  { %2438 = vmatmul.mubr.bf16.vlgmr.msra.gmra.mrb[96].mxu0 %v2768_v10 }
  0xe4   :  { %2535 = vmatmul.mubr.bf16.vlgmr.msra.gmra.mrb[96].mxu1 %v2770_v11  ;;  %2445 = vmatprep.mubr.bf16.mxu0 %v2785_v12 }
  0xe5   :  { %2542 = vmatprep.mubr.bf16.mxu1 %v2787_v13 }
  0xeb   :  { %2446 = vmatmul.mubr.bf16.gmra.mrb[100].mxu0 %v2784_v18  ;;  %v127_v18 = vld [vmem:[%s4739_s0 + $0x338] sm:$0xff] }
  0xec   :  { %2543 = vmatmul.mubr.bf16.gmra.mrb[100].mxu1 %v2786_v19  ;;  %2453 = vmatprep.mubr.bf16.mxu0 %v2801_v20  ;;  %v135_v19 = vld [vmem:[%s4739_s0 + $0x378] sm:$0xff] }
  0xed   :  { %2550 = vmatprep.mubr.bf16.mxu1 %v2803_v21  ;;  %v2867_v31 = vcombine.high %v127_v18, %v135_v19 }
  0xf3   :  { %2454 = vmatmul.mubr.bf16.gmra.mrb[104].mxu0 %v2800_v26  ;;  %v2850_v26 = vcombine.low %v111_v58, %v119_v59 }
  0xf4   :  { %2551 = vmatmul.mubr.bf16.gmra.mrb[104].mxu1 %v2802_v27  ;;  %2461 = vmatprep.mubr.bf16.mxu0 %v2817_v28  ;;  %v2865_v27 = vcombine.high %v126_v14, %v134_v15 }
  0xf5   :  { %2558 = vmatprep.mubr.bf16.mxu1 %v2819_v29 }
  0xf6   :  { %v3107_v32 = vpop.f32.mrb[0].mxu0 }
  0xf7   :  { %v3171_v35 = vpop.f32.mrb[0].mxu1  ;;  %v3108_v37 = vpop.f32.mrb[1].mxu0 }
  0xf8   :  { %v3109_v39 = vadd.f32 %v3108_v37, %v3107_v32  ;;  %v3172_v40 = vpop.f32.mrb[1].mxu1  ;;  %v3110_v41 = vpop.f32.mrb[2].mxu0 }
  0xf9   :  { %v3173_v44 = vadd.f32 %v3172_v40, %v3171_v35  ;;  %v3174_v45 = vpop.f32.mrb[2].mxu1  ;;  %v3111_v46 = vpop.f32.mrb[3].mxu0  ;;  %v150_v40 = vld [vmem:[%s4739_s0 + $0x3f0] sm:$0xff] }
  0xfa   :  { %v1858_v48 = vadd.f32 %v3109_v39, %v4498_v36  ;;  %v3112_v49 = vadd.f32 %v3111_v46, %v3110_v41  ;;  %v3175_v50 = vpop.f32.mrb[3].mxu1  ;;  %v142_v39 = vld [vmem:[%s4739_s0 + $0x3b0] sm:$0xff] }
  0xfb   :  { %v3176_v51 = vadd.f32 %v3175_v50, %v3174_v45  ;;  %2462 = vmatmul.mubr.bf16.gmra.mrb[108].mxu0 %v2816_v38 }
  0xfc   :  { %v4501_v52 = vadd.f32 %v3173_v44, %v1858_v48  ;;  %v1861_v53 = vadd.f32 %v3112_v49, %v4498_v36  ;;  %2559 = vmatmul.mubr.bf16.gmra.mrb[108].mxu1 %v2818_v42  ;;  %2469 = vmatprep.mubr.bf16.mxu0 %v2833_v43  ;;  %v143_v43 = vld [vmem:[%s4739_s0 + $0x3b8] sm:$0xff] }
  0xfd   :  { %2566 = vmatprep.mubr.bf16.mxu1 %v2835_v47  ;;  %v151_v44 = vld [vmem:[%s4739_s0 + $0x3f8] sm:$0xff]  ;;  %v2864_v47 = vcombine.low %v126_v14, %v134_v15 }
  0xfe   :  { %v4510_v56 = vadd.f32 %v3176_v51, %v1861_v53  ;;  %v3113_v57 = vpop.f32.mrb[4].mxu0  ;;  %v2866_v51 = vcombine.low %v127_v18, %v135_v19  ;;  %v2881_v53 = vcombine.high %v142_v39, %v150_v40  ;;  %v2883_v58 = vcombine.high %v143_v43, %v151_v44 }
  0xff   :  { %v3177_v60 = vpop.f32.mrb[4].mxu1  ;;  %v3114_v61 = vpop.f32.mrb[5].mxu0 }
 0x100   :  { %v3115_v63 = vadd.f32 %v3114_v61, %v3113_v57  ;;  %v3178_v0 = vpop.f32.mrb[5].mxu1  ;;  %v3116_v1 = vpop.f32.mrb[6].mxu0 }
 0x101   :  { %v3179_v4 = vadd.f32 %v3178_v0, %v3177_v60  ;;  %v3180_v5 = vpop.f32.mrb[6].mxu1  ;;  %v3117_v6 = vpop.f32.mrb[7].mxu0 }
 0x102   :  { %v1866_v8 = vadd.f32 %v3115_v63, %v4498_v36  ;;  %v3118_v9 = vadd.f32 %v3117_v6, %v3116_v1  ;;  %v3181_v10 = vpop.f32.mrb[7].mxu1 }
 0x103   :  { %v3182_v11 = vadd.f32 %v3181_v10, %v3180_v5  ;;  %2470 = vmatmul.mubr.bf16.gmra.mrb[112].mxu0 %v2832_v62  ;;  %v2880_v5 = vcombine.low %v142_v39, %v150_v40 }
 0x104   :  { %v4519_v12 = vadd.f32 %v3179_v4, %v1866_v8  ;;  %v1869_v13 = vadd.f32 %v3118_v9, %v4498_v36  ;;  %2567 = vmatmul.mubr.bf16.gmra.mrb[112].mxu1 %v2834_v2  ;;  %2477 = vmatprep.mubr.bf16.mxu0 %v2849_v3  ;;  %v2882_v9 = vcombine.low %v143_v43, %v151_v44 }
 0x105   :  { %2574 = vmatprep.mubr.bf16.mxu1 %v2851_v7 }
 0x106   :  { %v4528_v16 = vadd.f32 %v3182_v11, %v1869_v13  ;;  %v3119_v17 = vpop.f32.mrb[8].mxu0 }
 0x107   :  { %v3183_v20 = vpop.f32.mrb[8].mxu1  ;;  %v3120_v21 = vpop.f32.mrb[9].mxu0 }
 0x108   :  { %v3121_v23 = vadd.f32 %v3120_v21, %v3119_v17  ;;  %v3184_v24 = vpop.f32.mrb[9].mxu1  ;;  %v3122_v25 = vpop.f32.mrb[10].mxu0 }
 0x109   :  { %v3185_v28 = vadd.f32 %v3184_v24, %v3183_v20  ;;  %v3186_v29 = vpop.f32.mrb[10].mxu1  ;;  %v3123_v30 = vpop.f32.mrb[11].mxu0 }
 0x10a   :  { %v1874_v32 = vadd.f32 %v3121_v23, %v4498_v36  ;;  %v3124_v33 = vadd.f32 %v3123_v30, %v3122_v25  ;;  %v3187_v34 = vpop.f32.mrb[11].mxu1 }
 0x10b   :  { %v3188_v35 = vadd.f32 %v3187_v34, %v3186_v29  ;;  %2478 = vmatmul.mubr.bf16.gmra.mrb[116].mxu0 %v2848_v22 }
 0x10c   :  { %v4537_v37 = vadd.f32 %v3185_v28, %v1874_v32  ;;  %v1877_v38 = vadd.f32 %v3124_v33, %v4498_v36  ;;  %2575 = vmatmul.mubr.bf16.gmra.mrb[116].mxu1 %v2850_v26  ;;  %2485 = vmatprep.mubr.bf16.mxu0 %v2865_v27 }
 0x10d   :  { %2582 = vmatprep.mubr.bf16.mxu1 %v2867_v31 }
 0x10e   :  { %v4546_v41 = vadd.f32 %v3188_v35, %v1877_v38  ;;  %v3125_v42 = vpop.f32.mrb[12].mxu0 }
 0x10f   :  { %v3189_v45 = vpop.f32.mrb[12].mxu1  ;;  %v3126_v46 = vpop.f32.mrb[13].mxu0 }
 0x110   :  { %v3127_v48 = vadd.f32 %v3126_v46, %v3125_v42  ;;  %v3190_v49 = vpop.f32.mrb[13].mxu1  ;;  %v3128_v50 = vpop.f32.mrb[14].mxu0 }
 0x111   :  { %v3191_v54 = vadd.f32 %v3190_v49, %v3189_v45  ;;  %v3192_v55 = vpop.f32.mrb[14].mxu1  ;;  %v3129_v57 = vpop.f32.mrb[15].mxu0 }
 0x112   :  { %v1882_v59 = vadd.f32 %v3127_v48, %v4498_v36  ;;  %v3130_v60 = vadd.f32 %v3129_v57, %v3128_v50  ;;  %v3193_v61 = vpop.f32.mrb[15].mxu1 }
 0x113   :  { %v3194_v62 = vadd.f32 %v3193_v61, %v3192_v55  ;;  %2486 = vmatmul.mubr.bf16.gmra.mrb[120].mxu0 %v2864_v47 }
 0x114   :  { %v4555_v63 = vadd.f32 %v3191_v54, %v1882_v59  ;;  %v1885_v0 = vadd.f32 %v3130_v60, %v4498_v36  ;;  %2583 = vmatmul.mubr.bf16.gmra.mrb[120].mxu1 %v2866_v51  ;;  %2493 = vmatprep.mubr.bf16.mxu0 %v2881_v53 }
 0x115   :  { %2590 = vmatprep.mubr.bf16.mxu1 %v2883_v58 }
 0x116   :  { %v4558_v1 = vadd.f32 %v3194_v62, %v1885_v0  ;;  %v3131_v2 = vpop.f32.mrb[16].mxu0 }
 0x117   :  { %v3195_v3 = vpop.f32.mrb[16].mxu1  ;;  %v3132_v4 = vpop.f32.mrb[17].mxu0 }
 0x118   :  { %v3133_v6 = vadd.f32 %v3132_v4, %v3131_v2  ;;  %v3196_v7 = vpop.f32.mrb[17].mxu1  ;;  %v3134_v8 = vpop.f32.mrb[18].mxu0 }
 0x119   :  { %v3197_v10 = vadd.f32 %v3196_v7, %v3195_v3  ;;  %v3198_v11 = vpop.f32.mrb[18].mxu1  ;;  %v3135_v13 = vpop.f32.mrb[19].mxu0 }
 0x11a   :  { %v1890_v14 = vadd.f32 %v3133_v6, %v4498_v36  ;;  %v3136_v15 = vadd.f32 %v3135_v13, %v3134_v8  ;;  %v3199_v17 = vpop.f32.mrb[19].mxu1 }
 0x11b   :  { %v3200_v18 = vadd.f32 %v3199_v17, %v3198_v11  ;;  %2494 = vmatmul.mubr.bf16.gmra.mrb[124].mxu0 %v2880_v5 }
 0x11c   :  { %v4561_v19 = vadd.f32 %v3197_v10, %v1890_v14  ;;  %v1893_v20 = vadd.f32 %v3136_v15, %v4498_v36  ;;  %2591 = vmatmul.mubr.bf16.gmra.mrb[124].mxu1 %v2882_v9 }
 0x11e   :  { %v4564_v21 = vadd.f32 %v3200_v18, %v1893_v20  ;;  %v3137_v22 = vpop.f32.mrb[20].mxu0 }
 0x11f   :  { %v3201_v23 = vpop.f32.mrb[20].mxu1  ;;  %v3138_v24 = vpop.f32.mrb[21].mxu0 }
 0x120   :  { %v3139_v25 = vadd.f32 %v3138_v24, %v3137_v22  ;;  %v3202_v26 = vpop.f32.mrb[21].mxu1  ;;  %v3140_v27 = vpop.f32.mrb[22].mxu0 }
 0x121   :  { %v3203_v28 = vadd.f32 %v3202_v26, %v3201_v23  ;;  %v3204_v29 = vpop.f32.mrb[22].mxu1  ;;  %v3141_v30 = vpop.f32.mrb[23].mxu0 }
 0x122   :  { %v1898_v31 = vadd.f32 %v3139_v25, %v4498_v36  ;;  %v3142_v32 = vadd.f32 %v3141_v30, %v3140_v27  ;;  %v3205_v33 = vpop.f32.mrb[23].mxu1 }
 0x123   :  { %v3206_v34 = vadd.f32 %v3205_v33, %v3204_v29 }
 0x124   :  { %v4567_v35 = vadd.f32 %v3203_v28, %v1898_v31  ;;  %v1901_v38 = vadd.f32 %v3142_v32, %v4498_v36 }
 0x126   :  { %v4570_v39 = vadd.f32 %v3206_v34, %v1901_v38  ;;  %v3143_v40 = vpop.f32.mrb[24].mxu0 }
 0x127   :  { %v3207_v42 = vpop.f32.mrb[24].mxu1  ;;  %v3144_v43 = vpop.f32.mrb[25].mxu0 }
 0x128   :  { %v3145_v44 = vadd.f32 %v3144_v43, %v3143_v40  ;;  %v3208_v45 = vpop.f32.mrb[25].mxu1  ;;  %v3146_v46 = vpop.f32.mrb[26].mxu0 }
 0x129   :  { %v3209_v47 = vadd.f32 %v3208_v45, %v3207_v42  ;;  %v3210_v48 = vpop.f32.mrb[26].mxu1  ;;  %v3147_v49 = vpop.f32.mrb[27].mxu0 }
 0x12a   :  { %v1906_v50 = vadd.f32 %v3145_v44, %v4498_v36  ;;  %v3148_v51 = vadd.f32 %v3147_v49, %v3146_v46  ;;  %v3211_v53 = vpop.f32.mrb[27].mxu1 }
 0x12b   :  { %v3212_v54 = vadd.f32 %v3211_v53, %v3210_v48 }
 0x12c   :  { %v4573_v55 = vadd.f32 %v3209_v47, %v1906_v50  ;;  %v1909_v57 = vadd.f32 %v3148_v51, %v4498_v36 }
 0x12e   :  { %v4576_v58 = vadd.f32 %v3212_v54, %v1909_v57  ;;  %v3149_v59 = vpop.f32.mrb[28].mxu0 }
 0x12f   :  { %v3213_v60 = vpop.f32.mrb[28].mxu1  ;;  %v3150_v61 = vpop.f32.mrb[29].mxu0 }
 0x130   :  { %v3151_v62 = vadd.f32 %v3150_v61, %v3149_v59  ;;  %v3214_v0 = vpop.f32.mrb[29].mxu1  ;;  %v3152_v2 = vpop.f32.mrb[30].mxu0 }
 0x131   :  { %v3215_v3 = vadd.f32 %v3214_v0, %v3213_v60  ;;  %v3216_v4 = vpop.f32.mrb[30].mxu1  ;;  %v3153_v5 = vpop.f32.mrb[31].mxu0 }
 0x132   :  { %v1914_v6 = vadd.f32 %v3151_v62, %v4498_v36  ;;  %v3154_v7 = vadd.f32 %v3153_v5, %v3152_v2  ;;  %v3217_v8 = vpop.f32.mrb[31].mxu1 }
 0x133   :  { %v3218_v9 = vadd.f32 %v3217_v8, %v3216_v4 }
 0x134   :  { %v4579_v10 = vadd.f32 %v3215_v3, %v1914_v6  ;;  %v1917_v11 = vadd.f32 %v3154_v7, %v4498_v36 }
 0x136   :  { %v4582_v13 = vadd.f32 %v3218_v9, %v1917_v11  ;;  %v3235_v14 = vpop.f32.mrb[32].mxu0 }
 0x137   :  { %v3299_v15 = vpop.f32.mrb[32].mxu1  ;;  %v3236_v17 = vpop.f32.mrb[33].mxu0 }
 0x138   :  { %v3237_v18 = vadd.f32 %v3236_v17, %v3235_v14  ;;  %v3300_v20 = vpop.f32.mrb[33].mxu1  ;;  %v3238_v22 = vpop.f32.mrb[34].mxu0 }
 0x139   :  { %v3301_v23 = vadd.f32 %v3300_v20, %v3299_v15  ;;  %v3302_v24 = vpop.f32.mrb[34].mxu1  ;;  %v3239_v25 = vpop.f32.mrb[35].mxu0 }
 0x13a   :  { %v2052_v26 = vadd.f32 %v3237_v18, %v4501_v52  ;;  %v3240_v27 = vadd.f32 %v3239_v25, %v3238_v22  ;;  %v3303_v28 = vpop.f32.mrb[35].mxu1 }
 0x13b   :  { %v3304_v29 = vadd.f32 %v3303_v28, %v3302_v24 }
 0x13c   :  { %v4585_v30 = vadd.f32 %v3301_v23, %v2052_v26  ;;  %v2055_v36 = vadd.f32 %v3240_v27, %v4510_v56 }
 0x13e   :  { %v4588_v31 = vadd.f32 %v3304_v29, %v2055_v36  ;;  %v3241_v32 = vpop.f32.mrb[36].mxu0 }
 0x13f   :  { %v3305_v33 = vpop.f32.mrb[36].mxu1  ;;  %v3242_v34 = vpop.f32.mrb[37].mxu0 }
 0x140   :  { %v3243_v38 = vadd.f32 %v3242_v34, %v3241_v32  ;;  %v3306_v40 = vpop.f32.mrb[37].mxu1  ;;  %v3244_v42 = vpop.f32.mrb[38].mxu0 }
 0x141   :  { %v3307_v43 = vadd.f32 %v3306_v40, %v3305_v33  ;;  %v3308_v44 = vpop.f32.mrb[38].mxu1  ;;  %v3245_v45 = vpop.f32.mrb[39].mxu0 }
 0x142   :  { %v2060_v52 = vadd.f32 %v3243_v38, %v4519_v12  ;;  %v3246_v46 = vadd.f32 %v3245_v45, %v3244_v42  ;;  %v3309_v47 = vpop.f32.mrb[39].mxu1 }
 0x143   :  { %v3310_v48 = vadd.f32 %v3309_v47, %v3308_v44 }
 0x144   :  { %v4591_v49 = vadd.f32 %v3307_v43, %v2060_v52  ;;  %v2063_v56 = vadd.f32 %v3246_v46, %v4528_v16 }
 0x146   :  { %v4594_v50 = vadd.f32 %v3310_v48, %v2063_v56  ;;  %v3247_v51 = vpop.f32.mrb[40].mxu0 }
 0x147   :  { %v3311_v53 = vpop.f32.mrb[40].mxu1  ;;  %v3248_v54 = vpop.f32.mrb[41].mxu0 }
 0x148   :  { %v3249_v57 = vadd.f32 %v3248_v54, %v3247_v51  ;;  %v3312_v59 = vpop.f32.mrb[41].mxu1  ;;  %v3250_v60 = vpop.f32.mrb[42].mxu0 }
 0x149   :  { %v3313_v61 = vadd.f32 %v3312_v59, %v3311_v53  ;;  %v3314_v62 = vpop.f32.mrb[42].mxu1  ;;  %v3251_v0 = vpop.f32.mrb[43].mxu0 }
 0x14a   :  { %v2068_v12 = vadd.f32 %v3249_v57, %v4537_v37  ;;  %v3252_v2 = vadd.f32 %v3251_v0, %v3250_v60  ;;  %v3315_v3 = vpop.f32.mrb[43].mxu1 }
 0x14b   :  { %v3316_v4 = vadd.f32 %v3315_v3, %v3314_v62 }
 0x14c   :  { %v4597_v5 = vadd.f32 %v3313_v61, %v2068_v12  ;;  %v2071_v16 = vadd.f32 %v3252_v2, %v4546_v41 }
 0x14e   :  { %v4600_v6 = vadd.f32 %v3316_v4, %v2071_v16  ;;  %v3253_v7 = vpop.f32.mrb[44].mxu0 }
 0x14f   :  { %v3317_v8 = vpop.f32.mrb[44].mxu1  ;;  %v3254_v9 = vpop.f32.mrb[45].mxu0 }
 0x150   :  { %v3255_v11 = vadd.f32 %v3254_v9, %v3253_v7  ;;  %v3318_v14 = vpop.f32.mrb[45].mxu1  ;;  %v3256_v15 = vpop.f32.mrb[46].mxu0 }
 0x151   :  { %v3319_v17 = vadd.f32 %v3318_v14, %v3317_v8  ;;  %v3320_v18 = vpop.f32.mrb[46].mxu1  ;;  %v3257_v20 = vpop.f32.mrb[47].mxu0 }
 0x152   :  { %v2076_v37 = vadd.f32 %v3255_v11, %v4555_v63  ;;  %v3258_v22 = vadd.f32 %v3257_v20, %v3256_v15  ;;  %v3321_v23 = vpop.f32.mrb[47].mxu1 }
 0x153   :  { %v3322_v24 = vadd.f32 %v3321_v23, %v3320_v18 }
 0x154   :  { %v4603_v25 = vadd.f32 %v3319_v17, %v2076_v37  ;;  %v2079_v41 = vadd.f32 %v3258_v22, %v4558_v1 }
 0x156   :  { %v4606_v26 = vadd.f32 %v3322_v24, %v2079_v41  ;;  %v3259_v27 = vpop.f32.mrb[48].mxu0 }
 0x157   :  { %v3323_v28 = vpop.f32.mrb[48].mxu1  ;;  %v3260_v29 = vpop.f32.mrb[49].mxu0 }
 0x158   :  { %v3261_v36 = vadd.f32 %v3260_v29, %v3259_v27  ;;  %v3324_v32 = vpop.f32.mrb[49].mxu1  ;;  %v3262_v33 = vpop.f32.mrb[50].mxu0 }
 0x159   :  { %v3325_v34 = vadd.f32 %v3324_v32, %v3323_v28  ;;  %v3326_v38 = vpop.f32.mrb[50].mxu1  ;;  %v3263_v40 = vpop.f32.mrb[51].mxu0 }
 0x15a   :  { %v2084_v63 = vadd.f32 %v3261_v36, %v4561_v19  ;;  %v3264_v42 = vadd.f32 %v3263_v40, %v3262_v33  ;;  %v3327_v43 = vpop.f32.mrb[51].mxu1 }
 0x15b   :  { %v3328_v44 = vadd.f32 %v3327_v43, %v3326_v38 }
 0x15c   :  { %v4609_v45 = vadd.f32 %v3325_v34, %v2084_v63  ;;  %v2087_v1 = vadd.f32 %v3264_v42, %v4564_v21 }
 0x15e   :  { %v4612_v52 = vadd.f32 %v3328_v44, %v2087_v1  ;;  %v3265_v46 = vpop.f32.mrb[52].mxu0 }
 0x15f   :  { %v3329_v47 = vpop.f32.mrb[52].mxu1  ;;  %v3266_v48 = vpop.f32.mrb[53].mxu0 }
 0x160   :  { %v3267_v56 = vadd.f32 %v3266_v48, %v3265_v46  ;;  %v3330_v51 = vpop.f32.mrb[53].mxu1  ;;  %v3268_v53 = vpop.f32.mrb[54].mxu0 }
 0x161   :  { %v3331_v54 = vadd.f32 %v3330_v51, %v3329_v47  ;;  %v3332_v57 = vpop.f32.mrb[54].mxu1  ;;  %v3269_v59 = vpop.f32.mrb[55].mxu0 }
 0x162   :  { %v2092_v19 = vadd.f32 %v3267_v56, %v4567_v35  ;;  %v3270_v60 = vadd.f32 %v3269_v59, %v3268_v53  ;;  %v3333_v61 = vpop.f32.mrb[55].mxu1  ;;  %v3732_v53 = vmov 0.0  }
 0x163   :  { %v3334_v62 = vadd.f32 %v3333_v61, %v3332_v57  ;;  %22 = vst [vmem:[%s4741_s4] sm:$0x1] %v3732_v53  ;;  %23 = vst [vmem:[%s4742_s5] sm:$0x1] %v3732_v53 }
 0x164   :  { %v4615_v0 = vadd.f32 %v3331_v54, %v2092_v19  ;;  %v2095_v21 = vadd.f32 %v3270_v60, %v4570_v39 }
 0x166   :  { %v4618_v12 = vadd.f32 %v3334_v62, %v2095_v21  ;;  %v3271_v2 = vpop.f32.mrb[56].mxu0 }
 0x167   :  { %v3335_v3 = vpop.f32.mrb[56].mxu1  ;;  %v3272_v4 = vpop.f32.mrb[57].mxu0 }
 0x168   :  { %v3273_v16 = vadd.f32 %v3272_v4, %v3271_v2  ;;  %v3336_v7 = vpop.f32.mrb[57].mxu1  ;;  %v3274_v8 = vpop.f32.mrb[58].mxu0 }
 0x169   :  { %v3337_v9 = vadd.f32 %v3336_v7, %v3335_v3  ;;  %v3338_v11 = vpop.f32.mrb[58].mxu1  ;;  %v3275_v14 = vpop.f32.mrb[59].mxu0 }
 0x16a   :  { %v2100_v35 = vadd.f32 %v3273_v16, %v4573_v55  ;;  %v3276_v15 = vadd.f32 %v3275_v14, %v3274_v8  ;;  %v3339_v17 = vpop.f32.mrb[59].mxu1 }
 0x16b   :  { %v3340_v18 = vadd.f32 %v3339_v17, %v3338_v11 }
 0x16c   :  { %v4621_v20 = vadd.f32 %v3337_v9, %v2100_v35  ;;  %v2103_v39 = vadd.f32 %v3276_v15, %v4576_v58 }
 0x16e   :  { %v4624_v37 = vadd.f32 %v3340_v18, %v2103_v39  ;;  %v3277_v22 = vpop.f32.mrb[60].mxu0 }
 0x16f   :  { %v3341_v23 = vpop.f32.mrb[60].mxu1  ;;  %v3278_v24 = vpop.f32.mrb[61].mxu0 }
 0x170   :  { %v3279_v41 = vadd.f32 %v3278_v24, %v3277_v22  ;;  %v3342_v27 = vpop.f32.mrb[61].mxu1  ;;  %v3280_v28 = vpop.f32.mrb[62].mxu0 }
 0x171   :  { %v3343_v29 = vadd.f32 %v3342_v27, %v3341_v23  ;;  %v3344_v36 = vpop.f32.mrb[62].mxu1  ;;  %v3281_v32 = vpop.f32.mrb[63].mxu0 }
 0x172   :  { %v2108_v55 = vadd.f32 %v3279_v41, %v4579_v10  ;;  %v3282_v33 = vadd.f32 %v3281_v32, %v3280_v28  ;;  %v3345_v34 = vpop.f32.mrb[63].mxu1 }
 0x173   :  { %v3346_v38 = vadd.f32 %v3345_v34, %v3344_v36 }
 0x174   :  { %v4627_v40 = vadd.f32 %v3343_v29, %v2108_v55  ;;  %v2111_v58 = vadd.f32 %v3282_v33, %v4582_v13 }
 0x176   :  { %v4630_v63 = vadd.f32 %v3346_v38, %v2111_v58  ;;  %v3363_v42 = vpop.f32.mrb[64].mxu0 }
 0x177   :  { %v3427_v43 = vpop.f32.mrb[64].mxu1  ;;  %v3364_v44 = vpop.f32.mrb[65].mxu0 }
 0x178   :  { %v3365_v1 = vadd.f32 %v3364_v44, %v3363_v42  ;;  %v3428_v46 = vpop.f32.mrb[65].mxu1  ;;  %v3366_v47 = vpop.f32.mrb[66].mxu0 }
 0x179   :  { %v3429_v48 = vadd.f32 %v3428_v46, %v3427_v43  ;;  %v3430_v56 = vpop.f32.mrb[66].mxu1  ;;  %v3367_v51 = vpop.f32.mrb[67].mxu0 }
 0x17a   :  { %v2246_v10 = vadd.f32 %v3365_v1, %v4585_v30  ;;  %v3368_v13 = vadd.f32 %v3367_v51, %v3366_v47  ;;  %v3431_v54 = vpop.f32.mrb[67].mxu1 }
 0x17b   :  { %v3432_v57 = vadd.f32 %v3431_v54, %v3430_v56 }
 0x17c   :  { %v4639_v59 = vadd.f32 %v3429_v48, %v2246_v10  ;;  %v2249_v19 = vadd.f32 %v3368_v13, %v4588_v31 }
 0x17e   :  { %v4642_v60 = vadd.f32 %v3432_v57, %v2249_v19  ;;  %v3369_v61 = vpop.f32.mrb[68].mxu0 }
 0x17f   :  { %v3433_v62 = vpop.f32.mrb[68].mxu1  ;;  %v3370_v21 = vpop.f32.mrb[69].mxu0 }
 0x180   :  { %v3371_v2 = vadd.f32 %v3370_v21, %v3369_v61  ;;  %v3434_v3 = vpop.f32.mrb[69].mxu1  ;;  %v3372_v4 = vpop.f32.mrb[70].mxu0 }
 0x181   :  { %v3435_v16 = vadd.f32 %v3434_v3, %v3433_v62  ;;  %v3436_v7 = vpop.f32.mrb[70].mxu1  ;;  %v3373_v8 = vpop.f32.mrb[71].mxu0 }
 0x182   :  { %v2254_v30 = vadd.f32 %v3371_v2, %v4591_v49  ;;  %v3374_v9 = vadd.f32 %v3373_v8, %v3372_v4  ;;  %v3437_v11 = vpop.f32.mrb[71].mxu1 }
 0x183   :  { %v3438_v14 = vadd.f32 %v3437_v11, %v3436_v7 }
 0x184   :  { %v4645_v35 = vadd.f32 %v3435_v16, %v2254_v30  ;;  %v2257_v31 = vadd.f32 %v3374_v9, %v4594_v50 }
 0x186   :  { %v4648_v15 = vadd.f32 %v3438_v14, %v2257_v31  ;;  %v3375_v17 = vpop.f32.mrb[72].mxu0 }
 0x187   :  { %v3439_v18 = vpop.f32.mrb[72].mxu1  ;;  %v3376_v39 = vpop.f32.mrb[73].mxu0 }
 0x188   :  { %v3377_v22 = vadd.f32 %v3376_v39, %v3375_v17  ;;  %v3440_v23 = vpop.f32.mrb[73].mxu1  ;;  %v3378_v24 = vpop.f32.mrb[74].mxu0 }
 0x189   :  { %v3441_v41 = vadd.f32 %v3440_v23, %v3439_v18  ;;  %v3442_v27 = vpop.f32.mrb[74].mxu1  ;;  %v3379_v28 = vpop.f32.mrb[75].mxu0 }
 0x18a   :  { %v2262_v49 = vadd.f32 %v3377_v22, %v4597_v5  ;;  %v3380_v29 = vadd.f32 %v3379_v28, %v3378_v24  ;;  %v3443_v36 = vpop.f32.mrb[75].mxu1 }
 0x18b   :  { %v3444_v32 = vadd.f32 %v3443_v36, %v3442_v27 }
 0x18c   :  { %v4651_v55 = vadd.f32 %v3441_v41, %v2262_v49  ;;  %v2265_v50 = vadd.f32 %v3380_v29, %v4600_v6 }
 0x18e   :  { %v4654_v33 = vadd.f32 %v3444_v32, %v2265_v50  ;;  %v3381_v34 = vpop.f32.mrb[76].mxu0 }
 0x18f   :  { %v3445_v38 = vpop.f32.mrb[76].mxu1  ;;  %v3382_v58 = vpop.f32.mrb[77].mxu0 }
 0x190   :  { %v3383_v42 = vadd.f32 %v3382_v58, %v3381_v34  ;;  %v3446_v43 = vpop.f32.mrb[77].mxu1  ;;  %v3384_v44 = vpop.f32.mrb[78].mxu0 }
 0x191   :  { %v3447_v1 = vadd.f32 %v3446_v43, %v3445_v38  ;;  %v3448_v46 = vpop.f32.mrb[78].mxu1  ;;  %v3385_v47 = vpop.f32.mrb[79].mxu0 }
 0x192   :  { %v2270_v5 = vadd.f32 %v3383_v42, %v4603_v25  ;;  %v3386_v48 = vadd.f32 %v3385_v47, %v3384_v44  ;;  %v3449_v56 = vpop.f32.mrb[79].mxu1 }
 0x193   :  { %v3450_v51 = vadd.f32 %v3449_v56, %v3448_v46 }
 0x194   :  { %v4657_v53 = vadd.f32 %v3447_v1, %v2270_v5  ;;  %v2273_v6 = vadd.f32 %v3386_v48, %v4606_v26 }
 0x196   :  { %v4660_v10 = vadd.f32 %v3450_v51, %v2273_v6  ;;  %v3387_v13 = vpop.f32.mrb[80].mxu0 }
 0x197   :  { %v3451_v54 = vpop.f32.mrb[80].mxu1  ;;  %v3388_v57 = vpop.f32.mrb[81].mxu0 }
 0x198   :  { %v3389_v19 = vadd.f32 %v3388_v57, %v3387_v13  ;;  %v3452_v61 = vpop.f32.mrb[81].mxu1  ;;  %v3390_v62 = vpop.f32.mrb[82].mxu0 }
 0x199   :  { %v3453_v21 = vadd.f32 %v3452_v61, %v3451_v54  ;;  %v3454_v2 = vpop.f32.mrb[82].mxu1  ;;  %v3391_v3 = vpop.f32.mrb[83].mxu0 }
 0x19a   :  { %v2278_v25 = vadd.f32 %v3389_v19, %v4609_v45  ;;  %v3392_v4 = vadd.f32 %v3391_v3, %v3390_v62  ;;  %v3455_v16 = vpop.f32.mrb[83].mxu1 }
 0x19b   :  { %v3456_v7 = vadd.f32 %v3455_v16, %v3454_v2 }
 0x19c   :  { %v4663_v8 = vadd.f32 %v3453_v21, %v2278_v25  ;;  %v2281_v26 = vadd.f32 %v3392_v4, %v4612_v52 }
 0x19e   :  { %v4666_v30 = vadd.f32 %v3456_v7, %v2281_v26  ;;  %v3393_v9 = vpop.f32.mrb[84].mxu0 }
 0x19f   :  { %v3457_v11 = vpop.f32.mrb[84].mxu1  ;;  %v3394_v14 = vpop.f32.mrb[85].mxu0 }
 0x1a0   :  { %v3395_v31 = vadd.f32 %v3394_v14, %v3393_v9  ;;  %v3458_v17 = vpop.f32.mrb[85].mxu1  ;;  %v3396_v18 = vpop.f32.mrb[86].mxu0 }
 0x1a1   :  { %v3459_v39 = vadd.f32 %v3458_v17, %v3457_v11  ;;  %v3460_v22 = vpop.f32.mrb[86].mxu1  ;;  %v3397_v23 = vpop.f32.mrb[87].mxu0 }
 0x1a2   :  { %v2286_v45 = vadd.f32 %v3395_v31, %v4615_v0  ;;  %v3398_v24 = vadd.f32 %v3397_v23, %v3396_v18  ;;  %v3461_v41 = vpop.f32.mrb[87].mxu1 }
 0x1a3   :  { %v3462_v27 = vadd.f32 %v3461_v41, %v3460_v22 }
 0x1a4   :  { %v4669_v28 = vadd.f32 %v3459_v39, %v2286_v45  ;;  %v2289_v52 = vadd.f32 %v3398_v24, %v4618_v12 }
 0x1a6   :  { %v4672_v49 = vadd.f32 %v3462_v27, %v2289_v52  ;;  %v3399_v29 = vpop.f32.mrb[88].mxu0 }
 0x1a7   :  { %v3463_v36 = vpop.f32.mrb[88].mxu1  ;;  %v3400_v32 = vpop.f32.mrb[89].mxu0 }
 0x1a8   :  { %v3401_v50 = vadd.f32 %v3400_v32, %v3399_v29  ;;  %v3464_v34 = vpop.f32.mrb[89].mxu1  ;;  %v3402_v38 = vpop.f32.mrb[90].mxu0 }
 0x1a9   :  { %v3465_v58 = vadd.f32 %v3464_v34, %v3463_v36  ;;  %v3466_v42 = vpop.f32.mrb[90].mxu1  ;;  %v3403_v43 = vpop.f32.mrb[91].mxu0 }
 0x1aa   :  { %v2294_v0 = vadd.f32 %v3401_v50, %v4621_v20  ;;  %v3404_v44 = vadd.f32 %v3403_v43, %v3402_v38  ;;  %v3467_v1 = vpop.f32.mrb[91].mxu1 }
 0x1ab   :  { %v3468_v46 = vadd.f32 %v3467_v1, %v3466_v42 }
 0x1ac   :  { %v4675_v47 = vadd.f32 %v3465_v58, %v2294_v0  ;;  %v2297_v12 = vadd.f32 %v3404_v44, %v4624_v37 }
 0x1ae   :  { %v4678_v5 = vadd.f32 %v3468_v46, %v2297_v12  ;;  %v3405_v48 = vpop.f32.mrb[92].mxu0 }
 0x1af   :  { %v3469_v56 = vpop.f32.mrb[92].mxu1  ;;  %v3406_v51 = vpop.f32.mrb[93].mxu0 }
 0x1b0   :  { %v3407_v6 = vadd.f32 %v3406_v51, %v3405_v48  ;;  %v3470_v13 = vpop.f32.mrb[93].mxu1  ;;  %v3408_v54 = vpop.f32.mrb[94].mxu0 }
 0x1b1   :  { %v3471_v57 = vadd.f32 %v3470_v13, %v3469_v56  ;;  %v3472_v19 = vpop.f32.mrb[94].mxu1  ;;  %v3409_v61 = vpop.f32.mrb[95].mxu0 }
 0x1b2   :  { %v2302_v20 = vadd.f32 %v3407_v6, %v4627_v40  ;;  %v3410_v62 = vadd.f32 %v3409_v61, %v3408_v54  ;;  %v3473_v21 = vpop.f32.mrb[95].mxu1 }
 0x1b3   :  { %v3474_v2 = vadd.f32 %v3473_v21, %v3472_v19 }
 0x1b4   :  { %v4681_v3 = vadd.f32 %v3471_v57, %v2302_v20  ;;  %v2305_v37 = vadd.f32 %v3410_v62, %v4630_v63 }
 0x1b6   :  { %v4684_v25 = vadd.f32 %v3474_v2, %v2305_v37  ;;  %v3491_v4 = vpop.f32.mrb[96].mxu0 }
 0x1b7   :  { %v3555_v16 = vpop.f32.mrb[96].mxu1  ;;  %v3492_v7 = vpop.f32.mrb[97].mxu0 }
 0x1b8   :  { %v3493_v26 = vadd.f32 %v3492_v7, %v3491_v4  ;;  %v3556_v9 = vpop.f32.mrb[97].mxu1  ;;  %v3494_v11 = vpop.f32.mrb[98].mxu0 }
 0x1b9   :  { %v3557_v14 = vadd.f32 %v3556_v9, %v3555_v16  ;;  %v3558_v31 = vpop.f32.mrb[98].mxu1  ;;  %v3495_v17 = vpop.f32.mrb[99].mxu0 }
 0x1ba   :  { %v2440_v40 = vadd.f32 %v3493_v26, %v4639_v59  ;;  %v3496_v18 = vadd.f32 %v3495_v17, %v3494_v11  ;;  %v3559_v39 = vpop.f32.mrb[99].mxu1 }
 0x1bb   :  { %v3560_v22 = vadd.f32 %v3559_v39, %v3558_v31 }
 0x1bc   :  { %v2537_v23 = vadd.f32 %v3557_v14, %v2440_v40  ;;  %v2443_v45 = vadd.f32 %v3496_v18, %v4642_v60 }
 0x1be   :  { %v2540_v63 = vadd.f32 %v3560_v22, %v2443_v45  ;;  %v3497_v24 = vpop.f32.mrb[100].mxu0  ;;  %v2704_v41 = vmul.f32 %v2537_v23, %v2537_v23 }
 0x1bf   :  { %v3561_v27 = vpop.f32.mrb[100].mxu1  ;;  %v3498_v52 = vpop.f32.mrb[101].mxu0 }
 0x1c0   :  { %v3047_v29 = vpack.c.bf16 %v2540_v63, %v2537_v23  ;;  %v2680_v36 = vadd.f32 %v2540_v63, %v2537_v23  ;;  %v2705_v32 = vmul.f32 %v2540_v63, %v2540_v63  ;;  %v3499_v50 = vadd.f32 %v3498_v52, %v3497_v24  ;;  %v3562_v34 = vpop.f32.mrb[101].mxu1  ;;  %v3500_v38 = vpop.f32.mrb[102].mxu0 }
 0x1c1   :  { %v3563_v58 = vadd.f32 %v3562_v34, %v3561_v27  ;;  %v3564_v42 = vpop.f32.mrb[102].mxu1  ;;  %v3501_v59 = vpop.f32.mrb[103].mxu0 }
 0x1c2   :  { %3048 = vst [vmem:[%s4743_s3] sm:$0xff] %v3047_v29   ;;  %v2720_v43 = vadd.f32 %v2705_v32, %v2704_v41  ;;  %v2448_v60 = vadd.f32 %v3499_v50, %v4645_v35  ;;  %v3502_v0 = vadd.f32 %v3501_v59, %v3500_v38  ;;  %v3565_v44 = vpop.f32.mrb[103].mxu1 }
 0x1c3   :  { %v3566_v1 = vadd.f32 %v3565_v44, %v3564_v42 }
 0x1c4   :  { %v2545_v46 = vadd.f32 %v3563_v58, %v2448_v60  ;;  %v2451_v12 = vadd.f32 %v3502_v0, %v4648_v15 }
 0x1c6   :  { %v2681_v48 = vadd.f32 %v2680_v36, %v2545_v46  ;;  %v2706_v56 = vmul.f32 %v2545_v46, %v2545_v46  ;;  %v2548_v51 = vadd.f32 %v3566_v1, %v2451_v12  ;;  %v3503_v6 = vpop.f32.mrb[104].mxu0 }
 0x1c7   :  { %v3567_v13 = vpop.f32.mrb[104].mxu1  ;;  %v3504_v54 = vpop.f32.mrb[105].mxu0 }
 0x1c8   :  { %v2721_v57 = vadd.f32 %v2720_v43, %v2706_v56  ;;  %v3052_v19 = vpack.c.bf16 %v2548_v51, %v2545_v46  ;;  %v2682_v61 = vadd.f32 %v2681_v48, %v2548_v51  ;;  %v2707_v20 = vmul.f32 %v2548_v51, %v2548_v51  ;;  %v3568_v62 = vpop.f32.mrb[105].mxu1  ;;  %v3506_v21 = vpop.f32.mrb[106].mxu0 }
 0x1c9   :  { %v3505_v2 = vadd.f32 %v3504_v54, %v3503_v6  ;;  %v3569_v35 = vadd.f32 %v3568_v62, %v3567_v13  ;;  %v3570_v37 = vpop.f32.mrb[106].mxu1  ;;  %v3507_v4 = vpop.f32.mrb[107].mxu0 }
 0x1ca   :  { %3084 = vst [vmem:[%s4743_s3 + $0x8] sm:$0xff] %v3052_v19   ;;  %v2722_v15 = vadd.f32 %v2721_v57, %v2707_v20  ;;  %v3508_v16 = vadd.f32 %v3507_v4, %v3506_v21  ;;  %v3571_v7 = vpop.f32.mrb[107].mxu1 }
 0x1cb   :  { %v2456_v26 = vadd.f32 %v3505_v2, %v4651_v55  ;;  %v3572_v9 = vadd.f32 %v3571_v7, %v3570_v37 }
 0x1cc   :  { %v2459_v11 = vadd.f32 %v3508_v16, %v4654_v33 }
 0x1cd   :  { %v2553_v14 = vadd.f32 %v3569_v35, %v2456_v26 }
 0x1ce   :  { %v2556_v31 = vadd.f32 %v3572_v9, %v2459_v11  ;;  %v3509_v17 = vpop.f32.mrb[108].mxu0 }
 0x1cf   :  { %v2683_v40 = vadd.f32 %v2682_v61, %v2553_v14  ;;  %v2708_v18 = vmul.f32 %v2553_v14, %v2553_v14  ;;  %v3573_v39 = vpop.f32.mrb[108].mxu1  ;;  %v3510_v22 = vpop.f32.mrb[109].mxu0 }
 0x1d0   :  { %v3057_v23 = vpack.c.bf16 %v2556_v31, %v2553_v14  ;;  %v2709_v45 = vmul.f32 %v2556_v31, %v2556_v31  ;;  %v3511_v63 = vadd.f32 %v3510_v22, %v3509_v17  ;;  %v3574_v24 = vpop.f32.mrb[109].mxu1  ;;  %v3512_v41 = vpop.f32.mrb[110].mxu0 }
 0x1d1   :  { %v2723_v27 = vadd.f32 %v2722_v15, %v2708_v18  ;;  %v2684_v52 = vadd.f32 %v2683_v40, %v2556_v31  ;;  %v3575_v29 = vadd.f32 %v3574_v24, %v3573_v39  ;;  %v3576_v36 = vpop.f32.mrb[110].mxu1  ;;  %v3513_v55 = vpop.f32.mrb[111].mxu0 }
 0x1d2   :  { %3085 = vst [vmem:[%s4743_s3 + $0x10] sm:$0xff] %v3057_v23   ;;  %v2464_v33 = vadd.f32 %v3511_v63, %v4657_v53  ;;  %v3514_v32 = vadd.f32 %v3513_v55, %v3512_v41  ;;  %v3577_v50 = vpop.f32.mrb[111].mxu1 }
 0x1d3   :  { %v2724_v34 = vadd.f32 %v2723_v27, %v2709_v45  ;;  %v3578_v38 = vadd.f32 %v3577_v50, %v3576_v36 }
 0x1d4   :  { %v2561_v58 = vadd.f32 %v3575_v29, %v2464_v33  ;;  %v2467_v42 = vadd.f32 %v3514_v32, %v4660_v10 }
 0x1d6   :  { %v2685_v59 = vadd.f32 %v2684_v52, %v2561_v58  ;;  %v2710_v43 = vmul.f32 %v2561_v58, %v2561_v58  ;;  %v2564_v60 = vadd.f32 %v3578_v38, %v2467_v42  ;;  %v3515_v0 = vpop.f32.mrb[112].mxu0 }
 0x1d7   :  { %v3579_v44 = vpop.f32.mrb[112].mxu1  ;;  %v3516_v1 = vpop.f32.mrb[113].mxu0 }
 0x1d8   :  { %v2725_v46 = vadd.f32 %v2724_v34, %v2710_v43  ;;  %v3062_v12 = vpack.c.bf16 %v2564_v60, %v2561_v58  ;;  %v2686_v48 = vadd.f32 %v2685_v59, %v2564_v60  ;;  %v2711_v56 = vmul.f32 %v2564_v60, %v2564_v60  ;;  %v3580_v51 = vpop.f32.mrb[113].mxu1  ;;  %v3518_v6 = vpop.f32.mrb[114].mxu0 }
 0x1d9   :  { %v3517_v53 = vadd.f32 %v3516_v1, %v3515_v0  ;;  %v3581_v13 = vadd.f32 %v3580_v51, %v3579_v44  ;;  %v3582_v54 = vpop.f32.mrb[114].mxu1  ;;  %v3519_v57 = vpop.f32.mrb[115].mxu0 }
 0x1da   :  { %3086 = vst [vmem:[%s4743_s3 + $0x18] sm:$0xff] %v3062_v12   ;;  %v2726_v10 = vadd.f32 %v2725_v46, %v2711_v56  ;;  %v3520_v19 = vadd.f32 %v3519_v57, %v3518_v6  ;;  %v3583_v61 = vpop.f32.mrb[115].mxu1 }
 0x1db   :  { %v2472_v20 = vadd.f32 %v3517_v53, %v4663_v8  ;;  %v3584_v62 = vadd.f32 %v3583_v61, %v3582_v54 }
 0x1dc   :  { %v2475_v21 = vadd.f32 %v3520_v19, %v4666_v30 }
 0x1dd   :  { %v2569_v2 = vadd.f32 %v3581_v13, %v2472_v20 }
 0x1de   :  { %v2572_v35 = vadd.f32 %v3584_v62, %v2475_v21  ;;  %v3521_v37 = vpop.f32.mrb[116].mxu0 }
 0x1df   :  { %v2687_v4 = vadd.f32 %v2686_v48, %v2569_v2  ;;  %v2712_v15 = vmul.f32 %v2569_v2, %v2569_v2  ;;  %v3585_v16 = vpop.f32.mrb[116].mxu1  ;;  %v3522_v7 = vpop.f32.mrb[117].mxu0 }
 0x1e0   :  { %v3067_v26 = vpack.c.bf16 %v2572_v35, %v2569_v2  ;;  %v2713_v9 = vmul.f32 %v2572_v35, %v2572_v35  ;;  %v3523_v11 = vadd.f32 %v3522_v7, %v3521_v37  ;;  %v3586_v14 = vpop.f32.mrb[117].mxu1  ;;  %v3524_v31 = vpop.f32.mrb[118].mxu0 }
 0x1e1   :  { %v2727_v17 = vadd.f32 %v2726_v10, %v2712_v15  ;;  %v2688_v40 = vadd.f32 %v2687_v4, %v2572_v35  ;;  %v3587_v18 = vadd.f32 %v3586_v14, %v3585_v16  ;;  %v3588_v39 = vpop.f32.mrb[118].mxu1  ;;  %v3525_v8 = vpop.f32.mrb[119].mxu0 }
 0x1e2   :  { %3087 = vst [vmem:[%s4743_s3 + $0x20] sm:$0xff] %v3067_v26   ;;  %v2480_v30 = vadd.f32 %v3523_v11, %v4669_v28  ;;  %v3526_v22 = vadd.f32 %v3525_v8, %v3524_v31  ;;  %v3589_v23 = vpop.f32.mrb[119].mxu1 }
 0x1e3   :  { %v2728_v45 = vadd.f32 %v2727_v17, %v2713_v9  ;;  %v3590_v63 = vadd.f32 %v3589_v23, %v3588_v39 }
 0x1e4   :  { %v2577_v24 = vadd.f32 %v3587_v18, %v2480_v30  ;;  %v2483_v41 = vadd.f32 %v3526_v22, %v4672_v49 }
 0x1e6   :  { %v2689_v27 = vadd.f32 %v2688_v40, %v2577_v24  ;;  %v2714_v52 = vmul.f32 %v2577_v24, %v2577_v24  ;;  %v2580_v29 = vadd.f32 %v3590_v63, %v2483_v41  ;;  %v3527_v36 = vpop.f32.mrb[120].mxu0  ;;  %v2679_v41 = vld [vmem:[%s4741_s4] sm:$0x1] }
 0x1e7   :  { %v3591_v55 = vpop.f32.mrb[120].mxu1  ;;  %v3528_v33 = vpop.f32.mrb[121].mxu0 }
 0x1e8   :  { %v2729_v32 = vadd.f32 %v2728_v45, %v2714_v52  ;;  %v3072_v50 = vpack.c.bf16 %v2580_v29, %v2577_v24  ;;  %v2690_v34 = vadd.f32 %v2689_v27, %v2580_v29  ;;  %v2715_v38 = vmul.f32 %v2580_v29, %v2580_v29  ;;  %v3592_v58 = vpop.f32.mrb[121].mxu1  ;;  %v3530_v42 = vpop.f32.mrb[122].mxu0  ;;  %v2703_v29 = vld [vmem:[%s4742_s5] sm:$0x1] }
 0x1e9   :  { %v3529_v28 = vadd.f32 %v3528_v33, %v3527_v36  ;;  %v3593_v59 = vadd.f32 %v3592_v58, %v3591_v55  ;;  %v3594_v43 = vpop.f32.mrb[122].mxu1  ;;  %v3531_v60 = vpop.f32.mrb[123].mxu0 }
 0x1ea   :  { %3088 = vst [vmem:[%s4743_s3 + $0x28] sm:$0xff] %v3072_v50   ;;  %v2730_v49 = vadd.f32 %v2729_v32, %v2715_v38  ;;  %v3532_v0 = vadd.f32 %v3531_v60, %v3530_v42  ;;  %v3595_v44 = vpop.f32.mrb[123].mxu1 }
 0x1eb   :  { %v2488_v1 = vadd.f32 %v3529_v28, %v4675_v47  ;;  %v3596_v46 = vadd.f32 %v3595_v44, %v3594_v43 }
 0x1ec   :  { %v2491_v12 = vadd.f32 %v3532_v0, %v4678_v5 }
 0x1ed   :  { %v2585_v48 = vadd.f32 %v3593_v59, %v2488_v1 }
 0x1ee   :  { %v2588_v56 = vadd.f32 %v3596_v46, %v2491_v12  ;;  %v3533_v51 = vpop.f32.mrb[124].mxu0 }
 0x1ef   :  { %v2691_v6 = vadd.f32 %v2690_v34, %v2585_v48  ;;  %v2716_v53 = vmul.f32 %v2585_v48, %v2585_v48  ;;  %v3597_v13 = vpop.f32.mrb[124].mxu1  ;;  %v3534_v54 = vpop.f32.mrb[125].mxu0 }
 0x1f0   :  { %v3077_v57 = vpack.c.bf16 %v2588_v56, %v2585_v48  ;;  %v2717_v10 = vmul.f32 %v2588_v56, %v2588_v56  ;;  %v3535_v19 = vadd.f32 %v3534_v54, %v3533_v51  ;;  %v3598_v61 = vpop.f32.mrb[125].mxu1  ;;  %v3536_v20 = vpop.f32.mrb[126].mxu0 }
 0x1f1   :  { %v2731_v62 = vadd.f32 %v2730_v49, %v2716_v53  ;;  %v2692_v21 = vadd.f32 %v2691_v6, %v2588_v56  ;;  %v3599_v2 = vadd.f32 %v3598_v61, %v3597_v13  ;;  %v3600_v35 = vpop.f32.mrb[126].mxu1  ;;  %v3537_v47 = vpop.f32.mrb[127].mxu0 }
 0x1f2   :  { %3089 = vst [vmem:[%s4743_s3 + $0x30] sm:$0xff] %v3077_v57   ;;  %v2496_v5 = vadd.f32 %v3535_v19, %v4681_v3  ;;  %v3538_v37 = vadd.f32 %v3537_v47, %v3536_v20  ;;  %v3601_v4 = vpop.f32.mrb[127].mxu1 }
 0x1f3   :  { %v2732_v15 = vadd.f32 %v2731_v62, %v2717_v10  ;;  %v3602_v16 = vadd.f32 %v3601_v4, %v3600_v35 }
 0x1f4   :  { %v2593_v7 = vadd.f32 %v3599_v2, %v2496_v5  ;;  %v2499_v26 = vadd.f32 %v3538_v37, %v4684_v25 }
 0x1f6   :  { %v2693_v9 = vadd.f32 %v2692_v21, %v2593_v7  ;;  %v2718_v11 = vmul.f32 %v2593_v7, %v2593_v7  ;;  %v2596_v14 = vadd.f32 %v3602_v16, %v2499_v26 }
 0x1f8   :  { %v2733_v31 = vadd.f32 %v2732_v15, %v2718_v11  ;;  %v3082_v17 = vpack.c.bf16 %v2596_v14, %v2593_v7  ;;  %v2694_v40 = vadd.f32 %v2693_v9, %v2596_v14  ;;  %v2719_v18 = vmul.f32 %v2596_v14, %v2596_v14 }
 0x1fa   :  { %3090 = vst [vmem:[%s4743_s3 + $0x38] sm:$0xff] %v3082_v17   ;;  %v2695_v39 = vrot.slane %v2694_v40, 4  ;;  %v2734_v3 = vadd.f32 %v2733_v31, %v2719_v18 }
 0x1fc   :  { %v2696_v8 = vadd.f32 %v2695_v39, %v2694_v40  ;;  %v2735_v30 = vrot.slane %v2734_v3, 4 }
 0x1fe   :  { %v2697_v22 = vrot.slane %v2696_v8, 2  ;;  %v2736_v23 = vadd.f32 %v2735_v30, %v2734_v3 }
 0x200   :  { %v2698_v45 = vadd.f32 %v2697_v22, %v2696_v8  ;;  %v2737_v63 = vrot.slane %v2736_v23, 2 }
 0x202   :  { %v2699_v25 = vrot.slane %v2698_v45, 1  ;;  %v2738_v24 = vadd.f32 %v2737_v63, %v2736_v23 }
 0x204   :  { %v2700_v27 = vadd.f32 %v2699_v25, %v2698_v45  ;;  %v2739_v52 = vrot.slane %v2738_v24, 1 }
 0x206   :  { %v2701_v36 = vadd.f32 %v2700_v27, %v2679_v41  ;;  %v2740_v55 = vadd.f32 %v2739_v52, %v2738_v24 }
 0x208   :  { %2702 = vst [vmem:[%s4741_s4] sm:$0x1] %v2701_v36  ;;  %v2741_v33 = vadd.f32 %v2740_v55, %v2703_v29 }
 0x20a   :  { %2742 = vst [vmem:[%s4742_s5] sm:$0x1] %v2741_v33 }

// kernel: discriminator_forward.14
= control target key start
LH: loop header
LB: loop body
LE: loop exit
PB: predicated region body
PF: predicated region fallthrough
CT: control target
= control target key end

     0   :  { %v43_v8 = vlaneseq  ;;  %s182_s1 = inlined_call_operand.vmem [shape: f32[1,128], index: 1, kind: input, shape index: {}]   ;;  %s183_s2 = inlined_call_operand.vmem [shape: f32[1,128], index: 2, kind: input, shape index: {}]   ;;  %s184_s0 = inlined_call_operand.vmem [shape: bf16[32,128], index: 0, kind: input, shape index: {}]   ;;  %s185_s3 = inlined_call_operand.vmem [shape: f32[1,128], index: 3, kind: input, shape index: {}]   ;;  %s186_s4 = inlined_call_operand.vmem [shape: f32[1,128], index: 4, kind: input, shape index: {}]   ;;  %s187_s5 = inlined_call_operand.vmem [shape: bf16[32,128], index: 5, kind: output, shape index: {}]  }
   0x1   :  { %v20_v0 = vld [vmem:[%s182_s1] sm:$0x1]  ;;  %v124_v12 = vld [vmem:[%s184_s0 + $0x8] sm:$0xff]  }
   0x2   :  { %v22_v1 = vld [vmem:[%s183_s2] sm:$0x1]  ;;  %v21_v2 = vmul.f32 0.03125, %v20_v0  ;;  %v44_v9 = vshrl.u32 %v43_v8, 7  ;;  %v112_v18 = vunpack.c.l.bf16 %v124_v12  ;;  %v113_v20 = vunpack.c.h.bf16 %v124_v12 }
   0x3   :  { %v23_v3 = vmul.f32 0.03125, %v22_v1  ;;  %v27_v10 = vld [vmem:[%s185_s3] sm:$0x1] }
   0x4   :  { %v24_v4 = vmul.f32 %v21_v2, %v21_v2  ;;  %v107_v11 = vld [vmem:[%s184_s0] sm:$0xff]   ;;  %v45_v13 = vsub.s32 0, %v44_v9 }
   0x5   :  { %v108_v16 = vunpack.c.l.bf16 %v107_v11  ;;  %v109_v17 = vunpack.c.h.bf16 %v107_v11  ;;  %v31_v19 = vld [vmem:[%s186_s4] sm:$0x1] }
   0x6   :  { %v25_v5 = vsub.f32 %v23_v3, %v24_v4 }
   0x8   :  { %v26_v6 = vmax.f32 %v25_v5, 0.0 }
   0xa   :  { %v28_v7 = vadd.f32 1e-05, %v26_v6 }
   0xc   :  { %126 = vrsqrt.f32 %v28_v7 }
  0x16   :  { %v127_v14 = vpop.eup %126 }
  0x17   :  { %v30_v15 = vmul.f32 %v127_v14, %v27_v10 }
  0x19   :  { %v32_v21 = vmul.f32 %v30_v15, %v21_v2  ;;  %v46_v22 = vrot.slane %v30_v15, %v45_v13 }
  0x1b   :  { %v33_v23 = vsub.f32 %v31_v19, %v32_v21  ;;  %v48_v24 = vmul.f32 %v108_v16, %v46_v22  ;;  %v49_v25 = vmul.f32 %v109_v17, %v46_v22  ;;  %v50_v26 = vmul.f32 %v112_v18, %v46_v22 }
  0x1c   :  { %v51_v27 = vmul.f32 %v113_v20, %v46_v22 }
  0x1d   :  { %v56_v28 = vrot.slane %v33_v23, %v45_v13 }
  0x1f   :  { %v58_v29 = vadd.f32 %v56_v28, %v48_v24  ;;  %v59_v30 = vadd.f32 %v56_v28, %v49_v25  ;;  %v60_v31 = vadd.f32 %v56_v28, %v50_v26  ;;  %v61_v32 = vadd.f32 %v56_v28, %v51_v27 }
  0x21   :  { %vm62_vm0 = vcmp.ge.f32.partialorder %v58_v29, 0.0  ;;  %vm63_vm1 = vcmp.ge.f32.partialorder %v59_v30, 0.0  ;;  %v66_v33 = vmul.f32 0.2, %v58_v29  ;;  %v67_v34 = vmul.f32 0.2, %v59_v30 }
  0x22   :  { %vm64_vm2 = vcmp.ge.f32.partialorder %v60_v31, 0.0  ;;  %vm65_vm3 = vcmp.ge.f32.partialorder %v61_v32, 0.0  ;;  %v68_v35 = vmul.f32 0.2, %v60_v31  ;;  %v69_v36 = vmul.f32 0.2, %v61_v32 }
  0x23   :  { %v70_v37 = vsel %vm62_vm0, %v58_v29, %v66_v33  ;;  %v71_v38 = vsel %vm63_vm1, %v59_v30, %v67_v34 }
  0x24   :  { %v117_v39 = vpack.c.bf16 %v71_v38, %v70_v37  ;;  %v72_v40 = vsel %vm64_vm2, %v60_v31, %v68_v35  ;;  %v73_v41 = vsel %vm65_vm3, %v61_v32, %v69_v36 }
  0x25   :  { %v122_v42 = vpack.c.bf16 %v73_v41, %v72_v40 }
  0x26   :  { %118 = vst [vmem:[%s187_s5] sm:$0xff] %v117_v39  }
  0x27   :  { %125 = vst [vmem:[%s187_s5 + $0x8] sm:$0xff] %v122_v42  }

// kernel: discriminator_forward.15
= control target key start
LH: loop header
LB: loop body
LE: loop exit
PB: predicated region body
PF: predicated region fallthrough
CT: control target
= control target key end

     0   :  { %s2334_s1 = inlined_call_operand.vmem [shape: bf16[2048,128], index: 1, kind: input, shape index: {}]   ;;  %s2335_s0 = inlined_call_operand.vmem [shape: bf16[8,2048], index: 0, kind: input, shape index: {}]   ;;  %s2336_s2 = inlined_call_operand.vmem [shape: f32[1,128], index: 2, kind: input, shape index: {}]   ;;  %s2337_s3 = inlined_call_operand.vmem [shape: f32[8,128], index: 3, kind: output, shape index: {}]  }
   0x1   :  { %v1756_v0 = vld [vmem:[%s2334_s1 + $0x40] sm:$0xff]   ;;  %v1760_v4 = vld [vmem:[%s2334_s1 + $0x48] sm:$0xff]   ;;  %v1764_v8 = vld [vmem:[%s2334_s1 + $0x50] sm:$0xff]  }
   0x2   :  { %v1757_v1 = vld [vmem:[%s2334_s1 + $0xc0] sm:$0xff]   ;;  %1580 = vmatprep.subr.bf16.mxu0 %v1756_v0  ;;  %v1761_v5 = vld [vmem:[%s2334_s1 + $0xc8] sm:$0xff]   ;;  %v1765_v9 = vld [vmem:[%s2334_s1 + $0xd0] sm:$0xff]  }
   0x3   :  { %v1758_v2 = vld [vmem:[%s2334_s1] sm:$0xff]   ;;  %1602 = vmatprep.subr.bf16.mxu1 %v1757_v1  ;;  %v1762_v6 = vld [vmem:[%s2334_s1 + $0x8] sm:$0xff]   ;;  %v1766_v10 = vld [vmem:[%s2334_s1 + $0x10] sm:$0xff]  }
   0x4   :  { %v1759_v3 = vld [vmem:[%s2334_s1 + $0x80] sm:$0xff]   ;;  %1581 = vmatpush3.bf16.msra.mxu0 %v1758_v2  ;;  %v1763_v7 = vld [vmem:[%s2334_s1 + $0x88] sm:$0xff]   ;;  %v1767_v11 = vld [vmem:[%s2334_s1 + $0x90] sm:$0xff]  }
   0x5   :  { %1603 = vmatpush3.bf16.msra.mxu1 %v1759_v3  ;;  %1582 = vmatprep.subr.bf16.mxu0 %v1760_v4  ;;  %v1768_v12 = vld [vmem:[%s2334_s1 + $0x58] sm:$0xff]   ;;  %v1772_v16 = vld [vmem:[%s2334_s1 + $0x60] sm:$0xff]   ;;  %v1776_v20 = vld [vmem:[%s2334_s1 + $0x68] sm:$0xff]  }
   0x6   :  { %1604 = vmatprep.subr.bf16.mxu1 %v1761_v5  ;;  %v1769_v13 = vld [vmem:[%s2334_s1 + $0xd8] sm:$0xff]   ;;  %v1773_v17 = vld [vmem:[%s2334_s1 + $0xe0] sm:$0xff]   ;;  %v1777_v21 = vld [vmem:[%s2334_s1 + $0xe8] sm:$0xff]  }
   0x7   :  { %v1770_v14 = vld [vmem:[%s2334_s1 + $0x18] sm:$0xff]   ;;  %v1774_v18 = vld [vmem:[%s2334_s1 + $0x20] sm:$0xff]   ;;  %v1778_v22 = vld [vmem:[%s2334_s1 + $0x28] sm:$0xff]  }
   0x8   :  { %1583 = vmatpush3.bf16.msra.mxu0 %v1762_v6  ;;  %v1771_v15 = vld [vmem:[%s2334_s1 + $0x98] sm:$0xff]   ;;  %v1775_v19 = vld [vmem:[%s2334_s1 + $0xa0] sm:$0xff]   ;;  %v1779_v23 = vld [vmem:[%s2334_s1 + $0xa8] sm:$0xff]  }
   0x9   :  { %1605 = vmatpush3.bf16.msra.mxu1 %v1763_v7  ;;  %1584 = vmatprep.subr.bf16.mxu0 %v1764_v8  ;;  %v1780_v24 = vld [vmem:[%s2334_s1 + $0x70] sm:$0xff]   ;;  %v1784_v28 = vld [vmem:[%s2334_s1 + $0x78] sm:$0xff]   ;;  %v15_v32 = vld [vmem:[%s2335_s0] sm:$0xff] }
   0xa   :  { %1606 = vmatprep.subr.bf16.mxu1 %v1765_v9  ;;  %v1781_v25 = vld [vmem:[%s2334_s1 + $0xf0] sm:$0xff]   ;;  %v1785_v29 = vld [vmem:[%s2334_s1 + $0xf8] sm:$0xff]   ;;  %v16_v33 = vld [vmem:[%s2335_s0 + $0x8] sm:$0xff]  ;;  %v1436_v34 = vcombine.low %v15_v32, %v15_v32  ;;  %v1437_v35 = vcombine.high %v15_v32, %v15_v32 }
   0xb   :  { %v1782_v26 = vld [vmem:[%s2334_s1 + $0x30] sm:$0xff]   ;;  %v1786_v30 = vld [vmem:[%s2334_s1 + $0x38] sm:$0xff]   ;;  %v1438_v36 = vcombine.low %v16_v33, %v16_v33  ;;  %v1439_v37 = vcombine.high %v16_v33, %v16_v33  ;;  %v1792_v38 = vld [vmem:[%s2334_s1 + $0x140] sm:$0xff]  }
   0xc   :  { %1585 = vmatpush3.bf16.msra.mxu0 %v1766_v10  ;;  %v1783_v27 = vld [vmem:[%s2334_s1 + $0xb0] sm:$0xff]   ;;  %v1787_v31 = vld [vmem:[%s2334_s1 + $0xb8] sm:$0xff]   ;;  %v1793_v39 = vld [vmem:[%s2334_s1 + $0x1c0] sm:$0xff]   ;;  %1142 = vmatprep.mubr.bf16.mxu0 %v1437_v35 }
   0xd   :  { %1607 = vmatpush3.bf16.msra.mxu1 %v1767_v11  ;;  %1586 = vmatprep.subr.bf16.mxu0 %v1768_v12  ;;  %v1794_v40 = vld [vmem:[%s2334_s1 + $0x100] sm:$0xff]   ;;  %v1796_v42 = vld [vmem:[%s2334_s1 + $0x148] sm:$0xff]   ;;  %v1800_v46 = vld [vmem:[%s2334_s1 + $0x150] sm:$0xff]  }
   0xe   :  { %1608 = vmatprep.subr.bf16.mxu1 %v1769_v13  ;;  %1182 = vmatprep.mubr.bf16.mxu1 %v1439_v37  ;;  %v1795_v41 = vld [vmem:[%s2334_s1 + $0x180] sm:$0xff]   ;;  %v1797_v43 = vld [vmem:[%s2334_s1 + $0x1c8] sm:$0xff]   ;;  %v1801_v47 = vld [vmem:[%s2334_s1 + $0x1d0] sm:$0xff]  }
   0xf   :  { %v1798_v44 = vld [vmem:[%s2334_s1 + $0x108] sm:$0xff]   ;;  %v1802_v48 = vld [vmem:[%s2334_s1 + $0x110] sm:$0xff]   ;;  %v1804_v50 = vld [vmem:[%s2334_s1 + $0x158] sm:$0xff]  }
  0x10   :  { %1587 = vmatpush3.bf16.msra.mxu0 %v1770_v14  ;;  %v1799_v45 = vld [vmem:[%s2334_s1 + $0x188] sm:$0xff]   ;;  %v1803_v49 = vld [vmem:[%s2334_s1 + $0x190] sm:$0xff]   ;;  %v1805_v51 = vld [vmem:[%s2334_s1 + $0x1d8] sm:$0xff]  }
  0x11   :  { %1609 = vmatpush3.bf16.msra.mxu1 %v1771_v15  ;;  %1588 = vmatprep.subr.bf16.mxu0 %v1772_v16  ;;  %v1806_v52 = vld [vmem:[%s2334_s1 + $0x118] sm:$0xff]   ;;  %v1808_v54 = vld [vmem:[%s2334_s1 + $0x160] sm:$0xff]   ;;  %v1812_v58 = vld [vmem:[%s2334_s1 + $0x168] sm:$0xff]  }
  0x12   :  { %1610 = vmatprep.subr.bf16.mxu1 %v1773_v17  ;;  %v1807_v53 = vld [vmem:[%s2334_s1 + $0x198] sm:$0xff]   ;;  %v1809_v55 = vld [vmem:[%s2334_s1 + $0x1e0] sm:$0xff]   ;;  %v1813_v59 = vld [vmem:[%s2334_s1 + $0x1e8] sm:$0xff]  }
  0x13   :  { %v1810_v56 = vld [vmem:[%s2334_s1 + $0x120] sm:$0xff]   ;;  %v1814_v60 = vld [vmem:[%s2334_s1 + $0x128] sm:$0xff]   ;;  %v1816_v62 = vld [vmem:[%s2334_s1 + $0x170] sm:$0xff]  }
  0x14   :  { %1589 = vmatpush3.bf16.msra.mxu0 %v1774_v18  ;;  %v1811_v57 = vld [vmem:[%s2334_s1 + $0x1a0] sm:$0xff]   ;;  %v1815_v61 = vld [vmem:[%s2334_s1 + $0x1a8] sm:$0xff]   ;;  %v1817_v63 = vld [vmem:[%s2334_s1 + $0x1f0] sm:$0xff]  }
  0x15   :  { %1611 = vmatpush3.bf16.msra.mxu1 %v1775_v19  ;;  %1590 = vmatprep.subr.bf16.mxu0 %v1776_v20  ;;  %v1818_v0 = vld [vmem:[%s2334_s1 + $0x130] sm:$0xff]   ;;  %v1820_v2 = vld [vmem:[%s2334_s1 + $0x178] sm:$0xff]   ;;  %v1828_v12 = vld [vmem:[%s2334_s1 + $0x240] sm:$0xff]  }
  0x16   :  { %1612 = vmatprep.subr.bf16.mxu1 %v1777_v21  ;;  %v1819_v1 = vld [vmem:[%s2334_s1 + $0x1b0] sm:$0xff]   ;;  %v1821_v3 = vld [vmem:[%s2334_s1 + $0x1f8] sm:$0xff]   ;;  %v1829_v13 = vld [vmem:[%s2334_s1 + $0x2c0] sm:$0xff]  }
  0x17   :  { %v1822_v4 = vld [vmem:[%s2334_s1 + $0x138] sm:$0xff]   ;;  %v17_v6 = vld [vmem:[%s2335_s0 + $0x10] sm:$0xff]  ;;  %v1830_v14 = vld [vmem:[%s2334_s1 + $0x200] sm:$0xff]  }
  0x18   :  { %1591 = vmatpush3.bf16.msra.mxu0 %v1778_v22  ;;  %v1823_v5 = vld [vmem:[%s2334_s1 + $0x1b8] sm:$0xff]   ;;  %v1440_v7 = vcombine.low %v17_v6, %v17_v6  ;;  %v1441_v8 = vcombine.high %v17_v6, %v17_v6  ;;  %v1831_v15 = vld [vmem:[%s2334_s1 + $0x280] sm:$0xff]   ;;  %v1832_v16 = vld [vmem:[%s2334_s1 + $0x248] sm:$0xff]  }
  0x19   :  { %1613 = vmatpush3.bf16.msra.mxu1 %v1779_v23  ;;  %1592 = vmatprep.subr.bf16.mxu0 %v1780_v24  ;;  %v18_v9 = vld [vmem:[%s2335_s0 + $0x18] sm:$0xff]  ;;  %v1833_v17 = vld [vmem:[%s2334_s1 + $0x2c8] sm:$0xff]   ;;  %v1836_v20 = vld [vmem:[%s2334_s1 + $0x250] sm:$0xff]  }
  0x1a   :  { %1614 = vmatprep.subr.bf16.mxu1 %v1781_v25  ;;  %v1442_v10 = vcombine.low %v18_v9, %v18_v9  ;;  %v1443_v11 = vcombine.high %v18_v9, %v18_v9  ;;  %v1834_v18 = vld [vmem:[%s2334_s1 + $0x208] sm:$0xff]   ;;  %v1837_v21 = vld [vmem:[%s2334_s1 + $0x2d0] sm:$0xff]   ;;  %v1840_v24 = vld [vmem:[%s2334_s1 + $0x258] sm:$0xff]  }
  0x1b   :  { %v1835_v19 = vld [vmem:[%s2334_s1 + $0x288] sm:$0xff]   ;;  %v1838_v22 = vld [vmem:[%s2334_s1 + $0x210] sm:$0xff]   ;;  %v1841_v25 = vld [vmem:[%s2334_s1 + $0x2d8] sm:$0xff]  }
  0x1c   :  { %1593 = vmatpush3.bf16.msra.mxu0 %v1782_v26  ;;  %v1839_v23 = vld [vmem:[%s2334_s1 + $0x290] sm:$0xff]   ;;  %v1842_v26 = vld [vmem:[%s2334_s1 + $0x218] sm:$0xff]   ;;  %v1848_v32 = vld [vmem:[%s2334_s1 + $0x268] sm:$0xff]  }
  0x1d   :  { %1615 = vmatpush3.bf16.msra.mxu1 %v1783_v27  ;;  %1594 = vmatprep.subr.bf16.mxu0 %v1784_v28  ;;  %v1843_v27 = vld [vmem:[%s2334_s1 + $0x298] sm:$0xff]   ;;  %v1844_v28 = vld [vmem:[%s2334_s1 + $0x260] sm:$0xff]   ;;  %v1849_v33 = vld [vmem:[%s2334_s1 + $0x2e8] sm:$0xff]  }
  0x1e   :  { %1616 = vmatprep.subr.bf16.mxu1 %v1785_v29  ;;  %v1845_v29 = vld [vmem:[%s2334_s1 + $0x2e0] sm:$0xff]   ;;  %v1851_v35 = vld [vmem:[%s2334_s1 + $0x2a8] sm:$0xff]   ;;  %v1853_v37 = vld [vmem:[%s2334_s1 + $0x2f0] sm:$0xff]  }
  0x1f   :  { %v1884_v6 = vld [vmem:[%s2334_s1 + $0x368] sm:$0xff]  }
  0x20   :  { %1595 = vmatpush3.bf16.msra.mxu0 %v1786_v30  ;;  %v1846_v30 = vld [vmem:[%s2334_s1 + $0x220] sm:$0xff]   ;;  %v1887_v9 = vld [vmem:[%s2334_s1 + $0x3a8] sm:$0xff]  }
  0x21   :  { %1617 = vmatpush3.bf16.msra.mxu1 %v1787_v31  ;;  %1624 = vmatprep.subr.bf16.mxu0 %v1792_v38  ;;  %v1847_v31 = vld [vmem:[%s2334_s1 + $0x2a0] sm:$0xff]   ;;  %v1854_v38 = vld [vmem:[%s2334_s1 + $0x230] sm:$0xff]  }
  0x22   :  { %1646 = vmatprep.subr.bf16.mxu1 %v1793_v39  ;;  %v1855_v39 = vld [vmem:[%s2334_s1 + $0x2b0] sm:$0xff]  }
  0x23   :  { %1143 = vmatmul.mubr.bf16.vlgmr.msra.gmra.mrb[0].mxu0 %v1436_v34  ;;  %v1850_v34 = vld [vmem:[%s2334_s1 + $0x228] sm:$0xff]  }
  0x24   :  { %1183 = vmatmul.mubr.bf16.vlgmr.msra.gmra.mrb[0].mxu1 %v1438_v36  ;;  %1625 = vmatpush3.bf16.msra.mxu0 %v1794_v40  ;;  %v1852_v36 = vld [vmem:[%s2334_s1 + $0x270] sm:$0xff]   ;;  %v1856_v40 = vld [vmem:[%s2334_s1 + $0x278] sm:$0xff]  }
  0x25   :  { %1647 = vmatpush3.bf16.msra.mxu1 %v1795_v41  ;;  %1626 = vmatprep.subr.bf16.mxu0 %v1796_v42  ;;  %v1857_v41 = vld [vmem:[%s2334_s1 + $0x2f8] sm:$0xff]  }
  0x26   :  { %1648 = vmatprep.subr.bf16.mxu1 %v1797_v43  ;;  %1222 = vmatprep.mubr.bf16.mxu0 %v1441_v8  ;;  %v1858_v42 = vld [vmem:[%s2334_s1 + $0x238] sm:$0xff]   ;;  %v1886_v8 = vld [vmem:[%s2334_s1 + $0x328] sm:$0xff]  }
  0x27   :  { %1262 = vmatprep.mubr.bf16.mxu1 %v1443_v11  ;;  %v1859_v43 = vld [vmem:[%s2334_s1 + $0x2b8] sm:$0xff]   ;;  %v1889_v11 = vld [vmem:[%s2334_s1 + $0x3f0] sm:$0xff]  }
  0x28   :  { %1627 = vmatpush3.bf16.msra.mxu0 %v1798_v44  ;;  %v19_v44 = vld [vmem:[%s2335_s0 + $0x20] sm:$0xff] }
  0x29   :  { %1649 = vmatpush3.bf16.msra.mxu1 %v1799_v45  ;;  %1628 = vmatprep.subr.bf16.mxu0 %v1800_v46  ;;  %v20_v45 = vld [vmem:[%s2335_s0 + $0x28] sm:$0xff]  ;;  %v1444_v46 = vcombine.low %v19_v44, %v19_v44 }
  0x2a   :  { %1650 = vmatprep.subr.bf16.mxu1 %v1801_v47  ;;  %v1445_v47 = vcombine.high %v19_v44, %v19_v44 }
  0x2c   :  { %1629 = vmatpush3.bf16.msra.mxu0 %v1802_v48  ;;  %v1446_v48 = vcombine.low %v20_v45, %v20_v45 }
  0x2d   :  { %1651 = vmatpush3.bf16.msra.mxu1 %v1803_v49  ;;  %1630 = vmatprep.subr.bf16.mxu0 %v1804_v50  ;;  %v1447_v49 = vcombine.high %v20_v45, %v20_v45  ;;  %v1864_v50 = vld [vmem:[%s2334_s1 + $0x340] sm:$0xff]  }
  0x2e   :  { %1652 = vmatprep.subr.bf16.mxu1 %v1805_v51  ;;  %v1865_v51 = vld [vmem:[%s2334_s1 + $0x3c0] sm:$0xff]  }
  0x30   :  { %1631 = vmatpush3.bf16.msra.mxu0 %v1806_v52  ;;  %v1866_v52 = vld [vmem:[%s2334_s1 + $0x300] sm:$0xff]  }
  0x31   :  { %1653 = vmatpush3.bf16.msra.mxu1 %v1807_v53  ;;  %1632 = vmatprep.subr.bf16.mxu0 %v1808_v54  ;;  %v1867_v53 = vld [vmem:[%s2334_s1 + $0x380] sm:$0xff]   ;;  %v1868_v54 = vld [vmem:[%s2334_s1 + $0x348] sm:$0xff]  }
  0x32   :  { %1654 = vmatprep.subr.bf16.mxu1 %v1809_v55  ;;  %v1869_v55 = vld [vmem:[%s2334_s1 + $0x3c8] sm:$0xff]  }
  0x34   :  { %1633 = vmatpush3.bf16.msra.mxu0 %v1810_v56  ;;  %v1870_v56 = vld [vmem:[%s2334_s1 + $0x308] sm:$0xff]  }
  0x35   :  { %1655 = vmatpush3.bf16.msra.mxu1 %v1811_v57  ;;  %1634 = vmatprep.subr.bf16.mxu0 %v1812_v58  ;;  %v1871_v57 = vld [vmem:[%s2334_s1 + $0x388] sm:$0xff]   ;;  %v1872_v58 = vld [vmem:[%s2334_s1 + $0x350] sm:$0xff]  }
  0x36   :  { %1656 = vmatprep.subr.bf16.mxu1 %v1813_v59  ;;  %v1873_v59 = vld [vmem:[%s2334_s1 + $0x3d0] sm:$0xff]  }
  0x38   :  { %1635 = vmatpush3.bf16.msra.mxu0 %v1814_v60  ;;  %v1874_v60 = vld [vmem:[%s2334_s1 + $0x310] sm:$0xff]  }
  0x39   :  { %1657 = vmatpush3.bf16.msra.mxu1 %v1815_v61  ;;  %1636 = vmatprep.subr.bf16.mxu0 %v1816_v62  ;;  %v1875_v61 = vld [vmem:[%s2334_s1 + $0x390] sm:$0xff]   ;;  %v1876_v62 = vld [vmem:[%s2334_s1 + $0x358] sm:$0xff]  }
  0x3a   :  { %1658 = vmatprep.subr.bf16.mxu1 %v1817_v63  ;;  %v1877_v63 = vld [vmem:[%s2334_s1 + $0x3d8] sm:$0xff]  }
  0x3c   :  { %1637 = vmatpush3.bf16.msra.mxu0 %v1818_v0  ;;  %v1878_v0 = vld [vmem:[%s2334_s1 + $0x318] sm:$0xff]  }
  0x3d   :  { %1659 = vmatpush3.bf16.msra.mxu1 %v1819_v1  ;;  %1638 = vmatprep.subr.bf16.mxu0 %v1820_v2  ;;  %v1879_v1 = vld [vmem:[%s2334_s1 + $0x398] sm:$0xff]   ;;  %v1880_v2 = vld [vmem:[%s2334_s1 + $0x360] sm:$0xff]  }
  0x3e   :  { %1660 = vmatprep.subr.bf16.mxu1 %v1821_v3  ;;  %v1881_v3 = vld [vmem:[%s2334_s1 + $0x3e0] sm:$0xff]  }
  0x40   :  { %1639 = vmatpush3.bf16.msra.mxu0 %v1822_v4  ;;  %v1882_v4 = vld [vmem:[%s2334_s1 + $0x320] sm:$0xff]  }
  0x41   :  { %1661 = vmatpush3.bf16.msra.mxu1 %v1823_v5  ;;  %1668 = vmatprep.subr.bf16.mxu0 %v1828_v12  ;;  %v1883_v5 = vld [vmem:[%s2334_s1 + $0x3a0] sm:$0xff]   ;;  %v1890_v12 = vld [vmem:[%s2334_s1 + $0x330] sm:$0xff]  }
  0x42   :  { %1690 = vmatprep.subr.bf16.mxu1 %v1829_v13  ;;  %v1891_v13 = vld [vmem:[%s2334_s1 + $0x3b0] sm:$0xff]  }
  0x43   :  { %1223 = vmatmul.mubr.bf16.vlgmr.msra.gmra.mrb[4].mxu0 %v1440_v7  ;;  %v1885_v7 = vld [vmem:[%s2334_s1 + $0x3e8] sm:$0xff]  }
  0x44   :  { %1263 = vmatmul.mubr.bf16.vlgmr.msra.gmra.mrb[4].mxu1 %v1442_v10  ;;  %1669 = vmatpush3.bf16.msra.mxu0 %v1830_v14  ;;  %v1888_v10 = vld [vmem:[%s2334_s1 + $0x370] sm:$0xff]   ;;  %v1892_v14 = vld [vmem:[%s2334_s1 + $0x378] sm:$0xff]  }
  0x45   :  { %1691 = vmatpush3.bf16.msra.mxu1 %v1831_v15  ;;  %1670 = vmatprep.subr.bf16.mxu0 %v1832_v16  ;;  %v1893_v15 = vld [vmem:[%s2334_s1 + $0x3f8] sm:$0xff]  }
  0x46   :  { %1692 = vmatprep.subr.bf16.mxu1 %v1833_v17  ;;  %1302 = vmatprep.mubr.bf16.mxu0 %v1445_v47  ;;  %v1894_v16 = vld [vmem:[%s2334_s1 + $0x338] sm:$0xff]  }
  0x47   :  { %1342 = vmatprep.mubr.bf16.mxu1 %v1447_v49  ;;  %v1895_v17 = vld [vmem:[%s2334_s1 + $0x3b8] sm:$0xff]  }
  0x48   :  { %1671 = vmatpush3.bf16.msra.mxu0 %v1834_v18  ;;  %v21_v18 = vld [vmem:[%s2335_s0 + $0x30] sm:$0xff] }
  0x49   :  { %1693 = vmatpush3.bf16.msra.mxu1 %v1835_v19  ;;  %1672 = vmatprep.subr.bf16.mxu0 %v1836_v20  ;;  %v22_v19 = vld [vmem:[%s2335_s0 + $0x38] sm:$0xff]  ;;  %v1448_v20 = vcombine.low %v21_v18, %v21_v18 }
  0x4a   :  { %1694 = vmatprep.subr.bf16.mxu1 %v1837_v21  ;;  %v1449_v21 = vcombine.high %v21_v18, %v21_v18 }
  0x4c   :  { %1673 = vmatpush3.bf16.msra.mxu0 %v1838_v22  ;;  %v1450_v22 = vcombine.low %v22_v19, %v22_v19 }
  0x4d   :  { %1695 = vmatpush3.bf16.msra.mxu1 %v1839_v23  ;;  %1674 = vmatprep.subr.bf16.mxu0 %v1840_v24  ;;  %v1451_v23 = vcombine.high %v22_v19, %v22_v19 }
  0x4e   :  { %1696 = vmatprep.subr.bf16.mxu1 %v1841_v25 }
  0x50   :  { %1675 = vmatpush3.bf16.msra.mxu0 %v1842_v26  ;;  %v1435_v26 = vld [vmem:[%s2336_s2] ss:$0 sm:$0xff] }
  0x51   :  { %1697 = vmatpush3.bf16.msra.mxu1 %v1843_v27  ;;  %1676 = vmatprep.subr.bf16.mxu0 %v1844_v28 }
  0x52   :  { %1698 = vmatprep.subr.bf16.mxu1 %v1845_v29 }
  0x54   :  { %1677 = vmatpush3.bf16.msra.mxu0 %v1846_v30 }
  0x55   :  { %1699 = vmatpush3.bf16.msra.mxu1 %v1847_v31  ;;  %1678 = vmatprep.subr.bf16.mxu0 %v1848_v32 }
  0x56   :  { %1700 = vmatprep.subr.bf16.mxu1 %v1849_v33 }
  0x58   :  { %1679 = vmatpush3.bf16.msra.mxu0 %v1850_v34 }
  0x59   :  { %1701 = vmatpush3.bf16.msra.mxu1 %v1851_v35  ;;  %1680 = vmatprep.subr.bf16.mxu0 %v1852_v36 }
  0x5a   :  { %1702 = vmatprep.subr.bf16.mxu1 %v1853_v37 }
  0x5c   :  { %1681 = vmatpush3.bf16.msra.mxu0 %v1854_v38 }
  0x5d   :  { %1703 = vmatpush3.bf16.msra.mxu1 %v1855_v39  ;;  %1682 = vmatprep.subr.bf16.mxu0 %v1856_v40 }
  0x5e   :  { %1704 = vmatprep.subr.bf16.mxu1 %v1857_v41 }
  0x60   :  { %1683 = vmatpush3.bf16.msra.mxu0 %v1858_v42 }
  0x61   :  { %1705 = vmatpush3.bf16.msra.mxu1 %v1859_v43  ;;  %1712 = vmatprep.subr.bf16.mxu0 %v1864_v50 }
  0x62   :  { %1734 = vmatprep.subr.bf16.mxu1 %v1865_v51 }
  0x63   :  { %1303 = vmatmul.mubr.bf16.vlgmr.msra.gmra.mrb[8].mxu0 %v1444_v46 }
  0x64   :  { %1343 = vmatmul.mubr.bf16.vlgmr.msra.gmra.mrb[8].mxu1 %v1446_v48  ;;  %1713 = vmatpush3.bf16.msra.mxu0 %v1866_v52 }
  0x65   :  { %1735 = vmatpush3.bf16.msra.mxu1 %v1867_v53  ;;  %1714 = vmatprep.subr.bf16.mxu0 %v1868_v54 }
  0x66   :  { %1736 = vmatprep.subr.bf16.mxu1 %v1869_v55  ;;  %1382 = vmatprep.mubr.bf16.mxu0 %v1449_v21 }
  0x67   :  { %1422 = vmatprep.mubr.bf16.mxu1 %v1451_v23 }
  0x68   :  { %1715 = vmatpush3.bf16.msra.mxu0 %v1870_v56 }
  0x69   :  { %1737 = vmatpush3.bf16.msra.mxu1 %v1871_v57  ;;  %1716 = vmatprep.subr.bf16.mxu0 %v1872_v58 }
  0x6a   :  { %1738 = vmatprep.subr.bf16.mxu1 %v1873_v59 }
  0x6c   :  { %1717 = vmatpush3.bf16.msra.mxu0 %v1874_v60 }
  0x6d   :  { %1739 = vmatpush3.bf16.msra.mxu1 %v1875_v61  ;;  %1718 = vmatprep.subr.bf16.mxu0 %v1876_v62 }
  0x6e   :  { %1740 = vmatprep.subr.bf16.mxu1 %v1877_v63 }
  0x70   :  { %1719 = vmatpush3.bf16.msra.mxu0 %v1878_v0 }
  0x71   :  { %1741 = vmatpush3.bf16.msra.mxu1 %v1879_v1  ;;  %1720 = vmatprep.subr.bf16.mxu0 %v1880_v2 }
  0x72   :  { %1742 = vmatprep.subr.bf16.mxu1 %v1881_v3 }
  0x74   :  { %1721 = vmatpush3.bf16.msra.mxu0 %v1882_v4 }
  0x75   :  { %1743 = vmatpush3.bf16.msra.mxu1 %v1883_v5  ;;  %1722 = vmatprep.subr.bf16.mxu0 %v1884_v6 }
  0x76   :  { %1744 = vmatprep.subr.bf16.mxu1 %v1885_v7 }
  0x78   :  { %1723 = vmatpush3.bf16.msra.mxu0 %v1886_v8 }
  0x79   :  { %1745 = vmatpush3.bf16.msra.mxu1 %v1887_v9  ;;  %1724 = vmatprep.subr.bf16.mxu0 %v1888_v10 }
  0x7a   :  { %1746 = vmatprep.subr.bf16.mxu1 %v1889_v11 }
  0x7c   :  { %1725 = vmatpush3.bf16.msra.mxu0 %v1890_v12 }
  0x7d   :  { %1747 = vmatpush3.bf16.msra.mxu1 %v1891_v13  ;;  %1726 = vmatprep.subr.bf16.mxu0 %v1892_v14 }
  0x7e   :  { %1748 = vmatprep.subr.bf16.mxu1 %v1893_v15 }
  0x80   :  { %1727 = vmatpush3.bf16.msra.mxu0 %v1894_v16 }
  0x81   :  { %1749 = vmatpush3.bf16.msra.mxu1 %v1895_v17 }
  0x83   :  { %1383 = vmatmul.mubr.bf16.vlgmr.msra.gmra.mrb[12].mxu0 %v1448_v20 }
  0x84   :  { %1423 = vmatmul.mubr.bf16.vlgmr.msra.gmra.mrb[12].mxu1 %v1450_v22 }
  0xf6   :  { %v1596_v24 = vpop.f32.mrb[0].mxu0 }
  0xf7   :  { %v1618_v25 = vpop.f32.mrb[0].mxu1  ;;  %v1597_v27 = vpop.f32.mrb[1].mxu0 }
  0xf8   :  { %v1619_v28 = vpop.f32.mrb[1].mxu1  ;;  %v1598_v29 = vadd.f32 %v1597_v27, %v1596_v24  ;;  %v1599_v31 = vpop.f32.mrb[2].mxu0 }
  0xf9   :  { %v1620_v30 = vadd.f32 %v1619_v28, %v1618_v25  ;;  %v1621_v32 = vpop.f32.mrb[2].mxu1  ;;  %v1600_v33 = vpop.f32.mrb[3].mxu0 }
  0xfa   :  { %v1622_v34 = vpop.f32.mrb[3].mxu1  ;;  %v1145_v35 = vadd.f32 %v1598_v29, %v1435_v26 }
  0xfc   :  { %v1185_v36 = vadd.f32 %v1620_v30, %v1145_v35 }
 0x116   :  { %v1640_v37 = vpop.f32.mrb[4].mxu0 }
 0x117   :  { %v1662_v38 = vpop.f32.mrb[4].mxu1  ;;  %v1641_v39 = vpop.f32.mrb[5].mxu0 }
 0x118   :  { %v1663_v40 = vpop.f32.mrb[5].mxu1  ;;  %v1642_v41 = vadd.f32 %v1641_v39, %v1640_v37  ;;  %v1643_v43 = vpop.f32.mrb[6].mxu0 }
 0x119   :  { %v1664_v42 = vadd.f32 %v1663_v40, %v1662_v38  ;;  %v1665_v44 = vpop.f32.mrb[6].mxu1  ;;  %v1644_v45 = vpop.f32.mrb[7].mxu0 }
 0x11a   :  { %v1666_v46 = vpop.f32.mrb[7].mxu1  ;;  %v1225_v47 = vadd.f32 %v1642_v41, %v1185_v36 }
 0x11c   :  { %v1265_v48 = vadd.f32 %v1664_v42, %v1225_v47 }
 0x136   :  { %v1684_v49 = vpop.f32.mrb[8].mxu0 }
 0x137   :  { %v1706_v50 = vpop.f32.mrb[8].mxu1  ;;  %v1685_v51 = vpop.f32.mrb[9].mxu0 }
 0x138   :  { %v1686_v52 = vadd.f32 %v1685_v51, %v1684_v49  ;;  %v1707_v53 = vpop.f32.mrb[9].mxu1  ;;  %v1687_v54 = vpop.f32.mrb[10].mxu0 }
 0x139   :  { %v1708_v55 = vadd.f32 %v1707_v53, %v1706_v50  ;;  %v1709_v56 = vpop.f32.mrb[10].mxu1  ;;  %v1688_v57 = vpop.f32.mrb[11].mxu0 }
 0x13a   :  { %v1305_v58 = vadd.f32 %v1686_v52, %v1265_v48  ;;  %v1710_v59 = vpop.f32.mrb[11].mxu1 }
 0x13c   :  { %v1345_v60 = vadd.f32 %v1708_v55, %v1305_v58 }
 0x156   :  { %v1728_v61 = vpop.f32.mrb[12].mxu0 }
 0x157   :  { %v1750_v62 = vpop.f32.mrb[12].mxu1  ;;  %v1729_v63 = vpop.f32.mrb[13].mxu0 }
 0x158   :  { %v1730_v0 = vadd.f32 %v1729_v63, %v1728_v61  ;;  %v1751_v1 = vpop.f32.mrb[13].mxu1  ;;  %v1731_v2 = vpop.f32.mrb[14].mxu0 }
 0x159   :  { %v1752_v3 = vadd.f32 %v1751_v1, %v1750_v62  ;;  %v1753_v4 = vpop.f32.mrb[14].mxu1  ;;  %v1732_v5 = vpop.f32.mrb[15].mxu0 }
 0x15a   :  { %v1385_v6 = vadd.f32 %v1730_v0, %v1345_v60  ;;  %v1754_v7 = vpop.f32.mrb[15].mxu1 }
 0x15c   :  { %v1425_v8 = vadd.f32 %v1752_v3, %v1385_v6 }
 0x15e   :  { %1430 = vst [vmem:[%s2337_s3] sm:$0xff] %v1425_v8 }

// kernel: discriminator_forward.13
= control target key start
LH: loop header
LB: loop body
LE: loop exit
PB: predicated region body
PF: predicated region fallthrough
CT: control target
= control target key end

     0   :  { %s2770_s1 = inlined_call_operand.vmem [shape: bf16[2048,128], index: 1, kind: input, shape index: {}]   ;;  %s2771_s0 = inlined_call_operand.vmem [shape: bf16[32,2048], index: 0, kind: input, shape index: {}]   ;;  %s2772_s4 = inlined_call_operand.vmem [shape: f32[1,128], index: 4, kind: output, shape index: {1}]   ;;  %s2773_s5 = inlined_call_operand.vmem [shape: f32[1,128], index: 5, kind: output, shape index: {2}]   ;;  %s2774_s2 = inlined_call_operand.vmem [shape: f32[1,128], index: 2, kind: input, shape index: {}]   ;;  %s2775_s3 = inlined_call_operand.vmem [shape: bf16[32,128], index: 3, kind: output, shape index: {0}]  }
   0x1   :  { %v2104_v0 = vld [vmem:[%s2770_s1 + $0x40] sm:$0xff]   ;;  %v2108_v4 = vld [vmem:[%s2770_s1 + $0x48] sm:$0xff]   ;;  %v2112_v8 = vld [vmem:[%s2770_s1 + $0x50] sm:$0xff]  }
   0x2   :  { %v2105_v1 = vld [vmem:[%s2770_s1 + $0xc0] sm:$0xff]   ;;  %1879 = vmatprep.subr.bf16.mxu0 %v2104_v0  ;;  %v2109_v5 = vld [vmem:[%s2770_s1 + $0xc8] sm:$0xff]   ;;  %v2113_v9 = vld [vmem:[%s2770_s1 + $0xd0] sm:$0xff]  }
   0x3   :  { %v2106_v2 = vld [vmem:[%s2770_s1] sm:$0xff]   ;;  %1907 = vmatprep.subr.bf16.mxu1 %v2105_v1  ;;  %v2110_v6 = vld [vmem:[%s2770_s1 + $0x8] sm:$0xff]   ;;  %v2114_v10 = vld [vmem:[%s2770_s1 + $0x10] sm:$0xff]  }
   0x4   :  { %v2107_v3 = vld [vmem:[%s2770_s1 + $0x80] sm:$0xff]   ;;  %1880 = vmatpush3.bf16.msra.mxu0 %v2106_v2  ;;  %v2111_v7 = vld [vmem:[%s2770_s1 + $0x88] sm:$0xff]   ;;  %v2115_v11 = vld [vmem:[%s2770_s1 + $0x90] sm:$0xff]  }
   0x5   :  { %1908 = vmatpush3.bf16.msra.mxu1 %v2107_v3  ;;  %1881 = vmatprep.subr.bf16.mxu0 %v2108_v4  ;;  %v2116_v12 = vld [vmem:[%s2770_s1 + $0x58] sm:$0xff]   ;;  %v2120_v16 = vld [vmem:[%s2770_s1 + $0x60] sm:$0xff]   ;;  %v2124_v20 = vld [vmem:[%s2770_s1 + $0x68] sm:$0xff]  }
   0x6   :  { %1909 = vmatprep.subr.bf16.mxu1 %v2109_v5  ;;  %v2117_v13 = vld [vmem:[%s2770_s1 + $0xd8] sm:$0xff]   ;;  %v2121_v17 = vld [vmem:[%s2770_s1 + $0xe0] sm:$0xff]   ;;  %v2125_v21 = vld [vmem:[%s2770_s1 + $0xe8] sm:$0xff]  }
   0x7   :  { %v2118_v14 = vld [vmem:[%s2770_s1 + $0x18] sm:$0xff]   ;;  %v2122_v18 = vld [vmem:[%s2770_s1 + $0x20] sm:$0xff]   ;;  %v2126_v22 = vld [vmem:[%s2770_s1 + $0x28] sm:$0xff]  }
   0x8   :  { %1882 = vmatpush3.bf16.msra.mxu0 %v2110_v6  ;;  %v2119_v15 = vld [vmem:[%s2770_s1 + $0x98] sm:$0xff]   ;;  %v2123_v19 = vld [vmem:[%s2770_s1 + $0xa0] sm:$0xff]   ;;  %v2127_v23 = vld [vmem:[%s2770_s1 + $0xa8] sm:$0xff]  }
   0x9   :  { %1910 = vmatpush3.bf16.msra.mxu1 %v2111_v7  ;;  %1883 = vmatprep.subr.bf16.mxu0 %v2112_v8  ;;  %v2128_v24 = vld [vmem:[%s2770_s1 + $0x70] sm:$0xff]   ;;  %v2132_v28 = vld [vmem:[%s2770_s1 + $0x78] sm:$0xff]   ;;  %v24_v32 = vld [vmem:[%s2771_s0] sm:$0xff] }
   0xa   :  { %1911 = vmatprep.subr.bf16.mxu1 %v2113_v9  ;;  %v2129_v25 = vld [vmem:[%s2770_s1 + $0xf0] sm:$0xff]   ;;  %v2133_v29 = vld [vmem:[%s2770_s1 + $0xf8] sm:$0xff]   ;;  %v32_v33 = vld [vmem:[%s2771_s0 + $0x40] sm:$0xff] }
   0xb   :  { %v2130_v26 = vld [vmem:[%s2770_s1 + $0x30] sm:$0xff]   ;;  %v2134_v30 = vld [vmem:[%s2770_s1 + $0x38] sm:$0xff]   ;;  %v25_v34 = vld [vmem:[%s2771_s0 + $0x8] sm:$0xff]  ;;  %v1700_v35 = vcombine.low %v24_v32, %v32_v33  ;;  %v1701_v36 = vcombine.high %v24_v32, %v32_v33 }
   0xc   :  { %1884 = vmatpush3.bf16.msra.mxu0 %v2114_v10  ;;  %v2131_v27 = vld [vmem:[%s2770_s1 + $0xb0] sm:$0xff]   ;;  %v2135_v31 = vld [vmem:[%s2770_s1 + $0xb8] sm:$0xff]   ;;  %v33_v37 = vld [vmem:[%s2771_s0 + $0x48] sm:$0xff] }
   0xd   :  { %1912 = vmatpush3.bf16.msra.mxu1 %v2115_v11  ;;  %1885 = vmatprep.subr.bf16.mxu0 %v2116_v12  ;;  %v1702_v38 = vcombine.low %v25_v34, %v33_v37  ;;  %v1703_v39 = vcombine.high %v25_v34, %v33_v37  ;;  %v2136_v40 = vld [vmem:[%s2770_s1 + $0x140] sm:$0xff]   ;;  %v2140_v44 = vld [vmem:[%s2770_s1 + $0x148] sm:$0xff]   ;;  %v2144_v48 = vld [vmem:[%s2770_s1 + $0x150] sm:$0xff]  }
   0xe   :  { %1913 = vmatprep.subr.bf16.mxu1 %v2117_v13  ;;  %1279 = vmatprep.mubr.bf16.mxu0 %v1701_v36  ;;  %v2137_v41 = vld [vmem:[%s2770_s1 + $0x1c0] sm:$0xff]   ;;  %v2141_v45 = vld [vmem:[%s2770_s1 + $0x1c8] sm:$0xff]   ;;  %v2145_v49 = vld [vmem:[%s2770_s1 + $0x1d0] sm:$0xff]  }
   0xf   :  { %1328 = vmatprep.mubr.bf16.mxu1 %v1703_v39  ;;  %v2138_v42 = vld [vmem:[%s2770_s1 + $0x100] sm:$0xff]   ;;  %v2142_v46 = vld [vmem:[%s2770_s1 + $0x108] sm:$0xff]   ;;  %v2146_v50 = vld [vmem:[%s2770_s1 + $0x110] sm:$0xff]  }
  0x10   :  { %1886 = vmatpush3.bf16.msra.mxu0 %v2118_v14  ;;  %v2139_v43 = vld [vmem:[%s2770_s1 + $0x180] sm:$0xff]   ;;  %v2143_v47 = vld [vmem:[%s2770_s1 + $0x188] sm:$0xff]   ;;  %v2147_v51 = vld [vmem:[%s2770_s1 + $0x190] sm:$0xff]  }
  0x11   :  { %1914 = vmatpush3.bf16.msra.mxu1 %v2119_v15  ;;  %1887 = vmatprep.subr.bf16.mxu0 %v2120_v16  ;;  %v2148_v52 = vld [vmem:[%s2770_s1 + $0x158] sm:$0xff]   ;;  %v2152_v56 = vld [vmem:[%s2770_s1 + $0x160] sm:$0xff]   ;;  %v2156_v60 = vld [vmem:[%s2770_s1 + $0x168] sm:$0xff]  }
  0x12   :  { %1915 = vmatprep.subr.bf16.mxu1 %v2121_v17  ;;  %v2149_v53 = vld [vmem:[%s2770_s1 + $0x1d8] sm:$0xff]   ;;  %v2153_v57 = vld [vmem:[%s2770_s1 + $0x1e0] sm:$0xff]   ;;  %v2157_v61 = vld [vmem:[%s2770_s1 + $0x1e8] sm:$0xff]  }
  0x13   :  { %v2150_v54 = vld [vmem:[%s2770_s1 + $0x118] sm:$0xff]   ;;  %v2154_v58 = vld [vmem:[%s2770_s1 + $0x120] sm:$0xff]   ;;  %v2158_v1 = vld [vmem:[%s2770_s1 + $0x128] sm:$0xff]  }
  0x14   :  { %1888 = vmatpush3.bf16.msra.mxu0 %v2122_v18  ;;  %v2151_v55 = vld [vmem:[%s2770_s1 + $0x198] sm:$0xff]   ;;  %v2155_v59 = vld [vmem:[%s2770_s1 + $0x1a0] sm:$0xff]   ;;  %v2159_v3 = vld [vmem:[%s2770_s1 + $0x1a8] sm:$0xff]  }
  0x15   :  { %1916 = vmatpush3.bf16.msra.mxu1 %v2123_v19  ;;  %1889 = vmatprep.subr.bf16.mxu0 %v2124_v20  ;;  %v40_v62 = vld [vmem:[%s2771_s0 + $0x80] sm:$0xff]  ;;  %v41_v4 = vld [vmem:[%s2771_s0 + $0x88] sm:$0xff]  ;;  %v2160_v8 = vld [vmem:[%s2770_s1 + $0x170] sm:$0xff]  }
  0x16   :  { %1917 = vmatprep.subr.bf16.mxu1 %v2125_v21  ;;  %v48_v63 = vld [vmem:[%s2771_s0 + $0xc0] sm:$0xff]  ;;  %v49_v5 = vld [vmem:[%s2771_s0 + $0xc8] sm:$0xff]  ;;  %v2161_v9 = vld [vmem:[%s2770_s1 + $0x1f0] sm:$0xff]  }
  0x17   :  { %v1717_v0 = vcombine.high %v40_v62, %v48_v63  ;;  %v1716_v2 = vcombine.low %v40_v62, %v48_v63  ;;  %v1719_v6 = vcombine.high %v41_v4, %v49_v5  ;;  %v1718_v7 = vcombine.low %v41_v4, %v49_v5  ;;  %v2162_v10 = vld [vmem:[%s2770_s1 + $0x130] sm:$0xff]   ;;  %v2164_v12 = vld [vmem:[%s2770_s1 + $0x178] sm:$0xff]   ;;  %v29_v4 = vld [vmem:[%s2771_s0 + $0x28] sm:$0xff] }
  0x18   :  { %1890 = vmatpush3.bf16.msra.mxu0 %v2126_v22  ;;  %v2163_v11 = vld [vmem:[%s2770_s1 + $0x1b0] sm:$0xff]   ;;  %v2165_v13 = vld [vmem:[%s2770_s1 + $0x1f8] sm:$0xff]   ;;  %v37_v5 = vld [vmem:[%s2771_s0 + $0x68] sm:$0xff] }
  0x19   :  { %1918 = vmatpush3.bf16.msra.mxu1 %v2127_v23  ;;  %1891 = vmatprep.subr.bf16.mxu0 %v2128_v24  ;;  %v2166_v14 = vld [vmem:[%s2770_s1 + $0x138] sm:$0xff]   ;;  %v26_v16 = vld [vmem:[%s2771_s0 + $0x10] sm:$0xff]  ;;  %v2168_v24 = vld [vmem:[%s2770_s1 + $0x240] sm:$0xff]  }
  0x1a   :  { %1919 = vmatprep.subr.bf16.mxu1 %v2129_v25  ;;  %v2167_v15 = vld [vmem:[%s2770_s1 + $0x1b8] sm:$0xff]   ;;  %v34_v17 = vld [vmem:[%s2771_s0 + $0x50] sm:$0xff]  ;;  %v2169_v25 = vld [vmem:[%s2770_s1 + $0x2c0] sm:$0xff]  }
  0x1b   :  { %v27_v18 = vld [vmem:[%s2771_s0 + $0x18] sm:$0xff]  ;;  %v1704_v20 = vcombine.low %v26_v16, %v34_v17  ;;  %v1705_v21 = vcombine.high %v26_v16, %v34_v17  ;;  %v42_v32 = vld [vmem:[%s2771_s0 + $0x90] sm:$0xff]  ;;  %v44_v16 = vld [vmem:[%s2771_s0 + $0xa0] sm:$0xff] }
  0x1c   :  { %1892 = vmatpush3.bf16.msra.mxu0 %v2130_v26  ;;  %v35_v19 = vld [vmem:[%s2771_s0 + $0x58] sm:$0xff]  ;;  %v2170_v26 = vld [vmem:[%s2770_s1 + $0x200] sm:$0xff]   ;;  %v50_v33 = vld [vmem:[%s2771_s0 + $0xd0] sm:$0xff] }
  0x1d   :  { %1920 = vmatpush3.bf16.msra.mxu1 %v2131_v27  ;;  %1893 = vmatprep.subr.bf16.mxu0 %v2132_v28  ;;  %v1706_v22 = vcombine.low %v27_v18, %v35_v19  ;;  %v1707_v23 = vcombine.high %v27_v18, %v35_v19  ;;  %v2171_v27 = vld [vmem:[%s2770_s1 + $0x280] sm:$0xff]   ;;  %v2172_v28 = vld [vmem:[%s2770_s1 + $0x248] sm:$0xff]   ;;  %v1721_v34 = vcombine.high %v42_v32, %v50_v33  ;;  %v2176_v36 = vld [vmem:[%s2770_s1 + $0x250] sm:$0xff]  }
  0x1e   :  { %1921 = vmatprep.subr.bf16.mxu1 %v2133_v29  ;;  %v2173_v29 = vld [vmem:[%s2770_s1 + $0x2c8] sm:$0xff]   ;;  %v2177_v37 = vld [vmem:[%s2770_s1 + $0x2d0] sm:$0xff]   ;;  %v51_v39 = vld [vmem:[%s2771_s0 + $0xd8] sm:$0xff] }
  0x1f   :  { %v2198_v62 = vld [vmem:[%s2770_s1 + $0x238] sm:$0xff]   ;;  %v52_v17 = vld [vmem:[%s2771_s0 + $0xe0] sm:$0xff] }
  0x20   :  { %1894 = vmatpush3.bf16.msra.mxu0 %v2134_v30  ;;  %v2174_v30 = vld [vmem:[%s2770_s1 + $0x208] sm:$0xff]   ;;  %v2199_v63 = vld [vmem:[%s2770_s1 + $0x2b8] sm:$0xff]   ;;  %v1725_v18 = vcombine.high %v44_v16, %v52_v17  ;;  %v1724_v19 = vcombine.low %v44_v16, %v52_v17 }
  0x21   :  { %1922 = vmatpush3.bf16.msra.mxu1 %v2135_v31  ;;  %1935 = vmatprep.subr.bf16.mxu0 %v2136_v40  ;;  %v2175_v31 = vld [vmem:[%s2770_s1 + $0x288] sm:$0xff]  }
  0x22   :  { %1963 = vmatprep.subr.bf16.mxu1 %v2137_v41  ;;  %v2178_v41 = vld [vmem:[%s2770_s1 + $0x210] sm:$0xff]  }
  0x23   :  { %1280 = vmatmul.mubr.bf16.vlgmr.msra.gmra.mrb[0].mxu0 %v1700_v35  ;;  %v1720_v35 = vcombine.low %v42_v32, %v50_v33  ;;  %v2216_v32 = vld [vmem:[%s2770_s1 + $0x360] sm:$0xff]  }
  0x24   :  { %1329 = vmatmul.mubr.bf16.vlgmr.msra.gmra.mrb[0].mxu1 %v1702_v38  ;;  %1936 = vmatpush3.bf16.msra.mxu0 %v2138_v42  ;;  %v43_v38 = vld [vmem:[%s2771_s0 + $0x98] sm:$0xff]  ;;  %v2217_v33 = vld [vmem:[%s2770_s1 + $0x3e0] sm:$0xff]  }
  0x25   :  { %1964 = vmatpush3.bf16.msra.mxu1 %v2139_v43  ;;  %1937 = vmatprep.subr.bf16.mxu0 %v2140_v44  ;;  %v1723_v40 = vcombine.high %v43_v38, %v51_v39  ;;  %v1722_v42 = vcombine.low %v43_v38, %v51_v39  ;;  %v2179_v43 = vld [vmem:[%s2770_s1 + $0x290] sm:$0xff]   ;;  %v2180_v44 = vld [vmem:[%s2770_s1 + $0x258] sm:$0xff]   ;;  %v2222_v38 = vld [vmem:[%s2770_s1 + $0x328] sm:$0xff]  }
  0x26   :  { %1965 = vmatprep.subr.bf16.mxu1 %v2141_v45  ;;  %1287 = vmatprep.mubr.bf16.mxu0 %v1717_v0  ;;  %v2181_v45 = vld [vmem:[%s2770_s1 + $0x2d8] sm:$0xff]   ;;  %v28_v0 = vld [vmem:[%s2771_s0 + $0x20] sm:$0xff]  ;;  %v2223_v39 = vld [vmem:[%s2770_s1 + $0x3a8] sm:$0xff]  }
  0x27   :  { %1336 = vmatprep.mubr.bf16.mxu1 %v1719_v6  ;;  %v1710_v6 = vcombine.low %v29_v4, %v37_v5 }
  0x28   :  { %1938 = vmatpush3.bf16.msra.mxu0 %v2142_v46  ;;  %v2182_v46 = vld [vmem:[%s2770_s1 + $0x218] sm:$0xff]  }
  0x29   :  { %1966 = vmatpush3.bf16.msra.mxu1 %v2143_v47  ;;  %1939 = vmatprep.subr.bf16.mxu0 %v2144_v48  ;;  %v2183_v47 = vld [vmem:[%s2770_s1 + $0x298] sm:$0xff]   ;;  %v2184_v48 = vld [vmem:[%s2770_s1 + $0x260] sm:$0xff]  }
  0x2a   :  { %1967 = vmatprep.subr.bf16.mxu1 %v2145_v49  ;;  %v2185_v49 = vld [vmem:[%s2770_s1 + $0x2e0] sm:$0xff]  }
  0x2b   :  { %1288 = vmatmul.mubr.bf16.gmra.mrb[4].mxu0 %v1716_v2 }
  0x2c   :  { %1940 = vmatpush3.bf16.msra.mxu0 %v2146_v50  ;;  %1337 = vmatmul.mubr.bf16.gmra.mrb[4].mxu1 %v1718_v7  ;;  %v2186_v50 = vld [vmem:[%s2770_s1 + $0x220] sm:$0xff]   ;;  %v1711_v7 = vcombine.high %v29_v4, %v37_v5 }
  0x2d   :  { %1968 = vmatpush3.bf16.msra.mxu1 %v2147_v51  ;;  %1941 = vmatprep.subr.bf16.mxu0 %v2148_v52  ;;  %v2187_v51 = vld [vmem:[%s2770_s1 + $0x2a0] sm:$0xff]   ;;  %v2188_v52 = vld [vmem:[%s2770_s1 + $0x268] sm:$0xff]  }
  0x2e   :  { %1969 = vmatprep.subr.bf16.mxu1 %v2149_v53  ;;  %1377 = vmatprep.mubr.bf16.mxu0 %v1705_v21  ;;  %v2189_v53 = vld [vmem:[%s2770_s1 + $0x2e8] sm:$0xff]   ;;  %v2209_v21 = vld [vmem:[%s2770_s1 + $0x3d0] sm:$0xff]  }
  0x2f   :  { %1426 = vmatprep.mubr.bf16.mxu1 %v1707_v23  ;;  %v53_v23 = vld [vmem:[%s2771_s0 + $0xe8] sm:$0xff] }
  0x30   :  { %1942 = vmatpush3.bf16.msra.mxu0 %v2150_v54  ;;  %v2190_v54 = vld [vmem:[%s2770_s1 + $0x228] sm:$0xff]  }
  0x31   :  { %1970 = vmatpush3.bf16.msra.mxu1 %v2151_v55  ;;  %1943 = vmatprep.subr.bf16.mxu0 %v2152_v56  ;;  %v2191_v55 = vld [vmem:[%s2770_s1 + $0x2a8] sm:$0xff]   ;;  %v2192_v56 = vld [vmem:[%s2770_s1 + $0x270] sm:$0xff]  }
  0x32   :  { %1971 = vmatprep.subr.bf16.mxu1 %v2153_v57  ;;  %v2193_v57 = vld [vmem:[%s2770_s1 + $0x2f0] sm:$0xff]  }
  0x34   :  { %1944 = vmatpush3.bf16.msra.mxu0 %v2154_v58  ;;  %v2194_v58 = vld [vmem:[%s2770_s1 + $0x230] sm:$0xff]  }
  0x35   :  { %1972 = vmatpush3.bf16.msra.mxu1 %v2155_v59  ;;  %1945 = vmatprep.subr.bf16.mxu0 %v2156_v60  ;;  %v2195_v59 = vld [vmem:[%s2770_s1 + $0x2b0] sm:$0xff]   ;;  %v2196_v60 = vld [vmem:[%s2770_s1 + $0x278] sm:$0xff]  }
  0x36   :  { %1973 = vmatprep.subr.bf16.mxu1 %v2157_v61  ;;  %v2197_v61 = vld [vmem:[%s2770_s1 + $0x2f8] sm:$0xff]  }
  0x38   :  { %1946 = vmatpush3.bf16.msra.mxu0 %v2158_v1  ;;  %v36_v1 = vld [vmem:[%s2771_s0 + $0x60] sm:$0xff] }
  0x39   :  { %1974 = vmatpush3.bf16.msra.mxu1 %v2159_v3  ;;  %1947 = vmatprep.subr.bf16.mxu0 %v2160_v8  ;;  %v1708_v2 = vcombine.low %v28_v0, %v36_v1  ;;  %v1709_v3 = vcombine.high %v28_v0, %v36_v1  ;;  %v2200_v8 = vld [vmem:[%s2770_s1 + $0x340] sm:$0xff]   ;;  %v2232_v0 = vmov 0.0  }
  0x3a   :  { %1975 = vmatprep.subr.bf16.mxu1 %v2161_v9  ;;  %v2201_v9 = vld [vmem:[%s2770_s1 + $0x3c0] sm:$0xff]   ;;  %22 = vst [vmem:[%s2772_s4] sm:$0x1] %v2232_v0  ;;  %23 = vst [vmem:[%s2773_s5] sm:$0x1] %v2232_v0 }
  0x3c   :  { %1948 = vmatpush3.bf16.msra.mxu0 %v2162_v10  ;;  %v2202_v10 = vld [vmem:[%s2770_s1 + $0x300] sm:$0xff]  }
  0x3d   :  { %1976 = vmatpush3.bf16.msra.mxu1 %v2163_v11  ;;  %1949 = vmatprep.subr.bf16.mxu0 %v2164_v12  ;;  %v2203_v11 = vld [vmem:[%s2770_s1 + $0x380] sm:$0xff]   ;;  %v2204_v12 = vld [vmem:[%s2770_s1 + $0x348] sm:$0xff]  }
  0x3e   :  { %1977 = vmatprep.subr.bf16.mxu1 %v2165_v13  ;;  %v2205_v13 = vld [vmem:[%s2770_s1 + $0x3c8] sm:$0xff]  }
  0x40   :  { %1950 = vmatpush3.bf16.msra.mxu0 %v2166_v14  ;;  %v2206_v14 = vld [vmem:[%s2770_s1 + $0x308] sm:$0xff]  }
  0x41   :  { %1978 = vmatpush3.bf16.msra.mxu1 %v2167_v15  ;;  %1991 = vmatprep.subr.bf16.mxu0 %v2168_v24  ;;  %v2207_v15 = vld [vmem:[%s2770_s1 + $0x388] sm:$0xff]  }
  0x42   :  { %2019 = vmatprep.subr.bf16.mxu1 %v2169_v25  ;;  %v2210_v25 = vld [vmem:[%s2770_s1 + $0x310] sm:$0xff]  }
  0x43   :  { %1378 = vmatmul.mubr.bf16.vlgmr.msra.gmra.mrb[8].mxu0 %v1704_v20  ;;  %v2208_v20 = vld [vmem:[%s2770_s1 + $0x350] sm:$0xff]  }
  0x44   :  { %1427 = vmatmul.mubr.bf16.vlgmr.msra.gmra.mrb[8].mxu1 %v1706_v22  ;;  %1992 = vmatpush3.bf16.msra.mxu0 %v2170_v26  ;;  %v45_v22 = vld [vmem:[%s2771_s0 + $0xa8] sm:$0xff] }
  0x45   :  { %2020 = vmatpush3.bf16.msra.mxu1 %v2171_v27  ;;  %1993 = vmatprep.subr.bf16.mxu0 %v2172_v28  ;;  %v1727_v24 = vcombine.high %v45_v22, %v53_v23  ;;  %v1726_v26 = vcombine.low %v45_v22, %v53_v23  ;;  %v2211_v27 = vld [vmem:[%s2770_s1 + $0x390] sm:$0xff]   ;;  %v2212_v28 = vld [vmem:[%s2770_s1 + $0x358] sm:$0xff]  }
  0x46   :  { %2021 = vmatprep.subr.bf16.mxu1 %v2173_v29  ;;  %1385 = vmatprep.mubr.bf16.mxu0 %v1721_v34  ;;  %v2213_v29 = vld [vmem:[%s2770_s1 + $0x3d8] sm:$0xff]   ;;  %v2218_v34 = vld [vmem:[%s2770_s1 + $0x320] sm:$0xff]  }
  0x47   :  { %1434 = vmatprep.mubr.bf16.mxu1 %v1723_v40  ;;  %v2224_v40 = vld [vmem:[%s2770_s1 + $0x370] sm:$0xff]  }
  0x48   :  { %1994 = vmatpush3.bf16.msra.mxu0 %v2174_v30  ;;  %v2214_v30 = vld [vmem:[%s2770_s1 + $0x318] sm:$0xff]  }
  0x49   :  { %2022 = vmatpush3.bf16.msra.mxu1 %v2175_v31  ;;  %1995 = vmatprep.subr.bf16.mxu0 %v2176_v36  ;;  %v2215_v31 = vld [vmem:[%s2770_s1 + $0x398] sm:$0xff]   ;;  %v2220_v36 = vld [vmem:[%s2770_s1 + $0x368] sm:$0xff]  }
  0x4a   :  { %2023 = vmatprep.subr.bf16.mxu1 %v2177_v37  ;;  %v2221_v37 = vld [vmem:[%s2770_s1 + $0x3e8] sm:$0xff]  }
  0x4b   :  { %1386 = vmatmul.mubr.bf16.gmra.mrb[12].mxu0 %v1720_v35  ;;  %v2219_v35 = vld [vmem:[%s2770_s1 + $0x3a0] sm:$0xff]  }
  0x4c   :  { %1996 = vmatpush3.bf16.msra.mxu0 %v2178_v41  ;;  %1435 = vmatmul.mubr.bf16.gmra.mrb[12].mxu1 %v1722_v42  ;;  %v2225_v41 = vld [vmem:[%s2770_s1 + $0x3f0] sm:$0xff]  }
  0x4d   :  { %2024 = vmatpush3.bf16.msra.mxu1 %v2179_v43  ;;  %1997 = vmatprep.subr.bf16.mxu0 %v2180_v44  ;;  %v2226_v42 = vld [vmem:[%s2770_s1 + $0x330] sm:$0xff]   ;;  %v2228_v44 = vld [vmem:[%s2770_s1 + $0x378] sm:$0xff]  }
  0x4e   :  { %2025 = vmatprep.subr.bf16.mxu1 %v2181_v45  ;;  %1475 = vmatprep.mubr.bf16.mxu0 %v1709_v3  ;;  %v2227_v43 = vld [vmem:[%s2770_s1 + $0x3b0] sm:$0xff]   ;;  %v2229_v45 = vld [vmem:[%s2770_s1 + $0x3f8] sm:$0xff]   ;;  %v1699_v3 = vld [vmem:[%s2774_s2] ss:$0 sm:$0xff] }
  0x4f   :  { %1524 = vmatprep.mubr.bf16.mxu1 %v1711_v7 }
  0x50   :  { %1998 = vmatpush3.bf16.msra.mxu0 %v2182_v46  ;;  %v2230_v46 = vld [vmem:[%s2770_s1 + $0x338] sm:$0xff]  }
  0x51   :  { %2026 = vmatpush3.bf16.msra.mxu1 %v2183_v47  ;;  %1999 = vmatprep.subr.bf16.mxu0 %v2184_v48  ;;  %v2231_v47 = vld [vmem:[%s2770_s1 + $0x3b8] sm:$0xff]   ;;  %v30_v48 = vld [vmem:[%s2771_s0 + $0x30] sm:$0xff] }
  0x52   :  { %2027 = vmatprep.subr.bf16.mxu1 %v2185_v49  ;;  %v38_v49 = vld [vmem:[%s2771_s0 + $0x70] sm:$0xff] }
  0x54   :  { %2000 = vmatpush3.bf16.msra.mxu0 %v2186_v50  ;;  %v31_v50 = vld [vmem:[%s2771_s0 + $0x38] sm:$0xff] }
  0x55   :  { %2028 = vmatpush3.bf16.msra.mxu1 %v2187_v51  ;;  %2001 = vmatprep.subr.bf16.mxu0 %v2188_v52  ;;  %v1712_v51 = vcombine.low %v30_v48, %v38_v49  ;;  %v1713_v52 = vcombine.high %v30_v48, %v38_v49 }
  0x56   :  { %2029 = vmatprep.subr.bf16.mxu1 %v2189_v53  ;;  %v39_v53 = vld [vmem:[%s2771_s0 + $0x78] sm:$0xff] }
  0x58   :  { %2002 = vmatpush3.bf16.msra.mxu0 %v2190_v54  ;;  %v46_v54 = vld [vmem:[%s2771_s0 + $0xb0] sm:$0xff] }
  0x59   :  { %2030 = vmatpush3.bf16.msra.mxu1 %v2191_v55  ;;  %2003 = vmatprep.subr.bf16.mxu0 %v2192_v56  ;;  %v54_v55 = vld [vmem:[%s2771_s0 + $0xf0] sm:$0xff]  ;;  %v1714_v56 = vcombine.low %v31_v50, %v39_v53 }
  0x5a   :  { %2031 = vmatprep.subr.bf16.mxu1 %v2193_v57  ;;  %v1715_v57 = vcombine.high %v31_v50, %v39_v53 }
  0x5c   :  { %2004 = vmatpush3.bf16.msra.mxu0 %v2194_v58  ;;  %v1729_v58 = vcombine.high %v46_v54, %v54_v55 }
  0x5d   :  { %2032 = vmatpush3.bf16.msra.mxu1 %v2195_v59  ;;  %2005 = vmatprep.subr.bf16.mxu0 %v2196_v60  ;;  %v47_v59 = vld [vmem:[%s2771_s0 + $0xb8] sm:$0xff] }
  0x5e   :  { %2033 = vmatprep.subr.bf16.mxu1 %v2197_v61  ;;  %v55_v60 = vld [vmem:[%s2771_s0 + $0xf8] sm:$0xff] }
  0x5f   :  { %v1731_v61 = vcombine.high %v47_v59, %v55_v60 }
  0x60   :  { %2006 = vmatpush3.bf16.msra.mxu0 %v2198_v62  ;;  %v1728_v62 = vcombine.low %v46_v54, %v54_v55 }
  0x61   :  { %2034 = vmatpush3.bf16.msra.mxu1 %v2199_v63  ;;  %2047 = vmatprep.subr.bf16.mxu0 %v2200_v8  ;;  %v1730_v63 = vcombine.low %v47_v59, %v55_v60 }
  0x62   :  { %2075 = vmatprep.subr.bf16.mxu1 %v2201_v9 }
  0x63   :  { %1476 = vmatmul.mubr.bf16.vlgmr.msra.gmra.mrb[16].mxu0 %v1708_v2 }
  0x64   :  { %1525 = vmatmul.mubr.bf16.vlgmr.msra.gmra.mrb[16].mxu1 %v1710_v6  ;;  %2048 = vmatpush3.bf16.msra.mxu0 %v2202_v10 }
  0x65   :  { %2076 = vmatpush3.bf16.msra.mxu1 %v2203_v11  ;;  %2049 = vmatprep.subr.bf16.mxu0 %v2204_v12 }
  0x66   :  { %2077 = vmatprep.subr.bf16.mxu1 %v2205_v13  ;;  %1483 = vmatprep.mubr.bf16.mxu0 %v1725_v18 }
  0x67   :  { %1532 = vmatprep.mubr.bf16.mxu1 %v1727_v24 }
  0x68   :  { %2050 = vmatpush3.bf16.msra.mxu0 %v2206_v14 }
  0x69   :  { %2078 = vmatpush3.bf16.msra.mxu1 %v2207_v15  ;;  %2051 = vmatprep.subr.bf16.mxu0 %v2208_v20 }
  0x6a   :  { %2079 = vmatprep.subr.bf16.mxu1 %v2209_v21 }
  0x6b   :  { %1484 = vmatmul.mubr.bf16.gmra.mrb[20].mxu0 %v1724_v19 }
  0x6c   :  { %2052 = vmatpush3.bf16.msra.mxu0 %v2210_v25  ;;  %1533 = vmatmul.mubr.bf16.gmra.mrb[20].mxu1 %v1726_v26 }
  0x6d   :  { %2080 = vmatpush3.bf16.msra.mxu1 %v2211_v27  ;;  %2053 = vmatprep.subr.bf16.mxu0 %v2212_v28 }
  0x6e   :  { %2081 = vmatprep.subr.bf16.mxu1 %v2213_v29  ;;  %1573 = vmatprep.mubr.bf16.mxu0 %v1713_v52 }
  0x6f   :  { %1622 = vmatprep.mubr.bf16.mxu1 %v1715_v57 }
  0x70   :  { %2054 = vmatpush3.bf16.msra.mxu0 %v2214_v30 }
  0x71   :  { %2082 = vmatpush3.bf16.msra.mxu1 %v2215_v31  ;;  %2055 = vmatprep.subr.bf16.mxu0 %v2216_v32 }
  0x72   :  { %2083 = vmatprep.subr.bf16.mxu1 %v2217_v33 }
  0x74   :  { %2056 = vmatpush3.bf16.msra.mxu0 %v2218_v34 }
  0x75   :  { %2084 = vmatpush3.bf16.msra.mxu1 %v2219_v35  ;;  %2057 = vmatprep.subr.bf16.mxu0 %v2220_v36 }
  0x76   :  { %2085 = vmatprep.subr.bf16.mxu1 %v2221_v37 }
  0x78   :  { %2058 = vmatpush3.bf16.msra.mxu0 %v2222_v38 }
  0x79   :  { %2086 = vmatpush3.bf16.msra.mxu1 %v2223_v39  ;;  %2059 = vmatprep.subr.bf16.mxu0 %v2224_v40 }
  0x7a   :  { %2087 = vmatprep.subr.bf16.mxu1 %v2225_v41 }
  0x7c   :  { %2060 = vmatpush3.bf16.msra.mxu0 %v2226_v42 }
  0x7d   :  { %2088 = vmatpush3.bf16.msra.mxu1 %v2227_v43  ;;  %2061 = vmatprep.subr.bf16.mxu0 %v2228_v44 }
  0x7e   :  { %2089 = vmatprep.subr.bf16.mxu1 %v2229_v45 }
  0x80   :  { %2062 = vmatpush3.bf16.msra.mxu0 %v2230_v46 }
  0x81   :  { %2090 = vmatpush3.bf16.msra.mxu1 %v2231_v47 }
  0x83   :  { %1574 = vmatmul.mubr.bf16.vlgmr.msra.gmra.mrb[24].mxu0 %v1712_v51 }
  0x84   :  { %1623 = vmatmul.mubr.bf16.vlgmr.msra.gmra.mrb[24].mxu1 %v1714_v56  ;;  %1581 = vmatprep.mubr.bf16.mxu0 %v1729_v58 }
  0x85   :  { %1630 = vmatprep.mubr.bf16.mxu1 %v1731_v61 }
  0x8b   :  { %1582 = vmatmul.mubr.bf16.gmra.mrb[28].mxu0 %v1728_v62 }
  0x8c   :  { %1631 = vmatmul.mubr.bf16.gmra.mrb[28].mxu1 %v1730_v63 }
  0xf6   :  { %v1895_v1 = vpop.f32.mrb[0].mxu0 }
  0xf7   :  { %v1923_v2 = vpop.f32.mrb[0].mxu1  ;;  %v1896_v4 = vpop.f32.mrb[1].mxu0 }
  0xf8   :  { %v1897_v5 = vadd.f32 %v1896_v4, %v1895_v1  ;;  %v1924_v6 = vpop.f32.mrb[1].mxu1  ;;  %v1898_v7 = vpop.f32.mrb[2].mxu0 }
  0xf9   :  { %v1925_v8 = vadd.f32 %v1924_v6, %v1923_v2  ;;  %v1926_v9 = vpop.f32.mrb[2].mxu1  ;;  %v1899_v10 = vpop.f32.mrb[3].mxu0 }
  0xfa   :  { %v1282_v11 = vadd.f32 %v1897_v5, %v1699_v3  ;;  %v1900_v12 = vadd.f32 %v1899_v10, %v1898_v7  ;;  %v1927_v13 = vpop.f32.mrb[3].mxu1 }
  0xfb   :  { %v1928_v14 = vadd.f32 %v1927_v13, %v1926_v9 }
  0xfc   :  { %v1331_v15 = vadd.f32 %v1925_v8, %v1282_v11  ;;  %v1285_v16 = vadd.f32 %v1900_v12, %v1699_v3 }
  0xfe   :  { %v1334_v17 = vadd.f32 %v1928_v14, %v1285_v16  ;;  %v1901_v18 = vpop.f32.mrb[4].mxu0 }
  0xff   :  { %v1902_v19 = vpop.f32.mrb[5].mxu0  ;;  %v1929_v22 = vpop.f32.mrb[4].mxu1 }
 0x100   :  { %v1903_v20 = vadd.f32 %v1902_v19, %v1901_v18  ;;  %v1904_v21 = vpop.f32.mrb[6].mxu0  ;;  %v1930_v26 = vpop.f32.mrb[5].mxu1 }
 0x101   :  { %v1905_v23 = vpop.f32.mrb[7].mxu0  ;;  %v1931_v27 = vadd.f32 %v1930_v26, %v1929_v22  ;;  %v1932_v28 = vpop.f32.mrb[6].mxu1 }
 0x102   :  { %v1290_v24 = vadd.f32 %v1903_v20, %v1699_v3  ;;  %v1906_v25 = vadd.f32 %v1905_v23, %v1904_v21  ;;  %v1933_v30 = vpop.f32.mrb[7].mxu1 }
 0x103   :  { %v1934_v32 = vadd.f32 %v1933_v30, %v1932_v28 }
 0x104   :  { %v1293_v29 = vadd.f32 %v1906_v25, %v1699_v3  ;;  %v1339_v31 = vadd.f32 %v1931_v27, %v1290_v24 }
 0x106   :  { %v1342_v33 = vadd.f32 %v1934_v32, %v1293_v29 }
 0x116   :  { %v1951_v34 = vpop.f32.mrb[8].mxu0 }
 0x117   :  { %v1979_v35 = vpop.f32.mrb[8].mxu1  ;;  %v1952_v36 = vpop.f32.mrb[9].mxu0 }
 0x118   :  { %v1980_v37 = vpop.f32.mrb[9].mxu1  ;;  %v1953_v38 = vadd.f32 %v1952_v36, %v1951_v34  ;;  %v1954_v40 = vpop.f32.mrb[10].mxu0 }
 0x119   :  { %v1981_v39 = vadd.f32 %v1980_v37, %v1979_v35  ;;  %v1982_v41 = vpop.f32.mrb[10].mxu1  ;;  %v1955_v42 = vpop.f32.mrb[11].mxu0 }
 0x11a   :  { %v1983_v43 = vpop.f32.mrb[11].mxu1  ;;  %v1380_v44 = vadd.f32 %v1953_v38, %v1331_v15  ;;  %v1956_v45 = vadd.f32 %v1955_v42, %v1954_v40 }
 0x11b   :  { %v1984_v46 = vadd.f32 %v1983_v43, %v1982_v41 }
 0x11c   :  { %v1429_v47 = vadd.f32 %v1981_v39, %v1380_v44  ;;  %v1383_v48 = vadd.f32 %v1956_v45, %v1334_v17 }
 0x11e   :  { %v1432_v49 = vadd.f32 %v1984_v46, %v1383_v48  ;;  %v1957_v50 = vpop.f32.mrb[12].mxu0 }
 0x11f   :  { %v1958_v51 = vpop.f32.mrb[13].mxu0  ;;  %v1985_v56 = vpop.f32.mrb[12].mxu1 }
 0x120   :  { %v1959_v52 = vadd.f32 %v1958_v51, %v1957_v50  ;;  %v1960_v53 = vpop.f32.mrb[14].mxu0  ;;  %v1986_v58 = vpop.f32.mrb[13].mxu1 }
 0x121   :  { %v1961_v54 = vpop.f32.mrb[15].mxu0  ;;  %v1987_v60 = vadd.f32 %v1986_v58, %v1985_v56  ;;  %v1988_v61 = vpop.f32.mrb[14].mxu1 }
 0x122   :  { %v1388_v55 = vadd.f32 %v1959_v52, %v1339_v31  ;;  %v1962_v57 = vadd.f32 %v1961_v54, %v1960_v53  ;;  %v1989_v62 = vpop.f32.mrb[15].mxu1 }
 0x123   :  { %v1990_v0 = vadd.f32 %v1989_v62, %v1988_v61 }
 0x124   :  { %v1391_v59 = vadd.f32 %v1962_v57, %v1342_v33  ;;  %v1437_v63 = vadd.f32 %v1987_v60, %v1388_v55 }
 0x126   :  { %v1440_v1 = vadd.f32 %v1990_v0, %v1391_v59 }
 0x136   :  { %v2007_v2 = vpop.f32.mrb[16].mxu0 }
 0x137   :  { %v2035_v3 = vpop.f32.mrb[16].mxu1  ;;  %v2008_v4 = vpop.f32.mrb[17].mxu0 }
 0x138   :  { %v2009_v5 = vadd.f32 %v2008_v4, %v2007_v2  ;;  %v2036_v6 = vpop.f32.mrb[17].mxu1  ;;  %v2010_v7 = vpop.f32.mrb[18].mxu0 }
 0x139   :  { %v2037_v8 = vadd.f32 %v2036_v6, %v2035_v3  ;;  %v2038_v9 = vpop.f32.mrb[18].mxu1  ;;  %v2011_v10 = vpop.f32.mrb[19].mxu0 }
 0x13a   :  { %v1478_v11 = vadd.f32 %v2009_v5, %v1429_v47  ;;  %v2012_v12 = vadd.f32 %v2011_v10, %v2010_v7  ;;  %v2039_v13 = vpop.f32.mrb[19].mxu1 }
 0x13b   :  { %v2040_v14 = vadd.f32 %v2039_v13, %v2038_v9 }
 0x13c   :  { %v1527_v15 = vadd.f32 %v2037_v8, %v1478_v11  ;;  %v1481_v16 = vadd.f32 %v2012_v12, %v1432_v49 }
 0x13e   :  { %v1530_v17 = vadd.f32 %v2040_v14, %v1481_v16  ;;  %v2013_v18 = vpop.f32.mrb[20].mxu0 }
 0x13f   :  { %v2014_v19 = vpop.f32.mrb[21].mxu0  ;;  %v2041_v22 = vpop.f32.mrb[20].mxu1 }
 0x140   :  { %v2015_v20 = vadd.f32 %v2014_v19, %v2013_v18  ;;  %v2016_v21 = vpop.f32.mrb[22].mxu0  ;;  %v2042_v26 = vpop.f32.mrb[21].mxu1 }
 0x141   :  { %v2017_v23 = vpop.f32.mrb[23].mxu0  ;;  %v2043_v27 = vadd.f32 %v2042_v26, %v2041_v22  ;;  %v2044_v28 = vpop.f32.mrb[22].mxu1  ;;  %v1671_v26 = vld [vmem:[%s2773_s5] sm:$0x1] }
 0x142   :  { %v1486_v24 = vadd.f32 %v2015_v20, %v1437_v63  ;;  %v2018_v25 = vadd.f32 %v2017_v23, %v2016_v21  ;;  %v2045_v30 = vpop.f32.mrb[23].mxu1  ;;  %v1659_v23 = vld [vmem:[%s2772_s4] sm:$0x1] }
 0x143   :  { %v2046_v32 = vadd.f32 %v2045_v30, %v2044_v28 }
 0x144   :  { %v1489_v29 = vadd.f32 %v2018_v25, %v1440_v1  ;;  %v1535_v31 = vadd.f32 %v2043_v27, %v1486_v24 }
 0x146   :  { %v1538_v33 = vadd.f32 %v2046_v32, %v1489_v29 }
 0x156   :  { %v2063_v34 = vpop.f32.mrb[24].mxu0 }
 0x157   :  { %v2091_v35 = vpop.f32.mrb[24].mxu1  ;;  %v2064_v36 = vpop.f32.mrb[25].mxu0 }
 0x158   :  { %v2065_v37 = vadd.f32 %v2064_v36, %v2063_v34  ;;  %v2092_v38 = vpop.f32.mrb[25].mxu1  ;;  %v2066_v39 = vpop.f32.mrb[26].mxu0 }
 0x159   :  { %v2093_v40 = vadd.f32 %v2092_v38, %v2091_v35  ;;  %v2094_v41 = vpop.f32.mrb[26].mxu1  ;;  %v2067_v42 = vpop.f32.mrb[27].mxu0 }
 0x15a   :  { %v1576_v43 = vadd.f32 %v2065_v37, %v1527_v15  ;;  %v2068_v44 = vadd.f32 %v2067_v42, %v2066_v39  ;;  %v2095_v45 = vpop.f32.mrb[27].mxu1 }
 0x15b   :  { %v2096_v46 = vadd.f32 %v2095_v45, %v2094_v41 }
 0x15c   :  { %v1625_v47 = vadd.f32 %v2093_v40, %v1576_v43  ;;  %v1579_v48 = vadd.f32 %v2068_v44, %v1530_v17 }
 0x15e   :  { %v1628_v49 = vadd.f32 %v2096_v46, %v1579_v48  ;;  %v2069_v50 = vpop.f32.mrb[28].mxu0  ;;  %v1672_v51 = vmul.f32 %v1625_v47, %v1625_v47 }
 0x15f   :  { %v2097_v52 = vpop.f32.mrb[28].mxu1  ;;  %v2070_v53 = vpop.f32.mrb[29].mxu0 }
 0x160   :  { %v1871_v54 = vpack.c.bf16 %v1628_v49, %v1625_v47  ;;  %v1660_v55 = vadd.f32 %v1628_v49, %v1625_v47  ;;  %v1673_v56 = vmul.f32 %v1628_v49, %v1628_v49  ;;  %v2071_v57 = vadd.f32 %v2070_v53, %v2069_v50  ;;  %v2098_v58 = vpop.f32.mrb[29].mxu1  ;;  %v2072_v59 = vpop.f32.mrb[30].mxu0 }
 0x161   :  { %v2099_v60 = vadd.f32 %v2098_v58, %v2097_v52  ;;  %v2100_v61 = vpop.f32.mrb[30].mxu1  ;;  %v2073_v62 = vpop.f32.mrb[31].mxu0 }
 0x162   :  { %1872 = vst [vmem:[%s2775_s3] sm:$0xff] %v1871_v54   ;;  %v1676_v63 = vadd.f32 %v1673_v56, %v1672_v51  ;;  %v1584_v0 = vadd.f32 %v2071_v57, %v1535_v31  ;;  %v2074_v1 = vadd.f32 %v2073_v62, %v2072_v59  ;;  %v2101_v2 = vpop.f32.mrb[31].mxu1 }
 0x163   :  { %v2102_v3 = vadd.f32 %v2101_v2, %v2100_v61 }
 0x164   :  { %v1633_v4 = vadd.f32 %v2099_v60, %v1584_v0  ;;  %v1587_v5 = vadd.f32 %v2074_v1, %v1538_v33 }
 0x166   :  { %v1661_v6 = vadd.f32 %v1660_v55, %v1633_v4  ;;  %v1674_v7 = vmul.f32 %v1633_v4, %v1633_v4  ;;  %v1636_v8 = vadd.f32 %v2102_v3, %v1587_v5 }
 0x168   :  { %v1677_v9 = vadd.f32 %v1676_v63, %v1674_v7  ;;  %v1876_v10 = vpack.c.bf16 %v1636_v8, %v1633_v4  ;;  %v1662_v11 = vadd.f32 %v1661_v6, %v1636_v8  ;;  %v1675_v12 = vmul.f32 %v1636_v8, %v1636_v8 }
 0x16a   :  { %1878 = vst [vmem:[%s2775_s3 + $0x8] sm:$0xff] %v1876_v10   ;;  %v1663_v13 = vrot.slane %v1662_v11, 4  ;;  %v1678_v14 = vadd.f32 %v1677_v9, %v1675_v12 }
 0x16c   :  { %v1664_v15 = vadd.f32 %v1663_v13, %v1662_v11  ;;  %v1679_v16 = vrot.slane %v1678_v14, 4 }
 0x16e   :  { %v1665_v17 = vrot.slane %v1664_v15, 2  ;;  %v1680_v18 = vadd.f32 %v1679_v16, %v1678_v14 }
 0x170   :  { %v1666_v19 = vadd.f32 %v1665_v17, %v1664_v15  ;;  %v1681_v20 = vrot.slane %v1680_v18, 2 }
 0x172   :  { %v1667_v21 = vrot.slane %v1666_v19, 1  ;;  %v1682_v22 = vadd.f32 %v1681_v20, %v1680_v18 }
 0x174   :  { %v1668_v24 = vadd.f32 %v1667_v21, %v1666_v19  ;;  %v1683_v25 = vrot.slane %v1682_v22, 1 }
 0x176   :  { %v1669_v27 = vadd.f32 %v1668_v24, %v1659_v23  ;;  %v1684_v28 = vadd.f32 %v1683_v25, %v1682_v22 }
 0x178   :  { %1670 = vst [vmem:[%s2772_s4] sm:$0x1] %v1669_v27  ;;  %v1685_v29 = vadd.f32 %v1684_v28, %v1671_v26 }
 0x17a   :  { %1686 = vst [vmem:[%s2773_s5] sm:$0x1] %v1685_v29 }

</bundles_post_ra>
